<compile_context>
chip_gen: v7x
topology: tpu7x:2x2x1
jax: 0.10.0
libtpu: 0.0.40
codegen_flags: <defaults>
</compile_context>

<pallas_src>
import jax
import jax.numpy as jnp
from jax.experimental import pallas as pl
from jax.experimental.pallas import tpu as pltpu

BN_EPS = 1e-5
_VMEM = pl.BlockSpec(memory_space=pltpu.MemorySpace.VMEM)
# Explicit scoped-VMEM budget with headroom: largest double-buffered working
# set (conv1, TM=2048, bf16, K lane-padded to 128) is ~6 MB, so 32 MiB is safe
# on v7x (64 MiB physical) and v5e/v6e alike.
_VMEM_LIMIT = 32 * 1024 * 1024


def _round_up(x, m):
    return (x + m - 1) // m * m


# ---------------------------------------------------------------------------
# Pallas kernels
# ---------------------------------------------------------------------------
def _conv_pool_kernel(p_ref, w_ref, b_ref, o_ref):
    """Fused conv(as matmul) + folded-BN bias + ReLU + 2x2 max-pool.

    Grid: (group, row_tile), both "parallel".  The NCH pool-child axis lives
    inside the block, so one (NCH*TM, K) x (K, Cout) MXU matmul covers all
    children of every pooled output row; the pool is a VPU max over NCH slabs.
    p block: (1, NCH, TM, K) bf16; w: (1, K, Cout) bf16; b: (1, 1, Cout) f32;
    o: (1, TM, Cout).  Layers without pooling use NCH == 1 (max is a no-op).
    """
    _, nch, tm, k = p_ref.shape
    cout = w_ref.shape[-1]
    x = p_ref[0].reshape(nch * tm, k)                  # leading-dim collapse: free
    y = jnp.dot(x, w_ref[0], preferred_element_type=jnp.float32)
    y = jnp.maximum(y + b_ref[0], 0.0)                 # f32 bias + ReLU epilogue
    y = jnp.max(y.reshape(nch, tm, cout), axis=0)      # relu-before-max == max-then-relu
    o_ref[0] = y.astype(o_ref.dtype)


def _gap_kernel(x_ref, o_ref):
    """AdaptiveAvgPool2d((1,1)) + Flatten for a batch of rows: (NB,S,C)->(NB,C)."""
    o_ref[...] = jnp.mean(x_ref[...].astype(jnp.float32), axis=1).astype(o_ref.dtype)


def _fc_head_kernel(x_ref, w1_ref, b1_ref, w2_ref, b2_ref, w3_ref, b3_ref, o_ref):
    """Fused Linear->ReLU->Linear->ReLU->Linear (Dropout = identity, eval)."""
    h = jnp.dot(x_ref[...], w1_ref[...], preferred_element_type=jnp.float32)
    h = jnp.maximum(h + b1_ref[...], 0.0)
    h = jnp.dot(h, w2_ref[...], preferred_element_type=jnp.float32)
    h = jnp.maximum(h + b2_ref[...], 0.0)
    o = jnp.dot(h, w3_ref[...], preferred_element_type=jnp.float32) + b3_ref[...]
    o_ref[...] = o.astype(o_ref.dtype)


# ---------------------------------------------------------------------------
# Pallas wrappers
# ---------------------------------------------------------------------------
def conv_block(patches, w, b, *, tile, out_dtype=jnp.bfloat16):
    """patches: (G, NCH, P, K) bf16; w: (G, K, Cout) bf16; b: (G, 1, Cout) f32
    -> (G, P, Cout) out_dtype."""
    G, NCH, P, K = patches.shape
    Cout = w.shape[-1]
    tp = min(tile, _round_up(P, 16))          # 16: bf16 sublane packing
    Pp = _round_up(P, tp)
    if Pp != P:
        patches = jnp.pad(patches, ((0, 0), (0, 0), (0, Pp - P), (0, 0)))

    out = pl.pallas_call(
        _conv_pool_kernel,
        out_shape=jax.ShapeDtypeStruct((G, Pp, Cout), out_dtype),
        grid_spec=pltpu.PrefetchScalarGridSpec(
            num_scalar_prefetch=0,
            grid=(G, Pp // tp),
            in_specs=[
                pl.BlockSpec((1, NCH, tp, K), lambda g, i: (g, 0, i, 0)),
                pl.BlockSpec((1, K, Cout), lambda g, i: (g, 0, 0)),
                pl.BlockSpec((1, 1, Cout), lambda g, i: (g, 0, 0)),
            ],
            out_specs=pl.BlockSpec((1, tp, Cout), lambda g, i: (g, i, 0)),
        ),
        compiler_params=pltpu.CompilerParams(
            dimension_semantics=("parallel", "parallel"),
            vmem_limit_bytes=_VMEM_LIMIT),
    )(patches, w, b)
    return out[:, :P, :] if Pp != P else out


def global_avg_pool(x, *, rows=8):
    """x: (N, S, C) -> (N, C); `rows` (branch,batch) rows reduced per grid step."""
    N, S, C = x.shape
    Np = _round_up(N, rows)
    if Np != N:
        x = jnp.pad(x, ((0, Np - N), (0, 0), (0, 0)))
    out = pl.pallas_call(
        _gap_kernel,
        out_shape=jax.ShapeDtypeStruct((Np, C), jnp.float32),
        grid_spec=pltpu.PrefetchScalarGridSpec(
            num_scalar_prefetch=0,
            grid=(Np // rows,),
            in_specs=[pl.BlockSpec((rows, S, C), lambda i: (i, 0, 0))],
            out_specs=pl.BlockSpec((rows, C), lambda i: (i, 0)),
        ),
        compiler_params=pltpu.CompilerParams(
            dimension_semantics=("parallel",),
            vmem_limit_bytes=_VMEM_LIMIT),
    )(x)
    return out[:N]


def fc_head(x, fc):
    (w1, b1), (w2, b2), (w3, b3) = fc
    B = x.shape[0]
    return pl.pallas_call(
        _fc_head_kernel,
        out_shape=jax.ShapeDtypeStruct((B, w3.shape[1]), jnp.float32),
        in_specs=[_VMEM] * 7,
        out_specs=_VMEM,
        compiler_params=pltpu.CompilerParams(vmem_limit_bytes=_VMEM_LIMIT),
    )(x, w1, b1, w2, b2, w3, b3)


# ---------------------------------------------------------------------------
# im2col glue (matches nn.Conv2d(k=3, s=2, p=1) + optional MaxPool2d(2,2))
# ---------------------------------------------------------------------------
def _build_patches(x, k, stride, pad, pool):
    """Returns (NCH, rows, k*k*Cin) patches in x.dtype.

    pool=True : rows are POOLED output positions (b, ph, pw), NCH=4 children
                of each 2x2 pool window (conv output positions).
    pool=False: rows are conv output positions (b, oh, ow), NCH=1.
    """
    B, H, W, C = x.shape
    xp = jnp.pad(x, ((0, 0), (pad, pad), (pad, pad), (0, 0)))
    OH = (H + 2 * pad - k) // stride + 1
    OW = (W + 2 * pad - k) // stride + 1
    taps = [xp[:, di:di + stride * OH:stride, dj:dj + stride * OW:stride, :]
            for di in range(k) for dj in range(k)]
    pat = jnp.stack(taps, axis=-2).reshape(B, OH, OW, k * k * C)
    if not pool:
        return pat.reshape(1, B * OH * OW, k * k * C), OH, OW
    PH, PW = OH // 2, OW // 2                       # MaxPool2d floors odd dims
    pat = pat[:, :2 * PH, :2 * PW, :].reshape(B, PH, 2, PW, 2, k * k * C)
    pat = pat.transpose(2, 4, 0, 1, 3, 5)           # (rp, wp, B, PH, PW, K)
    return pat.reshape(4, B * PH * PW, k * k * C), PH, PW


# ---------------------------------------------------------------------------
# Parameters
# ---------------------------------------------------------------------------
def init_conv(key, cin, cout, k=3):
    kw, kb = jax.random.split(key)
    w = jax.random.normal(kw, (k, k, cin, cout), jnp.float32) / jnp.sqrt(
        float(k * k * cin))
    b = 0.01 * jax.random.normal(kb, (cout,), jnp.float32)
    return dict(w=w, b=b,
                gamma=jnp.ones((cout,), jnp.float32),
                beta=jnp.zeros((cout,), jnp.float32),
                mean=jnp.zeros((cout,), jnp.float32),
                var=jnp.ones((cout,), jnp.float32))


def init_linear(key, fin, fout):
    kw, kb = jax.random.split(key)
    w = jax.random.normal(kw, (fin, fout), jnp.float32) / jnp.sqrt(float(fin))
    b = 0.01 * jax.random.normal(kb, (fout,), jnp.float32)
    return dict(w=w, b=b)


def init_params(key, n_classes):
    keys = jax.random.split(key, 6)
    params = {}
    for bi, (name, cin) in enumerate([("corrected", 1), ("edge", 1),
                                      ("threshold", 4)]):
        k0, k1, k2 = jax.random.split(keys[bi], 3)
        params[name] = [init_conv(k0, cin, 16),
                        init_conv(k1, 16, 32),
                        init_conv(k2, 32, 64)]
    params["fc"] = [init_linear(keys[3], 64 * 3, 128),
                    init_linear(keys[4], 128, 64),
                    init_linear(keys[5], 64, n_classes)]
    return params


def _fold_conv(p):
    """Fold eval-mode BatchNorm into conv weight/bias; weight -> bf16 matmul form.

    NOTE: if loading a real PyTorch state_dict, Conv2d weights are
    (cout, cin, kh, kw) and Linear weights are (out, in) -> permute/transpose
    into (kh, kw, cin, cout) / (fin, fout) first.
    """
    scale = p["gamma"] / jnp.sqrt(p["var"] + BN_EPS)
    kh, kw, cin, cout = p["w"].shape
    w = (p["w"] * scale).reshape(kh * kw * cin, cout).astype(jnp.bfloat16)
    b = ((p["b"] - p["mean"]) * scale + p["beta"]).reshape(1, cout)  # f32 epilogue
    return w, b


def fold_params(params):
    order = ("corrected", "edge", "threshold")
    folded = {}
    # conv1: corrected + edge share shapes (Cin=1) -> batched into one group axis
    w, b = zip(*[_fold_conv(params[n][0]) for n in ("corrected", "edge")])
    folded["conv1_ce"] = (jnp.stack(w), jnp.stack(b))
    w, b = _fold_conv(params["threshold"][0])
    folded["conv1_th"] = (w[None], b[None])
    for li, key in ((1, "conv2"), (2, "conv3")):
        w, b = zip(*[_fold_conv(params[n][li]) for n in order])
        folded[key] = (jnp.stack(w), jnp.stack(b))
    folded["fc"] = [(p["w"], p["b"].reshape(1, -1)) for p in params["fc"]]
    return folded


# ---------------------------------------------------------------------------
# Forward pass
# ---------------------------------------------------------------------------
def multibranch_forward(fp, corrected, edge, thresholds):
    # NCHW (PyTorch) -> NHWC (kernel layout), bf16 activations.
    to_nhwc = lambda t: jnp.transpose(t, (0, 2, 3, 1)).astype(jnp.bfloat16)
    corrected, edge, thresholds = map(to_nhwc, (corrected, edge, thresholds))
    B = corrected.shape[0]

    # layer 1: Conv(s=2)+BN+ReLU (+Dropout2d=id) + MaxPool(2,2) -- fused
    pc, ph1, pw1 = _build_patches(corrected, 3, 2, 1, pool=True)
    pe, _, _ = _build_patches(edge, 3, 2, 1, pool=True)
    pt, _, _ = _build_patches(thresholds, 3, 2, 1, pool=True)
    ce1 = conv_block(jnp.stack([pc, pe]), *fp["conv1_ce"], tile=2048)  # (2, P1, 16)
    th1 = conv_block(pt[None], *fp["conv1_th"], tile=2048)             # (1, P1, 16)
    acts = [ce1[0], ce1[1], th1[0]]
    acts = [a.reshape(B, ph1, pw1, 16) for a in acts]

    # layer 2: identical shapes across the 3 branches -> one 3-group kernel
    p2 = [_build_patches(a, 3, 2, 1, pool=True) for a in acts]
    ph2, pw2 = p2[0][1], p2[0][2]
    x2 = conv_block(jnp.stack([p[0] for p in p2]), *fp["conv2"], tile=1024)
    acts = [x2[g].reshape(B, ph2, pw2, 32) for g in range(3)]

    # layer 3: Conv+BN+ReLU (no pool); emit f32 for avg-pool / FC head
    p3 = [_build_patches(a, 3, 2, 1, pool=False) for a in acts]
    oh3, ow3 = p3[0][1], p3[0][2]
    x3 = conv_block(jnp.stack([p[0] for p in p3]), *fp["conv3"], tile=512,
                    out_dtype=jnp.float32)                             # (3, P3, 64)

    feats = global_avg_pool(x3.reshape(3 * B, oh3 * ow3, 64))          # (3B, 64)
    feats = feats.reshape(3, B, 64).transpose(1, 0, 2).reshape(B, 3 * 64)

    # FC head (Dropout = identity in eval), fused into a single kernel
    return fc_head(feats, fp["fc"])


if __name__ == "__main__":
    B, H, W = 2, 64, 64          # small stand-in for the 480x640 inputs
    n_classes = 5

    key = jax.random.PRNGKey(0)
    kp, kc, ke, kt = jax.random.split(key, 4)
    params = init_params(kp, n_classes)
    fparams = fold_params(params)   # fold BN + reshape/cast weights once, outside hot path

    corrected = jax.random.normal(kc, (B, 1, H, W), jnp.float32)
    edge = jax.random.normal(ke, (B, 1, H, W), jnp.float32)
    thresholds = jax.random.normal(kt, (B, 4, H, W), jnp.float32)

    out = jax.jit(multibranch_forward)(fparams, corrected, edge, thresholds)
    out = jax.block_until_ready(out)
    assert out.shape == (B, n_classes), out.shape
    print("KERNEL_OK")
</pallas_src>

<mosaic_0001>
module attributes {stable_mosaic.version = 11 : i64} {
  func.func @_conv_pool_kernel(%arg0: i32, %arg1: i32, %arg2: memref<1x4x512x36xbf16, #tpu.memory_space<vmem>>, %arg3: memref<1x36x16xbf16, #tpu.memory_space<vmem>>, %arg4: memref<1x1x16xf32, #tpu.memory_space<vmem>>, %arg5: memref<1x512x16xbf16, #tpu.memory_space<vmem>>) attributes {dimension_semantics = [#tpu.dimension_semantics<parallel>, #tpu.dimension_semantics<parallel>], iteration_bounds = array<i64: 1, 1>, scalar_prefetch = 0 : i64, scratch_operands = 0 : i64, tpu.core_type = #tpu.core_type<tc>, window_params = [{transform_indices = @transform_0, window_bounds = array<i64: 1, 4, 512, 36>}, {transform_indices = @transform_1, window_bounds = array<i64: 1, 36, 16>}, {transform_indices = @transform_2, window_bounds = array<i64: 1, 1, 16>}, {transform_indices = @transform_3, window_bounds = array<i64: 1, 512, 16>}]} {
    %c0 = arith.constant 0 : index
    %c0_0 = arith.constant 0 : index
    %c0_1 = arith.constant 0 : index
    %c0_2 = arith.constant 0 : index
    %0 = vector.load %arg2[%c0, %c0_0, %c0_1, %c0_2] : memref<1x4x512x36xbf16, #tpu.memory_space<vmem>>, vector<1x4x512x36xbf16>
    %1 = vector.shape_cast %0 : vector<1x4x512x36xbf16> to vector<4x512x36xbf16>
    %2 = vector.shape_cast %1 : vector<4x512x36xbf16> to vector<2048x36xbf16>
    %c0_3 = arith.constant 0 : index
    %c0_4 = arith.constant 0 : index
    %c0_5 = arith.constant 0 : index
    %3 = vector.load %arg3[%c0_3, %c0_4, %c0_5] : memref<1x36x16xbf16, #tpu.memory_space<vmem>>, vector<1x36x16xbf16>
    %4 = vector.shape_cast %3 : vector<1x36x16xbf16> to vector<36x16xbf16>
    %cst = arith.constant dense<0.000000e+00> : vector<2048x16xf32>
    %5 = tpu.matmul %2, %4, %cst {dimension_numbers = #tpu.dot_dimension_numbers<[1], [0], [0], [1], [0, 0, 1, 1], [], []>} : vector<2048x36xbf16>, vector<36x16xbf16>, vector<2048x16xf32> -> vector<2048x16xf32>
    %c0_6 = arith.constant 0 : index
    %c0_7 = arith.constant 0 : index
    %c0_8 = arith.constant 0 : index
    %6 = vector.load %arg4[%c0_6, %c0_7, %c0_8] : memref<1x1x16xf32, #tpu.memory_space<vmem>>, vector<1x1x16xf32>
    %7 = vector.shape_cast %6 : vector<1x1x16xf32> to vector<1x16xf32>
    %8 = vector.broadcast %7 : vector<1x16xf32> to vector<2048x16xf32>
    %9 = arith.addf %5, %8 : vector<2048x16xf32>
    %cst_9 = arith.constant 0.000000e+00 : f32
    %10 = vector.broadcast %cst_9 : f32 to vector<2048x16xf32>
    %11 = arith.maximumf %9, %10 : vector<2048x16xf32>
    %12 = vector.shape_cast %11 : vector<2048x16xf32> to vector<4x512x16xf32>
    %cst_10 = arith.constant dense<0xFF800000> : vector<512x16xf32>
    %13 = vector.multi_reduction <maximumf>, %12, %cst_10 [0] : vector<4x512x16xf32> to vector<512x16xf32>
    %14 = arith.truncf %13 : vector<512x16xf32> to vector<512x16xbf16>
    %c0_11 = arith.constant 0 : index
    %c0_12 = arith.constant 0 : index
    %c0_13 = arith.constant 0 : index
    %15 = vector.load %arg5[%c0_11, %c0_12, %c0_13] : memref<1x512x16xbf16, #tpu.memory_space<vmem>>, vector<1x512x16xbf16>
    %16 = vector.shape_cast %15 : vector<1x512x16xbf16> to vector<512x16xbf16>
    %17 = vector.shape_cast %14 : vector<512x16xbf16> to vector<1x512x16xbf16>
    tpu.vector_store %arg5[%c0_11, %c0_12, %c0_13], %17 {strides = array<i32>} : memref<1x512x16xbf16, #tpu.memory_space<vmem>>, vector<1x512x16xbf16>,
    return
  }
  func.func @transform_0(%arg0: i32, %arg1: i32) -> (i32, i32, i32, i32) {
    %c0_i32 = arith.constant 0 : i32
    %c0_i32_0 = arith.constant 0 : i32
    %c0_i32_1 = arith.constant 0 : i32
    return %arg0, %c0_i32, %arg1, %c0_i32_0 : i32, i32, i32, i32
  }
  func.func @transform_1(%arg0: i32, %arg1: i32) -> (i32, i32, i32) {
    %c0_i32 = arith.constant 0 : i32
    %c0_i32_0 = arith.constant 0 : i32
    %c0_i32_1 = arith.constant 0 : i32
    return %arg0, %c0_i32, %c0_i32_0 : i32, i32, i32
  }
  func.func @transform_2(%arg0: i32, %arg1: i32) -> (i32, i32, i32) {
    %c0_i32 = arith.constant 0 : i32
    %c0_i32_0 = arith.constant 0 : i32
    %c0_i32_1 = arith.constant 0 : i32
    return %arg0, %c0_i32, %c0_i32_0 : i32, i32, i32
  }
  func.func @transform_3(%arg0: i32, %arg1: i32) -> (i32, i32, i32) {
    %c0_i32 = arith.constant 0 : i32
    %c0_i32_0 = arith.constant 0 : i32
    return %arg0, %arg1, %c0_i32 : i32, i32, i32
  }
}

module attributes {stable_mosaic.version = 11 : i64} {
  func.func @_conv_pool_kernel(%arg0: i32, %arg1: i32, %arg2: memref<1x4x512x9xbf16, #tpu.memory_space<vmem>>, %arg3: memref<1x9x16xbf16, #tpu.memory_space<vmem>>, %arg4: memref<1x1x16xf32, #tpu.memory_space<vmem>>, %arg5: memref<1x512x16xbf16, #tpu.memory_space<vmem>>) attributes {dimension_semantics = [#tpu.dimension_semantics<parallel>, #tpu.dimension_semantics<parallel>], iteration_bounds = array<i64: 2, 1>, scalar_prefetch = 0 : i64, scratch_operands = 0 : i64, tpu.core_type = #tpu.core_type<tc>, window_params = [{transform_indices = @transform_0, window_bounds = array<i64: 1, 4, 512, 9>}, {transform_indices = @transform_1, window_bounds = array<i64: 1, 9, 16>}, {transform_indices = @transform_2, window_bounds = array<i64: 1, 1, 16>}, {transform_indices = @transform_3, window_bounds = array<i64: 1, 512, 16>}]} {
    %c0 = arith.constant 0 : index
    %c0_0 = arith.constant 0 : index
    %c0_1 = arith.constant 0 : index
    %c0_2 = arith.constant 0 : index
    %0 = vector.load %arg2[%c0, %c0_0, %c0_1, %c0_2] : memref<1x4x512x9xbf16, #tpu.memory_space<vmem>>, vector<1x4x512x9xbf16>
    %1 = vector.shape_cast %0 : vector<1x4x512x9xbf16> to vector<4x512x9xbf16>
    %2 = vector.shape_cast %1 : vector<4x512x9xbf16> to vector<2048x9xbf16>
    %c0_3 = arith.constant 0 : index
    %c0_4 = arith.constant 0 : index
    %c0_5 = arith.constant 0 : index
    %3 = vector.load %arg3[%c0_3, %c0_4, %c0_5] : memref<1x9x16xbf16, #tpu.memory_space<vmem>>, vector<1x9x16xbf16>
    %4 = vector.shape_cast %3 : vector<1x9x16xbf16> to vector<9x16xbf16>
    %cst = arith.constant dense<0.000000e+00> : vector<2048x16xf32>
    %5 = tpu.matmul %2, %4, %cst {dimension_numbers = #tpu.dot_dimension_numbers<[1], [0], [0], [1], [0, 0, 1, 1], [], []>} : vector<2048x9xbf16>, vector<9x16xbf16>, vector<2048x16xf32> -> vector<2048x16xf32>
    %c0_6 = arith.constant 0 : index
    %c0_7 = arith.constant 0 : index
    %c0_8 = arith.constant 0 : index
    %6 = vector.load %arg4[%c0_6, %c0_7, %c0_8] : memref<1x1x16xf32, #tpu.memory_space<vmem>>, vector<1x1x16xf32>
    %7 = vector.shape_cast %6 : vector<1x1x16xf32> to vector<1x16xf32>
    %8 = vector.broadcast %7 : vector<1x16xf32> to vector<2048x16xf32>
    %9 = arith.addf %5, %8 : vector<2048x16xf32>
    %cst_9 = arith.constant 0.000000e+00 : f32
    %10 = vector.broadcast %cst_9 : f32 to vector<2048x16xf32>
    %11 = arith.maximumf %9, %10 : vector<2048x16xf32>
    %12 = vector.shape_cast %11 : vector<2048x16xf32> to vector<4x512x16xf32>
    %cst_10 = arith.constant dense<0xFF800000> : vector<512x16xf32>
    %13 = vector.multi_reduction <maximumf>, %12, %cst_10 [0] : vector<4x512x16xf32> to vector<512x16xf32>
    %14 = arith.truncf %13 : vector<512x16xf32> to vector<512x16xbf16>
    %c0_11 = arith.constant 0 : index
    %c0_12 = arith.constant 0 : index
    %c0_13 = arith.constant 0 : index
    %15 = vector.load %arg5[%c0_11, %c0_12, %c0_13] : memref<1x512x16xbf16, #tpu.memory_space<vmem>>, vector<1x512x16xbf16>
    %16 = vector.shape_cast %15 : vector<1x512x16xbf16> to vector<512x16xbf16>
    %17 = vector.shape_cast %14 : vector<512x16xbf16> to vector<1x512x16xbf16>
    tpu.vector_store %arg5[%c0_11, %c0_12, %c0_13], %17 {strides = array<i32>} : memref<1x512x16xbf16, #tpu.memory_space<vmem>>, vector<1x512x16xbf16>,
    return
  }
  func.func @transform_0(%arg0: i32, %arg1: i32) -> (i32, i32, i32, i32) {
    %c0_i32 = arith.constant 0 : i32
    %c0_i32_0 = arith.constant 0 : i32
    %c0_i32_1 = arith.constant 0 : i32
    return %arg0, %c0_i32, %arg1, %c0_i32_0 : i32, i32, i32, i32
  }
  func.func @transform_1(%arg0: i32, %arg1: i32) -> (i32, i32, i32) {
    %c0_i32 = arith.constant 0 : i32
    %c0_i32_0 = arith.constant 0 : i32
    %c0_i32_1 = arith.constant 0 : i32
    return %arg0, %c0_i32, %c0_i32_0 : i32, i32, i32
  }
  func.func @transform_2(%arg0: i32, %arg1: i32) -> (i32, i32, i32) {
    %c0_i32 = arith.constant 0 : i32
    %c0_i32_0 = arith.constant 0 : i32
    %c0_i32_1 = arith.constant 0 : i32
    return %arg0, %c0_i32, %c0_i32_0 : i32, i32, i32
  }
  func.func @transform_3(%arg0: i32, %arg1: i32) -> (i32, i32, i32) {
    %c0_i32 = arith.constant 0 : i32
    %c0_i32_0 = arith.constant 0 : i32
    return %arg0, %arg1, %c0_i32 : i32, i32, i32
  }
}

module attributes {stable_mosaic.version = 11 : i64} {
  func.func @_conv_pool_kernel(%arg0: i32, %arg1: i32, %arg2: memref<1x4x32x144xbf16, #tpu.memory_space<vmem>>, %arg3: memref<1x144x32xbf16, #tpu.memory_space<vmem>>, %arg4: memref<1x1x32xf32, #tpu.memory_space<vmem>>, %arg5: memref<1x32x32xbf16, #tpu.memory_space<vmem>>) attributes {dimension_semantics = [#tpu.dimension_semantics<parallel>, #tpu.dimension_semantics<parallel>], iteration_bounds = array<i64: 3, 1>, scalar_prefetch = 0 : i64, scratch_operands = 0 : i64, tpu.core_type = #tpu.core_type<tc>, window_params = [{transform_indices = @transform_0, window_bounds = array<i64: 1, 4, 32, 144>}, {transform_indices = @transform_1, window_bounds = array<i64: 1, 144, 32>}, {transform_indices = @transform_2, window_bounds = array<i64: 1, 1, 32>}, {transform_indices = @transform_3, window_bounds = array<i64: 1, 32, 32>}]} {
    %c0 = arith.constant 0 : index
    %c0_0 = arith.constant 0 : index
    %c0_1 = arith.constant 0 : index
    %c0_2 = arith.constant 0 : index
    %0 = vector.load %arg2[%c0, %c0_0, %c0_1, %c0_2] : memref<1x4x32x144xbf16, #tpu.memory_space<vmem>>, vector<1x4x32x144xbf16>
    %1 = vector.shape_cast %0 : vector<1x4x32x144xbf16> to vector<4x32x144xbf16>
    %2 = vector.shape_cast %1 : vector<4x32x144xbf16> to vector<128x144xbf16>
    %c0_3 = arith.constant 0 : index
    %c0_4 = arith.constant 0 : index
    %c0_5 = arith.constant 0 : index
    %3 = vector.load %arg3[%c0_3, %c0_4, %c0_5] : memref<1x144x32xbf16, #tpu.memory_space<vmem>>, vector<1x144x32xbf16>
    %4 = vector.shape_cast %3 : vector<1x144x32xbf16> to vector<144x32xbf16>
    %cst = arith.constant dense<0.000000e+00> : vector<128x32xf32>
    %5 = tpu.matmul %2, %4, %cst {dimension_numbers = #tpu.dot_dimension_numbers<[1], [0], [0], [1], [0, 0, 1, 1], [], []>} : vector<128x144xbf16>, vector<144x32xbf16>, vector<128x32xf32> -> vector<128x32xf32>
    %c0_6 = arith.constant 0 : index
    %c0_7 = arith.constant 0 : index
    %c0_8 = arith.constant 0 : index
    %6 = vector.load %arg4[%c0_6, %c0_7, %c0_8] : memref<1x1x32xf32, #tpu.memory_space<vmem>>, vector<1x1x32xf32>
    %7 = vector.shape_cast %6 : vector<1x1x32xf32> to vector<1x32xf32>
    %8 = vector.broadcast %7 : vector<1x32xf32> to vector<128x32xf32>
    %9 = arith.addf %5, %8 : vector<128x32xf32>
    %cst_9 = arith.constant 0.000000e+00 : f32
    %10 = vector.broadcast %cst_9 : f32 to vector<128x32xf32>
    %11 = arith.maximumf %9, %10 : vector<128x32xf32>
    %12 = vector.shape_cast %11 : vector<128x32xf32> to vector<4x32x32xf32>
    %cst_10 = arith.constant dense<0xFF800000> : vector<32x32xf32>
    %13 = vector.multi_reduction <maximumf>, %12, %cst_10 [0] : vector<4x32x32xf32> to vector<32x32xf32>
    %14 = arith.truncf %13 : vector<32x32xf32> to vector<32x32xbf16>
    %c0_11 = arith.constant 0 : index
    %c0_12 = arith.constant 0 : index
    %c0_13 = arith.constant 0 : index
    %15 = vector.load %arg5[%c0_11, %c0_12, %c0_13] : memref<1x32x32xbf16, #tpu.memory_space<vmem>>, vector<1x32x32xbf16>
    %16 = vector.shape_cast %15 : vector<1x32x32xbf16> to vector<32x32xbf16>
    %17 = vector.shape_cast %14 : vector<32x32xbf16> to vector<1x32x32xbf16>
    tpu.vector_store %arg5[%c0_11, %c0_12, %c0_13], %17 {strides = array<i32>} : memref<1x32x32xbf16, #tpu.memory_space<vmem>>, vector<1x32x32xbf16>,
    return
  }
  func.func @transform_0(%arg0: i32, %arg1: i32) -> (i32, i32, i32, i32) {
    %c0_i32 = arith.constant 0 : i32
    %c0_i32_0 = arith.constant 0 : i32
    %c0_i32_1 = arith.constant 0 : i32
    return %arg0, %c0_i32, %arg1, %c0_i32_0 : i32, i32, i32, i32
  }
  func.func @transform_1(%arg0: i32, %arg1: i32) -> (i32, i32, i32) {
    %c0_i32 = arith.constant 0 : i32
    %c0_i32_0 = arith.constant 0 : i32
    %c0_i32_1 = arith.constant 0 : i32
    return %arg0, %c0_i32, %c0_i32_0 : i32, i32, i32
  }
  func.func @transform_2(%arg0: i32, %arg1: i32) -> (i32, i32, i32) {
    %c0_i32 = arith.constant 0 : i32
    %c0_i32_0 = arith.constant 0 : i32
    %c0_i32_1 = arith.constant 0 : i32
    return %arg0, %c0_i32, %c0_i32_0 : i32, i32, i32
  }
  func.func @transform_3(%arg0: i32, %arg1: i32) -> (i32, i32, i32) {
    %c0_i32 = arith.constant 0 : i32
    %c0_i32_0 = arith.constant 0 : i32
    return %arg0, %arg1, %c0_i32 : i32, i32, i32
  }
}

module attributes {stable_mosaic.version = 11 : i64} {
  func.func @_gap_kernel(%arg0: i32, %arg1: memref<8x4x64xf32, #tpu.memory_space<vmem>>, %arg2: memref<8x64xf32, #tpu.memory_space<vmem>>) attributes {dimension_semantics = [#tpu.dimension_semantics<parallel>], iteration_bounds = array<i64: 1>, scalar_prefetch = 0 : i64, scratch_operands = 0 : i64, tpu.core_type = #tpu.core_type<tc>, window_params = [{transform_indices = @transform_0, window_bounds = array<i64: 8, 4, 64>}, {transform_indices = @transform_1, window_bounds = array<i64: 8, 64>}]} {
    %c0 = arith.constant 0 : index
    %c0_0 = arith.constant 0 : index
    %c0_1 = arith.constant 0 : index
    %0 = vector.load %arg1[%c0, %c0_0, %c0_1] : memref<8x4x64xf32, #tpu.memory_space<vmem>>, vector<8x4x64xf32>
    %cst = arith.constant dense<0.000000e+00> : vector<8x64xf32>
    %1 = vector.multi_reduction <add>, %0, %cst [1] : vector<8x4x64xf32> to vector<8x64xf32>
    %cst_2 = arith.constant 4.000000e+00 : f32
    %2 = vector.broadcast %cst_2 : f32 to vector<8x64xf32>
    %3 = arith.divf %1, %2 : vector<8x64xf32>
    %c0_3 = arith.constant 0 : index
    %c0_4 = arith.constant 0 : index
    %4 = vector.load %arg2[%c0_3, %c0_4] : memref<8x64xf32, #tpu.memory_space<vmem>>, vector<8x64xf32>
    tpu.vector_store %arg2[%c0_3, %c0_4], %3 {strides = array<i32>} : memref<8x64xf32, #tpu.memory_space<vmem>>, vector<8x64xf32>,
    return
  }
  func.func @transform_0(%arg0: i32) -> (i32, i32, i32) {
    %c0_i32 = arith.constant 0 : i32
    %c0_i32_0 = arith.constant 0 : i32
    %c0_i32_1 = arith.constant 0 : i32
    return %arg0, %c0_i32, %c0_i32_0 : i32, i32, i32
  }
  func.func @transform_1(%arg0: i32) -> (i32, i32) {
    %c0_i32 = arith.constant 0 : i32
    %c0_i32_0 = arith.constant 0 : i32
    return %arg0, %c0_i32 : i32, i32
  }
}

module attributes {stable_mosaic.version = 11 : i64} {
  func.func @_conv_pool_kernel(%arg0: i32, %arg1: i32, %arg2: memref<1x1x16x288xbf16, #tpu.memory_space<vmem>>, %arg3: memref<1x288x64xbf16, #tpu.memory_space<vmem>>, %arg4: memref<1x1x64xf32, #tpu.memory_space<vmem>>, %arg5: memref<1x16x64xf32, #tpu.memory_space<vmem>>) attributes {dimension_semantics = [#tpu.dimension_semantics<parallel>, #tpu.dimension_semantics<parallel>], iteration_bounds = array<i64: 3, 1>, scalar_prefetch = 0 : i64, scratch_operands = 0 : i64, tpu.core_type = #tpu.core_type<tc>, window_params = [{transform_indices = @transform_0, window_bounds = array<i64: 1, 1, 16, 288>}, {transform_indices = @transform_1, window_bounds = array<i64: 1, 288, 64>}, {transform_indices = @transform_2, window_bounds = array<i64: 1, 1, 64>}, {transform_indices = @transform_3, window_bounds = array<i64: 1, 16, 64>}]} {
    %c0 = arith.constant 0 : index
    %c0_0 = arith.constant 0 : index
    %c0_1 = arith.constant 0 : index
    %c0_2 = arith.constant 0 : index
    %0 = vector.load %arg2[%c0, %c0_0, %c0_1, %c0_2] : memref<1x1x16x288xbf16, #tpu.memory_space<vmem>>, vector<1x1x16x288xbf16>
    %1 = vector.shape_cast %0 : vector<1x1x16x288xbf16> to vector<1x16x288xbf16>
    %2 = vector.shape_cast %1 : vector<1x16x288xbf16> to vector<16x288xbf16>
    %c0_3 = arith.constant 0 : index
    %c0_4 = arith.constant 0 : index
    %c0_5 = arith.constant 0 : index
    %3 = vector.load %arg3[%c0_3, %c0_4, %c0_5] : memref<1x288x64xbf16, #tpu.memory_space<vmem>>, vector<1x288x64xbf16>
    %4 = vector.shape_cast %3 : vector<1x288x64xbf16> to vector<288x64xbf16>
    %cst = arith.constant dense<0.000000e+00> : vector<16x64xf32>
    %5 = tpu.matmul %2, %4, %cst {dimension_numbers = #tpu.dot_dimension_numbers<[1], [0], [0], [1], [0, 0, 1, 1], [], []>} : vector<16x288xbf16>, vector<288x64xbf16>, vector<16x64xf32> -> vector<16x64xf32>
    %c0_6 = arith.constant 0 : index
    %c0_7 = arith.constant 0 : index
    %c0_8 = arith.constant 0 : index
    %6 = vector.load %arg4[%c0_6, %c0_7, %c0_8] : memref<1x1x64xf32, #tpu.memory_space<vmem>>, vector<1x1x64xf32>
    %7 = vector.shape_cast %6 : vector<1x1x64xf32> to vector<1x64xf32>
    %8 = vector.broadcast %7 : vector<1x64xf32> to vector<16x64xf32>
    %9 = arith.addf %5, %8 : vector<16x64xf32>
    %cst_9 = arith.constant 0.000000e+00 : f32
    %10 = vector.broadcast %cst_9 : f32 to vector<16x64xf32>
    %11 = arith.maximumf %9, %10 : vector<16x64xf32>
    %12 = vector.shape_cast %11 : vector<16x64xf32> to vector<1x16x64xf32>
    %cst_10 = arith.constant dense<0xFF800000> : vector<16x64xf32>
    %13 = vector.multi_reduction <maximumf>, %12, %cst_10 [0] : vector<1x16x64xf32> to vector<16x64xf32>
    %c0_11 = arith.constant 0 : index
    %c0_12 = arith.constant 0 : index
    %c0_13 = arith.constant 0 : index
    %14 = vector.load %arg5[%c0_11, %c0_12, %c0_13] : memref<1x16x64xf32, #tpu.memory_space<vmem>>, vector<1x16x64xf32>
    %15 = vector.shape_cast %14 : vector<1x16x64xf32> to vector<16x64xf32>
    %16 = vector.shape_cast %13 : vector<16x64xf32> to vector<1x16x64xf32>
    tpu.vector_store %arg5[%c0_11, %c0_12, %c0_13], %16 {strides = array<i32>} : memref<1x16x64xf32, #tpu.memory_space<vmem>>, vector<1x16x64xf32>,
    return
  }
  func.func @transform_0(%arg0: i32, %arg1: i32) -> (i32, i32, i32, i32) {
    %c0_i32 = arith.constant 0 : i32
    %c0_i32_0 = arith.constant 0 : i32
    %c0_i32_1 = arith.constant 0 : i32
    return %arg0, %c0_i32, %arg1, %c0_i32_0 : i32, i32, i32, i32
  }
  func.func @transform_1(%arg0: i32, %arg1: i32) -> (i32, i32, i32) {
    %c0_i32 = arith.constant 0 : i32
    %c0_i32_0 = arith.constant 0 : i32
    %c0_i32_1 = arith.constant 0 : i32
    return %arg0, %c0_i32, %c0_i32_0 : i32, i32, i32
  }
  func.func @transform_2(%arg0: i32, %arg1: i32) -> (i32, i32, i32) {
    %c0_i32 = arith.constant 0 : i32
    %c0_i32_0 = arith.constant 0 : i32
    %c0_i32_1 = arith.constant 0 : i32
    return %arg0, %c0_i32, %c0_i32_0 : i32, i32, i32
  }
  func.func @transform_3(%arg0: i32, %arg1: i32) -> (i32, i32, i32) {
    %c0_i32 = arith.constant 0 : i32
    %c0_i32_0 = arith.constant 0 : i32
    return %arg0, %arg1, %c0_i32 : i32, i32, i32
  }
}

module attributes {stable_mosaic.version = 11 : i64} {
  func.func @_fc_head_kernel(%arg0: memref<2x192xf32, #tpu.memory_space<vmem>>, %arg1: memref<192x128xf32, #tpu.memory_space<vmem>>, %arg2: memref<1x128xf32, #tpu.memory_space<vmem>>, %arg3: memref<128x64xf32, #tpu.memory_space<vmem>>, %arg4: memref<1x64xf32, #tpu.memory_space<vmem>>, %arg5: memref<64x5xf32, #tpu.memory_space<vmem>>, %arg6: memref<1x5xf32, #tpu.memory_space<vmem>>, %arg7: memref<2x5xf32, #tpu.memory_space<vmem>>) attributes {dimension_semantics = [], scalar_prefetch = 0 : i64, scratch_operands = 0 : i64, tpu.core_type = #tpu.core_type<tc>} {
    %c0 = arith.constant 0 : index
    %c0_0 = arith.constant 0 : index
    %0 = vector.load %arg0[%c0, %c0_0] : memref<2x192xf32, #tpu.memory_space<vmem>>, vector<2x192xf32>
    %c0_1 = arith.constant 0 : index
    %c0_2 = arith.constant 0 : index
    %1 = vector.load %arg1[%c0_1, %c0_2] : memref<192x128xf32, #tpu.memory_space<vmem>>, vector<192x128xf32>
    %cst = arith.constant dense<0.000000e+00> : vector<2x128xf32>
    %2 = tpu.matmul %0, %1, %cst {dimension_numbers = #tpu.dot_dimension_numbers<[1], [0], [0], [1], [0, 0, 1, 1], [], []>} : vector<2x192xf32>, vector<192x128xf32>, vector<2x128xf32> -> vector<2x128xf32>
    %c0_3 = arith.constant 0 : index
    %c0_4 = arith.constant 0 : index
    %3 = vector.load %arg2[%c0_3, %c0_4] : memref<1x128xf32, #tpu.memory_space<vmem>>, vector<1x128xf32>
    %4 = vector.broadcast %3 : vector<1x128xf32> to vector<2x128xf32>
    %5 = arith.addf %2, %4 : vector<2x128xf32>
    %cst_5 = arith.constant 0.000000e+00 : f32
    %6 = vector.broadcast %cst_5 : f32 to vector<2x128xf32>
    %7 = arith.maximumf %5, %6 : vector<2x128xf32>
    %c0_6 = arith.constant 0 : index
    %c0_7 = arith.constant 0 : index
    %8 = vector.load %arg3[%c0_6, %c0_7] : memref<128x64xf32, #tpu.memory_space<vmem>>, vector<128x64xf32>
    %cst_8 = arith.constant dense<0.000000e+00> : vector<2x64xf32>
    %9 = tpu.matmul %7, %8, %cst_8 {dimension_numbers = #tpu.dot_dimension_numbers<[1], [0], [0], [1], [0, 0, 1, 1], [], []>} : vector<2x128xf32>, vector<128x64xf32>, vector<2x64xf32> -> vector<2x64xf32>
    %c0_9 = arith.constant 0 : index
    %c0_10 = arith.constant 0 : index
    %10 = vector.load %arg4[%c0_9, %c0_10] : memref<1x64xf32, #tpu.memory_space<vmem>>, vector<1x64xf32>
    %11 = vector.broadcast %10 : vector<1x64xf32> to vector<2x64xf32>
    %12 = arith.addf %9, %11 : vector<2x64xf32>
    %cst_11 = arith.constant 0.000000e+00 : f32
    %13 = vector.broadcast %cst_11 : f32 to vector<2x64xf32>
    %14 = arith.maximumf %12, %13 : vector<2x64xf32>
    %c0_12 = arith.constant 0 : index
    %c0_13 = arith.constant 0 : index
    %15 = vector.load %arg5[%c0_12, %c0_13] : memref<64x5xf32, #tpu.memory_space<vmem>>, vector<64x5xf32>
    %cst_14 = arith.constant dense<0.000000e+00> : vector<2x5xf32>
    %16 = tpu.matmul %14, %15, %cst_14 {dimension_numbers = #tpu.dot_dimension_numbers<[1], [0], [0], [1], [0, 0, 1, 1], [], []>} : vector<2x64xf32>, vector<64x5xf32>, vector<2x5xf32> -> vector<2x5xf32>
    %c0_15 = arith.constant 0 : index
    %c0_16 = arith.constant 0 : index
    %17 = vector.load %arg6[%c0_15, %c0_16] : memref<1x5xf32, #tpu.memory_space<vmem>>, vector<1x5xf32>
    %18 = vector.broadcast %17 : vector<1x5xf32> to vector<2x5xf32>
    %19 = arith.addf %16, %18 : vector<2x5xf32>
    %c0_17 = arith.constant 0 : index
    %c0_18 = arith.constant 0 : index
    %20 = vector.load %arg7[%c0_17, %c0_18] : memref<2x5xf32, #tpu.memory_space<vmem>>, vector<2x5xf32>
    tpu.vector_store %arg7[%c0_17, %c0_18], %19 {strides = array<i32>} : memref<2x5xf32, #tpu.memory_space<vmem>>, vector<2x5xf32>,
    return
  }
}

</mosaic_0001>

<bundles_post_ra>
// kernel: multibranch_forward.7
= control target key start
LH: loop header
LB: loop body
LE: loop exit
PB: predicated region body
PF: predicated region fallthrough
CT: control target
= control target key end

     0   :  { %vm938_vm0 = vcmask 293888   ;;  %vm1323_vm1 = vcmask 1041408   ;;  %vm2640_vm2 = vcmask 130048   ;;  %vm3345_vm3 = vcmask 125952   ;;  %s6537_s1 = inlined_call_operand.vmem [shape: bf16[1,36,16], index: 1, kind: input, shape index: {}]   ;;  %s6538_s0 = inlined_call_operand.vmem [shape: bf16[1,4,512,36], index: 0, kind: input, shape index: {}]   ;;  %s6539_s2 = inlined_call_operand.vmem [shape: f32[1,1,16], index: 2, kind: input, shape index: {}]   ;;  %s6540_s3 = inlined_call_operand.vmem [shape: bf16[1,512,16], index: 3, kind: output, shape index: {}]  }
   0x1   :  { %v4203_v0 = vld [vmem:[%s6537_s1] sm:$0xff]   ;;  %v4204_v1 = vld [vmem:[%s6537_s1 + $0x8] sm:$0xff]   ;;  %v4205_v2 = vld [vmem:[%s6537_s1 + $0x10] ss:$0 sps:$4 sm:$0x33]  }
   0x2   :  { %3933 = vmatprep.subr.bf16.mxu0 %v4203_v0  ;;  %4195 = vmatprep.subr.bf16.mxu1 %v4203_v0  ;;  %v4206_v3 = vld [vmem:[%s6538_s0] sm:$0xff]   ;;  %v1325_v5 = vsel %vm1323_vm1, %v4205_v2, 0  ;;  %v4207_v6 = vld [vmem:[%s6538_s0 + $0x8] sm:$0xff]   ;;  %v4210_v8 = vld [vmem:[%s6538_s0 + $0x10] sm:$0xff]  }
   0x3   :  { %3934 = vmatpush3.bf16.msra.mxu0 %v4203_v0  ;;  %4198 = vmatpush3.bf16.msra.mxu1 %v4203_v0  ;;  %v4208_v4 = vld [vmem:[%s6538_s0 + $0x200] sm:$0xff]   ;;  %v4209_v7 = vld [vmem:[%s6538_s0 + $0x208] sm:$0xff]   ;;  %v4212_v9 = vld [vmem:[%s6538_s0 + $0x210] sm:$0xff]  }
   0x4   :  { %3935 = vmatprep.subr.bf16.mxu0 %v4204_v1  ;;  %4196 = vmatprep.subr.bf16.mxu1 %v4204_v1  ;;  %v4211_v10 = vld [vmem:[%s6538_s0 + $0x18] sm:$0xff]   ;;  %v4214_v12 = vld [vmem:[%s6538_s0 + $0x20] sm:$0xff]   ;;  %v4215_v14 = vld [vmem:[%s6538_s0 + $0x28] sm:$0xff]  }
   0x5   :  { %3939 = vmatprep.mubr.msk.bf16.mxu0 %vm938_vm0, %v4206_v3  ;;  %4067 = vmatprep.mubr.msk.bf16.mxu1 %vm938_vm0, %v4208_v4  ;;  %v4213_v11 = vld [vmem:[%s6538_s0 + $0x218] sm:$0xff]   ;;  %v4216_v13 = vld [vmem:[%s6538_s0 + $0x220] sm:$0xff]   ;;  %v4217_v15 = vld [vmem:[%s6538_s0 + $0x228] sm:$0xff]  }
   0x6   :  { %v4218_v16 = vld [vmem:[%s6538_s0 + $0x30] sm:$0xff]   ;;  %v4219_v18 = vld [vmem:[%s6538_s0 + $0x38] sm:$0xff]   ;;  %v4222_v20 = vld [vmem:[%s6538_s0 + $0x40] sm:$0xff]  }
   0x7   :  { %3936 = vmatpush3.bf16.msra.mxu0 %v4204_v1  ;;  %4199 = vmatpush3.bf16.msra.mxu1 %v4204_v1  ;;  %v4220_v17 = vld [vmem:[%s6538_s0 + $0x230] sm:$0xff]   ;;  %v4221_v19 = vld [vmem:[%s6538_s0 + $0x238] sm:$0xff]   ;;  %v4224_v21 = vld [vmem:[%s6538_s0 + $0x240] sm:$0xff]  }
   0x8   :  { %4201 = vmatprep.subr.msk.bf16.mxu0 %vm1323_vm1, %v4205_v2  ;;  %4202 = vmatprep.subr.msk.bf16.mxu1 %vm1323_vm1, %v4205_v2  ;;  %v4223_v22 = vld [vmem:[%s6538_s0 + $0x48] sm:$0xff]   ;;  %v4226_v24 = vld [vmem:[%s6538_s0 + $0x50] sm:$0xff]   ;;  %v4227_v26 = vld [vmem:[%s6538_s0 + $0x58] sm:$0xff]  }
   0x9   :  { %v4225_v23 = vld [vmem:[%s6538_s0 + $0x248] sm:$0xff]   ;;  %v4228_v25 = vld [vmem:[%s6538_s0 + $0x250] sm:$0xff]   ;;  %v4229_v27 = vld [vmem:[%s6538_s0 + $0x258] sm:$0xff]  }
   0xa   :  { %v4230_v28 = vld [vmem:[%s6538_s0 + $0x60] sm:$0xff]   ;;  %v4231_v30 = vld [vmem:[%s6538_s0 + $0x68] sm:$0xff]   ;;  %v4234_v32 = vld [vmem:[%s6538_s0 + $0x70] sm:$0xff]  }
   0xb   :  { %3938 = vmatpush3.bf16.msra.mxu0 %v1325_v5  ;;  %4200 = vmatpush3.bf16.msra.mxu1 %v1325_v5  ;;  %v4232_v29 = vld [vmem:[%s6538_s0 + $0x260] sm:$0xff]   ;;  %v4233_v31 = vld [vmem:[%s6538_s0 + $0x268] sm:$0xff]   ;;  %v4236_v33 = vld [vmem:[%s6538_s0 + $0x270] sm:$0xff]  }
   0xc   :  { %v4235_v34 = vld [vmem:[%s6538_s0 + $0x78] sm:$0xff]   ;;  %v4238_v36 = vld [vmem:[%s6538_s0 + $0x80] sm:$0xff]   ;;  %v4239_v38 = vld [vmem:[%s6538_s0 + $0x88] sm:$0xff]  }
   0xd   :  { %v4237_v35 = vld [vmem:[%s6538_s0 + $0x278] sm:$0xff]   ;;  %v4240_v37 = vld [vmem:[%s6538_s0 + $0x280] sm:$0xff]   ;;  %v4241_v39 = vld [vmem:[%s6538_s0 + $0x288] sm:$0xff]  }
   0xe   :  { %3940 = vmatmul.mubr.msk.bf16.vlgmr.msra.gmra.mrb[0].mxu0 %vm938_vm0, %v4207_v6  ;;  %4068 = vmatmul.mubr.msk.bf16.vlgmr.msra.gmra.mrb[0].mxu1 %vm938_vm0, %v4209_v7  ;;  %v4242_v40 = vld [vmem:[%s6538_s0 + $0x90] sm:$0xff]   ;;  %v4243_v42 = vld [vmem:[%s6538_s0 + $0x98] sm:$0xff]   ;;  %v4246_v44 = vld [vmem:[%s6538_s0 + $0xa0] sm:$0xff]  }
   0xf   :  { %3943 = vmatprep.mubr.msk.bf16.mxu0 %vm938_vm0, %v4210_v8  ;;  %4071 = vmatprep.mubr.msk.bf16.mxu1 %vm938_vm0, %v4212_v9  ;;  %v4244_v41 = vld [vmem:[%s6538_s0 + $0x290] sm:$0xff]   ;;  %v4245_v43 = vld [vmem:[%s6538_s0 + $0x298] sm:$0xff]   ;;  %v4248_v45 = vld [vmem:[%s6538_s0 + $0x2a0] sm:$0xff]  }
  0x10   :  { %v4247_v46 = vld [vmem:[%s6538_s0 + $0xa8] sm:$0xff]   ;;  %v4250_v48 = vld [vmem:[%s6538_s0 + $0xb0] sm:$0xff]   ;;  %v4251_v50 = vld [vmem:[%s6538_s0 + $0xb8] sm:$0xff]  }
  0x11   :  { %v4249_v47 = vld [vmem:[%s6538_s0 + $0x2a8] sm:$0xff]   ;;  %v4252_v49 = vld [vmem:[%s6538_s0 + $0x2b0] sm:$0xff]   ;;  %v4253_v51 = vld [vmem:[%s6538_s0 + $0x2b8] sm:$0xff]  }
  0x12   :  { %v4254_v52 = vld [vmem:[%s6538_s0 + $0xc0] sm:$0xff]   ;;  %v4255_v54 = vld [vmem:[%s6538_s0 + $0xc8] sm:$0xff]   ;;  %v4258_v56 = vld [vmem:[%s6538_s0 + $0xd0] sm:$0xff]  }
  0x13   :  { %v4256_v53 = vld [vmem:[%s6538_s0 + $0x2c0] sm:$0xff]   ;;  %v4257_v55 = vld [vmem:[%s6538_s0 + $0x2c8] sm:$0xff]   ;;  %v4260_v57 = vld [vmem:[%s6538_s0 + $0x2d0] sm:$0xff]  }
  0x14   :  { %v4259_v58 = vld [vmem:[%s6538_s0 + $0xd8] sm:$0xff]   ;;  %v4262_v60 = vld [vmem:[%s6538_s0 + $0xe0] sm:$0xff]   ;;  %v4263_v62 = vld [vmem:[%s6538_s0 + $0xe8] sm:$0xff]  }
  0x15   :  { %v4261_v59 = vld [vmem:[%s6538_s0 + $0x2d8] sm:$0xff]   ;;  %v4264_v61 = vld [vmem:[%s6538_s0 + $0x2e0] sm:$0xff]   ;;  %v4265_v63 = vld [vmem:[%s6538_s0 + $0x2e8] sm:$0xff]  }
  0x16   :  { %3944 = vmatmul.mubr.msk.bf16.gmra.mrb[4].mxu0 %vm938_vm0, %v4211_v10  ;;  %4072 = vmatmul.mubr.msk.bf16.gmra.mrb[4].mxu1 %vm938_vm0, %v4213_v11  ;;  %v4266_v0 = vld [vmem:[%s6538_s0 + $0xf0] sm:$0xff]   ;;  %v4267_v2 = vld [vmem:[%s6538_s0 + $0xf8] sm:$0xff]   ;;  %v4270_v4 = vld [vmem:[%s6538_s0 + $0x100] sm:$0xff]  }
  0x17   :  { %3947 = vmatprep.mubr.msk.bf16.mxu0 %vm938_vm0, %v4214_v12  ;;  %4075 = vmatprep.mubr.msk.bf16.mxu1 %vm938_vm0, %v4216_v13  ;;  %v4268_v1 = vld [vmem:[%s6538_s0 + $0x2f0] sm:$0xff]   ;;  %v4269_v3 = vld [vmem:[%s6538_s0 + $0x2f8] sm:$0xff]   ;;  %v4272_v5 = vld [vmem:[%s6538_s0 + $0x300] sm:$0xff]  }
  0x18   :  { %v4271_v6 = vld [vmem:[%s6538_s0 + $0x108] sm:$0xff]   ;;  %v4274_v8 = vld [vmem:[%s6538_s0 + $0x110] sm:$0xff]   ;;  %v4275_v10 = vld [vmem:[%s6538_s0 + $0x118] sm:$0xff]  }
  0x19   :  { %v4273_v7 = vld [vmem:[%s6538_s0 + $0x308] sm:$0xff]   ;;  %v4276_v9 = vld [vmem:[%s6538_s0 + $0x310] sm:$0xff]   ;;  %v4277_v11 = vld [vmem:[%s6538_s0 + $0x318] sm:$0xff]  }
  0x1a   :  { %v4278_v12 = vld [vmem:[%s6538_s0 + $0x120] sm:$0xff]  }
  0x1b   :  { %v4280_v13 = vld [vmem:[%s6538_s0 + $0x320] sm:$0xff]  }
  0x1e   :  { %3948 = vmatmul.mubr.msk.bf16.gmra.mrb[8].mxu0 %vm938_vm0, %v4215_v14  ;;  %4076 = vmatmul.mubr.msk.bf16.gmra.mrb[8].mxu1 %vm938_vm0, %v4217_v15  ;;  %v4279_v14 = vld [vmem:[%s6538_s0 + $0x128] sm:$0xff]  }
  0x1f   :  { %3951 = vmatprep.mubr.msk.bf16.mxu0 %vm938_vm0, %v4218_v16  ;;  %4079 = vmatprep.mubr.msk.bf16.mxu1 %vm938_vm0, %v4220_v17  ;;  %v4281_v15 = vld [vmem:[%s6538_s0 + $0x328] sm:$0xff]   ;;  %v4282_v16 = vld [vmem:[%s6538_s0 + $0x130] sm:$0xff]  }
  0x20   :  { %v4284_v17 = vld [vmem:[%s6538_s0 + $0x330] sm:$0xff]  }
  0x26   :  { %3952 = vmatmul.mubr.msk.bf16.gmra.mrb[12].mxu0 %vm938_vm0, %v4219_v18  ;;  %4080 = vmatmul.mubr.msk.bf16.gmra.mrb[12].mxu1 %vm938_vm0, %v4221_v19  ;;  %v4283_v18 = vld [vmem:[%s6538_s0 + $0x138] sm:$0xff]  }
  0x27   :  { %3955 = vmatprep.mubr.msk.bf16.mxu0 %vm938_vm0, %v4222_v20  ;;  %4083 = vmatprep.mubr.msk.bf16.mxu1 %vm938_vm0, %v4224_v21  ;;  %v4285_v19 = vld [vmem:[%s6538_s0 + $0x338] sm:$0xff]   ;;  %v4286_v20 = vld [vmem:[%s6538_s0 + $0x140] sm:$0xff]  }
  0x28   :  { %v4288_v21 = vld [vmem:[%s6538_s0 + $0x340] sm:$0xff]  }
  0x2e   :  { %3956 = vmatmul.mubr.msk.bf16.gmra.mrb[16].mxu0 %vm938_vm0, %v4223_v22  ;;  %4084 = vmatmul.mubr.msk.bf16.gmra.mrb[16].mxu1 %vm938_vm0, %v4225_v23  ;;  %v4287_v22 = vld [vmem:[%s6538_s0 + $0x148] sm:$0xff]  }
  0x2f   :  { %3959 = vmatprep.mubr.msk.bf16.mxu0 %vm938_vm0, %v4226_v24  ;;  %4087 = vmatprep.mubr.msk.bf16.mxu1 %vm938_vm0, %v4228_v25  ;;  %v4289_v23 = vld [vmem:[%s6538_s0 + $0x348] sm:$0xff]   ;;  %v4290_v24 = vld [vmem:[%s6538_s0 + $0x150] sm:$0xff]  }
  0x30   :  { %v4292_v25 = vld [vmem:[%s6538_s0 + $0x350] sm:$0xff]  }
  0x36   :  { %3960 = vmatmul.mubr.msk.bf16.gmra.mrb[20].mxu0 %vm938_vm0, %v4227_v26  ;;  %4088 = vmatmul.mubr.msk.bf16.gmra.mrb[20].mxu1 %vm938_vm0, %v4229_v27  ;;  %v4291_v26 = vld [vmem:[%s6538_s0 + $0x158] sm:$0xff]  }
  0x37   :  { %3963 = vmatprep.mubr.msk.bf16.mxu0 %vm938_vm0, %v4230_v28  ;;  %4091 = vmatprep.mubr.msk.bf16.mxu1 %vm938_vm0, %v4232_v29  ;;  %v4293_v27 = vld [vmem:[%s6538_s0 + $0x358] sm:$0xff]   ;;  %v4294_v28 = vld [vmem:[%s6538_s0 + $0x160] sm:$0xff]  }
  0x38   :  { %v4296_v29 = vld [vmem:[%s6538_s0 + $0x360] sm:$0xff]  }
  0x3e   :  { %3964 = vmatmul.mubr.msk.bf16.gmra.mrb[24].mxu0 %vm938_vm0, %v4231_v30  ;;  %4092 = vmatmul.mubr.msk.bf16.gmra.mrb[24].mxu1 %vm938_vm0, %v4233_v31  ;;  %v4295_v30 = vld [vmem:[%s6538_s0 + $0x168] sm:$0xff]  }
  0x3f   :  { %3967 = vmatprep.mubr.msk.bf16.mxu0 %vm938_vm0, %v4234_v32  ;;  %4095 = vmatprep.mubr.msk.bf16.mxu1 %vm938_vm0, %v4236_v33  ;;  %v4297_v31 = vld [vmem:[%s6538_s0 + $0x368] sm:$0xff]   ;;  %v4298_v32 = vld [vmem:[%s6538_s0 + $0x170] sm:$0xff]  }
  0x40   :  { %v4300_v33 = vld [vmem:[%s6538_s0 + $0x370] sm:$0xff]  }
  0x46   :  { %3968 = vmatmul.mubr.msk.bf16.gmra.mrb[28].mxu0 %vm938_vm0, %v4235_v34  ;;  %4096 = vmatmul.mubr.msk.bf16.gmra.mrb[28].mxu1 %vm938_vm0, %v4237_v35  ;;  %v4299_v34 = vld [vmem:[%s6538_s0 + $0x178] sm:$0xff]  }
  0x47   :  { %3971 = vmatprep.mubr.msk.bf16.mxu0 %vm938_vm0, %v4238_v36  ;;  %4099 = vmatprep.mubr.msk.bf16.mxu1 %vm938_vm0, %v4240_v37  ;;  %v4301_v35 = vld [vmem:[%s6538_s0 + $0x378] sm:$0xff]   ;;  %v4302_v36 = vld [vmem:[%s6538_s0 + $0x180] sm:$0xff]  }
  0x48   :  { %v4304_v37 = vld [vmem:[%s6538_s0 + $0x380] sm:$0xff]  }
  0x4e   :  { %3972 = vmatmul.mubr.msk.bf16.gmra.mrb[32].mxu0 %vm938_vm0, %v4239_v38  ;;  %4100 = vmatmul.mubr.msk.bf16.gmra.mrb[32].mxu1 %vm938_vm0, %v4241_v39  ;;  %v4303_v38 = vld [vmem:[%s6538_s0 + $0x188] sm:$0xff]  }
  0x4f   :  { %3975 = vmatprep.mubr.msk.bf16.mxu0 %vm938_vm0, %v4242_v40  ;;  %4103 = vmatprep.mubr.msk.bf16.mxu1 %vm938_vm0, %v4244_v41  ;;  %v4305_v39 = vld [vmem:[%s6538_s0 + $0x388] sm:$0xff]   ;;  %v4306_v40 = vld [vmem:[%s6538_s0 + $0x190] sm:$0xff]  }
  0x50   :  { %v4308_v41 = vld [vmem:[%s6538_s0 + $0x390] sm:$0xff]  }
  0x56   :  { %3976 = vmatmul.mubr.msk.bf16.gmra.mrb[36].mxu0 %vm938_vm0, %v4243_v42  ;;  %4104 = vmatmul.mubr.msk.bf16.gmra.mrb[36].mxu1 %vm938_vm0, %v4245_v43  ;;  %v4307_v42 = vld [vmem:[%s6538_s0 + $0x198] sm:$0xff]  }
  0x57   :  { %3979 = vmatprep.mubr.msk.bf16.mxu0 %vm938_vm0, %v4246_v44  ;;  %4107 = vmatprep.mubr.msk.bf16.mxu1 %vm938_vm0, %v4248_v45  ;;  %v4309_v43 = vld [vmem:[%s6538_s0 + $0x398] sm:$0xff]   ;;  %v4310_v44 = vld [vmem:[%s6538_s0 + $0x1a0] sm:$0xff]  }
  0x58   :  { %v4312_v45 = vld [vmem:[%s6538_s0 + $0x3a0] sm:$0xff]  }
  0x5e   :  { %3980 = vmatmul.mubr.msk.bf16.gmra.mrb[40].mxu0 %vm938_vm0, %v4247_v46  ;;  %4108 = vmatmul.mubr.msk.bf16.gmra.mrb[40].mxu1 %vm938_vm0, %v4249_v47  ;;  %v4311_v46 = vld [vmem:[%s6538_s0 + $0x1a8] sm:$0xff]  }
  0x5f   :  { %3983 = vmatprep.mubr.msk.bf16.mxu0 %vm938_vm0, %v4250_v48  ;;  %4111 = vmatprep.mubr.msk.bf16.mxu1 %vm938_vm0, %v4252_v49  ;;  %v4313_v47 = vld [vmem:[%s6538_s0 + $0x3a8] sm:$0xff]   ;;  %v4314_v48 = vld [vmem:[%s6538_s0 + $0x1b0] sm:$0xff]  }
  0x60   :  { %v4316_v49 = vld [vmem:[%s6538_s0 + $0x3b0] sm:$0xff]  }
  0x66   :  { %3984 = vmatmul.mubr.msk.bf16.gmra.mrb[44].mxu0 %vm938_vm0, %v4251_v50  ;;  %4112 = vmatmul.mubr.msk.bf16.gmra.mrb[44].mxu1 %vm938_vm0, %v4253_v51 }
  0x67   :  { %3987 = vmatprep.mubr.msk.bf16.mxu0 %vm938_vm0, %v4254_v52  ;;  %4115 = vmatprep.mubr.msk.bf16.mxu1 %vm938_vm0, %v4256_v53 }
  0x6e   :  { %3988 = vmatmul.mubr.msk.bf16.gmra.mrb[48].mxu0 %vm938_vm0, %v4255_v54  ;;  %4116 = vmatmul.mubr.msk.bf16.gmra.mrb[48].mxu1 %vm938_vm0, %v4257_v55  ;;  %v4315_v54 = vld [vmem:[%s6538_s0 + $0x1b8] sm:$0xff]  }
  0x6f   :  { %3991 = vmatprep.mubr.msk.bf16.mxu0 %vm938_vm0, %v4258_v56  ;;  %4119 = vmatprep.mubr.msk.bf16.mxu1 %vm938_vm0, %v4260_v57  ;;  %v4317_v55 = vld [vmem:[%s6538_s0 + $0x3b8] sm:$0xff]  }
  0x76   :  { %3992 = vmatmul.mubr.msk.bf16.gmra.mrb[52].mxu0 %vm938_vm0, %v4259_v58  ;;  %4120 = vmatmul.mubr.msk.bf16.gmra.mrb[52].mxu1 %vm938_vm0, %v4261_v59  ;;  %v4318_v58 = vld [vmem:[%s6538_s0 + $0x1c0] sm:$0xff]  }
  0x77   :  { %3995 = vmatprep.mubr.msk.bf16.mxu0 %vm938_vm0, %v4262_v60  ;;  %4123 = vmatprep.mubr.msk.bf16.mxu1 %vm938_vm0, %v4264_v61  ;;  %v4320_v59 = vld [vmem:[%s6538_s0 + $0x3c0] sm:$0xff]  }
  0x7e   :  { %3996 = vmatmul.mubr.msk.bf16.gmra.mrb[56].mxu0 %vm938_vm0, %v4263_v62  ;;  %4124 = vmatmul.mubr.msk.bf16.gmra.mrb[56].mxu1 %vm938_vm0, %v4265_v63 }
  0x7f   :  { %3999 = vmatprep.mubr.msk.bf16.mxu0 %vm938_vm0, %v4266_v0  ;;  %4127 = vmatprep.mubr.msk.bf16.mxu1 %vm938_vm0, %v4268_v1 }
  0x86   :  { %4000 = vmatmul.mubr.msk.bf16.gmra.mrb[60].mxu0 %vm938_vm0, %v4267_v2  ;;  %4128 = vmatmul.mubr.msk.bf16.gmra.mrb[60].mxu1 %vm938_vm0, %v4269_v3  ;;  %v4319_v2 = vld [vmem:[%s6538_s0 + $0x1c8] sm:$0xff]  }
  0x87   :  { %4003 = vmatprep.mubr.msk.bf16.mxu0 %vm938_vm0, %v4270_v4  ;;  %4131 = vmatprep.mubr.msk.bf16.mxu1 %vm938_vm0, %v4272_v5  ;;  %v4321_v3 = vld [vmem:[%s6538_s0 + $0x3c8] sm:$0xff]  }
  0x8e   :  { %4004 = vmatmul.mubr.msk.bf16.gmra.mrb[64].mxu0 %vm938_vm0, %v4271_v6  ;;  %4132 = vmatmul.mubr.msk.bf16.gmra.mrb[64].mxu1 %vm938_vm0, %v4273_v7  ;;  %v4322_v6 = vld [vmem:[%s6538_s0 + $0x1d0] sm:$0xff]  }
  0x8f   :  { %4007 = vmatprep.mubr.msk.bf16.mxu0 %vm938_vm0, %v4274_v8  ;;  %4135 = vmatprep.mubr.msk.bf16.mxu1 %vm938_vm0, %v4276_v9  ;;  %v4324_v7 = vld [vmem:[%s6538_s0 + $0x3d0] sm:$0xff]  }
  0x96   :  { %4008 = vmatmul.mubr.msk.bf16.gmra.mrb[68].mxu0 %vm938_vm0, %v4275_v10  ;;  %4136 = vmatmul.mubr.msk.bf16.gmra.mrb[68].mxu1 %vm938_vm0, %v4277_v11 }
  0x97   :  { %4011 = vmatprep.mubr.msk.bf16.mxu0 %vm938_vm0, %v4278_v12  ;;  %4139 = vmatprep.mubr.msk.bf16.mxu1 %vm938_vm0, %v4280_v13 }
  0x9e   :  { %4012 = vmatmul.mubr.msk.bf16.gmra.mrb[72].mxu0 %vm938_vm0, %v4279_v14  ;;  %4140 = vmatmul.mubr.msk.bf16.gmra.mrb[72].mxu1 %vm938_vm0, %v4281_v15  ;;  %v4323_v14 = vld [vmem:[%s6538_s0 + $0x1d8] sm:$0xff]  }
  0x9f   :  { %4015 = vmatprep.mubr.msk.bf16.mxu0 %vm938_vm0, %v4282_v16  ;;  %4143 = vmatprep.mubr.msk.bf16.mxu1 %vm938_vm0, %v4284_v17  ;;  %v4325_v15 = vld [vmem:[%s6538_s0 + $0x3d8] sm:$0xff]  }
  0xa6   :  { %4016 = vmatmul.mubr.msk.bf16.gmra.mrb[76].mxu0 %vm938_vm0, %v4283_v18  ;;  %4144 = vmatmul.mubr.msk.bf16.gmra.mrb[76].mxu1 %vm938_vm0, %v4285_v19  ;;  %v4326_v18 = vld [vmem:[%s6538_s0 + $0x1e0] sm:$0xff]  }
  0xa7   :  { %4019 = vmatprep.mubr.msk.bf16.mxu0 %vm938_vm0, %v4286_v20  ;;  %4147 = vmatprep.mubr.msk.bf16.mxu1 %vm938_vm0, %v4288_v21  ;;  %v4328_v19 = vld [vmem:[%s6538_s0 + $0x3e0] sm:$0xff]  }
  0xae   :  { %4020 = vmatmul.mubr.msk.bf16.gmra.mrb[80].mxu0 %vm938_vm0, %v4287_v22  ;;  %4148 = vmatmul.mubr.msk.bf16.gmra.mrb[80].mxu1 %vm938_vm0, %v4289_v23 }
  0xaf   :  { %4023 = vmatprep.mubr.msk.bf16.mxu0 %vm938_vm0, %v4290_v24  ;;  %4151 = vmatprep.mubr.msk.bf16.mxu1 %vm938_vm0, %v4292_v25 }
  0xb6   :  { %4024 = vmatmul.mubr.msk.bf16.gmra.mrb[84].mxu0 %vm938_vm0, %v4291_v26  ;;  %4152 = vmatmul.mubr.msk.bf16.gmra.mrb[84].mxu1 %vm938_vm0, %v4293_v27  ;;  %v4327_v26 = vld [vmem:[%s6538_s0 + $0x1e8] sm:$0xff]  }
  0xb7   :  { %4027 = vmatprep.mubr.msk.bf16.mxu0 %vm938_vm0, %v4294_v28  ;;  %4155 = vmatprep.mubr.msk.bf16.mxu1 %vm938_vm0, %v4296_v29  ;;  %v4329_v27 = vld [vmem:[%s6538_s0 + $0x3e8] sm:$0xff]  }
  0xbe   :  { %4028 = vmatmul.mubr.msk.bf16.gmra.mrb[88].mxu0 %vm938_vm0, %v4295_v30  ;;  %4156 = vmatmul.mubr.msk.bf16.gmra.mrb[88].mxu1 %vm938_vm0, %v4297_v31  ;;  %v4330_v30 = vld [vmem:[%s6538_s0 + $0x1f0] sm:$0xff]  }
  0xbf   :  { %4031 = vmatprep.mubr.msk.bf16.mxu0 %vm938_vm0, %v4298_v32  ;;  %4159 = vmatprep.mubr.msk.bf16.mxu1 %vm938_vm0, %v4300_v33  ;;  %v4332_v31 = vld [vmem:[%s6538_s0 + $0x3f0] sm:$0xff]  }
  0xc6   :  { %4032 = vmatmul.mubr.msk.bf16.gmra.mrb[92].mxu0 %vm938_vm0, %v4299_v34  ;;  %4160 = vmatmul.mubr.msk.bf16.gmra.mrb[92].mxu1 %vm938_vm0, %v4301_v35  ;;  %v4932_v34 = vld [vmem:[%s6539_s2] ss:$0 sm:$0xff] }
  0xc7   :  { %4035 = vmatprep.mubr.msk.bf16.mxu0 %vm938_vm0, %v4302_v36  ;;  %4163 = vmatprep.mubr.msk.bf16.mxu1 %vm938_vm0, %v4304_v37 }
  0xce   :  { %4036 = vmatmul.mubr.msk.bf16.gmra.mrb[96].mxu0 %vm938_vm0, %v4303_v38  ;;  %4164 = vmatmul.mubr.msk.bf16.gmra.mrb[96].mxu1 %vm938_vm0, %v4305_v39 }
  0xcf   :  { %4039 = vmatprep.mubr.msk.bf16.mxu0 %vm938_vm0, %v4306_v40  ;;  %4167 = vmatprep.mubr.msk.bf16.mxu1 %vm938_vm0, %v4308_v41 }
  0xd6   :  { %4040 = vmatmul.mubr.msk.bf16.gmra.mrb[100].mxu0 %vm938_vm0, %v4307_v42  ;;  %4168 = vmatmul.mubr.msk.bf16.gmra.mrb[100].mxu1 %vm938_vm0, %v4309_v43  ;;  %v4331_v42 = vld [vmem:[%s6538_s0 + $0x1f8] sm:$0xff]  }
  0xd7   :  { %4043 = vmatprep.mubr.msk.bf16.mxu0 %vm938_vm0, %v4310_v44  ;;  %4171 = vmatprep.mubr.msk.bf16.mxu1 %vm938_vm0, %v4312_v45  ;;  %v4333_v43 = vld [vmem:[%s6538_s0 + $0x3f8] sm:$0xff]  }
  0xde   :  { %4044 = vmatmul.mubr.msk.bf16.gmra.mrb[104].mxu0 %vm938_vm0, %v4311_v46  ;;  %4172 = vmatmul.mubr.msk.bf16.gmra.mrb[104].mxu1 %vm938_vm0, %v4313_v47 }
  0xdf   :  { %4047 = vmatprep.mubr.msk.bf16.mxu0 %vm938_vm0, %v4314_v48  ;;  %4175 = vmatprep.mubr.msk.bf16.mxu1 %vm938_vm0, %v4316_v49 }
  0xe1   :  { %v4805_v50 = vpop.f32.mrb[0].mxu0  ;;  %v4807_v51 = vpop.f32.mrb[0].mxu1 }
  0xe2   :  { %v4809_v52 = vpop.f32.mrb[1].mxu0  ;;  %v4811_v53 = vpop.f32.mrb[1].mxu1  ;;  %v1370_v35 = vadd.f32 %v4805_v50, %v4932_v34  ;;  %v1882_v39 = vadd.f32 %v4807_v51, %v4932_v34 }
  0xe3   :  { %v4819_v56 = vpop.f32.mrb[2].mxu0  ;;  %v4821_v57 = vpop.f32.mrb[2].mxu1  ;;  %v1362_v38 = vadd.f32 %v4932_v34, %v4809_v52  ;;  %v1874_v45 = vadd.f32 %v4932_v34, %v4811_v53 }
  0xe4   :  { %v4829_v60 = vpop.f32.mrb[3].mxu0  ;;  %v4831_v61 = vpop.f32.mrb[3].mxu1  ;;  %v1373_v44 = vadd.f32 %v4819_v56, %v4932_v34  ;;  %v1885_v49 = vadd.f32 %v4821_v57, %v4932_v34 }
  0xe5   :  { %v1365_v48 = vadd.f32 %v4932_v34, %v4829_v60  ;;  %v1877_v50 = vadd.f32 %v4932_v34, %v4831_v61  ;;  %v2384_v53 = vmax.f32 %v1362_v38, 0.0 }
  0xe6   :  { %4048 = vmatmul.mubr.msk.bf16.gmra.mrb[108].mxu0 %vm938_vm0, %v4315_v54  ;;  %4176 = vmatmul.mubr.msk.bf16.gmra.mrb[108].mxu1 %vm938_vm0, %v4317_v55  ;;  %v2386_v54 = vmax.f32 %v1370_v35, 0.0  ;;  %v2514_v55 = vmax.f32 %v1882_v39, 0.0  ;;  %v2387_v57 = vmax.f32 %v1373_v44, 0.0 }
  0xe7   :  { %4051 = vmatprep.mubr.msk.bf16.mxu0 %vm938_vm0, %v4318_v58  ;;  %4179 = vmatprep.mubr.msk.bf16.mxu1 %vm938_vm0, %v4320_v59  ;;  %v2512_v59 = vmax.f32 %v1874_v45, 0.0 }
  0xe9   :  { %v4837_v62 = vpop.f32.mrb[4].mxu0  ;;  %v4839_v63 = vpop.f32.mrb[4].mxu1 }
  0xea   :  { %v4841_v0 = vpop.f32.mrb[5].mxu0  ;;  %v4843_v1 = vpop.f32.mrb[5].mxu1  ;;  %v1386_v56 = vadd.f32 %v4837_v62, %v4932_v34  ;;  %v1898_v58 = vadd.f32 %v4839_v63, %v4932_v34  ;;  %v4989_v63 = vsel %vm2640_vm2, %v2386_v54, -inf }
  0xeb   :  { %v4851_v4 = vpop.f32.mrb[6].mxu0  ;;  %v4853_v5 = vpop.f32.mrb[6].mxu1  ;;  %v1378_v60 = vadd.f32 %v4932_v34, %v4841_v0  ;;  %v1890_v61 = vadd.f32 %v4932_v34, %v4843_v1 }
  0xec   :  { %v4861_v8 = vpop.f32.mrb[7].mxu0  ;;  %v4863_v9 = vpop.f32.mrb[7].mxu1  ;;  %v1389_v62 = vadd.f32 %v4851_v4, %v4932_v34  ;;  %v5005_v4 = vsel %vm2640_vm2, %v2514_v55, -inf }
  0xed   :  { %v1893_v0 = vadd.f32 %v4932_v34, %v4863_v9  ;;  %v5015_v9 = vsel %vm2640_vm2, %v2512_v59, -inf }
  0xee   :  { %4052 = vmatmul.mubr.msk.bf16.gmra.mrb[112].mxu0 %vm938_vm0, %v4319_v2  ;;  %4180 = vmatmul.mubr.msk.bf16.gmra.mrb[112].mxu1 %vm938_vm0, %v4321_v3  ;;  %v2385_v2 = vmax.f32 %v1365_v48, 0.0  ;;  %v2515_v3 = vmax.f32 %v1885_v49, 0.0  ;;  %v2391_v44 = vmax.f32 %v1389_v62, 0.0 }
  0xef   :  { %4055 = vmatprep.mubr.msk.bf16.mxu0 %vm938_vm0, %v4322_v6  ;;  %4183 = vmatprep.mubr.msk.bf16.mxu1 %vm938_vm0, %v4324_v7  ;;  %v2513_v6 = vmax.f32 %v1877_v50, 0.0  ;;  %v1381_v7 = vadd.f32 %v4932_v34, %v4861_v8  ;;  %v2517_v54 = vmax.f32 %v1893_v0, 0.0 }
  0xf0   :  { %v5022_v39 = vsel %vm2640_vm2, %v2385_v2, -inf  ;;  %v5057_v2 = vsel %vm2640_vm2, %v2391_v44, -inf }
  0xf1   :  { %v4869_v10 = vpop.f32.mrb[8].mxu0  ;;  %v4871_v11 = vpop.f32.mrb[8].mxu1  ;;  %v2389_v49 = vmax.f32 %v1381_v7, 0.0 }
  0xf2   :  { %v4873_v12 = vpop.f32.mrb[9].mxu0  ;;  %v4875_v13 = vpop.f32.mrb[9].mxu1 }
  0xf3   :  { %v4883_v16 = vpop.f32.mrb[10].mxu0  ;;  %v4885_v17 = vpop.f32.mrb[10].mxu1 }
  0xf4   :  { %v4893_v20 = vpop.f32.mrb[11].mxu0  ;;  %v4895_v21 = vpop.f32.mrb[11].mxu1 }
  0xf6   :  { %4056 = vmatmul.mubr.msk.bf16.gmra.mrb[116].mxu0 %vm938_vm0, %v4323_v14  ;;  %4184 = vmatmul.mubr.msk.bf16.gmra.mrb[116].mxu1 %vm938_vm0, %v4325_v15  ;;  %v1901_v14 = vadd.f32 %v4853_v5, %v4932_v34  ;;  %v5012_v5 = vsel %vm2640_vm2, %v2387_v57, -inf  ;;  %v1914_v57 = vadd.f32 %v4871_v11, %v4932_v34  ;;  %v1917_v11 = vadd.f32 %v4885_v17, %v4932_v34 }
  0xf7   :  { %4059 = vmatprep.mubr.msk.bf16.mxu0 %vm938_vm0, %v4326_v18  ;;  %4187 = vmatprep.mubr.msk.bf16.mxu1 %vm938_vm0, %v4328_v19  ;;  %v5002_v18 = vsel %vm2640_vm2, %v2384_v53, -inf  ;;  %v2390_v19 = vmax.f32 %v1386_v56, 0.0  ;;  %v1402_v53 = vadd.f32 %v4869_v10, %v4932_v34  ;;  %v1405_v10 = vadd.f32 %v4883_v16, %v4932_v34 }
  0xf8   :  { %v2519_v50 = vmax.f32 %v1901_v14, 0.0  ;;  %v2522_v0 = vmax.f32 %v1914_v57, 0.0 }
  0xf9   :  { %v4901_v22 = vpop.f32.mrb[12].mxu0  ;;  %v4903_v23 = vpop.f32.mrb[12].mxu1  ;;  %v5037_v55 = vsel %vm2640_vm2, %v2390_v19, -inf  ;;  %v2394_v62 = vmax.f32 %v1402_v53, 0.0  ;;  %v2523_v53 = vmax.f32 %v1917_v11, 0.0 }
  0xfa   :  { %v4905_v24 = vpop.f32.mrb[13].mxu0  ;;  %v4907_v25 = vpop.f32.mrb[13].mxu1  ;;  %v5069_v16 = vsel %vm2640_vm2, %v2519_v50, -inf  ;;  %v1418_v17 = vadd.f32 %v4901_v22, %v4932_v34 }
  0xfb   :  { %v4915_v28 = vpop.f32.mrb[14].mxu0  ;;  %v4917_v29 = vpop.f32.mrb[14].mxu1  ;;  %v1410_v44 = vadd.f32 %v4932_v34, %v4905_v24 }
  0xfc   :  { %v4925_v32 = vpop.f32.mrb[15].mxu0  ;;  %v4927_v33 = vpop.f32.mrb[15].mxu1 }
  0xfd   :  { %v1413_v24 = vadd.f32 %v4932_v34, %v4925_v32  ;;  %v2396_v32 = vmax.f32 %v1410_v44, 0.0 }
  0xfe   :  { %4060 = vmatmul.mubr.msk.bf16.gmra.mrb[120].mxu0 %vm938_vm0, %v4327_v26  ;;  %4188 = vmatmul.mubr.msk.bf16.gmra.mrb[120].mxu1 %vm938_vm0, %v4329_v27  ;;  %v2518_v26 = vmax.f32 %v1898_v58, 0.0  ;;  %v1394_v58 = vadd.f32 %v4932_v34, %v4873_v12  ;;  %v1397_v12 = vadd.f32 %v4932_v34, %v4893_v20 }
  0xff   :  { %4063 = vmatprep.mubr.msk.bf16.mxu0 %vm938_vm0, %v4330_v30  ;;  %4191 = vmatprep.mubr.msk.bf16.mxu1 %vm938_vm0, %v4332_v31  ;;  %v2388_v30 = vmax.f32 %v1378_v60, 0.0  ;;  %v2516_v31 = vmax.f32 %v1890_v61, 0.0  ;;  %v1906_v61 = vadd.f32 %v4932_v34, %v4875_v13  ;;  %v5072_v13 = vsel %vm2640_vm2, %v2517_v54, -inf }
 0x100   :  { %v5040_v56 = vsel %vm2640_vm2, %v2518_v26, -inf  ;;  %6544 = vst [vmem:[#allocation3_spill] sm:$0xff] %v5072_v13  ;;  %v2392_v20 = vmax.f32 %v1394_v58, 0.0  ;;  %v2393_v22 = vmax.f32 %v1397_v12, 0.0  ;;  %v1925_v12 = vadd.f32 %v4932_v34, %v4927_v33 }
 0x101   :  { %v4940_v36 = vpop.f32.mrb[16].mxu0  ;;  %v4942_v37 = vpop.f32.mrb[16].mxu1  ;;  %v5047_v59 = vsel %vm2640_vm2, %v2388_v30, -inf  ;;  %v5050_v60 = vsel %vm2640_vm2, %v2516_v31, -inf  ;;  %v2395_v30 = vmax.f32 %v1405_v10, 0.0  ;;  %v2520_v31 = vmax.f32 %v1906_v61, 0.0 }
 0x102   :  { %v4948_v40 = vpop.f32.mrb[17].mxu0  ;;  %v4950_v41 = vpop.f32.mrb[17].mxu1  ;;  %v5101_v61 = vsel %vm2640_vm2, %v2394_v62, -inf  ;;  %v5110_v11 = vsel %vm2640_vm2, %v2392_v20, -inf  ;;  %v5125_v33 = vsel %vm2640_vm2, %v2523_v53, -inf }
 0x103   :  { %v4962_v46 = vpop.f32.mrb[18].mxu0  ;;  %v4964_v47 = vpop.f32.mrb[18].mxu1  ;;  %6545 = vst [vmem:[#allocation4_spill] sm:$0xff] %v5101_v61  ;;  %6546 = vst [vmem:[#allocation5_spill] sm:$0xff] %v5110_v11  ;;  %v5116_v62 = vsel %vm2640_vm2, %v2395_v30, -inf  ;;  %v5119_v61 = vsel %vm2640_vm2, %v2520_v31, -inf  ;;  %v1434_v30 = vadd.f32 %v4940_v36, %v4932_v34  ;;  %v1426_v53 = vadd.f32 %v4932_v34, %v4948_v40 }
 0x104   :  { %v4972_v51 = vpop.f32.mrb[19].mxu0  ;;  %v4974_v52 = vpop.f32.mrb[19].mxu1  ;;  %6547 = vst [vmem:[#allocation6_spill] sm:$0xff] %v5125_v33  ;;  %v2525_v11 = vmax.f32 %v1925_v12, 0.0  ;;  %v5151_v36 = vsel %vm2640_vm2, %v2396_v32, -inf  ;;  %v1938_v12 = vadd.f32 %v4932_v34, %v4950_v41 }
 0x105   :  { %6551 = vst [vmem:[#allocation10_spill] sm:$0xff] %v5151_v36  ;;  %v1429_v32 = vadd.f32 %v4932_v34, %v4972_v51  ;;  %v2402_v51 = vmax.f32 %v1434_v30, 0.0 }
 0x106   :  { %4064 = vmatmul.mubr.msk.bf16.gmra.mrb[124].mxu0 %vm938_vm0, %v4331_v42  ;;  %4192 = vmatmul.mubr.msk.bf16.gmra.mrb[124].mxu1 %vm938_vm0, %v4333_v43  ;;  %v5025_v42 = vsel %vm2640_vm2, %v2515_v3, -inf  ;;  %v5028_v43 = vsel %vm2640_vm2, %v2513_v6, -inf  ;;  %v1909_v3 = vadd.f32 %v4932_v34, %v4895_v21  ;;  %v5066_v6 = vsel %vm2640_vm2, %v2389_v49, -inf }
 0x107   :  { %6543 = vst [vmem:[#allocation2_spill] sm:$0xff] %v5066_v6  ;;  %v1930_v21 = vadd.f32 %v4903_v23, %v4932_v34  ;;  %v1922_v49 = vadd.f32 %v4932_v34, %v4907_v25  ;;  %v1421_v23 = vadd.f32 %v4915_v28, %v4932_v34  ;;  %v1933_v25 = vadd.f32 %v4917_v29, %v4932_v34 }
 0x108   :  { %v2521_v58 = vmax.f32 %v1909_v3, 0.0  ;;  %v5113_v28 = vsel %vm2640_vm2, %v2522_v0, -inf  ;;  %v2398_v3 = vmax.f32 %v1418_v17, 0.0  ;;  %v5122_v29 = vsel %vm2640_vm2, %v2393_v22, -inf }
 0x109   :  { %v4997_v15 = vpop.f32.mrb[20].mxu0  ;;  %v4999_v1 = vpop.f32.mrb[20].mxu1  ;;  %v2526_v13 = vmax.f32 %v1930_v21, 0.0  ;;  %v2524_v6 = vmax.f32 %v1922_v49, 0.0  ;;  %v2399_v0 = vmax.f32 %v1421_v23, 0.0  ;;  %v2397_v17 = vmax.f32 %v1413_v24, 0.0 }
 0x10a   :  { %v5007_v27 = vpop.f32.mrb[21].mxu0  ;;  %v5009_v8 = vpop.f32.mrb[21].mxu1  ;;  %v5128_v20 = vsel %vm2640_vm2, %v2521_v58, -inf  ;;  %v2527_v21 = vmax.f32 %v1933_v25, 0.0  ;;  %v5137_v49 = vsel %vm2640_vm2, %v2398_v3, -inf  ;;  %v1946_v58 = vadd.f32 %v4942_v37, %v4932_v34 }
 0x10b   :  { %v5017_v35 = vpop.f32.mrb[22].mxu0  ;;  %v5019_v38 = vpop.f32.mrb[22].mxu1  ;;  %6548 = vst [vmem:[#allocation7_spill] sm:$0xff] %v5128_v20  ;;  %6549 = vst [vmem:[#allocation8_spill] sm:$0xff] %v5137_v49  ;;  %v5140_v22 = vsel %vm2640_vm2, %v2526_v13, -inf  ;;  %v5154_v25 = vsel %vm2640_vm2, %v2524_v6, -inf  ;;  %v1437_v13 = vadd.f32 %v4962_v46, %v4932_v34  ;;  %v1949_v6 = vadd.f32 %v4964_v47, %v4932_v34 }
 0x10c   :  { %v5030_v45 = vpop.f32.mrb[23].mxu0  ;;  %v5032_v48 = vpop.f32.mrb[23].mxu1  ;;  %6550 = vst [vmem:[#allocation9_spill] sm:$0xff] %v5140_v22  ;;  %6552 = vst [vmem:[#allocation11_spill] sm:$0xff] %v5154_v25  ;;  %v5165_v37 = vsel %vm2640_vm2, %v2399_v0, -inf  ;;  %v1941_v25 = vadd.f32 %v4932_v34, %v4974_v52  ;;  %v5178_v41 = vsel %vm2640_vm2, %v2397_v17, -inf  ;;  %v1450_v47 = vadd.f32 %v4997_v15, %v4932_v34 }
 0x10d   :  { %6553 = vst [vmem:[#allocation12_spill] sm:$0xff] %v5165_v37  ;;  %v5181_v36 = vsel %vm2640_vm2, %v2527_v21, -inf  ;;  %v5184_v0 = vsel %vm2640_vm2, %v2525_v11, -inf  ;;  %v2400_v37 = vmax.f32 %v1426_v53, 0.0  ;;  %v2530_v49 = vmax.f32 %v1946_v58, 0.0 }
 0x10e   :  { %6554 = vst [vmem:[#allocation13_spill] sm:$0xff] %v5181_v36  ;;  %6555 = vst [vmem:[#allocation14_spill] sm:$0xff] %v5184_v0  ;;  %v1962_v52 = vadd.f32 %v4999_v1, %v4932_v34  ;;  %v2403_v20 = vmax.f32 %v1437_v13, 0.0  ;;  %v2528_v33 = vmax.f32 %v1938_v12, 0.0  ;;  %v1442_v17 = vadd.f32 %v4932_v34, %v5007_v27 }
 0x10f   :  { %v1954_v21 = vadd.f32 %v4932_v34, %v5009_v8  ;;  %v2401_v36 = vmax.f32 %v1429_v32, 0.0  ;;  %v2531_v11 = vmax.f32 %v1949_v6, 0.0  ;;  %v2529_v0 = vmax.f32 %v1941_v25, 0.0 }
 0x110   :  { %v1453_v30 = vadd.f32 %v5017_v35, %v4932_v34  ;;  %v5197_v53 = vsel %vm2640_vm2, %v2402_v51, -inf  ;;  %v1445_v15 = vadd.f32 %v4932_v34, %v5030_v45  ;;  %v1965_v1 = vadd.f32 %v5019_v38, %v4932_v34 }
 0x111   :  { %v5074_v7 = vpop.f32.mrb[24].mxu0  ;;  %v5076_v14 = vpop.f32.mrb[24].mxu1  ;;  %6556 = vst [vmem:[#allocation15_spill] sm:$0xff] %v5197_v53  ;;  %v1957_v27 = vadd.f32 %v4932_v34, %v5032_v48  ;;  %v5210_v25 = vsel %vm2640_vm2, %v2400_v37, -inf  ;;  %v5213_v35 = vsel %vm2640_vm2, %v2530_v49, -inf  ;;  %v2406_v13 = vmax.f32 %v1450_v47, 0.0 }
 0x112   :  { %v5082_v19 = vpop.f32.mrb[25].mxu0  ;;  %v5084_v26 = vpop.f32.mrb[25].mxu1  ;;  %6557 = vst [vmem:[#allocation16_spill] sm:$0xff] %v5213_v35  ;;  %v2534_v12 = vmax.f32 %v1962_v52, 0.0  ;;  %v5220_v38 = vsel %vm2640_vm2, %v2403_v20, -inf  ;;  %v5223_v48 = vsel %vm2640_vm2, %v2528_v33, -inf  ;;  %v1466_v35 = vadd.f32 %v5074_v7, %v4932_v34 }
 0x113   :  { %v5090_v50 = vpop.f32.mrb[26].mxu0  ;;  %v5092_v54 = vpop.f32.mrb[26].mxu1  ;;  %6558 = vst [vmem:[#allocation17_spill] sm:$0xff] %v5220_v38  ;;  %6559 = vst [vmem:[#allocation18_spill] sm:$0xff] %v5223_v48  ;;  %v2404_v6 = vmax.f32 %v1442_v17, 0.0  ;;  %v2532_v51 = vmax.f32 %v1954_v21, 0.0 }
 0x114   :  { %v5096_v57 = vpop.f32.mrb[27].mxu0  ;;  %v5098_v10 = vpop.f32.mrb[27].mxu1  ;;  %v5230_v49 = vsel %vm2640_vm2, %v2401_v36, -inf  ;;  %v5233_v47 = vsel %vm2640_vm2, %v2531_v11, -inf  ;;  %v5236_v52 = vsel %vm2640_vm2, %v2529_v0, -inf  ;;  %v2407_v20 = vmax.f32 %v1453_v30, 0.0 }
 0x115   :  { %6560 = vst [vmem:[#allocation19_spill] sm:$0xff] %v5236_v52  ;;  %v2405_v17 = vmax.f32 %v1445_v15, 0.0  ;;  %v2535_v21 = vmax.f32 %v1965_v1, 0.0  ;;  %v2533_v48 = vmax.f32 %v1957_v27, 0.0  ;;  %v5245_v36 = vsel %vm2640_vm2, %v2406_v13, -inf }
 0x116   :  { %6561 = vst [vmem:[#allocation20_spill] sm:$0xff] %v5245_v36  ;;  %v5248_v11 = vsel %vm2640_vm2, %v2534_v12, -inf  ;;  %v1458_v0 = vadd.f32 %v4932_v34, %v5082_v19  ;;  %v1978_v30 = vadd.f32 %v5076_v14, %v4932_v34  ;;  %v5255_v52 = vsel %vm2640_vm2, %v2404_v6, -inf }
 0x117   :  { %6562 = vst [vmem:[#allocation21_spill] sm:$0xff] %v5248_v11  ;;  %6563 = vst [vmem:[#allocation22_spill] sm:$0xff] %v5255_v52  ;;  %v5258_v15 = vsel %vm2640_vm2, %v2532_v51, -inf  ;;  %v1469_v7 = vadd.f32 %v5090_v50, %v4932_v34  ;;  %v1970_v1 = vadd.f32 %v4932_v34, %v5084_v26  ;;  %v5265_v27 = vsel %vm2640_vm2, %v2407_v20, -inf }
 0x118   :  { %6564 = vst [vmem:[#allocation23_spill] sm:$0xff] %v5258_v15  ;;  %6565 = vst [vmem:[#allocation24_spill] sm:$0xff] %v5265_v27  ;;  %v1461_v19 = vadd.f32 %v4932_v34, %v5096_v57  ;;  %v1981_v14 = vadd.f32 %v5092_v54, %v4932_v34  ;;  %v1973_v13 = vadd.f32 %v4932_v34, %v5098_v10  ;;  %v5274_v12 = vsel %vm2640_vm2, %v2405_v17, -inf }
 0x119   :  { %v5132_v31 = vpop.f32.mrb[28].mxu0  ;;  %v5134_v44 = vpop.f32.mrb[28].mxu1  ;;  %6566 = vst [vmem:[#allocation25_spill] sm:$0xff] %v5274_v12  ;;  %v5277_v50 = vsel %vm2640_vm2, %v2535_v21, -inf  ;;  %v5280_v26 = vsel %vm2640_vm2, %v2533_v48, -inf  ;;  %v2410_v6 = vmax.f32 %v1466_v35, 0.0 }
 0x11a   :  { %v5146_v23 = vpop.f32.mrb[29].mxu0  ;;  %v5148_v24 = vpop.f32.mrb[29].mxu1  ;;  %6567 = vst [vmem:[#allocation26_spill] sm:$0xff] %v5277_v50  ;;  %6568 = vst [vmem:[#allocation27_spill] sm:$0xff] %v5280_v26  ;;  %v2408_v57 = vmax.f32 %v1458_v0, 0.0  ;;  %v2538_v15 = vmax.f32 %v1978_v30, 0.0  ;;  %v1482_v54 = vadd.f32 %v5132_v31, %v4932_v34  ;;  %v1994_v10 = vadd.f32 %v5134_v44, %v4932_v34 }
 0x11b   :  { %v5160_v40 = vpop.f32.mrb[30].mxu0  ;;  %v5162_v3 = vpop.f32.mrb[30].mxu1  ;;  %v2411_v50 = vmax.f32 %v1469_v7, 0.0  ;;  %v2536_v48 = vmax.f32 %v1970_v1, 0.0  ;;  %v1474_v35 = vadd.f32 %v4932_v34, %v5146_v23  ;;  %v1986_v26 = vadd.f32 %v4932_v34, %v5148_v24 }
 0x11c   :  { %v5173_v46 = vpop.f32.mrb[31].mxu0  ;;  %v5175_v22 = vpop.f32.mrb[31].mxu1  ;;  %v2409_v31 = vmax.f32 %v1461_v19, 0.0  ;;  %v2539_v12 = vmax.f32 %v1981_v14, 0.0  ;;  %v2537_v27 = vmax.f32 %v1973_v13, 0.0  ;;  %v1485_v44 = vadd.f32 %v5160_v40, %v4932_v34 }
 0x11d   :  { %v5305_v7 = vsel %vm2640_vm2, %v2410_v6, -inf  ;;  %v1477_v23 = vadd.f32 %v4932_v34, %v5173_v46  ;;  %v1997_v24 = vadd.f32 %v5162_v3, %v4932_v34  ;;  %v1989_v1 = vadd.f32 %v4932_v34, %v5175_v22 }
 0x11e   :  { %6569 = vst [vmem:[#allocation28_spill] sm:$0xff] %v5305_v7  ;;  %v5314_v19 = vsel %vm2640_vm2, %v2408_v57, -inf  ;;  %v5317_v14 = vsel %vm2640_vm2, %v2538_v15, -inf  ;;  %v2414_v40 = vmax.f32 %v1482_v54, 0.0  ;;  %v2542_v13 = vmax.f32 %v1994_v10, 0.0 }
 0x11f   :  { %6570 = vst [vmem:[#allocation29_spill] sm:$0xff] %v5317_v14  ;;  %v5320_v6 = vsel %vm2640_vm2, %v2411_v50, -inf  ;;  %v5323_v7 = vsel %vm2640_vm2, %v2536_v48, -inf  ;;  %v2412_v46 = vmax.f32 %v1474_v35, 0.0  ;;  %v2540_v36 = vmax.f32 %v1986_v26, 0.0 }
 0x120   :  { %v5326_v3 = vsel %vm2640_vm2, %v2409_v31, -inf  ;;  %v5329_v22 = vsel %vm2640_vm2, %v2539_v12, -inf  ;;  %v5332_v57 = vsel %vm2640_vm2, %v2537_v27, -inf  ;;  %v2415_v15 = vmax.f32 %v1485_v44, 0.0 }
 0x121   :  { %v5205_v58 = vpop.f32.mrb[32].mxu0  ;;  %v5207_v8 = vpop.f32.mrb[32].mxu1  ;;  %6571 = vst [vmem:[#allocation30_spill] sm:$0xff] %v5329_v22  ;;  %6572 = vst [vmem:[#allocation31_spill] sm:$0xff] %v5332_v57  ;;  %v2413_v54 = vmax.f32 %v1477_v23, 0.0  ;;  %v2543_v10 = vmax.f32 %v1997_v24, 0.0 }
 0x122   :  { %v5215_v32 = vpop.f32.mrb[33].mxu0  ;;  %v5217_v45 = vpop.f32.mrb[33].mxu1  ;;  %v2541_v14 = vmax.f32 %v1989_v1, 0.0  ;;  %v1498_v50 = vadd.f32 %v5205_v58, %v4932_v34  ;;  %v5341_v26 = vsel %vm2640_vm2, %v2414_v40, -inf  ;;  %v5344_v12 = vsel %vm2640_vm2, %v2542_v13, -inf }
 0x123   :  { %v5225_v53 = vpop.f32.mrb[34].mxu0  ;;  %v5227_v37 = vpop.f32.mrb[34].mxu1  ;;  %6573 = vst [vmem:[#allocation32_spill] sm:$0xff] %v5341_v26  ;;  %6574 = vst [vmem:[#allocation33_spill] sm:$0xff] %v5344_v12  ;;  %v1490_v27 = vadd.f32 %v4932_v34, %v5215_v32  ;;  %v2010_v31 = vadd.f32 %v5207_v8, %v4932_v34  ;;  %v5353_v58 = vsel %vm2640_vm2, %v2412_v46, -inf  ;;  %v5356_v24 = vsel %vm2640_vm2, %v2540_v36, -inf }
 0x124   :  { %v5238_v38 = vpop.f32.mrb[35].mxu0  ;;  %v5240_v33 = vpop.f32.mrb[35].mxu1  ;;  %6575 = vst [vmem:[#allocation34_spill] sm:$0xff] %v5353_v58  ;;  %6576 = vst [vmem:[#allocation35_spill] sm:$0xff] %v5356_v24  ;;  %v1501_v1 = vadd.f32 %v5225_v53, %v4932_v34  ;;  %v2002_v40 = vadd.f32 %v4932_v34, %v5217_v45  ;;  %v5363_v12 = vsel %vm2640_vm2, %v2415_v15, -inf  ;;  %v2013_v46 = vadd.f32 %v5227_v37, %v4932_v34 }
 0x125   :  { %6577 = vst [vmem:[#allocation36_spill] sm:$0xff] %v5363_v12  ;;  %v1493_v8 = vadd.f32 %v4932_v34, %v5238_v38  ;;  %v2005_v36 = vadd.f32 %v4932_v34, %v5240_v33  ;;  %v5372_v53 = vsel %vm2640_vm2, %v2413_v54, -inf  ;;  %v5375_v45 = vsel %vm2640_vm2, %v2543_v10, -inf }
 0x126   :  { %6578 = vst [vmem:[#allocation37_spill] sm:$0xff] %v5372_v53  ;;  %6579 = vst [vmem:[#allocation38_spill] sm:$0xff] %v5375_v45  ;;  %v5378_v15 = vsel %vm2640_vm2, %v2541_v14, -inf  ;;  %v2418_v12 = vmax.f32 %v1498_v50, 0.0  ;;  %v2416_v26 = vmax.f32 %v1490_v27, 0.0  ;;  %v2546_v38 = vmax.f32 %v2010_v31, 0.0 }
 0x127   :  { %6580 = vst [vmem:[#allocation39_spill] sm:$0xff] %v5378_v15  ;;  %v2419_v57 = vmax.f32 %v1501_v1, 0.0  ;;  %v2544_v22 = vmax.f32 %v2002_v40, 0.0  ;;  %v2417_v45 = vmax.f32 %v1493_v8, 0.0  ;;  %v2547_v14 = vmax.f32 %v2013_v46, 0.0 }
 0x128   :  { %v2545_v15 = vmax.f32 %v2005_v36, 0.0  ;;  %v5391_v27 = vsel %vm2640_vm2, %v2418_v12, -inf  ;;  %v5401_v40 = vsel %vm2640_vm2, %v2546_v38, -inf }
 0x129   :  { %v5282_v51 = vpop.f32.mrb[36].mxu0  ;;  %v5284_v20 = vpop.f32.mrb[36].mxu1  ;;  %6581 = vst [vmem:[#allocation40_spill] sm:$0xff] %v5391_v27  ;;  %6583 = vst [vmem:[#allocation42_spill] sm:$0xff] %v5401_v40  ;;  %v5404_v36 = vsel %vm2640_vm2, %v2419_v57, -inf  ;;  %v5413_v38 = vsel %vm2640_vm2, %v2547_v14, -inf }
 0x12a   :  { %v5290_v17 = vpop.f32.mrb[37].mxu0  ;;  %v5292_v21 = vpop.f32.mrb[37].mxu1  ;;  %v1514_v37 = vadd.f32 %v5282_v51, %v4932_v34  ;;  %v2026_v33 = vadd.f32 %v5284_v20, %v4932_v34  ;;  %6584 = vst [vmem:[#allocation43_spill] sm:$0xff] %v5404_v36 }
 0x12b   :  { %v5298_v0 = vpop.f32.mrb[38].mxu0  ;;  %v5300_v30 = vpop.f32.mrb[38].mxu1  ;;  %v1506_v54 = vadd.f32 %v4932_v34, %v5290_v17  ;;  %v2018_v10 = vadd.f32 %v4932_v34, %v5292_v21  ;;  %v5398_v21 = vsel %vm2640_vm2, %v2416_v26, -inf  ;;  %v5410_v26 = vsel %vm2640_vm2, %v2417_v45, -inf }
 0x12c   :  { %v1508_v11 = vpop.f32.mrb[39].mxu0  ;;  %v2020_v52 = vpop.f32.mrb[39].mxu1  ;;  %v1517_v50 = vadd.f32 %v5298_v0, %v4932_v34  ;;  %v2029_v20 = vadd.f32 %v5300_v30, %v4932_v34  ;;  %6582 = vst [vmem:[#allocation41_spill] sm:$0xff] %v5398_v21  ;;  %v2422_v8 = vmax.f32 %v1514_v37, 0.0  ;;  %v2550_v0 = vmax.f32 %v2026_v33, 0.0 }
 0x12d   :  { %v1509_v51 = vadd.f32 %v4932_v34, %v1508_v11  ;;  %v2021_v31 = vadd.f32 %v4932_v34, %v2020_v52  ;;  %v5407_v11 = vsel %vm2640_vm2, %v2544_v22, -inf  ;;  %v2420_v30 = vmax.f32 %v1506_v54, 0.0 }
 0x12e   :  { %v2548_v52 = vmax.f32 %v2018_v10, 0.0  ;;  %v5416_v37 = vsel %vm2640_vm2, %v2545_v15, -inf  ;;  %v2423_v33 = vmax.f32 %v1517_v50, 0.0  ;;  %v2551_v21 = vmax.f32 %v2029_v20, 0.0 }
 0x12f   :  { %6585 = vst [vmem:[#allocation44_spill] sm:$0xff] %v5416_v37  ;;  %v2421_v36 = vmax.f32 %v1509_v51, 0.0  ;;  %v2549_v22 = vmax.f32 %v2021_v31, 0.0  ;;  %v5421_v10 = vsel %vm2640_vm2, %v2422_v8, -inf  ;;  %v5424_v45 = vsel %vm2640_vm2, %v2550_v0, -inf }
 0x130   :  { %6586 = vst [vmem:[#allocation45_spill] sm:$0xff] %v5421_v10  ;;  %6587 = vst [vmem:[#allocation46_spill] sm:$0xff] %v5424_v45  ;;  %v5430_v50 = vsel %vm2640_vm2, %v2420_v30, -inf  ;;  %v5433_v51 = vsel %vm2640_vm2, %v2548_v52, -inf  ;;  %v5439_v31 = vsel %vm2640_vm2, %v2423_v33, -inf  ;;  %v5448_v30 = vsel %vm2640_vm2, %v2551_v21, -inf }
 0x131   :  { %v5336_v48 = vpop.f32.mrb[40].mxu0  ;;  %v5338_v35 = vpop.f32.mrb[40].mxu1  ;;  %6588 = vst [vmem:[#allocation47_spill] sm:$0xff] %v5430_v50  ;;  %6589 = vst [vmem:[#allocation48_spill] sm:$0xff] %v5433_v51  ;;  %v5445_v0 = vsel %vm2640_vm2, %v2421_v36, -inf }
 0x132   :  { %v1521_v44 = vpop.f32.mrb[41].mxu0  ;;  %v5350_v23 = vpop.f32.mrb[41].mxu1  ;;  %v1530_v54 = vadd.f32 %v5336_v48, %v4932_v34  ;;  %v2042_v15 = vadd.f32 %v5338_v35, %v4932_v34  ;;  %6590 = vst [vmem:[#allocation49_spill] sm:$0xff] %v5439_v31  ;;  %6591 = vst [vmem:[#allocation50_spill] sm:$0xff] %v5445_v0 }
 0x133   :  { %v3982_v13 = vpop.f32.mrb[42].mxu0  ;;  %v4110_v32 = vpop.f32.mrb[42].mxu1  ;;  %v1522_v14 = vadd.f32 %v4932_v34, %v1521_v44  ;;  %v2034_v48 = vadd.f32 %v4932_v34, %v5350_v23  ;;  %6592 = vst [vmem:[#allocation51_spill] sm:$0xff] %v5448_v30 }
 0x134   :  { %v1524_v24 = vpop.f32.mrb[43].mxu0  ;;  %v2036_v58 = vpop.f32.mrb[43].mxu1  ;;  %v1533_v20 = vadd.f32 %v3982_v13, %v4932_v34  ;;  %v2045_v44 = vadd.f32 %v4110_v32, %v4932_v34  ;;  %v5451_v13 = vsel %vm2640_vm2, %v2549_v22, -inf  ;;  %v2426_v52 = vmax.f32 %v1530_v54, 0.0 }
 0x135   :  { %v1525_v8 = vadd.f32 %v4932_v34, %v1524_v24  ;;  %v2037_v35 = vadd.f32 %v4932_v34, %v2036_v58  ;;  %6593 = vst [vmem:[#allocation52_spill] sm:$0xff] %v5451_v13  ;;  %v2424_v33 = vmax.f32 %v1522_v14, 0.0  ;;  %v2554_v31 = vmax.f32 %v2042_v15, 0.0 }
 0x136   :  { %v2427_v50 = vmax.f32 %v1533_v20, 0.0  ;;  %v2552_v36 = vmax.f32 %v2034_v48, 0.0  ;;  %v2555_v54 = vmax.f32 %v2045_v44, 0.0 }
 0x137   :  { %v2425_v13 = vmax.f32 %v1525_v8, 0.0  ;;  %v2553_v10 = vmax.f32 %v2037_v35, 0.0  ;;  %v5468_v48 = vsel %vm2640_vm2, %v2554_v31, -inf }
 0x138   :  { %6594 = vst [vmem:[#allocation53_spill] sm:$0xff] %v5468_v48  ;;  %v5474_v35 = vsel %vm2640_vm2, %v2552_v36, -inf }
 0x139   :  { %v3985_v17 = vpop.f32.mrb[44].mxu0  ;;  %v4113_v1 = vpop.f32.mrb[44].mxu1 }
 0x13a   :  { %v1537_v46 = vpop.f32.mrb[45].mxu0  ;;  %v2049_v12 = vpop.f32.mrb[45].mxu1  ;;  %v1546_v24 = vadd.f32 %v3985_v17, %v4932_v34  ;;  %v2058_v32 = vadd.f32 %v4113_v1, %v4932_v34  ;;  %v5459_v17 = vsel %vm2640_vm2, %v2426_v52, -inf }
 0x13b   :  { %v3986_v27 = vpop.f32.mrb[46].mxu0  ;;  %v4114_v53 = vpop.f32.mrb[46].mxu1  ;;  %v1538_v0 = vadd.f32 %v4932_v34, %v1537_v46  ;;  %v2050_v21 = vadd.f32 %v4932_v34, %v2049_v12  ;;  %v5465_v12 = vsel %vm2640_vm2, %v2424_v33, -inf  ;;  %v5483_v33 = vsel %vm2640_vm2, %v2553_v10, -inf }
 0x13c   :  { %v1540_v40 = vpop.f32.mrb[47].mxu0  ;;  %v2052_v57 = vpop.f32.mrb[47].mxu1  ;;  %v1549_v14 = vadd.f32 %v3986_v27, %v4932_v34  ;;  %v2061_v20 = vadd.f32 %v4114_v53, %v4932_v34  ;;  %v2430_v8 = vmax.f32 %v1546_v24, 0.0  ;;  %v2558_v44 = vmax.f32 %v2058_v32, 0.0  ;;  %6598 = vst [vmem:[#allocation57_spill] sm:$0xff] %v5483_v33 }
 0x13d   :  { %v1541_v1 = vadd.f32 %v4932_v34, %v1540_v40  ;;  %v2053_v46 = vadd.f32 %v4932_v34, %v2052_v57  ;;  %v5471_v27 = vsel %vm2640_vm2, %v2427_v50, -inf  ;;  %v2428_v52 = vmax.f32 %v1538_v0, 0.0 }
 0x13e   :  { %6595 = vst [vmem:[#allocation54_spill] sm:$0xff] %v5471_v27  ;;  %v2556_v40 = vmax.f32 %v2050_v21, 0.0  ;;  %v5477_v53 = vsel %vm2640_vm2, %v2425_v13, -inf  ;;  %v5480_v57 = vsel %vm2640_vm2, %v2555_v54, -inf  ;;  %v2431_v31 = vmax.f32 %v1549_v14, 0.0 }
 0x13f   :  { %6596 = vst [vmem:[#allocation55_spill] sm:$0xff] %v5477_v53  ;;  %6597 = vst [vmem:[#allocation56_spill] sm:$0xff] %v5480_v57  ;;  %v2429_v24 = vmax.f32 %v1541_v1, 0.0  ;;  %v2559_v32 = vmax.f32 %v2061_v20, 0.0  ;;  %v2557_v48 = vmax.f32 %v2053_v46, 0.0  ;;  %v5487_v0 = vsel %vm2640_vm2, %v2430_v8, -inf }
 0x140   :  { %6599 = vst [vmem:[#allocation58_spill] sm:$0xff] %v5487_v0  ;;  %v5490_v13 = vsel %vm2640_vm2, %v2558_v44, -inf  ;;  %v5495_v14 = vsel %vm2640_vm2, %v2428_v52, -inf  ;;  %v5498_v1 = vsel %vm2640_vm2, %v2556_v40, -inf  ;;  %v5503_v44 = vsel %vm2640_vm2, %v2431_v31, -inf }
 0x141   :  { %v3989_v23 = vpop.f32.mrb[48].mxu0  ;;  %v4117_v51 = vpop.f32.mrb[48].mxu1  ;;  %6600 = vst [vmem:[#allocation59_spill] sm:$0xff] %v5490_v13  ;;  %6601 = vst [vmem:[#allocation60_spill] sm:$0xff] %v5495_v14  ;;  %v5509_v40 = vsel %vm2640_vm2, %v2429_v24, -inf }
 0x142   :  { %v1553_v45 = vpop.f32.mrb[49].mxu0  ;;  %v2065_v58 = vpop.f32.mrb[49].mxu1  ;;  %v1562_v50 = vadd.f32 %v3989_v23, %v4932_v34  ;;  %v2074_v54 = vadd.f32 %v4117_v51, %v4932_v34  ;;  %6602 = vst [vmem:[#allocation61_spill] sm:$0xff] %v5498_v1  ;;  %6603 = vst [vmem:[#allocation62_spill] sm:$0xff] %v5503_v44 }
 0x143   :  { %v3990_v30 = vpop.f32.mrb[50].mxu0  ;;  %v4118_v22 = vpop.f32.mrb[50].mxu1  ;;  %v1554_v21 = vadd.f32 %v4932_v34, %v1553_v45  ;;  %v2066_v20 = vadd.f32 %v4932_v34, %v2065_v58  ;;  %6604 = vst [vmem:[#allocation63_spill] sm:$0xff] %v5509_v40  ;;  %v5515_v58 = vsel %vm2640_vm2, %v2557_v48, -inf }
 0x144   :  { %v1556_v15 = vpop.f32.mrb[51].mxu0  ;;  %v2068_v37 = vpop.f32.mrb[51].mxu1  ;;  %v1565_v23 = vadd.f32 %v3990_v30, %v4932_v34  ;;  %v2077_v51 = vadd.f32 %v4118_v22, %v4932_v34  ;;  %v5512_v30 = vsel %vm2640_vm2, %v2559_v32, -inf  ;;  %v2434_v1 = vmax.f32 %v1562_v50, 0.0 }
 0x145   :  { %v1557_v45 = vadd.f32 %v4932_v34, %v1556_v15  ;;  %v2069_v13 = vadd.f32 %v4932_v34, %v2068_v37  ;;  %6605 = vst [vmem:[#allocation64_spill] sm:$0xff] %v5512_v30  ;;  %v2432_v31 = vmax.f32 %v1554_v21, 0.0  ;;  %v2562_v44 = vmax.f32 %v2074_v54, 0.0 }
 0x146   :  { %v2435_v0 = vmax.f32 %v1565_v23, 0.0  ;;  %v2560_v37 = vmax.f32 %v2066_v20, 0.0  ;;  %v2563_v53 = vmax.f32 %v2077_v51, 0.0  ;;  %v5523_v48 = vsel %vm2640_vm2, %v2434_v1, -inf }
 0x147   :  { %v2433_v40 = vmax.f32 %v1557_v45, 0.0  ;;  %v2561_v32 = vmax.f32 %v2069_v13, 0.0 }
 0x148   :  { %v5535_v1 = vsel %vm2640_vm2, %v2435_v0, -inf  ;;  %v5538_v45 = vsel %vm2640_vm2, %v2560_v37, -inf }
 0x149   :  { %v3993_v27 = vpop.f32.mrb[52].mxu0  ;;  %v4121_v36 = vpop.f32.mrb[52].mxu1  ;;  %6608 = vst [vmem:[#allocation67_spill] sm:$0xff] %v5535_v1 }
 0x14a   :  { %v1569_v10 = vpop.f32.mrb[53].mxu0  ;;  %v2081_v33 = vpop.f32.mrb[53].mxu1  ;;  %v1578_v15 = vadd.f32 %v3993_v27, %v4932_v34  ;;  %v2090_v22 = vadd.f32 %v4121_v36, %v4932_v34 }
 0x14b   :  { %v3994_v46 = vpop.f32.mrb[54].mxu0  ;;  %v4122_v8 = vpop.f32.mrb[54].mxu1  ;;  %v1570_v57 = vadd.f32 %v4932_v34, %v1569_v10  ;;  %v2082_v24 = vadd.f32 %v4932_v34, %v2081_v33  ;;  %v5529_v10 = vsel %vm2640_vm2, %v2432_v31, -inf  ;;  %v5532_v33 = vsel %vm2640_vm2, %v2562_v44, -inf }
 0x14c   :  { %v1572_v52 = vpop.f32.mrb[55].mxu0  ;;  %v2084_v14 = vpop.f32.mrb[55].mxu1  ;;  %v1581_v30 = vadd.f32 %v3994_v46, %v4932_v34  ;;  %v2093_v27 = vadd.f32 %v4122_v8, %v4932_v34  ;;  %6606 = vst [vmem:[#allocation65_spill] sm:$0xff] %v5529_v10  ;;  %6607 = vst [vmem:[#allocation66_spill] sm:$0xff] %v5532_v33  ;;  %v2438_v13 = vmax.f32 %v1578_v15, 0.0  ;;  %v2566_v23 = vmax.f32 %v2090_v22, 0.0 }
 0x14d   :  { %v1573_v50 = vadd.f32 %v4932_v34, %v1572_v52  ;;  %v2085_v36 = vadd.f32 %v4932_v34, %v2084_v14  ;;  %v2436_v8 = vmax.f32 %v1570_v57, 0.0  ;;  %v2564_v14 = vmax.f32 %v2082_v24, 0.0 }
 0x14e   :  { %v5541_v31 = vsel %vm2640_vm2, %v2433_v40, -inf  ;;  %v5544_v44 = vsel %vm2640_vm2, %v2563_v53, -inf  ;;  %v5547_v15 = vsel %vm2640_vm2, %v2561_v32, -inf  ;;  %v2439_v22 = vmax.f32 %v1581_v30, 0.0 }
 0x14f   :  { %6609 = vst [vmem:[#allocation68_spill] sm:$0xff] %v5541_v31  ;;  %6610 = vst [vmem:[#allocation69_spill] sm:$0xff] %v5544_v44  ;;  %v2437_v1 = vmax.f32 %v1573_v50, 0.0  ;;  %v2567_v10 = vmax.f32 %v2093_v27, 0.0  ;;  %v2565_v37 = vmax.f32 %v2085_v36, 0.0  ;;  %v5551_v24 = vsel %vm2640_vm2, %v2438_v13, -inf }
 0x150   :  { %6611 = vst [vmem:[#allocation70_spill] sm:$0xff] %v5547_v15  ;;  %6612 = vst [vmem:[#allocation71_spill] sm:$0xff] %v5551_v24  ;;  %v5554_v40 = vsel %vm2640_vm2, %v2566_v23, -inf  ;;  %v5559_v32 = vsel %vm2640_vm2, %v2436_v8, -inf  ;;  %v5562_v30 = vsel %vm2640_vm2, %v2564_v14, -inf  ;;  %v5567_v36 = vsel %vm2640_vm2, %v2439_v22, -inf }
 0x151   :  { %v3997_v21 = vpop.f32.mrb[56].mxu0  ;;  %v4125_v54 = vpop.f32.mrb[56].mxu1  ;;  %6613 = vst [vmem:[#allocation72_spill] sm:$0xff] %v5554_v40  ;;  %6614 = vst [vmem:[#allocation73_spill] sm:$0xff] %v5559_v32  ;;  %v5579_v8 = vsel %vm2640_vm2, %v2565_v37, -inf }
 0x152   :  { %v1585_v20 = vpop.f32.mrb[57].mxu0  ;;  %v2097_v46 = vpop.f32.mrb[57].mxu1  ;;  %v1594_v57 = vadd.f32 %v3997_v21, %v4932_v34  ;;  %v2106_v44 = vadd.f32 %v4125_v54, %v4932_v34  ;;  %6615 = vst [vmem:[#allocation74_spill] sm:$0xff] %v5562_v30  ;;  %6616 = vst [vmem:[#allocation75_spill] sm:$0xff] %v5567_v36  ;;  %v5573_v54 = vsel %vm2640_vm2, %v2437_v1, -inf }
 0x153   :  { %v3998_v51 = vpop.f32.mrb[58].mxu0  ;;  %v4126_v52 = vpop.f32.mrb[58].mxu1  ;;  %v1586_v53 = vadd.f32 %v4932_v34, %v1585_v20  ;;  %v2098_v27 = vadd.f32 %v4932_v34, %v2097_v46  ;;  %6617 = vst [vmem:[#allocation76_spill] sm:$0xff] %v5573_v54  ;;  %v5576_v20 = vsel %vm2640_vm2, %v2567_v10, -inf  ;;  %6619 = vst [vmem:[#allocation78_spill] sm:$0xff] %v5579_v8 }
 0x154   :  { %v1588_v33 = vpop.f32.mrb[59].mxu0  ;;  %v2100_v0 = vpop.f32.mrb[59].mxu1  ;;  %v1597_v50 = vadd.f32 %v3998_v51, %v4932_v34  ;;  %v2109_v13 = vadd.f32 %v4126_v52, %v4932_v34  ;;  %6618 = vst [vmem:[#allocation77_spill] sm:$0xff] %v5576_v20  ;;  %v2442_v14 = vmax.f32 %v1594_v57, 0.0  ;;  %v2570_v30 = vmax.f32 %v2106_v44, 0.0 }
 0x155   :  { %v1589_v21 = vadd.f32 %v4932_v34, %v1588_v33  ;;  %v2101_v23 = vadd.f32 %v4932_v34, %v2100_v0  ;;  %v2440_v22 = vmax.f32 %v1586_v53, 0.0  ;;  %v2568_v1 = vmax.f32 %v2098_v27, 0.0 }
 0x156   :  { %v2443_v40 = vmax.f32 %v1597_v50, 0.0  ;;  %v2571_v57 = vmax.f32 %v2109_v13, 0.0  ;;  %v5588_v50 = vsel %vm2640_vm2, %v2442_v14, -inf  ;;  %v5591_v27 = vsel %vm2640_vm2, %v2570_v30, -inf }
 0x157   :  { %v2441_v8 = vmax.f32 %v1589_v21, 0.0  ;;  %v2569_v32 = vmax.f32 %v2101_v23, 0.0  ;;  %v5597_v13 = vsel %vm2640_vm2, %v2440_v22, -inf  ;;  %v5600_v23 = vsel %vm2640_vm2, %v2568_v1, -inf }
 0x158   :  { %v5606_v14 = vsel %vm2640_vm2, %v2443_v40, -inf }
 0x159   :  { %v4001_v46 = vpop.f32.mrb[60].mxu0  ;;  %v4129_v51 = vpop.f32.mrb[60].mxu1  ;;  %v5609_v30 = vsel %vm2640_vm2, %v2441_v8, -inf }
 0x15a   :  { %v1610_v33 = vadd.f32 %v4001_v46, %v4932_v34  ;;  %v1601_v36 = vpop.f32.mrb[61].mxu0  ;;  %v2122_v52 = vadd.f32 %v4129_v51, %v4932_v34  ;;  %v2113_v0 = vpop.f32.mrb[61].mxu1 }
 0x15b   :  { %v1602_v54 = vadd.f32 %v4932_v34, %v1601_v36  ;;  %v4002_v10 = vpop.f32.mrb[62].mxu0  ;;  %v2114_v20 = vadd.f32 %v4932_v34, %v2113_v0  ;;  %v4130_v37 = vpop.f32.mrb[62].mxu1 }
 0x15c   :  { %v1613_v53 = vadd.f32 %v4002_v10, %v4932_v34  ;;  %v1604_v44 = vpop.f32.mrb[63].mxu0  ;;  %v2116_v24 = vpop.f32.mrb[63].mxu1  ;;  %v2446_v46 = vmax.f32 %v1610_v33, 0.0  ;;  %v2574_v31 = vmax.f32 %v2122_v52, 0.0  ;;  %v2125_v51 = vadd.f32 %v4130_v37, %v4932_v34 }
 0x15d   :  { %v2444_v15 = vmax.f32 %v1602_v54, 0.0  ;;  %v2572_v36 = vmax.f32 %v2114_v20, 0.0  ;;  %v5594_v21 = vadd.f32 %v4932_v34, %v1604_v44  ;;  %v5603_v33 = vadd.f32 %v4932_v34, %v2116_v24 }
 0x15e   :  { %v2447_v54 = vmax.f32 %v1613_v53, 0.0  ;;  %v5612_v20 = vsel %vm2640_vm2, %v2571_v57, -inf  ;;  %v5615_v52 = vsel %vm2640_vm2, %v2569_v32, -inf  ;;  %v5618_v22 = vsel %vm2640_vm2, %v2446_v46, -inf }
 0x15f   :  { %6620 = vst [vmem:[#allocation79_spill] sm:$0xff] %v5594_v21  ;;  %6621 = vst [vmem:[#allocation80_spill] sm:$0xff] %v5603_v33  ;;  %v5621_v0 = vsel %vm2640_vm2, %v2444_v15, -inf  ;;  %v5624_v24 = vsel %vm2640_vm2, %v2574_v31, -inf  ;;  %v2575_v40 = vmax.f32 %v2125_v51, 0.0  ;;  %v5627_v8 = vsel %vm2640_vm2, %v2572_v36, -inf }
 0x160   :  { %6622 = vst [vmem:[#allocation81_spill] sm:$0xff] %v5615_v52  ;;  %6623 = vst [vmem:[#allocation82_spill] sm:$0xff] %v5618_v22  ;;  %v5633_v15 = vsel %vm2640_vm2, %v2447_v54, -inf }
 0x161   :  { %6624 = vst [vmem:[#allocation83_spill] sm:$0xff] %v5621_v0  ;;  %6625 = vst [vmem:[#allocation84_spill] sm:$0xff] %v5624_v24  ;;  %v4005_v1 = vpop.f32.mrb[64].mxu0  ;;  %v4133_v10 = vpop.f32.mrb[64].mxu1 }
 0x162   :  { %6626 = vst [vmem:[#allocation85_spill] sm:$0xff] %v5627_v8  ;;  %v1626_v32 = vadd.f32 %v4005_v1, %v4932_v34  ;;  %v1617_v57 = vpop.f32.mrb[65].mxu0  ;;  %v2138_v53 = vadd.f32 %v4133_v10, %v4932_v34  ;;  %v2129_v44 = vpop.f32.mrb[65].mxu1  ;;  %6627 = vst [vmem:[#allocation86_spill] sm:$0xff] %v5633_v15 }
 0x163   :  { %v1618_v46 = vadd.f32 %v4932_v34, %v1617_v57  ;;  %v4006_v51 = vpop.f32.mrb[66].mxu0  ;;  %v2130_v24 = vadd.f32 %v4932_v34, %v2129_v44  ;;  %v4134_v36 = vpop.f32.mrb[66].mxu1  ;;  %v5643_v57 = vsel %vm2640_vm2, %v2575_v40, -inf }
 0x164   :  { %v2450_v8 = vmax.f32 %v1626_v32, 0.0  ;;  %v2578_v0 = vmax.f32 %v2138_v53, 0.0  ;;  %v1629_v1 = vadd.f32 %v4006_v51, %v4932_v34  ;;  %v1620_v37 = vpop.f32.mrb[67].mxu0  ;;  %v2141_v10 = vadd.f32 %v4134_v36, %v4932_v34  ;;  %v2132_v21 = vpop.f32.mrb[67].mxu1  ;;  %6628 = vst [vmem:[#allocation87_spill] sm:$0xff] %v5643_v57 }
 0x165   :  { %v2448_v22 = vmax.f32 %v1618_v46, 0.0  ;;  %v2576_v54 = vmax.f32 %v2130_v24, 0.0  ;;  %v1621_v15 = vadd.f32 %v4932_v34, %v1620_v37  ;;  %v2133_v31 = vadd.f32 %v4932_v34, %v2132_v21 }
 0x166   :  { %v2656_v44 = vsel %vm2640_vm2, %v2450_v8, -inf  ;;  %v2451_v32 = vmax.f32 %v1629_v1, 0.0  ;;  %v2579_v53 = vmax.f32 %v2141_v10, 0.0  ;;  %v2660_v36 = vsel %vm2640_vm2, %v2578_v0, -inf }
 0x167   :  { %v2657_v33 = vmax.f32 %v4989_v63, %v2656_v44  ;;  %v2642_v51 = vsel %vm2640_vm2, %v2448_v22, -inf  ;;  %v2449_v52 = vmax.f32 %v1621_v15, 0.0  ;;  %v2646_v34 = vsel %vm2640_vm2, %v2576_v54, -inf }
 0x168   :  { %v2643_v24 = vmax.f32 %v5002_v18, %v2642_v51  ;;  %v2663_v37 = vsel %vm2640_vm2, %v2451_v32, -inf  ;;  %v2577_v21 = vmax.f32 %v2133_v31, 0.0  ;;  %v2667_v63 = vsel %vm2640_vm2, %v2579_v53, -inf  ;;  %v5662_v31 = vld [vmem:[%s6539_s2] ss:$0 sm:$0xff] }
 0x169   :  { %v2659_v40 = vmax.f32 %v2657_v33, %v5005_v4  ;;  %v2664_v8 = vmax.f32 %v5012_v5, %v2663_v37  ;;  %v2649_v46 = vsel %vm2640_vm2, %v2449_v52, -inf  ;;  %v4009_v1 = vpop.f32.mrb[68].mxu0  ;;  %v4137_v22 = vpop.f32.mrb[68].mxu1 }
 0x16a   :  { %v2645_v0 = vmax.f32 %v2643_v24, %v5015_v9  ;;  %v2650_v15 = vmax.f32 %v5022_v39, %v2649_v46  ;;  %v2653_v18 = vsel %vm2640_vm2, %v2577_v21, -inf  ;;  %v1642_v4 = vadd.f32 %v5662_v31, %v4009_v1  ;;  %v1633_v5 = vpop.f32.mrb[69].mxu0  ;;  %v2145_v33 = vpop.f32.mrb[69].mxu1 }
 0x16b   :  { %v2661_v52 = vmax.f32 %v2659_v40, %v2660_v36  ;;  %v2666_v10 = vmax.f32 %v2664_v8, %v5025_v42  ;;  %v1634_v54 = vadd.f32 %v5662_v31, %v1633_v5  ;;  %v2154_v9 = vadd.f32 %v5662_v31, %v4137_v22  ;;  %v4010_v44 = vpop.f32.mrb[70].mxu0  ;;  %v4138_v39 = vpop.f32.mrb[70].mxu1 }
 0x16c   :  { %v2647_v32 = vmax.f32 %v2645_v0, %v2646_v34  ;;  %v2652_v53 = vmax.f32 %v2650_v15, %v5028_v43  ;;  %v2454_v51 = vmax.f32 %v1642_v4, 0.0  ;;  %v1645_v24 = vadd.f32 %v5662_v31, %v4010_v44  ;;  %v1636_v37 = vpop.f32.mrb[71].mxu0  ;;  %v2148_v21 = vpop.f32.mrb[71].mxu1 }
 0x16d   :  { %v3740_v46 = vpack.c.bf16 %v2661_v52, %v2661_v52  ;;  %v2668_v1 = vmax.f32 %v2666_v10, %v2667_v63  ;;  %v2452_v57 = vmax.f32 %v1634_v54, 0.0  ;;  %v2582_v36 = vmax.f32 %v2154_v9, 0.0 }
 0x16e   :  { %v3738_v40 = vpack.c.bf16 %v2647_v32, %v2647_v32  ;;  %v2654_v42 = vmax.f32 %v2652_v53, %v2653_v18  ;;  %v2684_v8 = vsel %vm2640_vm2, %v2454_v51, -inf  ;;  %v2455_v5 = vmax.f32 %v1645_v24, 0.0 }
 0x16f   :  { %3348 = vst.msk [vmem:[%s6540_s3 + $0x8] sm:$0xf] %vm3345_vm3, %v3740_v46  ;;  %v3741_v43 = vpack.c.bf16 %v2668_v1, %v2668_v1  ;;  %v2685_v34 = vmax.f32 %v5037_v55, %v2684_v8  ;;  %v2670_v22 = vsel %vm2640_vm2, %v2452_v57, -inf  ;;  %v2688_v0 = vsel %vm2640_vm2, %v2582_v36, -inf }
 0x170   :  { %3346 = vst.msk [vmem:[%s6540_s3] sm:$0xf] %vm3345_vm3, %v3738_v40  ;;  %v3739_v63 = vpack.c.bf16 %v2654_v42, %v2654_v42  ;;  %v2671_v15 = vmax.f32 %v5047_v59, %v2670_v22  ;;  %v2691_v18 = vsel %vm2640_vm2, %v2455_v5, -inf  ;;  %v2146_v4 = vadd.f32 %v5662_v31, %v2145_v33  ;;  %v6629_v22 = vld [vmem:[#allocation2_spill] sm:$0xff] }
 0x171   :  { %3349 = vst.msk [vmem:[%s6540_s3 + $0xc] sm:$0xf] %vm3345_vm3, %v3741_v43  ;;  %v2687_v55 = vmax.f32 %v2685_v34, %v5040_v56  ;;  %v2692_v57 = vmax.f32 %v5057_v2, %v2691_v18  ;;  %v1637_v52 = vadd.f32 %v5662_v31, %v1636_v37  ;;  %v2157_v10 = vadd.f32 %v5662_v31, %v4138_v39  ;;  %v4013_v54 = vpop.f32.mrb[72].mxu0  ;;  %v4141_v9 = vpop.f32.mrb[72].mxu1 }
 0x172   :  { %3347 = vst.msk [vmem:[%s6540_s3 + $0x4] sm:$0xf] %vm3345_vm3, %v3739_v63  ;;  %v2580_v59 = vmax.f32 %v2146_v4, 0.0  ;;  %v2673_v33 = vmax.f32 %v2671_v15, %v5050_v60  ;;  %v2149_v44 = vadd.f32 %v5662_v31, %v2148_v21  ;;  %v1658_v56 = vadd.f32 %v5662_v31, %v4013_v54  ;;  %v1649_v32 = vpop.f32.mrb[73].mxu0  ;;  %v2161_v2 = vpop.f32.mrb[73].mxu1  ;;  %v6630_v4 = vld [vmem:[#allocation4_spill] sm:$0xff] }
 0x173   :  { %v2689_v53 = vmax.f32 %v2687_v55, %v2688_v0  ;;  %v2453_v51 = vmax.f32 %v1637_v52, 0.0  ;;  %v2583_v24 = vmax.f32 %v2157_v10, 0.0  ;;  %v2694_v39 = vmax.f32 %v2692_v57, %v5069_v16  ;;  %v4014_v37 = vpop.f32.mrb[74].mxu0  ;;  %v4142_v46 = vpop.f32.mrb[74].mxu1  ;;  %v6631_v54 = vld [vmem:[#allocation3_spill] sm:$0xff] }
 0x174   :  { %v2674_v1 = vsel %vm2640_vm2, %v2580_v59, -inf  ;;  %v2581_v36 = vmax.f32 %v2149_v44, 0.0  ;;  %v2458_v40 = vmax.f32 %v1658_v56, 0.0  ;;  %v1650_v42 = vadd.f32 %v5662_v31, %v1649_v32  ;;  %v1652_v60 = vpop.f32.mrb[75].mxu0  ;;  %v2164_v8 = vpop.f32.mrb[75].mxu1 }
 0x175   :  { %v3744_v21 = vpack.c.bf16 %v2689_v53, %v2689_v53  ;;  %v2675_v5 = vmax.f32 %v2673_v33, %v2674_v1  ;;  %v2677_v43 = vsel %vm2640_vm2, %v2453_v51, -inf  ;;  %v2695_v34 = vsel %vm2640_vm2, %v2583_v24, -inf }
 0x176   :  { %v2678_v0 = vmax.f32 %v6629_v22, %v2677_v43  ;;  %v2696_v63 = vmax.f32 %v2694_v39, %v2695_v34  ;;  %v2681_v16 = vsel %vm2640_vm2, %v2581_v36, -inf  ;;  %v2712_v15 = vsel %vm2640_vm2, %v2458_v40, -inf  ;;  %v6632_v39 = vld [vmem:[#allocation5_spill] sm:$0xff] }
 0x177   :  { %3352 = vst.msk [vmem:[%s6540_s3 + $0x18] sm:$0xf] %vm3345_vm3, %v3744_v21  ;;  %v3742_v18 = vpack.c.bf16 %v2675_v5, %v2675_v5  ;;  %v2713_v55 = vmax.f32 %v6630_v4, %v2712_v15  ;;  %v2456_v57 = vmax.f32 %v1650_v42, 0.0  ;;  %v2170_v52 = vadd.f32 %v5662_v31, %v4141_v9 }
 0x178   :  { %v3745_v10 = vpack.c.bf16 %v2696_v63, %v2696_v63  ;;  %v2680_v59 = vmax.f32 %v2678_v0, %v6631_v54  ;;  %v1661_v33 = vadd.f32 %v5662_v31, %v4014_v37  ;;  %v2162_v44 = vadd.f32 %v5662_v31, %v2161_v2 }
 0x179   :  { %3350 = vst.msk [vmem:[%s6540_s3 + $0x10] sm:$0xf] %vm3345_vm3, %v3742_v18  ;;  %v2698_v56 = vsel %vm2640_vm2, %v2456_v57, -inf  ;;  %v2586_v32 = vmax.f32 %v2170_v52, 0.0  ;;  %v2715_v53 = vmax.f32 %v2713_v55, %v5113_v28  ;;  %v1653_v51 = vadd.f32 %v5662_v31, %v1652_v60  ;;  %v4017_v9 = vpop.f32.mrb[76].mxu0  ;;  %v4145_v24 = vpop.f32.mrb[76].mxu1 }
 0x17a   :  { %3353 = vst.msk [vmem:[%s6540_s3 + $0x1c] sm:$0xf] %vm3345_vm3, %v3745_v10  ;;  %v2682_v2 = vmax.f32 %v2680_v59, %v2681_v16  ;;  %v2699_v37 = vmax.f32 %v6632_v39, %v2698_v56  ;;  %v2459_v1 = vmax.f32 %v1661_v33, 0.0  ;;  %v2584_v36 = vmax.f32 %v2162_v44, 0.0  ;;  %v1665_v40 = vpop.f32.mrb[77].mxu0  ;;  %v2177_v42 = vpop.f32.mrb[77].mxu1 }
 0x17b   :  { %v2716_v21 = vsel %vm2640_vm2, %v2586_v32, -inf  ;;  %v2457_v5 = vmax.f32 %v1653_v51, 0.0  ;;  %v2173_v28 = vadd.f32 %v5662_v31, %v4142_v46  ;;  %v2165_v60 = vadd.f32 %v5662_v31, %v2164_v8  ;;  %v4018_v43 = vpop.f32.mrb[78].mxu0  ;;  %v4146_v34 = vpop.f32.mrb[78].mxu1  ;;  %v6634_v32 = vld [vmem:[#allocation7_spill] sm:$0xff] }
 0x17c   :  { %v3743_v22 = vpack.c.bf16 %v2682_v2, %v2682_v2  ;;  %v2717_v0 = vmax.f32 %v2715_v53, %v2716_v21  ;;  %v2719_v63 = vsel %vm2640_vm2, %v2459_v1, -inf  ;;  %v2701_v16 = vmax.f32 %v2699_v37, %v5119_v61  ;;  %v1668_v15 = vpop.f32.mrb[79].mxu0  ;;  %v2180_v18 = vpop.f32.mrb[79].mxu1  ;;  %v6633_v61 = vld [vmem:[#allocation6_spill] sm:$0xff] }
 0x17d   :  { %v2720_v4 = vmax.f32 %v5116_v62, %v2719_v63  ;;  %v2702_v55 = vsel %vm2640_vm2, %v2584_v36, -inf  ;;  %v2705_v57 = vsel %vm2640_vm2, %v2457_v5, -inf  ;;  %v2587_v52 = vmax.f32 %v2173_v28, 0.0 }
 0x17e   :  { %3351 = vst.msk [vmem:[%s6540_s3 + $0x14] sm:$0xf] %vm3345_vm3, %v3743_v22  ;;  %v3748_v46 = vpack.c.bf16 %v2717_v0, %v2717_v0  ;;  %v2703_v8 = vmax.f32 %v2701_v16, %v2702_v55  ;;  %v2706_v10 = vmax.f32 %v5122_v29, %v2705_v57  ;;  %v2585_v54 = vmax.f32 %v2165_v60, 0.0  ;;  %v6635_v57 = vld [vmem:[#allocation8_spill] sm:$0xff] }
 0x17f   :  { %v2722_v59 = vmax.f32 %v2720_v4, %v6633_v61  ;;  %v2723_v33 = vsel %vm2640_vm2, %v2587_v52, -inf  ;;  %v1674_v62 = vadd.f32 %v5662_v31, %v4017_v9  ;;  %v1666_v44 = vadd.f32 %v5662_v31, %v1665_v40 }
 0x180   :  { %3356 = vst.msk [vmem:[%s6540_s3 + $0x28] sm:$0xf] %vm3345_vm3, %v3748_v46  ;;  %v3746_v56 = vpack.c.bf16 %v2703_v8, %v2703_v8  ;;  %v2708_v53 = vmax.f32 %v2706_v10, %v6634_v32  ;;  %v2709_v51 = vsel %vm2640_vm2, %v2585_v54, -inf  ;;  %v2186_v29 = vadd.f32 %v5662_v31, %v4145_v24  ;;  %v6636_v46 = vld [vmem:[#allocation10_spill] sm:$0xff] }
 0x181   :  { %v2724_v2 = vmax.f32 %v2722_v59, %v2723_v33  ;;  %v2462_v39 = vmax.f32 %v1674_v62, 0.0  ;;  %v2460_v37 = vmax.f32 %v1666_v44, 0.0  ;;  %v1677_v1 = vadd.f32 %v5662_v31, %v4018_v43  ;;  %v4021_v9 = vpop.f32.mrb[80].mxu0  ;;  %v4149_v36 = vpop.f32.mrb[80].mxu1  ;;  %v6637_v62 = vld [vmem:[#allocation9_spill] sm:$0xff] }
 0x182   :  { %3354 = vst.msk [vmem:[%s6540_s3 + $0x20] sm:$0xf] %vm3345_vm3, %v3746_v56  ;;  %v2710_v40 = vmax.f32 %v2708_v53, %v2709_v51  ;;  %v2590_v21 = vmax.f32 %v2186_v29, 0.0  ;;  %v2178_v5 = vadd.f32 %v5662_v31, %v2177_v42  ;;  %v1669_v28 = vadd.f32 %v5662_v31, %v1668_v15  ;;  %v1681_v60 = vpop.f32.mrb[81].mxu0  ;;  %v2193_v24 = vpop.f32.mrb[81].mxu1  ;;  %v6638_v56 = vld [vmem:[#allocation12_spill] sm:$0xff] }
 0x183   :  { %v3749_v22 = vpack.c.bf16 %v2724_v2, %v2724_v2  ;;  %v2740_v0 = vsel %vm2640_vm2, %v2462_v39, -inf  ;;  %v2726_v43 = vsel %vm2640_vm2, %v2460_v37, -inf  ;;  %v2463_v63 = vmax.f32 %v1677_v1, 0.0  ;;  %v4022_v16 = vpop.f32.mrb[82].mxu0  ;;  %v5762_v4 = vpop.f32.mrb[82].mxu1  ;;  %v6639_v53 = vld [vmem:[#allocation11_spill] sm:$0xff] }
 0x184   :  { %v3747_v55 = vpack.c.bf16 %v2710_v40, %v2710_v40  ;;  %v2741_v52 = vmax.f32 %v6635_v57, %v2740_v0  ;;  %v2727_v8 = vmax.f32 %v6636_v46, %v2726_v43  ;;  %v2744_v42 = vsel %vm2640_vm2, %v2590_v21, -inf  ;;  %v1684_v10 = vpop.f32.mrb[83].mxu0  ;;  %v2196_v15 = vpop.f32.mrb[83].mxu1 }
 0x185   :  { %3357 = vst.msk [vmem:[%s6540_s3 + $0x2c] sm:$0xf] %vm3345_vm3, %v3749_v22  ;;  %v2747_v54 = vsel %vm2640_vm2, %v2463_v63, -inf  ;;  %v2588_v61 = vmax.f32 %v2178_v5, 0.0  ;;  %v2461_v59 = vmax.f32 %v1669_v28, 0.0  ;;  %v2189_v33 = vadd.f32 %v5662_v31, %v4146_v34  ;;  %v6640_v5 = vld [vmem:[#allocation13_spill] sm:$0xff] }
 0x186   :  { %3355 = vst.msk [vmem:[%s6540_s3 + $0x24] sm:$0xf] %vm3345_vm3, %v3747_v55  ;;  %v2743_v44 = vmax.f32 %v2741_v52, %v6637_v62  ;;  %v2748_v32 = vmax.f32 %v6638_v56, %v2747_v54  ;;  %v2729_v51 = vmax.f32 %v2727_v8, %v6639_v53  ;;  %v2181_v29 = vadd.f32 %v5662_v31, %v2180_v18  ;;  %v6641_v8 = vld [vmem:[#allocation14_spill] sm:$0xff] }
 0x187   :  { %v2730_v2 = vsel %vm2640_vm2, %v2588_v61, -inf  ;;  %v2733_v39 = vsel %vm2640_vm2, %v2461_v59, -inf  ;;  %v2591_v37 = vmax.f32 %v2189_v33, 0.0  ;;  %v1690_v34 = vadd.f32 %v5662_v31, %v4021_v9 }
 0x188   :  { %v2745_v1 = vmax.f32 %v2743_v44, %v2744_v42  ;;  %v2731_v40 = vmax.f32 %v2729_v51, %v2730_v2  ;;  %v2734_v21 = vmax.f32 %v5178_v41, %v2733_v39  ;;  %v2750_v28 = vmax.f32 %v2748_v32, %v6640_v5  ;;  %v6642_v32 = vld [vmem:[#allocation15_spill] sm:$0xff] }
 0x189   :  { %v2751_v22 = vsel %vm2640_vm2, %v2591_v37, -inf  ;;  %v2589_v0 = vmax.f32 %v2181_v29, 0.0  ;;  %v2466_v43 = vmax.f32 %v1690_v34, 0.0  ;;  %v1682_v63 = vadd.f32 %v5662_v31, %v1681_v60  ;;  %v4025_v18 = vpop.f32.mrb[84].mxu0  ;;  %v4153_v55 = vpop.f32.mrb[84].mxu1 }
 0x18a   :  { %v3752_v57 = vpack.c.bf16 %v2745_v1, %v2745_v1  ;;  %v3750_v52 = vpack.c.bf16 %v2731_v40, %v2731_v40  ;;  %v2752_v46 = vmax.f32 %v2750_v28, %v2751_v22  ;;  %v2736_v54 = vmax.f32 %v2734_v21, %v6641_v8  ;;  %v1697_v9 = vpop.f32.mrb[85].mxu0  ;;  %v5789_v42 = vpop.f32.mrb[85].mxu1  ;;  %v6643_v21 = vld [vmem:[#allocation16_spill] sm:$0xff] }
 0x18b   :  { %v2737_v41 = vsel %vm2640_vm2, %v2589_v0, -inf  ;;  %v2768_v61 = vsel %vm2640_vm2, %v2466_v43, -inf  ;;  %v2464_v59 = vmax.f32 %v1682_v63, 0.0  ;;  %v2202_v33 = vadd.f32 %v5662_v31, %v4149_v36  ;;  %v4026_v62 = vpop.f32.mrb[86].mxu0  ;;  %v5794_v44 = vpop.f32.mrb[86].mxu1  ;;  %v6644_v63 = vld [vmem:[#allocation18_spill] sm:$0xff] }
 0x18c   :  { %3360 = vst.msk [vmem:[%s6540_s3 + $0x38] sm:$0xf] %vm3345_vm3, %v3752_v57  ;;  %3358 = vst.msk [vmem:[%s6540_s3 + $0x30] sm:$0xf] %vm3345_vm3, %v3750_v52  ;;  %v3753_v60 = vpack.c.bf16 %v2752_v46, %v2752_v46  ;;  %v2738_v56 = vmax.f32 %v2736_v54, %v2737_v41  ;;  %v2769_v53 = vmax.f32 %v6642_v32, %v2768_v61  ;;  %v1700_v36 = vpop.f32.mrb[87].mxu0  ;;  %v5806_v29 = vpop.f32.mrb[87].mxu1 }
 0x18d   :  { %v1693_v51 = vadd.f32 %v5662_v31, %v4022_v16  ;;  %v2754_v2 = vsel %vm2640_vm2, %v2464_v59, -inf  ;;  %v2594_v39 = vmax.f32 %v2202_v33, 0.0  ;;  %v2194_v37 = vadd.f32 %v5662_v31, %v2193_v24  ;;  %v6645_v52 = vld [vmem:[#allocation17_spill] sm:$0xff] }
 0x18e   :  { %v1685_v34 = vadd.f32 %v5662_v31, %v1684_v10  ;;  %3361 = vst.msk [vmem:[%s6540_s3 + $0x3c] sm:$0xf] %vm3345_vm3, %v3753_v60  ;;  %v3751_v1 = vpack.c.bf16 %v2738_v56, %v2738_v56  ;;  %v2755_v40 = vmax.f32 %v5210_v25, %v2754_v2  ;;  %v2771_v16 = vmax.f32 %v2769_v53, %v6643_v21 }
 0x18f   :  { %v2467_v5 = vmax.f32 %v1693_v51, 0.0  ;;  %v2772_v28 = vsel %vm2640_vm2, %v2594_v39, -inf  ;;  %v2592_v22 = vmax.f32 %v2194_v37, 0.0  ;;  %v2205_v24 = vadd.f32 %v5662_v31, %v5762_v4 }
 0x190   :  { %v2465_v0 = vmax.f32 %v1685_v34, 0.0  ;;  %3359 = vst.msk [vmem:[%s6540_s3 + $0x34] sm:$0xf] %vm3345_vm3, %v3751_v1  ;;  %v2773_v10 = vmax.f32 %v2771_v16, %v2772_v28  ;;  %v2757_v25 = vmax.f32 %v2755_v40, %v6644_v63  ;;  %v2197_v57 = vadd.f32 %v5662_v31, %v2196_v15  ;;  %v6646_v1 = vld [vmem:[#allocation19_spill] sm:$0xff] }
 0x191   :  { %v2775_v43 = vsel %vm2640_vm2, %v2467_v5, -inf  ;;  %v2758_v8 = vsel %vm2640_vm2, %v2592_v22, -inf  ;;  %v2595_v41 = vmax.f32 %v2205_v24, 0.0  ;;  %v4029_v4 = vpop.f32.mrb[88].mxu0  ;;  %v5830_v61 = vpop.f32.mrb[88].mxu1  ;;  %v1706_v2 = vadd.f32 %v5662_v31, %v4025_v18 }
 0x192   :  { %v2776_v46 = vmax.f32 %v6645_v52, %v2775_v43  ;;  %v2761_v54 = vsel %vm2640_vm2, %v2465_v0, -inf  ;;  %v3756_v59 = vpack.c.bf16 %v2773_v10, %v2773_v10  ;;  %v2759_v33 = vmax.f32 %v2757_v25, %v2758_v8  ;;  %v1713_v32 = vpop.f32.mrb[89].mxu0  ;;  %v5833_v53 = vpop.f32.mrb[89].mxu1  ;;  %v6648_v8 = vld [vmem:[#allocation22_spill] sm:$0xff] }
 0x193   :  { %v2762_v60 = vmax.f32 %v5230_v49, %v2761_v54  ;;  %v2593_v56 = vmax.f32 %v2197_v57, 0.0  ;;  %v2779_v51 = vsel %vm2640_vm2, %v2595_v41, -inf  ;;  %v1698_v39 = vadd.f32 %v5662_v31, %v1697_v9  ;;  %v5839_v37 = vpop.f32.mrb[90].mxu0  ;;  %v5841_v34 = vpop.f32.mrb[90].mxu1 }
 0x194   :  { %v2778_v15 = vmax.f32 %v2776_v46, %v5233_v47  ;;  %3364 = vst.msk [vmem:[%s6540_s3 + $0x48] sm:$0xf] %vm3345_vm3, %v3756_v59  ;;  %v3754_v49 = vpack.c.bf16 %v2759_v33, %v2759_v33  ;;  %v2218_v21 = vadd.f32 %v5662_v31, %v4153_v55  ;;  %v5850_v16 = vpop.f32.mrb[91].mxu0  ;;  %v5852_v18 = vpop.f32.mrb[91].mxu1  ;;  %v2470_v5 = vmax.f32 %v1706_v2, 0.0  ;;  %v6650_v2 = vld [vmem:[#allocation24_spill] sm:$0xff] }
 0x195   :  { %v2764_v40 = vmax.f32 %v2762_v60, %v6646_v1  ;;  %v2765_v47 = vsel %vm2640_vm2, %v2593_v56, -inf  ;;  %v2468_v28 = vmax.f32 %v1698_v39, 0.0  ;;  %v1709_v22 = vadd.f32 %v5662_v31, %v4026_v62  ;;  %v6647_v62 = vld [vmem:[#allocation20_spill] sm:$0xff] }
 0x196   :  { %v2780_v9 = vmax.f32 %v2778_v15, %v2779_v51  ;;  %3362 = vst.msk [vmem:[%s6540_s3 + $0x40] sm:$0xf] %vm3345_vm3, %v3754_v49  ;;  %v2598_v24 = vmax.f32 %v2218_v21, 0.0  ;;  %v2210_v10 = vadd.f32 %v5662_v31, %v5789_v42  ;;  %v1701_v55 = vadd.f32 %v5662_v31, %v1700_v36  ;;  %v6649_v15 = vld [vmem:[#allocation21_spill] sm:$0xff]  ;;  %v6651_v49 = vld [vmem:[#allocation23_spill] sm:$0xff] }
 0x197   :  { %v2766_v0 = vmax.f32 %v2764_v40, %v2765_v47  ;;  %v2796_v63 = vsel %vm2640_vm2, %v2470_v5, -inf  ;;  %v2782_v25 = vsel %vm2640_vm2, %v2468_v28, -inf  ;;  %v2471_v57 = vmax.f32 %v1709_v22, 0.0 }
 0x198   :  { %v3757_v43 = vpack.c.bf16 %v2780_v9, %v2780_v9  ;;  %v2797_v46 = vmax.f32 %v6647_v62, %v2796_v63  ;;  %v2783_v54 = vmax.f32 %v6648_v8, %v2782_v25  ;;  %v2800_v41 = vsel %vm2640_vm2, %v2598_v24, -inf }
 0x199   :  { %v3755_v52 = vpack.c.bf16 %v2766_v0, %v2766_v0  ;;  %v2803_v42 = vsel %vm2640_vm2, %v2471_v57, -inf  ;;  %v2596_v36 = vmax.f32 %v2210_v10, 0.0  ;;  %v2469_v59 = vmax.f32 %v1701_v55, 0.0  ;;  %v5874_v60 = vpop.f32.mrb[92].mxu0  ;;  %v5876_v56 = vpop.f32.mrb[92].mxu1  ;;  %v6652_v55 = vld [vmem:[#allocation25_spill] sm:$0xff] }
 0x19a   :  { %3365 = vst.msk [vmem:[%s6540_s3 + $0x4c] sm:$0xf] %vm3345_vm3, %v3757_v43  ;;  %v2221_v33 = vadd.f32 %v5662_v31, %v5794_v44  ;;  %v2799_v51 = vmax.f32 %v2797_v46, %v6649_v15  ;;  %v2804_v39 = vmax.f32 %v6650_v2, %v2803_v42  ;;  %v2785_v1 = vmax.f32 %v2783_v54, %v6651_v49  ;;  %v5887_v47 = vpop.f32.mrb[93].mxu0  ;;  %v5889_v44 = vpop.f32.mrb[93].mxu1 }
 0x19b   :  { %3363 = vst.msk [vmem:[%s6540_s3 + $0x44] sm:$0xf] %vm3345_vm3, %v3755_v52  ;;  %v2213_v40 = vadd.f32 %v5662_v31, %v5806_v29  ;;  %v2786_v21 = vsel %vm2640_vm2, %v2596_v36, -inf  ;;  %v2789_v9 = vsel %vm2640_vm2, %v2469_v59, -inf  ;;  %v1722_v28 = vadd.f32 %v5662_v31, %v4029_v4  ;;  %v5894_v22 = vpop.f32.mrb[94].mxu0  ;;  %v5896_v0 = vpop.f32.mrb[94].mxu1 }
 0x19c   :  { %v2599_v5 = vmax.f32 %v2221_v33, 0.0  ;;  %v2801_v24 = vmax.f32 %v2799_v51, %v2800_v41  ;;  %v2787_v10 = vmax.f32 %v2785_v1, %v2786_v21  ;;  %v2790_v43 = vmax.f32 %v6652_v55, %v2789_v9  ;;  %v6653_v29 = vld [vmem:[#allocation26_spill] sm:$0xff]  ;;  %v5900_v25 = vpop.f32.mrb[95].mxu0  ;;  %v5902_v57 = vpop.f32.mrb[95].mxu1  ;;  %v6654_v36 = vld [vmem:[#allocation27_spill] sm:$0xff] }
 0x19d   :  { %v2806_v63 = vmax.f32 %v2804_v39, %v6653_v29  ;;  %v2597_v62 = vmax.f32 %v2213_v40, 0.0  ;;  %v2474_v46 = vmax.f32 %v1722_v28, 0.0  ;;  %v1714_v4 = vadd.f32 %v5662_v31, %v1713_v32  ;;  %v6655_v39 = vld [vmem:[#allocation28_spill] sm:$0xff] }
 0x19e   :  { %v2807_v52 = vsel %vm2640_vm2, %v2599_v5, -inf  ;;  %v3760_v8 = vpack.c.bf16 %v2801_v24, %v2801_v24  ;;  %v3758_v54 = vpack.c.bf16 %v2787_v10, %v2787_v10  ;;  %v2792_v41 = vmax.f32 %v2790_v43, %v6654_v36  ;;  %v6656_v10 = vld [vmem:[#allocation29_spill] sm:$0xff] }
 0x19f   :  { %v2808_v42 = vmax.f32 %v2806_v63, %v2807_v52  ;;  %v2793_v59 = vsel %vm2640_vm2, %v2597_v62, -inf  ;;  %v2824_v33 = vsel %vm2640_vm2, %v2474_v46, -inf  ;;  %v2472_v15 = vmax.f32 %v1714_v4, 0.0 }
 0x1a0   :  { %v2234_v51 = vadd.f32 %v5662_v31, %v5830_v61  ;;  %3368 = vst.msk [vmem:[%s6540_s3 + $0x58] sm:$0xf] %vm3345_vm3, %v3760_v8  ;;  %3366 = vst.msk [vmem:[%s6540_s3 + $0x50] sm:$0xf] %vm3345_vm3, %v3758_v54  ;;  %v2794_v2 = vmax.f32 %v2792_v41, %v2793_v59  ;;  %v2825_v49 = vmax.f32 %v6655_v39, %v2824_v33 }
 0x1a1   :  { %v3761_v32 = vpack.c.bf16 %v2808_v42, %v2808_v42  ;;  %v1725_v1 = vadd.f32 %v5662_v31, %v5839_v37  ;;  %v2810_v40 = vsel %vm2640_vm2, %v2472_v15, -inf  ;;  %v2226_v21 = vadd.f32 %v5662_v31, %v5833_v53  ;;  %v5927_v5 = vpop.f32.mrb[96].mxu0  ;;  %v5929_v28 = vpop.f32.mrb[96].mxu1 }
 0x1a2   :  { %v2602_v61 = vmax.f32 %v2234_v51, 0.0  ;;  %v1717_v9 = vadd.f32 %v5662_v31, %v5850_v16  ;;  %v3759_v24 = vpack.c.bf16 %v2794_v2, %v2794_v2  ;;  %v2811_v37 = vmax.f32 %v5314_v19, %v2810_v40  ;;  %v5937_v29 = vpop.f32.mrb[97].mxu0  ;;  %v5939_v53 = vpop.f32.mrb[97].mxu1 }
 0x1a3   :  { %3369 = vst.msk [vmem:[%s6540_s3 + $0x5c] sm:$0xf] %vm3345_vm3, %v3761_v32  ;;  %v2827_v55 = vmax.f32 %v2825_v49, %v6656_v10  ;;  %v2475_v43 = vmax.f32 %v1725_v1, 0.0  ;;  %v2600_v63 = vmax.f32 %v2226_v21, 0.0  ;;  %v2237_v62 = vadd.f32 %v5662_v31, %v5841_v34  ;;  %v5944_v46 = vpop.f32.mrb[98].mxu0  ;;  %v5946_v4 = vpop.f32.mrb[98].mxu1 }
 0x1a4   :  { %v2828_v16 = vsel %vm2640_vm2, %v2602_v61, -inf  ;;  %v2473_v52 = vmax.f32 %v1717_v9, 0.0  ;;  %3367 = vst.msk [vmem:[%s6540_s3 + $0x54] sm:$0xf] %vm3345_vm3, %v3759_v24  ;;  %v2813_v54 = vmax.f32 %v2811_v37, %v5323_v7  ;;  %v2229_v42 = vadd.f32 %v5662_v31, %v5852_v18  ;;  %v5956_v36 = vpop.f32.mrb[99].mxu0  ;;  %v5958_v34 = vpop.f32.mrb[99].mxu1 }
 0x1a5   :  { %v2829_v19 = vmax.f32 %v2827_v55, %v2828_v16  ;;  %v2831_v8 = vsel %vm2640_vm2, %v2475_v43, -inf  ;;  %v2814_v59 = vsel %vm2640_vm2, %v2600_v63, -inf  ;;  %v2603_v15 = vmax.f32 %v2237_v62, 0.0  ;;  %v6657_v7 = vld [vmem:[#allocation30_spill] sm:$0xff]  ;;  %v6658_v61 = vld [vmem:[#allocation31_spill] sm:$0xff] }
 0x1a6   :  { %v2832_v41 = vmax.f32 %v5320_v6, %v2831_v8  ;;  %v2817_v33 = vsel %vm2640_vm2, %v2473_v52, -inf  ;;  %v2815_v32 = vmax.f32 %v2813_v54, %v2814_v59  ;;  %v2601_v39 = vmax.f32 %v2229_v42, 0.0 }
 0x1a7   :  { %v3764_v51 = vpack.c.bf16 %v2829_v19, %v2829_v19  ;;  %v2818_v2 = vmax.f32 %v5326_v3, %v2817_v33  ;;  %v2835_v18 = vsel %vm2640_vm2, %v2603_v15, -inf  ;;  %v1738_v1 = vadd.f32 %v5662_v31, %v5874_v60  ;;  %v6659_v33 = vld [vmem:[#allocation32_spill] sm:$0xff]  ;;  %v6660_v15 = vld [vmem:[#allocation34_spill] sm:$0xff] }
 0x1a8   :  { %v2834_v49 = vmax.f32 %v2832_v41, %v6657_v7  ;;  %v1730_v6 = vadd.f32 %v5662_v31, %v5887_v47  ;;  %v3762_v40 = vpack.c.bf16 %v2815_v32, %v2815_v32  ;;  %v2821_v3 = vsel %vm2640_vm2, %v2601_v39, -inf }
 0x1a9   :  { %3372 = vst.msk [vmem:[%s6540_s3 + $0x68] sm:$0xf] %vm3345_vm3, %v3764_v51  ;;  %v2820_v21 = vmax.f32 %v2818_v2, %v6658_v61  ;;  %v2250_v9 = vadd.f32 %v5662_v31, %v5876_v56  ;;  %v2478_v37 = vmax.f32 %v1738_v1, 0.0  ;;  %v1741_v60 = vadd.f32 %v5662_v31, %v5894_v22  ;;  %v5980_v47 = vpop.f32.mrb[100].mxu0  ;;  %v5982_v55 = vpop.f32.mrb[100].mxu1  ;;  %v6661_v1 = vld [vmem:[#allocation33_spill] sm:$0xff] }
 0x1aa   :  { %v2836_v24 = vmax.f32 %v2834_v49, %v2835_v18  ;;  %v2476_v10 = vmax.f32 %v1730_v6, 0.0  ;;  %3370 = vst.msk [vmem:[%s6540_s3 + $0x60] sm:$0xf] %vm3345_vm3, %v3762_v40  ;;  %v2242_v56 = vadd.f32 %v5662_v31, %v5889_v44  ;;  %v1733_v63 = vadd.f32 %v5662_v31, %v5900_v25  ;;  %v5992_v52 = vpop.f32.mrb[101].mxu0  ;;  %v5994_v22 = vpop.f32.mrb[101].mxu1  ;;  %v6662_v40 = vld [vmem:[#allocation36_spill] sm:$0xff] }
 0x1ab   :  { %v2822_v43 = vmax.f32 %v2820_v21, %v2821_v3  ;;  %v2606_v16 = vmax.f32 %v2250_v9, 0.0  ;;  %v2852_v19 = vsel %vm2640_vm2, %v2478_v37, -inf  ;;  %v2479_v54 = vmax.f32 %v1741_v60, 0.0  ;;  %v5998_v42 = vpop.f32.mrb[102].mxu0  ;;  %v6000_v41 = vpop.f32.mrb[102].mxu1  ;;  %v6663_v21 = vld [vmem:[#allocation35_spill] sm:$0xff] }
 0x1ac   :  { %v3765_v62 = vpack.c.bf16 %v2836_v24, %v2836_v24  ;;  %v2838_v8 = vsel %vm2640_vm2, %v2476_v10, -inf  ;;  %v2853_v44 = vmax.f32 %v6659_v33, %v2852_v19  ;;  %v6005_v32 = vpop.f32.mrb[103].mxu0  ;;  %v6007_v2 = vpop.f32.mrb[103].mxu1  ;;  %v2604_v7 = vmax.f32 %v2242_v56, 0.0 }
 0x1ad   :  { %v3763_v59 = vpack.c.bf16 %v2822_v43, %v2822_v43  ;;  %v2839_v51 = vmax.f32 %v6660_v15, %v2838_v8  ;;  %v2856_v25 = vsel %vm2640_vm2, %v2606_v16, -inf  ;;  %v2859_v39 = vsel %vm2640_vm2, %v2479_v54, -inf  ;;  %v6664_v16 = vld [vmem:[#allocation37_spill] sm:$0xff] }
 0x1ae   :  { %3373 = vst.msk [vmem:[%s6540_s3 + $0x6c] sm:$0xf] %vm3345_vm3, %v3765_v62  ;;  %v2477_v49 = vmax.f32 %v1733_v63, 0.0  ;;  %v2253_v18 = vadd.f32 %v5662_v31, %v5896_v0  ;;  %v2855_v6 = vmax.f32 %v2853_v44, %v6661_v1  ;;  %v2860_v61 = vmax.f32 %v6662_v40, %v2859_v39  ;;  %v6665_v63 = vld [vmem:[#allocation38_spill] sm:$0xff] }
 0x1af   :  { %3371 = vst.msk [vmem:[%s6540_s3 + $0x64] sm:$0xf] %vm3345_vm3, %v3763_v59  ;;  %v2841_v3 = vmax.f32 %v2839_v51, %v6663_v21  ;;  %v2245_v9 = vadd.f32 %v5662_v31, %v5902_v57  ;;  %v2842_v24 = vsel %vm2640_vm2, %v2604_v7, -inf  ;;  %v1754_v0 = vadd.f32 %v5662_v31, %v5927_v5  ;;  %v6666_v51 = vld [vmem:[#allocation39_spill] sm:$0xff] }
 0x1b0   :  { %v2845_v37 = vsel %vm2640_vm2, %v2477_v49, -inf  ;;  %v2607_v10 = vmax.f32 %v2253_v18, 0.0  ;;  %v2857_v60 = vmax.f32 %v2855_v6, %v2856_v25  ;;  %v2862_v62 = vmax.f32 %v2860_v61, %v6665_v63  ;;  %v6669_v63 = vld [vmem:[#allocation42_spill] sm:$0xff] }
 0x1b1   :  { %v2843_v43 = vmax.f32 %v2841_v3, %v2842_v24  ;;  %v2846_v56 = vmax.f32 %v6664_v16, %v2845_v37  ;;  %v2605_v8 = vmax.f32 %v2245_v9, 0.0  ;;  %v2482_v54 = vmax.f32 %v1754_v0, 0.0  ;;  %v6034_v59 = vpop.f32.mrb[104].mxu0  ;;  %v6036_v33 = vpop.f32.mrb[104].mxu1  ;;  %v6667_v3 = vld [vmem:[#allocation40_spill] sm:$0xff] }
 0x1b2   :  { %v2863_v19 = vsel %vm2640_vm2, %v2607_v10, -inf  ;;  %v1746_v57 = vadd.f32 %v5662_v31, %v5937_v29  ;;  %v3768_v44 = vpack.c.bf16 %v2857_v60, %v2857_v60  ;;  %v6039_v39 = vpop.f32.mrb[105].mxu0  ;;  %v6041_v7 = vpop.f32.mrb[105].mxu1  ;;  %v2266_v29 = vadd.f32 %v5662_v31, %v5929_v28 }
 0x1b3   :  { %v3766_v15 = vpack.c.bf16 %v2843_v43, %v2843_v43  ;;  %v2864_v5 = vmax.f32 %v2862_v62, %v2863_v19  ;;  %v2848_v25 = vmax.f32 %v2846_v56, %v6666_v51  ;;  %v2849_v49 = vsel %vm2640_vm2, %v2605_v8, -inf  ;;  %v6047_v6 = vpop.f32.mrb[106].mxu0  ;;  %v6049_v40 = vpop.f32.mrb[106].mxu1  ;;  %v6670_v51 = vld [vmem:[#allocation43_spill] sm:$0xff] }
 0x1b4   :  { %v2880_v18 = vsel %vm2640_vm2, %v2482_v54, -inf  ;;  %v2480_v1 = vmax.f32 %v1746_v57, 0.0  ;;  %3376 = vst.msk [vmem:[%s6540_s3 + $0x78] sm:$0xf] %vm3345_vm3, %v3768_v44  ;;  %v1757_v28 = vadd.f32 %v5662_v31, %v5944_v46  ;;  %v6062_v24 = vpop.f32.mrb[107].mxu0  ;;  %v6064_v37 = vpop.f32.mrb[107].mxu1  ;;  %v2258_v60 = vadd.f32 %v5662_v31, %v5939_v53 }
 0x1b5   :  { %3374 = vst.msk [vmem:[%s6540_s3 + $0x70] sm:$0xf] %vm3345_vm3, %v3766_v15  ;;  %v3769_v61 = vpack.c.bf16 %v2864_v5, %v2864_v5  ;;  %v2850_v21 = vmax.f32 %v2848_v25, %v2849_v49  ;;  %v2881_v9 = vmax.f32 %v6667_v3, %v2880_v18  ;;  %v2610_v0 = vmax.f32 %v2266_v29, 0.0  ;;  %v6668_v46 = vld [vmem:[#allocation41_spill] sm:$0xff] }
 0x1b6   :  { %v2866_v10 = vsel %vm2640_vm2, %v2480_v1, -inf  ;;  %v1749_v43 = vadd.f32 %v5662_v31, %v5956_v36  ;;  %v2483_v19 = vmax.f32 %v1757_v28, 0.0  ;;  %v2608_v54 = vmax.f32 %v2258_v60, 0.0 }
 0x1b7   :  { %3377 = vst.msk [vmem:[%s6540_s3 + $0x7c] sm:$0xf] %vm3345_vm3, %v3769_v61  ;;  %v3767_v16 = vpack.c.bf16 %v2850_v21, %v2850_v21  ;;  %v2867_v56 = vmax.f32 %v6668_v46, %v2866_v10  ;;  %v2883_v62 = vmax.f32 %v2881_v9, %v6669_v63  ;;  %v2884_v8 = vsel %vm2640_vm2, %v2610_v0, -inf  ;;  %v6671_v46 = vld [vmem:[#allocation44_spill] sm:$0xff] }
 0x1b8   :  { %v2481_v57 = vmax.f32 %v1749_v43, 0.0  ;;  %v2269_v53 = vadd.f32 %v5662_v31, %v5946_v4  ;;  %v2887_v44 = vsel %vm2640_vm2, %v2483_v19, -inf  ;;  %v2261_v5 = vadd.f32 %v5662_v31, %v5958_v34 }
 0x1b9   :  { %3375 = vst.msk [vmem:[%s6540_s3 + $0x74] sm:$0xf] %vm3345_vm3, %v3767_v16  ;;  %v2885_v36 = vmax.f32 %v2883_v62, %v2884_v8  ;;  %v2869_v15 = vmax.f32 %v2867_v56, %v5407_v11  ;;  %v2888_v25 = vmax.f32 %v6670_v51, %v2887_v44  ;;  %v2870_v49 = vsel %vm2640_vm2, %v2608_v54, -inf  ;;  %v6091_v1 = vpop.f32.mrb[108].mxu0  ;;  %v6093_v29 = vpop.f32.mrb[108].mxu1 }
 0x1ba   :  { %v2873_v18 = vsel %vm2640_vm2, %v2481_v57, -inf  ;;  %v2611_v4 = vmax.f32 %v2269_v53, 0.0  ;;  %v2609_v9 = vmax.f32 %v2261_v5, 0.0  ;;  %v6096_v11 = vpop.f32.mrb[109].mxu0  ;;  %v6098_v28 = vpop.f32.mrb[109].mxu1  ;;  %v1770_v0 = vadd.f32 %v5662_v31, %v5980_v47 }
 0x1bb   :  { %v3772_v61 = vpack.c.bf16 %v2885_v36, %v2885_v36  ;;  %v2871_v21 = vmax.f32 %v2869_v15, %v2870_v49  ;;  %v2874_v3 = vmax.f32 %v5410_v26, %v2873_v18  ;;  %v2890_v34 = vmax.f32 %v2888_v25, %v5413_v38  ;;  %v6106_v43 = vpop.f32.mrb[110].mxu0  ;;  %v6108_v16 = vpop.f32.mrb[110].mxu1  ;;  %v6672_v25 = vld [vmem:[#allocation45_spill] sm:$0xff]  ;;  %v6673_v18 = vld [vmem:[#allocation47_spill] sm:$0xff] }
 0x1bc   :  { %v2891_v10 = vsel %vm2640_vm2, %v2611_v4, -inf  ;;  %v1762_v60 = vadd.f32 %v5662_v31, %v5992_v52  ;;  %v2877_v56 = vsel %vm2640_vm2, %v2609_v9, -inf  ;;  %v2282_v47 = vadd.f32 %v5662_v31, %v5982_v55  ;;  %v6118_v63 = vpop.f32.mrb[111].mxu0  ;;  %v6120_v52 = vpop.f32.mrb[111].mxu1 }
 0x1bd   :  { %3380 = vst.msk [vmem:[%s6540_s3 + $0x88] sm:$0xf] %vm3345_vm3, %v3772_v61  ;;  %v3770_v26 = vpack.c.bf16 %v2871_v21, %v2871_v21  ;;  %v2876_v38 = vmax.f32 %v2874_v3, %v6671_v46  ;;  %v2892_v62 = vmax.f32 %v2890_v34, %v2891_v10  ;;  %v2486_v19 = vmax.f32 %v1770_v0, 0.0  ;;  %v6674_v10 = vld [vmem:[#allocation46_spill] sm:$0xff]  ;;  %v6676_v46 = vld [vmem:[#allocation48_spill] sm:$0xff] }
 0x1be   :  { %v2484_v8 = vmax.f32 %v1762_v60, 0.0  ;;  %v1773_v54 = vadd.f32 %v5662_v31, %v5998_v42  ;;  %v2614_v53 = vmax.f32 %v2282_v47, 0.0  ;;  %v2274_v55 = vadd.f32 %v5662_v31, %v5994_v22  ;;  %v6675_v60 = vld [vmem:[#allocation49_spill] sm:$0xff] }
 0x1bf   :  { %3378 = vst.msk [vmem:[%s6540_s3 + $0x80] sm:$0xf] %vm3345_vm3, %v3770_v26  ;;  %v2878_v57 = vmax.f32 %v2876_v38, %v2877_v56  ;;  %v1765_v36 = vadd.f32 %v5662_v31, %v6005_v32  ;;  %v3773_v44 = vpack.c.bf16 %v2892_v62, %v2892_v62  ;;  %v2908_v15 = vsel %vm2640_vm2, %v2486_v19, -inf }
 0x1c0   :  { %v2894_v5 = vsel %vm2640_vm2, %v2484_v8, -inf  ;;  %v2487_v51 = vmax.f32 %v1773_v54, 0.0  ;;  %v2909_v49 = vmax.f32 %v6672_v25, %v2908_v15  ;;  %v2912_v61 = vsel %vm2640_vm2, %v2614_v53, -inf  ;;  %v6678_v15 = vld [vmem:[#allocation51_spill] sm:$0xff] }
 0x1c1   :  { %v3771_v42 = vpack.c.bf16 %v2878_v57, %v2878_v57  ;;  %v2895_v4 = vmax.f32 %v6673_v18, %v2894_v5  ;;  %3381 = vst.msk [vmem:[%s6540_s3 + $0x8c] sm:$0xf] %vm3345_vm3, %v3773_v44  ;;  %v2612_v32 = vmax.f32 %v2274_v55, 0.0  ;;  %v2485_v21 = vmax.f32 %v1765_v36, 0.0  ;;  %v6144_v9 = vpop.f32.mrb[112].mxu0  ;;  %v6146_v34 = vpop.f32.mrb[112].mxu1 }
 0x1c2   :  { %v2915_v22 = vsel %vm2640_vm2, %v2487_v51, -inf  ;;  %v2285_v3 = vadd.f32 %v5662_v31, %v6000_v41  ;;  %v2911_v0 = vmax.f32 %v2909_v49, %v6674_v10  ;;  %v2277_v56 = vadd.f32 %v5662_v31, %v6007_v2  ;;  %v6157_v47 = vpop.f32.mrb[113].mxu0  ;;  %v6159_v41 = vpop.f32.mrb[113].mxu1  ;;  %v6677_v44 = vld [vmem:[#allocation50_spill] sm:$0xff] }
 0x1c3   :  { %3379 = vst.msk [vmem:[%s6540_s3 + $0x84] sm:$0xf] %vm3345_vm3, %v3771_v42  ;;  %v2916_v26 = vmax.f32 %v6675_v60, %v2915_v22  ;;  %v2897_v38 = vmax.f32 %v2895_v4, %v6676_v46  ;;  %v2898_v62 = vsel %vm2640_vm2, %v2612_v32, -inf  ;;  %v2901_v19 = vsel %vm2640_vm2, %v2485_v21, -inf  ;;  %v6165_v57 = vpop.f32.mrb[114].mxu0  ;;  %v6167_v53 = vpop.f32.mrb[114].mxu1 }
 0x1c4   :  { %v2615_v8 = vmax.f32 %v2285_v3, 0.0  ;;  %v1786_v54 = vadd.f32 %v5662_v31, %v6034_v59  ;;  %v2913_v55 = vmax.f32 %v2911_v0, %v2912_v61  ;;  %v2902_v2 = vmax.f32 %v6677_v44, %v2901_v19  ;;  %v6171_v51 = vpop.f32.mrb[115].mxu0  ;;  %v6173_v42 = vpop.f32.mrb[115].mxu1  ;;  %v6679_v61 = vld [vmem:[#allocation52_spill] sm:$0xff] }
 0x1c5   :  { %v2899_v36 = vmax.f32 %v2897_v38, %v2898_v62  ;;  %v2918_v5 = vmax.f32 %v2916_v26, %v6678_v15  ;;  %v2613_v49 = vmax.f32 %v2277_v56, 0.0  ;;  %v1778_v59 = vadd.f32 %v5662_v31, %v6039_v39  ;;  %v6198_v62 = vld [vmem:[%s6539_s2] ss:$0 sm:$0xff] }
 0x1c6   :  { %v2919_v25 = vsel %vm2640_vm2, %v2615_v8, -inf  ;;  %v2490_v18 = vmax.f32 %v1786_v54, 0.0  ;;  %v3776_v4 = vpack.c.bf16 %v2913_v55, %v2913_v55  ;;  %v2904_v21 = vmax.f32 %v2902_v2, %v6679_v61  ;;  %v6680_v55 = vld [vmem:[#allocation53_spill] sm:$0xff]  ;;  %v6681_v61 = vld [vmem:[#allocation54_spill] sm:$0xff] }
 0x1c7   :  { %v3774_v22 = vpack.c.bf16 %v2899_v36, %v2899_v36  ;;  %v2920_v32 = vmax.f32 %v2918_v5, %v2919_v25  ;;  %v2905_v3 = vsel %vm2640_vm2, %v2613_v49, -inf  ;;  %v2488_v0 = vmax.f32 %v1778_v59, 0.0 }
 0x1c8   :  { %v2936_v10 = vsel %vm2640_vm2, %v2490_v18, -inf  ;;  %v2298_v60 = vadd.f32 %v5662_v31, %v6036_v33  ;;  %3384 = vst.msk [vmem:[%s6540_s3 + $0x98] sm:$0xf] %vm3345_vm3, %v3776_v4  ;;  %v2906_v26 = vmax.f32 %v2904_v21, %v2905_v3  ;;  %v1789_v38 = vadd.f32 %v5662_v31, %v6047_v6 }
 0x1c9   :  { %3382 = vst.msk [vmem:[%s6540_s3 + $0x90] sm:$0xf] %vm3345_vm3, %v3774_v22  ;;  %v3777_v39 = vpack.c.bf16 %v2920_v32, %v2920_v32  ;;  %v2937_v46 = vmax.f32 %v5459_v17, %v2936_v10  ;;  %v2922_v56 = vsel %vm2640_vm2, %v2488_v0, -inf  ;;  %v2290_v19 = vadd.f32 %v6198_v62, %v6041_v7  ;;  %v6204_v54 = vpop.f32.mrb[116].mxu0  ;;  %v6206_v17 = vpop.f32.mrb[116].mxu1 }
 0x1ca   :  { %v2618_v33 = vmax.f32 %v2298_v60, 0.0  ;;  %v1781_v8 = vadd.f32 %v6198_v62, %v6062_v24  ;;  %v3775_v31 = vpack.c.bf16 %v2906_v26, %v2906_v26  ;;  %v2923_v6 = vmax.f32 %v5465_v12, %v2922_v56  ;;  %v6214_v2 = vpop.f32.mrb[117].mxu0  ;;  %v6216_v7 = vpop.f32.mrb[117].mxu1  ;;  %v6682_v26 = vld [vmem:[#allocation55_spill] sm:$0xff] }
 0x1cb   :  { %3385 = vst.msk [vmem:[%s6540_s3 + $0x9c] sm:$0xf] %vm3345_vm3, %v3777_v39  ;;  %v2939_v36 = vmax.f32 %v2937_v46, %v6680_v55  ;;  %v2491_v44 = vmax.f32 %v1789_v38, 0.0  ;;  %v2616_v15 = vmax.f32 %v2290_v19, 0.0  ;;  %v2301_v25 = vadd.f32 %v6198_v62, %v6049_v40  ;;  %v6221_v49 = vpop.f32.mrb[118].mxu0  ;;  %v6223_v18 = vpop.f32.mrb[118].mxu1 }
 0x1cc   :  { %v2940_v24 = vsel %vm2640_vm2, %v2618_v33, -inf  ;;  %v2489_v5 = vmax.f32 %v1781_v8, 0.0  ;;  %3383 = vst.msk [vmem:[%s6540_s3 + $0x94] sm:$0xf] %vm3345_vm3, %v3775_v31  ;;  %v2925_v4 = vmax.f32 %v2923_v6, %v5474_v35  ;;  %v2293_v22 = vadd.f32 %v6198_v62, %v6064_v37  ;;  %v6233_v32 = vpop.f32.mrb[119].mxu0  ;;  %v6235_v40 = vpop.f32.mrb[119].mxu1 }
 0x1cd   :  { %v2941_v12 = vmax.f32 %v2939_v36, %v2940_v24  ;;  %v2943_v59 = vsel %vm2640_vm2, %v2491_v44, -inf  ;;  %v2926_v3 = vsel %vm2640_vm2, %v2616_v15, -inf  ;;  %v2619_v0 = vmax.f32 %v2301_v25, 0.0  ;;  %v6683_v35 = vld [vmem:[#allocation56_spill] sm:$0xff]  ;;  %v6684_v31 = vld [vmem:[#allocation57_spill] sm:$0xff] }
 0x1ce   :  { %v2944_v21 = vmax.f32 %v6681_v61, %v2943_v59  ;;  %v2929_v10 = vsel %vm2640_vm2, %v2489_v5, -inf  ;;  %v2927_v39 = vmax.f32 %v2925_v4, %v2926_v3  ;;  %v2617_v38 = vmax.f32 %v2293_v22, 0.0 }
 0x1cf   :  { %v3780_v60 = vpack.c.bf16 %v2941_v12, %v2941_v12  ;;  %v2930_v46 = vmax.f32 %v6682_v26, %v2929_v10  ;;  %v2947_v37 = vsel %vm2640_vm2, %v2619_v0, -inf  ;;  %v1802_v33 = vadd.f32 %v6198_v62, %v6091_v1  ;;  %v6686_v26 = vld [vmem:[#allocation60_spill] sm:$0xff] }
 0x1d0   :  { %v2946_v56 = vmax.f32 %v2944_v21, %v6683_v35  ;;  %v1794_v19 = vadd.f32 %v6198_v62, %v6096_v11  ;;  %v3778_v8 = vpack.c.bf16 %v2927_v39, %v2927_v39  ;;  %v2933_v55 = vsel %vm2640_vm2, %v2617_v38, -inf  ;;  %v6685_v39 = vld [vmem:[#allocation58_spill] sm:$0xff] }
 0x1d1   :  { %3388 = vst.msk [vmem:[%s6540_s3 + $0xa8] sm:$0xf] %vm3345_vm3, %v3780_v60  ;;  %v2932_v6 = vmax.f32 %v2930_v46, %v6684_v31  ;;  %v2314_v36 = vadd.f32 %v6198_v62, %v6093_v29  ;;  %v2494_v24 = vmax.f32 %v1802_v33, 0.0  ;;  %v1805_v1 = vadd.f32 %v6198_v62, %v6106_v43  ;;  %v6257_v11 = vpop.f32.mrb[120].mxu0  ;;  %v6259_v5 = vpop.f32.mrb[120].mxu1 }
 0x1d2   :  { %v2948_v44 = vmax.f32 %v2946_v56, %v2947_v37  ;;  %v2492_v15 = vmax.f32 %v1794_v19, 0.0  ;;  %3386 = vst.msk [vmem:[%s6540_s3 + $0xa0] sm:$0xf] %vm3345_vm3, %v3778_v8  ;;  %v2306_v29 = vadd.f32 %v6198_v62, %v6098_v28  ;;  %v1797_v59 = vadd.f32 %v6198_v62, %v6118_v63  ;;  %v6269_v4 = vpop.f32.mrb[121].mxu0  ;;  %v6271_v43 = vpop.f32.mrb[121].mxu1  ;;  %v6687_v8 = vld [vmem:[#allocation59_spill] sm:$0xff] }
 0x1d3   :  { %v2934_v25 = vmax.f32 %v2932_v6, %v2933_v55  ;;  %v2622_v12 = vmax.f32 %v2314_v36, 0.0  ;;  %v2964_v61 = vsel %vm2640_vm2, %v2494_v24, -inf  ;;  %v2495_v3 = vmax.f32 %v1805_v1, 0.0  ;;  %v6275_v10 = vpop.f32.mrb[122].mxu0  ;;  %v6277_v0 = vpop.f32.mrb[122].mxu1  ;;  %v6688_v6 = vld [vmem:[#allocation62_spill] sm:$0xff] }
 0x1d4   :  { %v3781_v22 = vpack.c.bf16 %v2948_v44, %v2948_v44  ;;  %v2950_v21 = vsel %vm2640_vm2, %v2492_v15, -inf  ;;  %v2965_v28 = vmax.f32 %v6685_v39, %v2964_v61  ;;  %v6282_v38 = vpop.f32.mrb[123].mxu0  ;;  %v6284_v35 = vpop.f32.mrb[123].mxu1  ;;  %v2620_v37 = vmax.f32 %v2306_v29, 0.0  ;;  %v6689_v36 = vld [vmem:[#allocation61_spill] sm:$0xff]  ;;  %v6691_v61 = vld [vmem:[#allocation64_spill] sm:$0xff] }
 0x1d5   :  { %v3779_v60 = vpack.c.bf16 %v2934_v25, %v2934_v25  ;;  %v2951_v46 = vmax.f32 %v6686_v26, %v2950_v21  ;;  %v2968_v63 = vsel %vm2640_vm2, %v2622_v12, -inf  ;;  %v2971_v56 = vsel %vm2640_vm2, %v2495_v3, -inf }
 0x1d6   :  { %3389 = vst.msk [vmem:[%s6540_s3 + $0xac] sm:$0xf] %vm3345_vm3, %v3781_v22  ;;  %v2493_v33 = vmax.f32 %v1797_v59, 0.0  ;;  %v2317_v19 = vadd.f32 %v6198_v62, %v6108_v16  ;;  %v2967_v31 = vmax.f32 %v2965_v28, %v6687_v8  ;;  %v2972_v55 = vmax.f32 %v6688_v6, %v2971_v56  ;;  %v6690_v59 = vld [vmem:[#allocation63_spill] sm:$0xff] }
 0x1d7   :  { %3387 = vst.msk [vmem:[%s6540_s3 + $0xa4] sm:$0xf] %vm3345_vm3, %v3779_v60  ;;  %v2953_v44 = vmax.f32 %v2951_v46, %v6689_v36  ;;  %v2309_v24 = vadd.f32 %v6198_v62, %v6120_v52  ;;  %v2954_v15 = vsel %vm2640_vm2, %v2620_v37, -inf  ;;  %v1818_v16 = vadd.f32 %v6198_v62, %v6144_v9 }
 0x1d8   :  { %v2957_v1 = vsel %vm2640_vm2, %v2493_v33, -inf  ;;  %v2623_v25 = vmax.f32 %v2317_v19, 0.0  ;;  %v2969_v12 = vmax.f32 %v2967_v31, %v2968_v63  ;;  %v2974_v21 = vmax.f32 %v2972_v55, %v6691_v61 }
 0x1d9   :  { %v2955_v29 = vmax.f32 %v2953_v44, %v2954_v15  ;;  %v2958_v22 = vmax.f32 %v6690_v59, %v2957_v1  ;;  %v2621_v60 = vmax.f32 %v2309_v24, 0.0  ;;  %v2498_v39 = vmax.f32 %v1818_v16, 0.0  ;;  %v6311_v28 = vpop.f32.mrb[124].mxu0  ;;  %v6313_v26 = vpop.f32.mrb[124].mxu1  ;;  %v6693_v59 = vld [vmem:[#allocation66_spill] sm:$0xff] }
 0x1da   :  { %v2975_v3 = vsel %vm2640_vm2, %v2623_v25, -inf  ;;  %v1810_v52 = vadd.f32 %v6198_v62, %v6157_v47  ;;  %v3784_v46 = vpack.c.bf16 %v2969_v12, %v2969_v12  ;;  %v6316_v37 = vpop.f32.mrb[125].mxu0  ;;  %v6318_v33 = vpop.f32.mrb[125].mxu1  ;;  %v2330_v47 = vadd.f32 %v6198_v62, %v6146_v34 }
 0x1db   :  { %v3782_v56 = vpack.c.bf16 %v2955_v29, %v2955_v29  ;;  %v2976_v9 = vmax.f32 %v2974_v21, %v2975_v3  ;;  %v2960_v63 = vmax.f32 %v2958_v22, %v5515_v58  ;;  %v2961_v19 = vsel %vm2640_vm2, %v2621_v60, -inf  ;;  %v6324_v6 = vpop.f32.mrb[126].mxu0  ;;  %v6326_v55 = vpop.f32.mrb[126].mxu1 }
 0x1dc   :  { %v2992_v8 = vsel %vm2640_vm2, %v2498_v39, -inf  ;;  %v2496_v31 = vmax.f32 %v1810_v52, 0.0  ;;  %3392 = vst.msk [vmem:[%s6540_s3 + $0xb8] sm:$0xf] %vm3345_vm3, %v3784_v46  ;;  %v1821_v34 = vadd.f32 %v6198_v62, %v6165_v57  ;;  %v6339_v24 = vpop.f32.mrb[127].mxu0  ;;  %v6341_v15 = vpop.f32.mrb[127].mxu1  ;;  %v2322_v16 = vadd.f32 %v6198_v62, %v6159_v41 }
 0x1dd   :  { %3390 = vst.msk [vmem:[%s6540_s3 + $0xb0] sm:$0xf] %vm3345_vm3, %v3782_v56  ;;  %v3785_v58 = vpack.c.bf16 %v2976_v9, %v2976_v9  ;;  %v2962_v36 = vmax.f32 %v2960_v63, %v2961_v19  ;;  %v2993_v44 = vmax.f32 %v5523_v48, %v2992_v8  ;;  %v2626_v25 = vmax.f32 %v2330_v47, 0.0  ;;  %v6692_v57 = vld [vmem:[#allocation65_spill] sm:$0xff]  ;;  %v6694_v56 = vld [vmem:[#allocation67_spill] sm:$0xff]  ;;  %v6695_v47 = vld [vmem:[#allocation68_spill] sm:$0xff] }
 0x1de   :  { %v2978_v1 = vsel %vm2640_vm2, %v2496_v31, -inf  ;;  %v1813_v12 = vadd.f32 %v6198_v62, %v6171_v51  ;;  %v2499_v61 = vmax.f32 %v1821_v34, 0.0  ;;  %v2624_v3 = vmax.f32 %v2322_v16, 0.0  ;;  %v6697_v16 = vld [vmem:[#allocation70_spill] sm:$0xff] }
 0x1df   :  { %3393 = vst.msk [vmem:[%s6540_s3 + $0xbc] sm:$0xf] %vm3345_vm3, %v3785_v58  ;;  %v3783_v48 = vpack.c.bf16 %v2962_v36, %v2962_v36  ;;  %v2979_v29 = vmax.f32 %v6692_v57, %v2978_v1  ;;  %v2995_v22 = vmax.f32 %v2993_v44, %v6693_v59  ;;  %v2996_v21 = vsel %vm2640_vm2, %v2626_v25, -inf  ;;  %v6696_v44 = vld [vmem:[#allocation69_spill] sm:$0xff] }
 0x1e0   :  { %v2497_v60 = vmax.f32 %v1813_v12, 0.0  ;;  %v2333_v41 = vadd.f32 %v6198_v62, %v6167_v53  ;;  %v2999_v39 = vsel %vm2640_vm2, %v2499_v61, -inf  ;;  %v2325_v46 = vadd.f32 %v6198_v62, %v6173_v42 }
 0x1e1   :  { %3391 = vst.msk [vmem:[%s6540_s3 + $0xb4] sm:$0xf] %vm3345_vm3, %v3783_v48  ;;  %v2997_v51 = vmax.f32 %v2995_v22, %v2996_v21  ;;  %v2981_v52 = vmax.f32 %v2979_v29, %v5538_v45  ;;  %v3000_v9 = vmax.f32 %v6694_v56, %v2999_v39  ;;  %v2982_v63 = vsel %vm2640_vm2, %v2624_v3, -inf  ;;  %v6698_v39 = vld [vmem:[#allocation71_spill] sm:$0xff] }
 0x1e2   :  { %v2985_v19 = vsel %vm2640_vm2, %v2497_v60, -inf  ;;  %v2627_v53 = vmax.f32 %v2333_v41, 0.0  ;;  %v2625_v36 = vmax.f32 %v2325_v46, 0.0  ;;  %v1834_v45 = vadd.f32 %v6198_v62, %v6204_v54  ;;  %v6699_v46 = vld [vmem:[#allocation73_spill] sm:$0xff] }
 0x1e3   :  { %v3788_v8 = vpack.c.bf16 %v2997_v51, %v2997_v51  ;;  %v2983_v31 = vmax.f32 %v2981_v52, %v2982_v63  ;;  %v2986_v58 = vmax.f32 %v6695_v47, %v2985_v19  ;;  %v3002_v34 = vmax.f32 %v3000_v9, %v6696_v44 }
 0x1e4   :  { %v3003_v1 = vsel %vm2640_vm2, %v2627_v53, -inf  ;;  %v1826_v42 = vadd.f32 %v6198_v62, %v6214_v2  ;;  %v2989_v48 = vsel %vm2640_vm2, %v2625_v36, -inf  ;;  %v2346_v57 = vadd.f32 %v6198_v62, %v6206_v17  ;;  %v6700_v53 = vld [vmem:[#allocation72_spill] sm:$0xff] }
 0x1e5   :  { %3396 = vst.msk [vmem:[%s6540_s3 + $0xc8] sm:$0xf] %vm3345_vm3, %v3788_v8  ;;  %v3786_v25 = vpack.c.bf16 %v2983_v31, %v2983_v31  ;;  %v2988_v12 = vmax.f32 %v2986_v58, %v6697_v16  ;;  %v3004_v29 = vmax.f32 %v3002_v34, %v3003_v1  ;;  %v2502_v59 = vmax.f32 %v1834_v45, 0.0  ;;  %v6701_v31 = vld [vmem:[#allocation75_spill] sm:$0xff]  ;;  %v6702_v58 = vld [vmem:[#allocation74_spill] sm:$0xff]  ;;  %v6703_v16 = vld [vmem:[#allocation76_spill] sm:$0xff] }
 0x1e6   :  { %v2500_v22 = vmax.f32 %v1826_v42, 0.0  ;;  %v1837_v54 = vadd.f32 %v6198_v62, %v6221_v49  ;;  %v2630_v61 = vmax.f32 %v2346_v57, 0.0  ;;  %v2338_v21 = vadd.f32 %v6198_v62, %v6216_v7 }
 0x1e7   :  { %3394 = vst.msk [vmem:[%s6540_s3 + $0xc0] sm:$0xf] %vm3345_vm3, %v3786_v25  ;;  %v2990_v2 = vmax.f32 %v2988_v12, %v2989_v48  ;;  %v1829_v3 = vadd.f32 %v6198_v62, %v6233_v32  ;;  %v3789_v17 = vpack.c.bf16 %v3004_v29, %v3004_v29  ;;  %v3020_v60 = vsel %vm2640_vm2, %v2502_v59, -inf  ;;  %v6704_v48 = vld [vmem:[#allocation77_spill] sm:$0xff] }
 0x1e8   :  { %v3006_v41 = vsel %vm2640_vm2, %v2500_v22, -inf  ;;  %v2503_v51 = vmax.f32 %v1837_v54, 0.0  ;;  %v3021_v52 = vmax.f32 %v6698_v39, %v3020_v60  ;;  %v3024_v9 = vsel %vm2640_vm2, %v2630_v61, -inf }
 0x1e9   :  { %v3787_v49 = vpack.c.bf16 %v2990_v2, %v2990_v2  ;;  %v3007_v56 = vmax.f32 %v6699_v46, %v3006_v41  ;;  %3397 = vst.msk [vmem:[%s6540_s3 + $0xcc] sm:$0xf] %vm3345_vm3, %v3789_v17  ;;  %v2628_v32 = vmax.f32 %v2338_v21, 0.0  ;;  %v2501_v63 = vmax.f32 %v1829_v3, 0.0  ;;  %v6705_v21 = vld [vmem:[#allocation78_spill] sm:$0xff] }
 0x1ea   :  { %v3027_v7 = vsel %vm2640_vm2, %v2503_v51, -inf  ;;  %v2349_v19 = vadd.f32 %v6198_v62, %v6223_v18  ;;  %v3023_v8 = vmax.f32 %v3021_v52, %v6700_v53  ;;  %v2341_v44 = vadd.f32 %v6198_v62, %v6235_v40 }
 0x1eb   :  { %3395 = vst.msk [vmem:[%s6540_s3 + $0xc4] sm:$0xf] %vm3345_vm3, %v3787_v49  ;;  %v3028_v47 = vmax.f32 %v6701_v31, %v3027_v7  ;;  %v3009_v36 = vmax.f32 %v3007_v56, %v6702_v58  ;;  %v3010_v34 = vsel %vm2640_vm2, %v2628_v32, -inf  ;;  %v3013_v1 = vsel %vm2640_vm2, %v2501_v63, -inf }
 0x1ec   :  { %v2631_v45 = vmax.f32 %v2349_v19, 0.0  ;;  %v1850_v18 = vadd.f32 %v6198_v62, %v6257_v11  ;;  %v3025_v42 = vmax.f32 %v3023_v8, %v3024_v9  ;;  %v3014_v12 = vmax.f32 %v6703_v16, %v3013_v1 }
 0x1ed   :  { %v3011_v25 = vmax.f32 %v3009_v36, %v3010_v34  ;;  %v3030_v57 = vmax.f32 %v3028_v47, %v6704_v48  ;;  %v2629_v59 = vmax.f32 %v2341_v44, 0.0  ;;  %v1842_v40 = vadd.f32 %v6198_v62, %v6269_v4 }
 0x1ee   :  { %v3031_v29 = vsel %vm2640_vm2, %v2631_v45, -inf  ;;  %v2506_v22 = vmax.f32 %v1850_v18, 0.0  ;;  %v3792_v54 = vpack.c.bf16 %v3025_v42, %v3025_v42  ;;  %v3016_v3 = vmax.f32 %v3014_v12, %v6705_v21  ;;  %v6706_v18 = vld [vmem:[#allocation81_spill] sm:$0xff] }
 0x1ef   :  { %v3790_v2 = vpack.c.bf16 %v3011_v25, %v3011_v25  ;;  %v3032_v61 = vmax.f32 %v3030_v57, %v3031_v29  ;;  %v3017_v11 = vsel %vm2640_vm2, %v2629_v59, -inf  ;;  %v2504_v60 = vmax.f32 %v1842_v40, 0.0 }
 0x1f0   :  { %v3048_v17 = vsel %vm2640_vm2, %v2506_v22, -inf  ;;  %v2362_v41 = vadd.f32 %v6198_v62, %v6259_v5  ;;  %3400 = vst.msk [vmem:[%s6540_s3 + $0xd8] sm:$0xf] %vm3345_vm3, %v3792_v54  ;;  %v3018_v51 = vmax.f32 %v3016_v3, %v3017_v11  ;;  %v1853_v39 = vadd.f32 %v6198_v62, %v6275_v10  ;;  %v6707_v54 = vld [vmem:[#allocation82_spill] sm:$0xff] }
 0x1f1   :  { %3398 = vst.msk [vmem:[%s6540_s3 + $0xd0] sm:$0xf] %vm3345_vm3, %v3790_v2  ;;  %v3793_v4 = vpack.c.bf16 %v3032_v61, %v3032_v61  ;;  %v3049_v49 = vmax.f32 %v5588_v50, %v3048_v17  ;;  %v3034_v52 = vsel %vm2640_vm2, %v2504_v60, -inf  ;;  %v2354_v46 = vadd.f32 %v6198_v62, %v6271_v43  ;;  %v6708_v61 = vld [vmem:[#allocation83_spill] sm:$0xff]  ;;  %v6709_v60 = vld [vmem:[#allocation84_spill] sm:$0xff] }
 0x1f2   :  { %v2634_v5 = vmax.f32 %v2362_v41, 0.0  ;;  %v1845_v56 = vadd.f32 %v6198_v62, %v6282_v38  ;;  %v3791_v9 = vpack.c.bf16 %v3018_v51, %v3018_v51  ;;  %v3035_v50 = vmax.f32 %v5597_v13, %v3034_v52 }
 0x1f3   :  { %3401 = vst.msk [vmem:[%s6540_s3 + $0xdc] sm:$0xf] %vm3345_vm3, %v3793_v4  ;;  %v3051_v7 = vmax.f32 %v3049_v49, %v5591_v27  ;;  %v2507_v10 = vmax.f32 %v1853_v39, 0.0  ;;  %v2632_v63 = vmax.f32 %v2354_v46, 0.0  ;;  %v2365_v43 = vadd.f32 %v6198_v62, %v6277_v0  ;;  %v6710_v4 = vld [vmem:[#allocation86_spill] sm:$0xff]  ;;  %v6711_v49 = vld [vmem:[#allocation85_spill] sm:$0xff] }
 0x1f4   :  { %v3052_v32 = vsel %vm2640_vm2, %v2634_v5, -inf  ;;  %v2505_v19 = vmax.f32 %v1845_v56, 0.0  ;;  %3399 = vst.msk [vmem:[%s6540_s3 + $0xd4] sm:$0xf] %vm3345_vm3, %v3791_v9  ;;  %v3037_v13 = vmax.f32 %v3035_v50, %v5600_v23  ;;  %v2357_v27 = vadd.f32 %v6198_v62, %v6284_v35  ;;  %v6712_v5 = vld [vmem:[#allocation79_spill] sm:$0xff] }
 0x1f5   :  { %v3053_v38 = vmax.f32 %v3051_v7, %v3052_v32  ;;  %v3055_v53 = vsel %vm2640_vm2, %v2507_v10, -inf  ;;  %v3038_v31 = vsel %vm2640_vm2, %v2632_v63, -inf  ;;  %v2635_v0 = vmax.f32 %v2365_v43, 0.0  ;;  %v6714_v63 = vld [vmem:[#allocation87_spill] sm:$0xff]  ;;  %v6715_v43 = vld [vmem:[#allocation80_spill] sm:$0xff] }
 0x1f6   :  { %v3056_v8 = vmax.f32 %v5606_v14, %v3055_v53  ;;  %v3041_v47 = vsel %vm2640_vm2, %v2505_v19, -inf  ;;  %v3039_v36 = vmax.f32 %v3037_v13, %v3038_v31  ;;  %v2633_v34 = vmax.f32 %v2357_v27, 0.0 }
 0x1f7   :  { %v3796_v58 = vpack.c.bf16 %v3053_v38, %v3053_v38  ;;  %v3042_v44 = vmax.f32 %v5609_v30, %v3041_v47  ;;  %v3059_v45 = vsel %vm2640_vm2, %v2635_v0, -inf  ;;  %v1866_v23 = vadd.f32 %v6198_v62, %v6311_v28 }
 0x1f8   :  { %v3058_v1 = vmax.f32 %v3056_v8, %v5612_v20  ;;  %v1858_v14 = vadd.f32 %v6198_v62, %v6316_v37  ;;  %v3794_v35 = vpack.c.bf16 %v3039_v36, %v3039_v36  ;;  %v3045_v30 = vsel %vm2640_vm2, %v2633_v34, -inf }
 0x1f9   :  { %3404 = vst.msk [vmem:[%s6540_s3 + $0xe8] sm:$0xf] %vm3345_vm3, %v3796_v58  ;;  %v3044_v42 = vmax.f32 %v3042_v44, %v6706_v18  ;;  %v2378_v20 = vadd.f32 %v6198_v62, %v6313_v26  ;;  %v2510_v16 = vmax.f32 %v1866_v23, 0.0  ;;  %v1869_v28 = vadd.f32 %v6198_v62, %v6324_v6 }
 0x1fa   :  { %v3060_v25 = vmax.f32 %v3058_v1, %v3059_v45  ;;  %v2508_v12 = vmax.f32 %v1858_v14, 0.0  ;;  %3402 = vst.msk [vmem:[%s6540_s3 + $0xe0] sm:$0xf] %vm3345_vm3, %v3794_v35  ;;  %v2370_v57 = vadd.f32 %v6198_v62, %v6318_v33  ;;  %v1861_v29 = vadd.f32 %v6198_v62, %v6339_v24 }
 0x1fb   :  { %v3046_v37 = vmax.f32 %v3044_v42, %v3045_v30  ;;  %v2638_v48 = vmax.f32 %v2378_v20, 0.0  ;;  %v3076_v59 = vsel %vm2640_vm2, %v2510_v16, -inf  ;;  %v2511_v40 = vmax.f32 %v1869_v28, 0.0 }
 0x1fc   :  { %v3797_v26 = vpack.c.bf16 %v3060_v25, %v3060_v25  ;;  %v3062_v22 = vsel %vm2640_vm2, %v2508_v12, -inf  ;;  %v3077_v2 = vmax.f32 %v6707_v54, %v3076_v59  ;;  %v2636_v24 = vmax.f32 %v2370_v57, 0.0 }
 0x1fd   :  { %v3795_v6 = vpack.c.bf16 %v3046_v37, %v3046_v37  ;;  %v3063_v21 = vmax.f32 %v6708_v61, %v3062_v22  ;;  %v3080_v3 = vsel %vm2640_vm2, %v2638_v48, -inf  ;;  %v3083_v33 = vsel %vm2640_vm2, %v2511_v40, -inf }
 0x1fe   :  { %3405 = vst.msk [vmem:[%s6540_s3 + $0xec] sm:$0xf] %vm3345_vm3, %v3797_v26  ;;  %v2509_v11 = vmax.f32 %v1861_v29, 0.0  ;;  %v2381_v17 = vadd.f32 %v6198_v62, %v6326_v55  ;;  %v3079_v41 = vmax.f32 %v3077_v2, %v6709_v60  ;;  %v3084_v51 = vmax.f32 %v6710_v4, %v3083_v33 }
 0x1ff   :  { %3403 = vst.msk [vmem:[%s6540_s3 + $0xe4] sm:$0xf] %vm3345_vm3, %v3795_v6  ;;  %v3065_v39 = vmax.f32 %v3063_v21, %v6711_v49  ;;  %v2373_v52 = vadd.f32 %v6198_v62, %v6341_v15  ;;  %v6713_v46 = vmax.f32 %v6712_v5, 0.0  ;;  %v3066_v55 = vsel %vm2640_vm2, %v2636_v24, -inf }
 0x200   :  { %v3069_v9 = vsel %vm2640_vm2, %v2509_v11, -inf  ;;  %v2639_v50 = vmax.f32 %v2381_v17, 0.0  ;;  %v3081_v7 = vmax.f32 %v3079_v41, %v3080_v3  ;;  %v3086_v19 = vmax.f32 %v3084_v51, %v6714_v63 }
 0x201   :  { %v3068_v56 = vsel %vm2640_vm2, %v6713_v46, -inf  ;;  %v3067_v10 = vmax.f32 %v3065_v39, %v3066_v55  ;;  %v6716_v38 = vmax.f32 %v6715_v43, 0.0  ;;  %v2637_v15 = vmax.f32 %v2373_v52, 0.0 }
 0x202   :  { %v3070_v32 = vmax.f32 %v3068_v56, %v3069_v9  ;;  %v3087_v62 = vsel %vm2640_vm2, %v2639_v50, -inf  ;;  %v3800_v13 = vpack.c.bf16 %v3081_v7, %v3081_v7 }
 0x203   :  { %v3071_v53 = vsel %vm2640_vm2, %v6716_v38, -inf  ;;  %v3798_v27 = vpack.c.bf16 %v3067_v10, %v3067_v10  ;;  %v3088_v8 = vmax.f32 %v3086_v19, %v3087_v62  ;;  %v3073_v47 = vsel %vm2640_vm2, %v2637_v15, -inf }
 0x204   :  { %v3072_v31 = vmax.f32 %v3070_v32, %v3071_v53  ;;  %3408 = vst.msk [vmem:[%s6540_s3 + $0xf8] sm:$0xf] %vm3345_vm3, %v3800_v13 }
 0x205   :  { %3406 = vst.msk [vmem:[%s6540_s3 + $0xf0] sm:$0xf] %vm3345_vm3, %v3798_v27  ;;  %v3801_v0 = vpack.c.bf16 %v3088_v8, %v3088_v8 }
 0x206   :  { %v3074_v58 = vmax.f32 %v3072_v31, %v3073_v47 }
 0x207   :  { %3409 = vst.msk [vmem:[%s6540_s3 + $0xfc] sm:$0xf] %vm3345_vm3, %v3801_v0 }
 0x208   :  { %v3799_v36 = vpack.c.bf16 %v3074_v58, %v3074_v58 }
 0x20a   :  { %3407 = vst.msk [vmem:[%s6540_s3 + $0xf4] sm:$0xf] %vm3345_vm3, %v3799_v36 }

// kernel: multibranch_forward.8
= control target key start
LH: loop header
LB: loop body
LE: loop exit
PB: predicated region body
PF: predicated region fallthrough
CT: control target
= control target key end

     0   :  { %s892_s12 = smov 0   ;;  %s894_s13 = smov 0   ;;  %s1018_s0 = inlined_call_operand.vmem [shape: bf16[3,4,32,144], index: 0, kind: input, shape index: {}]   ;;  %s1019_s1 = inlined_call_operand.vmem [shape: bf16[3,144,32], index: 1, kind: input, shape index: {}]   ;;  %s1020_s2 = inlined_call_operand.vmem [shape: f32[3,1,32], index: 2, kind: input, shape index: {}]   ;;  %s1021_s3 = inlined_call_operand.vmem [shape: bf16[3,32,32], index: 3, kind: output, shape index: {}]  }
   0x1   :  { %s896_s14 = smov 0  }
   0x2 LB: > { %s25_s15 = sadd.s32 1, %s865_s13  ;;  %p718_p0 = scmp.ge.s32.totalorder %s869_s14, 1  ;;  %s869_s14 = sphi %s896_s14, %s13_s14   ;;  %s865_s13 = sphi %s894_s13, %s1023_s13   ;;  %s861_s12 = sphi %s892_s12, %s1022_s12  }
   0x3   : > { %p27_p1 = scmp.ge.s32.totalorder %s25_s15, 3  ;;  %p177_p2 = scmp.lt.s32.totalorder %s869_s14, 4 }
   0x5   : > { %s1025_s15 = smov (%p27_p1, %s25_s15), 0  ;;  %p178_p3 = pnand %p718_p0, %p177_p2 }
   0x6   : > { %p219_p4 = scmp.lt.s32.totalorder (!%p178_p3), %s861_s12, 2  ;;  %v871_v0 = vmov (!%p178_p3), 0   ;;  %vm415_vm0 = vcmask (!%p178_p3), 130048   ;;  %vm553_vm1 = vcmask (!%p178_p3), 261120   ;;  %vm598_vm2 = vcmask (!%p178_p3), 257024  }
   0x7   : > { %181 = sbr.rel (%p178_p3) target bundleno = 306 (0x132), region = 32  ;;  %440 = vmatprep.subr.bf16.mxu0 (!%p178_p3), %v871_v0  ;;  %770 = vmatprep.subr.bf16.mxu1 (!%p178_p3), %v871_v0 }
   0xe   : > { %s1027_s12 = smov (!%p219_p4, %s861_s12), 2 }
   0xf   : > { %s788_s16 = smul.u32 72, %s1027_s12  ;;  %s764_s17 = sshll.u32 %s1027_s12, 7 }
  0x10   : > { %s917_s20 = scalar_lea.vmem %s1018_s0, %s764_s17  ;;  %s236_s26 = scalar_lea.vmem %s1020_s2, %s1027_s12 }
  0x11   : > { %s922_s23 = scalar_lea.vmem %s1019_s1, %s788_s16  ;;  %v825_v4 = vld [vmem:[%s917_s20 + $0x4] ss:$8 sps:$4 sm:$0xff]   ;;  %v823_v12 = vld [vmem:[%s917_s20] ss:$8 sps:$4 sm:$0xff]   ;;  %v829_v14 = vld [vmem:[%s917_s20 + $0x14] ss:$8 sps:$4 sm:$0xff]  }
  0x12   : > { %v814_v1 = vld [vmem:[%s922_s23] sm:$0xff]   ;;  %v815_v2 = vld [vmem:[%s922_s23 + $0x8] sm:$0xff]   ;;  %v816_v3 = vld [vmem:[%s922_s23 + $0x10] sm:$0xff]   ;;  %750 = vmatprep.mubr.msk.bf16.mxu0 %vm415_vm0, %v825_v4  ;;  %s765_s27 = sshll.u32 %s1027_s12, 4 }
  0x13   : > { %441 = vmatpush1.bf16.msra.mxu0 %v814_v1  ;;  %779 = vmatpush1.bf16.msra.mxu1 %v814_v1  ;;  %v817_v5 = vld [vmem:[%s922_s23 + $0x18] sm:$0xff]   ;;  %v828_v6 = vld [vmem:[%s917_s20 + $0x44] ss:$8 sps:$4 sm:$0xff]   ;;  %v820_v9 = vld [vmem:[%s922_s23 + $0x30] sm:$0xff]   ;;  %s989_s30 = scalar_lea.vmem %s1021_s3, %s765_s27 }
  0x14   : > { %442 = vmatprep.subr.bf16.mxu0 %v871_v0  ;;  %771 = vmatprep.subr.bf16.mxu1 %v871_v0  ;;  %v818_v7 = vld [vmem:[%s922_s23 + $0x20] sm:$0xff]   ;;  %v819_v8 = vld [vmem:[%s922_s23 + $0x28] sm:$0xff]   ;;  %v821_v10 = vld [vmem:[%s922_s23 + $0x38] sm:$0xff]  }
  0x15   : > { %754 = vmatprep.mubr.msk.bf16.mxu1 %vm415_vm0, %v828_v6  ;;  %v822_v11 = vld [vmem:[%s922_s23 + $0x40] sm:$0xff]   ;;  %v832_v15 = vld [vmem:[%s917_s20 + $0x54] ss:$8 sps:$4 sm:$0xff]   ;;  %v831_v16 = vld [vmem:[%s917_s20 + $0x10] ss:$8 sps:$4 sm:$0xff]  }
  0x16   : > { %v826_v13 = vld [vmem:[%s917_s20 + $0x40] ss:$8 sps:$4 sm:$0xff]   ;;  %v834_v17 = vld [vmem:[%s917_s20 + $0x50] ss:$8 sps:$4 sm:$0xff]   ;;  %v835_v18 = vld [vmem:[%s917_s20 + $0x24] ss:$8 sps:$4 sm:$0xff]  }
  0x17   : > { %443 = vmatpush1.bf16.msra.mxu0 %v815_v2  ;;  %780 = vmatpush1.bf16.msra.mxu1 %v815_v2  ;;  %v838_v19 = vld [vmem:[%s917_s20 + $0x64] ss:$8 sps:$4 sm:$0xff]   ;;  %v837_v20 = vld [vmem:[%s917_s20 + $0x20] ss:$8 sps:$4 sm:$0xff]   ;;  %v841_v22 = vld [vmem:[%s917_s20 + $0x34] ss:$8 sps:$4 sm:$0xff]  }
  0x18   : > { %444 = vmatprep.subr.bf16.mxu0 %v871_v0  ;;  %772 = vmatprep.subr.bf16.mxu1 %v871_v0  ;;  %v840_v21 = vld [vmem:[%s917_s20 + $0x60] ss:$8 sps:$4 sm:$0xff]   ;;  %v844_v23 = vld [vmem:[%s917_s20 + $0x74] ss:$8 sps:$4 sm:$0xff]   ;;  %v843_v24 = vld [vmem:[%s917_s20 + $0x30] ss:$8 sps:$4 sm:$0xff]  }
  0x19   : > { %v846_v25 = vld [vmem:[%s917_s20 + $0x70] ss:$8 sps:$4 sm:$0xff]   ;;  %v961_v38 = vld [vmem:[%s236_s26] ss:$0 sm:$0xff] }
  0x1b   : > { %445 = vmatpush1.bf16.msra.mxu0 %v816_v3  ;;  %781 = vmatpush1.bf16.msra.mxu1 %v816_v3 }
  0x1c   : > { %446 = vmatprep.subr.bf16.mxu0 %v871_v0  ;;  %773 = vmatprep.subr.bf16.mxu1 %v871_v0 }
  0x1f   : > { %447 = vmatpush1.bf16.msra.mxu0 %v817_v5  ;;  %782 = vmatpush1.bf16.msra.mxu1 %v817_v5 }
  0x20   : > { %448 = vmatprep.subr.bf16.mxu0 %v871_v0  ;;  %774 = vmatprep.subr.bf16.mxu1 %v871_v0 }
  0x23   : > { %449 = vmatpush1.bf16.msra.mxu0 %v818_v7  ;;  %783 = vmatpush1.bf16.msra.mxu1 %v818_v7 }
  0x24   : > { %450 = vmatprep.subr.bf16.mxu0 %v871_v0  ;;  %775 = vmatprep.subr.bf16.mxu1 %v871_v0 }
  0x27   : > { %451 = vmatpush1.bf16.msra.mxu0 %v819_v8  ;;  %784 = vmatpush1.bf16.msra.mxu1 %v819_v8 }
  0x28   : > { %452 = vmatprep.subr.bf16.mxu0 %v871_v0  ;;  %776 = vmatprep.subr.bf16.mxu1 %v871_v0 }
  0x2b   : > { %453 = vmatpush1.bf16.msra.mxu0 %v820_v9  ;;  %785 = vmatpush1.bf16.msra.mxu1 %v820_v9 }
  0x2c   : > { %454 = vmatprep.subr.bf16.mxu0 %v871_v0  ;;  %777 = vmatprep.subr.bf16.mxu1 %v871_v0 }
  0x2f   : > { %455 = vmatpush1.bf16.msra.mxu0 %v821_v10  ;;  %786 = vmatpush1.bf16.msra.mxu1 %v821_v10 }
  0x30   : > { %456 = vmatprep.subr.bf16.mxu0 %v871_v0  ;;  %778 = vmatprep.subr.bf16.mxu1 %v871_v0 }
  0x33   : > { %457 = vmatpush1.bf16.msra.mxu0 %v822_v11  ;;  %787 = vmatpush1.bf16.msra.mxu1 %v822_v11 }
  0x36   : > { %473 = vmatmul.mubr.bf16.vlgmr.msra.gmra.mrb[0].mxu0 %v823_v12  ;;  %505 = vmatmul.mubr.bf16.vlgmr.msra.gmra.mrb[0].mxu1 %v826_v13 }
  0x37   : > { %751 = vmatprep.mubr.msk.bf16.mxu0 %vm415_vm0, %v829_v14  ;;  %755 = vmatprep.mubr.msk.bf16.mxu1 %vm415_vm0, %v832_v15 }
  0x3e   : > { %481 = vmatmul.mubr.bf16.gmra.mrb[4].mxu0 %v831_v16  ;;  %513 = vmatmul.mubr.bf16.gmra.mrb[4].mxu1 %v834_v17 }
  0x3f   : > { %752 = vmatprep.mubr.msk.bf16.mxu0 %vm415_vm0, %v835_v18  ;;  %756 = vmatprep.mubr.msk.bf16.mxu1 %vm415_vm0, %v838_v19 }
  0x46   : > { %489 = vmatmul.mubr.bf16.gmra.mrb[8].mxu0 %v837_v20  ;;  %521 = vmatmul.mubr.bf16.gmra.mrb[8].mxu1 %v840_v21 }
  0x47   : > { %753 = vmatprep.mubr.msk.bf16.mxu0 %vm415_vm0, %v841_v22  ;;  %757 = vmatprep.mubr.msk.bf16.mxu1 %vm415_vm0, %v844_v23 }
  0x4e   : > { %497 = vmatmul.mubr.bf16.gmra.mrb[12].mxu0 %v843_v24  ;;  %529 = vmatmul.mubr.bf16.gmra.mrb[12].mxu1 %v846_v25 }
 0x109   : > { %v474_v26 = vpop.f32.mrb[0].mxu0  ;;  %v506_v27 = vpop.f32.mrb[0].mxu1 }
 0x10a   : > { %v476_v28 = vpop.f32.mrb[1].mxu0  ;;  %v508_v29 = vpop.f32.mrb[1].mxu1  ;;  %v475_v43 = vadd.f32 %v961_v38, %v474_v26  ;;  %v507_v44 = vadd.f32 %v961_v38, %v506_v27 }
 0x10b   : > { %v477_v30 = vpop.f32.mrb[2].mxu0  ;;  %v509_v31 = vpop.f32.mrb[2].mxu1 }
 0x10c   : > { %v479_v32 = vpop.f32.mrb[3].mxu0  ;;  %v511_v33 = vpop.f32.mrb[3].mxu1  ;;  %v478_v45 = vadd.f32 %v961_v38, %v477_v30  ;;  %v510_v46 = vadd.f32 %v961_v38, %v509_v31  ;;  %v537_v49 = vmax.f32 %v475_v43, 0.0  ;;  %v545_v54 = vmax.f32 %v507_v44, 0.0 }
 0x10e   : > { %v538_v55 = vmax.f32 %v478_v45, 0.0  ;;  %v546_v0 = vmax.f32 %v510_v46, 0.0  ;;  %v554_v2 = vsel %vm553_vm1, %v537_v49, -inf  ;;  %v557_v9 = vsel %vm553_vm1, %v545_v54, -inf }
 0x110   : > { %v561_v10 = vsel %vm553_vm1, %v538_v55, -inf  ;;  %v564_v13 = vsel %vm553_vm1, %v546_v0, -inf }
 0x111   : > { %v482_v34 = vpop.f32.mrb[4].mxu0  ;;  %v514_v35 = vpop.f32.mrb[4].mxu1 }
 0x112   : > { %v484_v36 = vpop.f32.mrb[5].mxu0  ;;  %v516_v37 = vpop.f32.mrb[5].mxu1  ;;  %v483_v1 = vadd.f32 %v961_v38, %v482_v34  ;;  %v515_v3 = vadd.f32 %v961_v38, %v514_v35 }
 0x113   : > { %v485_v39 = vpop.f32.mrb[6].mxu0  ;;  %v517_v40 = vpop.f32.mrb[6].mxu1 }
 0x114   : > { %v487_v41 = vpop.f32.mrb[7].mxu0  ;;  %v519_v42 = vpop.f32.mrb[7].mxu1  ;;  %v486_v6 = vadd.f32 %v961_v38, %v485_v39  ;;  %v539_v14 = vmax.f32 %v483_v1, 0.0  ;;  %v547_v19 = vmax.f32 %v515_v3, 0.0  ;;  %v518_v20 = vadd.f32 %v961_v38, %v517_v40 }
 0x116   : > { %v540_v25 = vmax.f32 %v486_v6, 0.0  ;;  %v568_v40 = vsel %vm553_vm1, %v539_v14, -inf  ;;  %v548_v41 = vmax.f32 %v518_v20, 0.0  ;;  %v571_v44 = vsel %vm553_vm1, %v547_v19, -inf }
 0x119   : > { %v490_v47 = vpop.f32.mrb[8].mxu0  ;;  %v522_v48 = vpop.f32.mrb[8].mxu1 }
 0x11a   : > { %v491_v50 = vadd.f32 %v961_v38, %v490_v47  ;;  %v492_v51 = vpop.f32.mrb[9].mxu0  ;;  %v523_v52 = vadd.f32 %v961_v38, %v522_v48  ;;  %v524_v53 = vpop.f32.mrb[9].mxu1 }
 0x11b   : > { %v493_v56 = vpop.f32.mrb[10].mxu0  ;;  %v525_v57 = vpop.f32.mrb[10].mxu1 }
 0x11c   : > { %v541_v58 = vmax.f32 %v491_v50, 0.0  ;;  %v549_v59 = vmax.f32 %v523_v52, 0.0  ;;  %v494_v60 = vadd.f32 %v961_v38, %v493_v56  ;;  %v495_v61 = vpop.f32.mrb[11].mxu0  ;;  %v526_v62 = vadd.f32 %v961_v38, %v525_v57  ;;  %v527_v63 = vpop.f32.mrb[11].mxu1 }
 0x11d   : > { %v578_v52 = vsel %vm553_vm1, %v548_v41, -inf }
 0x11e   : > { %v555_v4 = vsel %vm553_vm1, %v541_v58, -inf  ;;  %v542_v5 = vmax.f32 %v494_v60, 0.0  ;;  %v550_v8 = vmax.f32 %v526_v62, 0.0  ;;  %v559_v11 = vsel %vm553_vm1, %v549_v59, -inf }
 0x11f   : > { %v556_v7 = vmax.f32 %v554_v2, %v555_v4 }
 0x120   : > { %v562_v12 = vsel %vm553_vm1, %v542_v5, -inf  ;;  %v566_v28 = vsel %vm553_vm1, %v550_v8, -inf }
 0x121   : > { %v558_v15 = vmax.f32 %v556_v7, %v557_v9  ;;  %v563_v16 = vmax.f32 %v561_v10, %v562_v12  ;;  %v498_v17 = vpop.f32.mrb[12].mxu0  ;;  %v530_v18 = vpop.f32.mrb[12].mxu1 }
 0x122   : > { %v499_v21 = vadd.f32 %v961_v38, %v498_v17  ;;  %v500_v22 = vpop.f32.mrb[13].mxu0  ;;  %v531_v23 = vadd.f32 %v961_v38, %v530_v18  ;;  %v532_v24 = vpop.f32.mrb[13].mxu1 }
 0x123   : > { %v560_v26 = vmax.f32 %v558_v15, %v559_v11  ;;  %v565_v27 = vmax.f32 %v563_v16, %v564_v13  ;;  %v501_v29 = vpop.f32.mrb[14].mxu0  ;;  %v533_v30 = vpop.f32.mrb[14].mxu1 }
 0x124   : > { %v543_v31 = vmax.f32 %v499_v21, 0.0  ;;  %v551_v32 = vmax.f32 %v531_v23, 0.0  ;;  %v502_v33 = vadd.f32 %v961_v38, %v501_v29  ;;  %v503_v34 = vpop.f32.mrb[15].mxu0  ;;  %v534_v35 = vadd.f32 %v961_v38, %v533_v30  ;;  %v535_v36 = vpop.f32.mrb[15].mxu1 }
 0x125   : > { %v766_v37 = vpack.c.bf16 %v560_v26, %v560_v26  ;;  %v567_v39 = vmax.f32 %v565_v27, %v566_v28  ;;  %v575_v38 = vsel %vm553_vm1, %v540_v25, -inf }
 0x126   : > { %v569_v42 = vsel %vm553_vm1, %v543_v31, -inf  ;;  %v544_v43 = vmax.f32 %v502_v33, 0.0  ;;  %v573_v47 = vsel %vm553_vm1, %v551_v32, -inf  ;;  %v552_v49 = vmax.f32 %v534_v35, 0.0 }
 0x127   : > { %599 = vst.msk [vmem:[%s989_s30] sm:$0xf] %vm598_vm2, %v766_v37  ;;  %v767_v45 = vpack.c.bf16 %v567_v39, %v567_v39  ;;  %v570_v46 = vmax.f32 %v568_v40, %v569_v42 }
 0x128   : > { %v576_v48 = vsel %vm553_vm1, %v544_v43, -inf  ;;  %v580_v55 = vsel %vm553_vm1, %v552_v49, -inf }
 0x129   : > { %600 = vst.msk [vmem:[%s989_s30 + $0x4] sm:$0xf] %vm598_vm2, %v767_v45  ;;  %v572_v50 = vmax.f32 %v570_v46, %v571_v44  ;;  %v577_v51 = vmax.f32 %v575_v38, %v576_v48 }
 0x12b   : > { %v574_v53 = vmax.f32 %v572_v50, %v573_v47  ;;  %v579_v54 = vmax.f32 %v577_v51, %v578_v52 }
 0x12d   : > { %v768_v56 = vpack.c.bf16 %v574_v53, %v574_v53  ;;  %v581_v57 = vmax.f32 %v579_v54, %v580_v55 }
 0x12f   : > { %601 = vst.msk [vmem:[%s989_s30 + $0x8] sm:$0xf] %vm598_vm2, %v768_v56  ;;  %v769_v58 = vpack.c.bf16 %v581_v57, %v581_v57 }
 0x131   : > { %602 = vst.msk [vmem:[%s989_s30 + $0xc] sm:$0xf] %vm598_vm2, %v769_v58 }
 0x132 PF: > { %s13_s14 = sadd.s32 1, %s869_s14   ;;  %s1022_s12 = smov %s865_s13 }
 0x133   : > { %p10_p5 = scmp.ge.s32.totalorder %s13_s14, 5   ;;  %s1023_s13 = smov %s1025_s15 }
 0x135   :  { %12 = sbr.rel (!%p10_p5) target bundleno = 2 (0x2), region = 68 }

// kernel: multibranch_forward.6
= control target key start
LH: loop header
LB: loop body
LE: loop exit
PB: predicated region body
PF: predicated region fallthrough
CT: control target
= control target key end

     0   :  { %s4730_s12 = smov 0   ;;  %s4732_s13 = smov 0   ;;  %s6563_s0 = inlined_call_operand.vmem [shape: bf16[2,4,512,9], index: 0, kind: input, shape index: {}]   ;;  %s6564_s1 = inlined_call_operand.vmem [shape: bf16[2,9,16], index: 1, kind: input, shape index: {}]   ;;  %s6565_s2 = inlined_call_operand.vmem [shape: f32[2,1,16], index: 2, kind: input, shape index: {}]   ;;  %s6566_s3 = inlined_call_operand.vmem [shape: bf16[2,512,16], index: 3, kind: output, shape index: {}]  }
   0x1   :  { %s4734_s14 = smov 0  }
   0x2 LB: > { %s25_s15 = sadd.s32 1, %s4703_s13  ;;  %p3742_p0 = scmp.ge.s32.totalorder %s4707_s14, 1  ;;  %s4707_s14 = sphi %s4734_s14, %s13_s14   ;;  %s4703_s13 = sphi %s4732_s13, %s6742_s13   ;;  %s4699_s12 = sphi %s4730_s12, %s6741_s12  }
   0x3   : > { %p27_p1 = scmp.ge.s32.totalorder %s25_s15, 2  ;;  %p176_p2 = scmp.lt.s32.totalorder %s4707_s14, 3 }
   0x5   : > { %s6744_s15 = smov (%p27_p1, %s25_s15), 0  ;;  %p177_p3 = pnand %p3742_p0, %p176_p2 }
   0x7   : > { %180 = sbr.rel (%p177_p3) target bundleno = 535 (0x217), region = 32 }
   0xe   : > { %p217_p4 = scmp.lt.s32.totalorder %s4699_s12, 1  ;;  %vm1540_vm0 = vcmask 1043456   ;;  %vm1541_vm1 = vcmask 1044480   ;;  %v4709_v0 = vmov 65535   ;;  %vm1155_vm2 = vcmask 72704  }
   0xf   : > { %v1542_v1 = vsel %vm1540_vm0, 4294967295, %v4709_v0  ;;  %vm2860_vm3 = vcmask 130048   ;;  %vm3565_vm4 = vcmask 125952  }
  0x10   : > { %s6746_s12 = smov (!%p217_p4, %s4699_s12), 1  ;;  %v1543_v2 = vsel %vm1541_vm1, %v1542_v1, 0 }
  0x11   : > { %s4074_s16 = sshll.u32 %s6746_s12, 3  ;;  %s4073_s17 = sshll.u32 %s6746_s12, 10 }
  0x12   : > { %s230_s20 = scalar_lea.vmem %s6564_s1, %s4074_s16  ;;  %s4758_s23 = scalar_lea.vmem %s6563_s0, %s4073_s17 }
  0x13   : > { %v4554_v3 = vld [vmem:[%s230_s20] sm:$0x1f]   ;;  %v4556_v6 = vld [vmem:[%s4758_s23 + $0x8] sm:$0xff]   ;;  %v4559_v9 = vld [vmem:[%s4758_s23 + $0x10] sm:$0xff]   ;;  %s5066_s26 = scalar_lea.vmem %s6565_s2, %s6746_s12  ;;  %s4075_s27 = sshll.u32 %s6746_s12, 8 }
  0x14   : > { %v4555_v4 = vld [vmem:[%s4758_s23] sm:$0xff]   ;;  %v1545_v5 = vand.u32 %v4554_v3, %v1543_v2  ;;  %v4558_v8 = vld [vmem:[%s4758_s23 + $0x208] sm:$0xff]   ;;  %v4561_v10 = vld [vmem:[%s4758_s23 + $0x210] sm:$0xff]   ;;  %s5813_s30 = scalar_lea.vmem %s6566_s3, %s4075_s27 }
  0x15   : > { %4271 = vmatprep.mubr.msk.bf16.mxu0 %vm1155_vm2, %v4555_v4  ;;  %v4557_v7 = vld [vmem:[%s4758_s23 + $0x200] sm:$0xff]   ;;  %v4560_v11 = vld [vmem:[%s4758_s23 + $0x18] sm:$0xff]   ;;  %v4564_v15 = vld [vmem:[%s4758_s23 + $0x28] sm:$0xff]  }
  0x16   : > { %4269 = vmatprep.subr.bf16.mxu0 %v1545_v5  ;;  %4527 = vmatprep.subr.bf16.mxu1 %v1545_v5  ;;  %v4562_v12 = vld [vmem:[%s4758_s23 + $0x218] sm:$0xff]   ;;  %v4563_v13 = vld [vmem:[%s4758_s23 + $0x20] sm:$0xff]   ;;  %v4566_v16 = vld [vmem:[%s4758_s23 + $0x228] sm:$0xff]  }
  0x17   : > { %4270 = vmatpush3.bf16.msra.mxu0 %v1545_v5  ;;  %4528 = vmatpush3.bf16.msra.mxu1 %v1545_v5  ;;  %v4565_v14 = vld [vmem:[%s4758_s23 + $0x220] sm:$0xff]   ;;  %v4567_v17 = vld [vmem:[%s4758_s23 + $0x30] sm:$0xff]   ;;  %v4568_v19 = vld [vmem:[%s4758_s23 + $0x38] sm:$0xff]  }
  0x18   : > { %4399 = vmatprep.mubr.msk.bf16.mxu1 %vm1155_vm2, %v4557_v7  ;;  %v4569_v18 = vld [vmem:[%s4758_s23 + $0x230] sm:$0xff]   ;;  %v4570_v20 = vld [vmem:[%s4758_s23 + $0x238] sm:$0xff]   ;;  %v4571_v21 = vld [vmem:[%s4758_s23 + $0x40] sm:$0xff]  }
  0x19   : > { %v4573_v22 = vld [vmem:[%s4758_s23 + $0x240] sm:$0xff]   ;;  %v4572_v23 = vld [vmem:[%s4758_s23 + $0x48] sm:$0xff]   ;;  %v4575_v25 = vld [vmem:[%s4758_s23 + $0x50] sm:$0xff]  }
  0x1a   : > { %4272 = vmatmul.mubr.msk.bf16.vlgmr.msra.gmra.mrb[0].mxu0 %vm1155_vm2, %v4556_v6  ;;  %4400 = vmatmul.mubr.msk.bf16.vlgmr.msra.gmra.mrb[0].mxu1 %vm1155_vm2, %v4558_v8  ;;  %v4574_v24 = vld [vmem:[%s4758_s23 + $0x248] sm:$0xff]   ;;  %v4577_v26 = vld [vmem:[%s4758_s23 + $0x250] sm:$0xff]   ;;  %v4576_v27 = vld [vmem:[%s4758_s23 + $0x58] sm:$0xff]  }
  0x1b   : > { %4275 = vmatprep.mubr.msk.bf16.mxu0 %vm1155_vm2, %v4559_v9  ;;  %4403 = vmatprep.mubr.msk.bf16.mxu1 %vm1155_vm2, %v4561_v10  ;;  %v4578_v28 = vld [vmem:[%s4758_s23 + $0x258] sm:$0xff]   ;;  %v4579_v29 = vld [vmem:[%s4758_s23 + $0x60] sm:$0xff]   ;;  %v4580_v31 = vld [vmem:[%s4758_s23 + $0x68] sm:$0xff]  }
  0x1c   : > { %v4581_v30 = vld [vmem:[%s4758_s23 + $0x260] sm:$0xff]   ;;  %v4582_v32 = vld [vmem:[%s4758_s23 + $0x268] sm:$0xff]   ;;  %v4583_v33 = vld [vmem:[%s4758_s23 + $0x70] sm:$0xff]  }
  0x1d   : > { %v4585_v34 = vld [vmem:[%s4758_s23 + $0x270] sm:$0xff]   ;;  %v4584_v35 = vld [vmem:[%s4758_s23 + $0x78] sm:$0xff]   ;;  %v4587_v37 = vld [vmem:[%s4758_s23 + $0x80] sm:$0xff]  }
  0x1e   : > { %v4586_v36 = vld [vmem:[%s4758_s23 + $0x278] sm:$0xff]   ;;  %v4589_v38 = vld [vmem:[%s4758_s23 + $0x280] sm:$0xff]   ;;  %v4588_v39 = vld [vmem:[%s4758_s23 + $0x88] sm:$0xff]  }
  0x1f   : > { %v4590_v40 = vld [vmem:[%s4758_s23 + $0x288] sm:$0xff]   ;;  %v4591_v41 = vld [vmem:[%s4758_s23 + $0x90] sm:$0xff]   ;;  %v4592_v43 = vld [vmem:[%s4758_s23 + $0x98] sm:$0xff]  }
  0x20   : > { %v4593_v42 = vld [vmem:[%s4758_s23 + $0x290] sm:$0xff]   ;;  %v4594_v44 = vld [vmem:[%s4758_s23 + $0x298] sm:$0xff]   ;;  %v4595_v45 = vld [vmem:[%s4758_s23 + $0xa0] sm:$0xff]  }
  0x21   : > { %v4597_v46 = vld [vmem:[%s4758_s23 + $0x2a0] sm:$0xff]   ;;  %v4596_v47 = vld [vmem:[%s4758_s23 + $0xa8] sm:$0xff]   ;;  %v4599_v49 = vld [vmem:[%s4758_s23 + $0xb0] sm:$0xff]  }
  0x22   : > { %4276 = vmatmul.mubr.msk.bf16.gmra.mrb[4].mxu0 %vm1155_vm2, %v4560_v11  ;;  %4404 = vmatmul.mubr.msk.bf16.gmra.mrb[4].mxu1 %vm1155_vm2, %v4562_v12  ;;  %v4598_v48 = vld [vmem:[%s4758_s23 + $0x2a8] sm:$0xff]   ;;  %v4601_v50 = vld [vmem:[%s4758_s23 + $0x2b0] sm:$0xff]   ;;  %v4600_v51 = vld [vmem:[%s4758_s23 + $0xb8] sm:$0xff]  }
  0x23   : > { %4279 = vmatprep.mubr.msk.bf16.mxu0 %vm1155_vm2, %v4563_v13  ;;  %4407 = vmatprep.mubr.msk.bf16.mxu1 %vm1155_vm2, %v4565_v14  ;;  %v4602_v52 = vld [vmem:[%s4758_s23 + $0x2b8] sm:$0xff]   ;;  %v4603_v53 = vld [vmem:[%s4758_s23 + $0xc0] sm:$0xff]   ;;  %v4604_v55 = vld [vmem:[%s4758_s23 + $0xc8] sm:$0xff]  }
  0x24   : > { %v4605_v54 = vld [vmem:[%s4758_s23 + $0x2c0] sm:$0xff]   ;;  %v4606_v56 = vld [vmem:[%s4758_s23 + $0x2c8] sm:$0xff]   ;;  %v4607_v57 = vld [vmem:[%s4758_s23 + $0xd0] sm:$0xff]  }
  0x25   : > { %v4609_v58 = vld [vmem:[%s4758_s23 + $0x2d0] sm:$0xff]   ;;  %v4608_v59 = vld [vmem:[%s4758_s23 + $0xd8] sm:$0xff]   ;;  %v4611_v61 = vld [vmem:[%s4758_s23 + $0xe0] sm:$0xff]  }
  0x26   : > { %v4610_v60 = vld [vmem:[%s4758_s23 + $0x2d8] sm:$0xff]   ;;  %v4613_v62 = vld [vmem:[%s4758_s23 + $0x2e0] sm:$0xff]   ;;  %v4612_v63 = vld [vmem:[%s4758_s23 + $0xe8] sm:$0xff]  }
  0x27   : > { %v4614_v0 = vld [vmem:[%s4758_s23 + $0x2e8] sm:$0xff]   ;;  %v4615_v1 = vld [vmem:[%s4758_s23 + $0xf0] sm:$0xff]   ;;  %v4616_v3 = vld [vmem:[%s4758_s23 + $0xf8] sm:$0xff]  }
  0x28   : > { %v4617_v2 = vld [vmem:[%s4758_s23 + $0x2f0] sm:$0xff]   ;;  %v4618_v4 = vld [vmem:[%s4758_s23 + $0x2f8] sm:$0xff]   ;;  %v4619_v5 = vld [vmem:[%s4758_s23 + $0x100] sm:$0xff]  }
  0x29   : > { %v4621_v6 = vld [vmem:[%s4758_s23 + $0x300] sm:$0xff]   ;;  %v4620_v7 = vld [vmem:[%s4758_s23 + $0x108] sm:$0xff]   ;;  %v4623_v9 = vld [vmem:[%s4758_s23 + $0x110] sm:$0xff]  }
  0x2a   : > { %4280 = vmatmul.mubr.msk.bf16.gmra.mrb[8].mxu0 %vm1155_vm2, %v4564_v15  ;;  %4408 = vmatmul.mubr.msk.bf16.gmra.mrb[8].mxu1 %vm1155_vm2, %v4566_v16  ;;  %v4622_v8 = vld [vmem:[%s4758_s23 + $0x308] sm:$0xff]   ;;  %v4625_v10 = vld [vmem:[%s4758_s23 + $0x310] sm:$0xff]   ;;  %v4624_v11 = vld [vmem:[%s4758_s23 + $0x118] sm:$0xff]  }
  0x2b   : > { %4283 = vmatprep.mubr.msk.bf16.mxu0 %vm1155_vm2, %v4567_v17  ;;  %4411 = vmatprep.mubr.msk.bf16.mxu1 %vm1155_vm2, %v4569_v18  ;;  %v4626_v12 = vld [vmem:[%s4758_s23 + $0x318] sm:$0xff]   ;;  %v4627_v13 = vld [vmem:[%s4758_s23 + $0x120] sm:$0xff]   ;;  %v4628_v15 = vld [vmem:[%s4758_s23 + $0x128] sm:$0xff]  }
  0x2c   : > { %v4629_v14 = vld [vmem:[%s4758_s23 + $0x320] sm:$0xff]   ;;  %v4630_v16 = vld [vmem:[%s4758_s23 + $0x328] sm:$0xff]   ;;  %v4631_v17 = vld [vmem:[%s4758_s23 + $0x130] sm:$0xff]  }
  0x2d   : > { %v4633_v18 = vld [vmem:[%s4758_s23 + $0x330] sm:$0xff]  }
  0x32   : > { %4284 = vmatmul.mubr.msk.bf16.gmra.mrb[12].mxu0 %vm1155_vm2, %v4568_v19  ;;  %4412 = vmatmul.mubr.msk.bf16.gmra.mrb[12].mxu1 %vm1155_vm2, %v4570_v20  ;;  %v4632_v19 = vld [vmem:[%s4758_s23 + $0x138] sm:$0xff]  }
  0x33   : > { %4287 = vmatprep.mubr.msk.bf16.mxu0 %vm1155_vm2, %v4571_v21  ;;  %4415 = vmatprep.mubr.msk.bf16.mxu1 %vm1155_vm2, %v4573_v22  ;;  %v4634_v20 = vld [vmem:[%s4758_s23 + $0x338] sm:$0xff]   ;;  %v4635_v21 = vld [vmem:[%s4758_s23 + $0x140] sm:$0xff]  }
  0x34   : > { %v4637_v22 = vld [vmem:[%s4758_s23 + $0x340] sm:$0xff]  }
  0x3a   : > { %4288 = vmatmul.mubr.msk.bf16.gmra.mrb[16].mxu0 %vm1155_vm2, %v4572_v23  ;;  %4416 = vmatmul.mubr.msk.bf16.gmra.mrb[16].mxu1 %vm1155_vm2, %v4574_v24  ;;  %v4636_v23 = vld [vmem:[%s4758_s23 + $0x148] sm:$0xff]  }
  0x3b   : > { %4291 = vmatprep.mubr.msk.bf16.mxu0 %vm1155_vm2, %v4575_v25  ;;  %4419 = vmatprep.mubr.msk.bf16.mxu1 %vm1155_vm2, %v4577_v26  ;;  %v4638_v24 = vld [vmem:[%s4758_s23 + $0x348] sm:$0xff]   ;;  %v4639_v25 = vld [vmem:[%s4758_s23 + $0x150] sm:$0xff]  }
  0x3c   : > { %v4641_v26 = vld [vmem:[%s4758_s23 + $0x350] sm:$0xff]  }
  0x42   : > { %4292 = vmatmul.mubr.msk.bf16.gmra.mrb[20].mxu0 %vm1155_vm2, %v4576_v27  ;;  %4420 = vmatmul.mubr.msk.bf16.gmra.mrb[20].mxu1 %vm1155_vm2, %v4578_v28  ;;  %v4640_v27 = vld [vmem:[%s4758_s23 + $0x158] sm:$0xff]  }
  0x43   : > { %4295 = vmatprep.mubr.msk.bf16.mxu0 %vm1155_vm2, %v4579_v29  ;;  %4423 = vmatprep.mubr.msk.bf16.mxu1 %vm1155_vm2, %v4581_v30  ;;  %v4642_v28 = vld [vmem:[%s4758_s23 + $0x358] sm:$0xff]   ;;  %v4643_v29 = vld [vmem:[%s4758_s23 + $0x160] sm:$0xff]  }
  0x44   : > { %v4645_v30 = vld [vmem:[%s4758_s23 + $0x360] sm:$0xff]  }
  0x4a   : > { %4296 = vmatmul.mubr.msk.bf16.gmra.mrb[24].mxu0 %vm1155_vm2, %v4580_v31  ;;  %4424 = vmatmul.mubr.msk.bf16.gmra.mrb[24].mxu1 %vm1155_vm2, %v4582_v32  ;;  %v4644_v31 = vld [vmem:[%s4758_s23 + $0x168] sm:$0xff]  }
  0x4b   : > { %4299 = vmatprep.mubr.msk.bf16.mxu0 %vm1155_vm2, %v4583_v33  ;;  %4427 = vmatprep.mubr.msk.bf16.mxu1 %vm1155_vm2, %v4585_v34  ;;  %v4646_v32 = vld [vmem:[%s4758_s23 + $0x368] sm:$0xff]   ;;  %v4647_v33 = vld [vmem:[%s4758_s23 + $0x170] sm:$0xff]  }
  0x4c   : > { %v4649_v34 = vld [vmem:[%s4758_s23 + $0x370] sm:$0xff]  }
  0x52   : > { %4300 = vmatmul.mubr.msk.bf16.gmra.mrb[28].mxu0 %vm1155_vm2, %v4584_v35  ;;  %4428 = vmatmul.mubr.msk.bf16.gmra.mrb[28].mxu1 %vm1155_vm2, %v4586_v36  ;;  %v4648_v35 = vld [vmem:[%s4758_s23 + $0x178] sm:$0xff]  }
  0x53   : > { %4303 = vmatprep.mubr.msk.bf16.mxu0 %vm1155_vm2, %v4587_v37  ;;  %4431 = vmatprep.mubr.msk.bf16.mxu1 %vm1155_vm2, %v4589_v38  ;;  %v4650_v36 = vld [vmem:[%s4758_s23 + $0x378] sm:$0xff]   ;;  %v4651_v37 = vld [vmem:[%s4758_s23 + $0x180] sm:$0xff]  }
  0x54   : > { %v4653_v38 = vld [vmem:[%s4758_s23 + $0x380] sm:$0xff]  }
  0x5a   : > { %4304 = vmatmul.mubr.msk.bf16.gmra.mrb[32].mxu0 %vm1155_vm2, %v4588_v39  ;;  %4432 = vmatmul.mubr.msk.bf16.gmra.mrb[32].mxu1 %vm1155_vm2, %v4590_v40  ;;  %v4652_v39 = vld [vmem:[%s4758_s23 + $0x188] sm:$0xff]  }
  0x5b   : > { %4307 = vmatprep.mubr.msk.bf16.mxu0 %vm1155_vm2, %v4591_v41  ;;  %4435 = vmatprep.mubr.msk.bf16.mxu1 %vm1155_vm2, %v4593_v42  ;;  %v4654_v40 = vld [vmem:[%s4758_s23 + $0x388] sm:$0xff]   ;;  %v4655_v41 = vld [vmem:[%s4758_s23 + $0x190] sm:$0xff]  }
  0x5c   : > { %v4657_v42 = vld [vmem:[%s4758_s23 + $0x390] sm:$0xff]  }
  0x62   : > { %4308 = vmatmul.mubr.msk.bf16.gmra.mrb[36].mxu0 %vm1155_vm2, %v4592_v43  ;;  %4436 = vmatmul.mubr.msk.bf16.gmra.mrb[36].mxu1 %vm1155_vm2, %v4594_v44  ;;  %v4656_v43 = vld [vmem:[%s4758_s23 + $0x198] sm:$0xff]  }
  0x63   : > { %4311 = vmatprep.mubr.msk.bf16.mxu0 %vm1155_vm2, %v4595_v45  ;;  %4439 = vmatprep.mubr.msk.bf16.mxu1 %vm1155_vm2, %v4597_v46  ;;  %v4658_v44 = vld [vmem:[%s4758_s23 + $0x398] sm:$0xff]   ;;  %v4659_v45 = vld [vmem:[%s4758_s23 + $0x1a0] sm:$0xff]  }
  0x64   : > { %v4661_v46 = vld [vmem:[%s4758_s23 + $0x3a0] sm:$0xff]  }
  0x6a   : > { %4312 = vmatmul.mubr.msk.bf16.gmra.mrb[40].mxu0 %vm1155_vm2, %v4596_v47  ;;  %4440 = vmatmul.mubr.msk.bf16.gmra.mrb[40].mxu1 %vm1155_vm2, %v4598_v48  ;;  %v4660_v47 = vld [vmem:[%s4758_s23 + $0x1a8] sm:$0xff]  }
  0x6b   : > { %4315 = vmatprep.mubr.msk.bf16.mxu0 %vm1155_vm2, %v4599_v49  ;;  %4443 = vmatprep.mubr.msk.bf16.mxu1 %vm1155_vm2, %v4601_v50  ;;  %v4662_v48 = vld [vmem:[%s4758_s23 + $0x3a8] sm:$0xff]   ;;  %v4663_v49 = vld [vmem:[%s4758_s23 + $0x1b0] sm:$0xff]  }
  0x6c   : > { %v4665_v50 = vld [vmem:[%s4758_s23 + $0x3b0] sm:$0xff]  }
  0x72   : > { %4316 = vmatmul.mubr.msk.bf16.gmra.mrb[44].mxu0 %vm1155_vm2, %v4600_v51  ;;  %4444 = vmatmul.mubr.msk.bf16.gmra.mrb[44].mxu1 %vm1155_vm2, %v4602_v52 }
  0x73   : > { %4319 = vmatprep.mubr.msk.bf16.mxu0 %vm1155_vm2, %v4603_v53  ;;  %4447 = vmatprep.mubr.msk.bf16.mxu1 %vm1155_vm2, %v4605_v54 }
  0x7a   : > { %4320 = vmatmul.mubr.msk.bf16.gmra.mrb[48].mxu0 %vm1155_vm2, %v4604_v55  ;;  %4448 = vmatmul.mubr.msk.bf16.gmra.mrb[48].mxu1 %vm1155_vm2, %v4606_v56  ;;  %v4664_v55 = vld [vmem:[%s4758_s23 + $0x1b8] sm:$0xff]  }
  0x7b   : > { %4323 = vmatprep.mubr.msk.bf16.mxu0 %vm1155_vm2, %v4607_v57  ;;  %4451 = vmatprep.mubr.msk.bf16.mxu1 %vm1155_vm2, %v4609_v58  ;;  %v4666_v56 = vld [vmem:[%s4758_s23 + $0x3b8] sm:$0xff]  }
  0x82   : > { %4324 = vmatmul.mubr.msk.bf16.gmra.mrb[52].mxu0 %vm1155_vm2, %v4608_v59  ;;  %4452 = vmatmul.mubr.msk.bf16.gmra.mrb[52].mxu1 %vm1155_vm2, %v4610_v60  ;;  %v4667_v59 = vld [vmem:[%s4758_s23 + $0x1c0] sm:$0xff]  }
  0x83   : > { %4327 = vmatprep.mubr.msk.bf16.mxu0 %vm1155_vm2, %v4611_v61  ;;  %4455 = vmatprep.mubr.msk.bf16.mxu1 %vm1155_vm2, %v4613_v62  ;;  %v4669_v60 = vld [vmem:[%s4758_s23 + $0x3c0] sm:$0xff]  }
  0x8a   : > { %4328 = vmatmul.mubr.msk.bf16.gmra.mrb[56].mxu0 %vm1155_vm2, %v4612_v63  ;;  %4456 = vmatmul.mubr.msk.bf16.gmra.mrb[56].mxu1 %vm1155_vm2, %v4614_v0 }
  0x8b   : > { %4331 = vmatprep.mubr.msk.bf16.mxu0 %vm1155_vm2, %v4615_v1  ;;  %4459 = vmatprep.mubr.msk.bf16.mxu1 %vm1155_vm2, %v4617_v2 }
  0x92   : > { %4332 = vmatmul.mubr.msk.bf16.gmra.mrb[60].mxu0 %vm1155_vm2, %v4616_v3  ;;  %4460 = vmatmul.mubr.msk.bf16.gmra.mrb[60].mxu1 %vm1155_vm2, %v4618_v4  ;;  %v4668_v3 = vld [vmem:[%s4758_s23 + $0x1c8] sm:$0xff]  }
  0x93   : > { %4335 = vmatprep.mubr.msk.bf16.mxu0 %vm1155_vm2, %v4619_v5  ;;  %4463 = vmatprep.mubr.msk.bf16.mxu1 %vm1155_vm2, %v4621_v6  ;;  %v4670_v4 = vld [vmem:[%s4758_s23 + $0x3c8] sm:$0xff]  }
  0x9a   : > { %4336 = vmatmul.mubr.msk.bf16.gmra.mrb[64].mxu0 %vm1155_vm2, %v4620_v7  ;;  %4464 = vmatmul.mubr.msk.bf16.gmra.mrb[64].mxu1 %vm1155_vm2, %v4622_v8  ;;  %v4671_v7 = vld [vmem:[%s4758_s23 + $0x1d0] sm:$0xff]  }
  0x9b   : > { %4339 = vmatprep.mubr.msk.bf16.mxu0 %vm1155_vm2, %v4623_v9  ;;  %4467 = vmatprep.mubr.msk.bf16.mxu1 %vm1155_vm2, %v4625_v10  ;;  %v4673_v8 = vld [vmem:[%s4758_s23 + $0x3d0] sm:$0xff]  }
  0xa2   : > { %4340 = vmatmul.mubr.msk.bf16.gmra.mrb[68].mxu0 %vm1155_vm2, %v4624_v11  ;;  %4468 = vmatmul.mubr.msk.bf16.gmra.mrb[68].mxu1 %vm1155_vm2, %v4626_v12 }
  0xa3   : > { %4343 = vmatprep.mubr.msk.bf16.mxu0 %vm1155_vm2, %v4627_v13  ;;  %4471 = vmatprep.mubr.msk.bf16.mxu1 %vm1155_vm2, %v4629_v14 }
  0xaa   : > { %4344 = vmatmul.mubr.msk.bf16.gmra.mrb[72].mxu0 %vm1155_vm2, %v4628_v15  ;;  %4472 = vmatmul.mubr.msk.bf16.gmra.mrb[72].mxu1 %vm1155_vm2, %v4630_v16  ;;  %v4672_v15 = vld [vmem:[%s4758_s23 + $0x1d8] sm:$0xff]  }
  0xab   : > { %4347 = vmatprep.mubr.msk.bf16.mxu0 %vm1155_vm2, %v4631_v17  ;;  %4475 = vmatprep.mubr.msk.bf16.mxu1 %vm1155_vm2, %v4633_v18  ;;  %v4674_v16 = vld [vmem:[%s4758_s23 + $0x3d8] sm:$0xff]  }
  0xb2   : > { %4348 = vmatmul.mubr.msk.bf16.gmra.mrb[76].mxu0 %vm1155_vm2, %v4632_v19  ;;  %4476 = vmatmul.mubr.msk.bf16.gmra.mrb[76].mxu1 %vm1155_vm2, %v4634_v20  ;;  %v4675_v19 = vld [vmem:[%s4758_s23 + $0x1e0] sm:$0xff]  }
  0xb3   : > { %4351 = vmatprep.mubr.msk.bf16.mxu0 %vm1155_vm2, %v4635_v21  ;;  %4479 = vmatprep.mubr.msk.bf16.mxu1 %vm1155_vm2, %v4637_v22  ;;  %v4677_v20 = vld [vmem:[%s4758_s23 + $0x3e0] sm:$0xff]  }
  0xba   : > { %4352 = vmatmul.mubr.msk.bf16.gmra.mrb[80].mxu0 %vm1155_vm2, %v4636_v23  ;;  %4480 = vmatmul.mubr.msk.bf16.gmra.mrb[80].mxu1 %vm1155_vm2, %v4638_v24 }
  0xbb   : > { %4355 = vmatprep.mubr.msk.bf16.mxu0 %vm1155_vm2, %v4639_v25  ;;  %4483 = vmatprep.mubr.msk.bf16.mxu1 %vm1155_vm2, %v4641_v26 }
  0xc2   : > { %4356 = vmatmul.mubr.msk.bf16.gmra.mrb[84].mxu0 %vm1155_vm2, %v4640_v27  ;;  %4484 = vmatmul.mubr.msk.bf16.gmra.mrb[84].mxu1 %vm1155_vm2, %v4642_v28  ;;  %v4676_v27 = vld [vmem:[%s4758_s23 + $0x1e8] sm:$0xff]  }
  0xc3   : > { %4359 = vmatprep.mubr.msk.bf16.mxu0 %vm1155_vm2, %v4643_v29  ;;  %4487 = vmatprep.mubr.msk.bf16.mxu1 %vm1155_vm2, %v4645_v30  ;;  %v4678_v28 = vld [vmem:[%s4758_s23 + $0x3e8] sm:$0xff]  }
  0xca   : > { %4360 = vmatmul.mubr.msk.bf16.gmra.mrb[88].mxu0 %vm1155_vm2, %v4644_v31  ;;  %4488 = vmatmul.mubr.msk.bf16.gmra.mrb[88].mxu1 %vm1155_vm2, %v4646_v32  ;;  %v4679_v31 = vld [vmem:[%s4758_s23 + $0x1f0] sm:$0xff]  }
  0xcb   : > { %4363 = vmatprep.mubr.msk.bf16.mxu0 %vm1155_vm2, %v4647_v33  ;;  %4491 = vmatprep.mubr.msk.bf16.mxu1 %vm1155_vm2, %v4649_v34  ;;  %v4681_v32 = vld [vmem:[%s4758_s23 + $0x3f0] sm:$0xff]  }
  0xd2   : > { %4364 = vmatmul.mubr.msk.bf16.gmra.mrb[92].mxu0 %vm1155_vm2, %v4648_v35  ;;  %4492 = vmatmul.mubr.msk.bf16.gmra.mrb[92].mxu1 %vm1155_vm2, %v4650_v36  ;;  %v5079_v35 = vld [vmem:[%s5066_s26] ss:$0 sm:$0xff] }
  0xd3   : > { %4367 = vmatprep.mubr.msk.bf16.mxu0 %vm1155_vm2, %v4651_v37  ;;  %4495 = vmatprep.mubr.msk.bf16.mxu1 %vm1155_vm2, %v4653_v38 }
  0xda   : > { %4368 = vmatmul.mubr.msk.bf16.gmra.mrb[96].mxu0 %vm1155_vm2, %v4652_v39  ;;  %4496 = vmatmul.mubr.msk.bf16.gmra.mrb[96].mxu1 %vm1155_vm2, %v4654_v40 }
  0xdb   : > { %4371 = vmatprep.mubr.msk.bf16.mxu0 %vm1155_vm2, %v4655_v41  ;;  %4499 = vmatprep.mubr.msk.bf16.mxu1 %vm1155_vm2, %v4657_v42 }
  0xe2   : > { %4372 = vmatmul.mubr.msk.bf16.gmra.mrb[100].mxu0 %vm1155_vm2, %v4656_v43  ;;  %4500 = vmatmul.mubr.msk.bf16.gmra.mrb[100].mxu1 %vm1155_vm2, %v4658_v44  ;;  %v4680_v43 = vld [vmem:[%s4758_s23 + $0x1f8] sm:$0xff]  }
  0xe3   : > { %4375 = vmatprep.mubr.msk.bf16.mxu0 %vm1155_vm2, %v4659_v45  ;;  %4503 = vmatprep.mubr.msk.bf16.mxu1 %vm1155_vm2, %v4661_v46  ;;  %v4682_v44 = vld [vmem:[%s4758_s23 + $0x3f8] sm:$0xff]  }
  0xea   : > { %4376 = vmatmul.mubr.msk.bf16.gmra.mrb[104].mxu0 %vm1155_vm2, %v4660_v47  ;;  %4504 = vmatmul.mubr.msk.bf16.gmra.mrb[104].mxu1 %vm1155_vm2, %v4662_v48 }
  0xeb   : > { %4379 = vmatprep.mubr.msk.bf16.mxu0 %vm1155_vm2, %v4663_v49  ;;  %4507 = vmatprep.mubr.msk.bf16.mxu1 %vm1155_vm2, %v4665_v50 }
  0xed   : > { %v4980_v51 = vpop.f32.mrb[0].mxu0  ;;  %v4982_v52 = vpop.f32.mrb[0].mxu1 }
  0xee   : > { %v4984_v53 = vpop.f32.mrb[1].mxu0  ;;  %v4986_v54 = vpop.f32.mrb[1].mxu1  ;;  %v1590_v36 = vadd.f32 %v4980_v51, %v5079_v35  ;;  %v2102_v40 = vadd.f32 %v4982_v52, %v5079_v35 }
  0xef   : > { %v4990_v57 = vpop.f32.mrb[2].mxu0  ;;  %v4992_v58 = vpop.f32.mrb[2].mxu1  ;;  %v1582_v39 = vadd.f32 %v5079_v35, %v4984_v53  ;;  %v2094_v46 = vadd.f32 %v5079_v35, %v4986_v54 }
  0xf0   : > { %v4996_v61 = vpop.f32.mrb[3].mxu0  ;;  %v4998_v62 = vpop.f32.mrb[3].mxu1  ;;  %v1593_v45 = vadd.f32 %v4990_v57, %v5079_v35  ;;  %v2105_v50 = vadd.f32 %v4992_v58, %v5079_v35 }
  0xf1   : > { %v1585_v49 = vadd.f32 %v5079_v35, %v4996_v61  ;;  %v2097_v51 = vadd.f32 %v5079_v35, %v4998_v62  ;;  %v2604_v54 = vmax.f32 %v1582_v39, 0.0 }
  0xf2   : > { %4380 = vmatmul.mubr.msk.bf16.gmra.mrb[108].mxu0 %vm1155_vm2, %v4664_v55  ;;  %4508 = vmatmul.mubr.msk.bf16.gmra.mrb[108].mxu1 %vm1155_vm2, %v4666_v56  ;;  %v2606_v55 = vmax.f32 %v1590_v36, 0.0  ;;  %v2734_v56 = vmax.f32 %v2102_v40, 0.0  ;;  %v2607_v58 = vmax.f32 %v1593_v45, 0.0 }
  0xf3   : > { %4383 = vmatprep.mubr.msk.bf16.mxu0 %vm1155_vm2, %v4667_v59  ;;  %4511 = vmatprep.mubr.msk.bf16.mxu1 %vm1155_vm2, %v4669_v60  ;;  %v2732_v60 = vmax.f32 %v2094_v46, 0.0 }
  0xf5   : > { %v5004_v63 = vpop.f32.mrb[4].mxu0  ;;  %v5006_v0 = vpop.f32.mrb[4].mxu1 }
  0xf6   : > { %v5008_v1 = vpop.f32.mrb[5].mxu0  ;;  %v5010_v2 = vpop.f32.mrb[5].mxu1  ;;  %v1606_v57 = vadd.f32 %v5004_v63, %v5079_v35  ;;  %v2118_v59 = vadd.f32 %v5006_v0, %v5079_v35  ;;  %v5132_v0 = vsel %vm2860_vm3, %v2606_v55, -inf }
  0xf7   : > { %v5014_v5 = vpop.f32.mrb[6].mxu0  ;;  %v5016_v6 = vpop.f32.mrb[6].mxu1  ;;  %v1598_v61 = vadd.f32 %v5079_v35, %v5008_v1  ;;  %v2110_v62 = vadd.f32 %v5079_v35, %v5010_v2 }
  0xf8   : > { %v5020_v9 = vpop.f32.mrb[7].mxu0  ;;  %v5022_v10 = vpop.f32.mrb[7].mxu1  ;;  %v1609_v63 = vadd.f32 %v5014_v5, %v5079_v35  ;;  %v5148_v5 = vsel %vm2860_vm3, %v2734_v56, -inf }
  0xf9   : > { %v2113_v1 = vadd.f32 %v5079_v35, %v5022_v10  ;;  %v5158_v10 = vsel %vm2860_vm3, %v2732_v60, -inf }
  0xfa   : > { %4384 = vmatmul.mubr.msk.bf16.gmra.mrb[112].mxu0 %vm1155_vm2, %v4668_v3  ;;  %4512 = vmatmul.mubr.msk.bf16.gmra.mrb[112].mxu1 %vm1155_vm2, %v4670_v4  ;;  %v2605_v3 = vmax.f32 %v1585_v49, 0.0  ;;  %v2735_v4 = vmax.f32 %v2105_v50, 0.0  ;;  %v2611_v45 = vmax.f32 %v1609_v63, 0.0 }
  0xfb   : > { %4387 = vmatprep.mubr.msk.bf16.mxu0 %vm1155_vm2, %v4671_v7  ;;  %4515 = vmatprep.mubr.msk.bf16.mxu1 %vm1155_vm2, %v4673_v8  ;;  %v2733_v7 = vmax.f32 %v2097_v51, 0.0  ;;  %v1601_v8 = vadd.f32 %v5079_v35, %v5020_v9  ;;  %v2737_v55 = vmax.f32 %v2113_v1, 0.0 }
  0xfc   : > { %v5165_v40 = vsel %vm2860_vm3, %v2605_v3, -inf  ;;  %v5200_v3 = vsel %vm2860_vm3, %v2611_v45, -inf }
  0xfd   : > { %v5028_v11 = vpop.f32.mrb[8].mxu0  ;;  %v5030_v12 = vpop.f32.mrb[8].mxu1  ;;  %v2609_v50 = vmax.f32 %v1601_v8, 0.0 }
  0xfe   : > { %v5032_v13 = vpop.f32.mrb[9].mxu0  ;;  %v5034_v14 = vpop.f32.mrb[9].mxu1 }
  0xff   : > { %v5038_v17 = vpop.f32.mrb[10].mxu0  ;;  %v5040_v18 = vpop.f32.mrb[10].mxu1 }
 0x100   : > { %v5044_v21 = vpop.f32.mrb[11].mxu0  ;;  %v5046_v22 = vpop.f32.mrb[11].mxu1 }
 0x102   : > { %4388 = vmatmul.mubr.msk.bf16.gmra.mrb[116].mxu0 %vm1155_vm2, %v4672_v15  ;;  %4516 = vmatmul.mubr.msk.bf16.gmra.mrb[116].mxu1 %vm1155_vm2, %v4674_v16  ;;  %v2121_v15 = vadd.f32 %v5016_v6, %v5079_v35  ;;  %v5155_v6 = vsel %vm2860_vm3, %v2607_v58, -inf  ;;  %v2134_v58 = vadd.f32 %v5030_v12, %v5079_v35  ;;  %v2137_v12 = vadd.f32 %v5040_v18, %v5079_v35 }
 0x103   : > { %4391 = vmatprep.mubr.msk.bf16.mxu0 %vm1155_vm2, %v4675_v19  ;;  %4519 = vmatprep.mubr.msk.bf16.mxu1 %vm1155_vm2, %v4677_v20  ;;  %v5145_v19 = vsel %vm2860_vm3, %v2604_v54, -inf  ;;  %v2610_v20 = vmax.f32 %v1606_v57, 0.0  ;;  %v1622_v54 = vadd.f32 %v5028_v11, %v5079_v35  ;;  %v1625_v11 = vadd.f32 %v5038_v17, %v5079_v35 }
 0x104   : > { %v2739_v51 = vmax.f32 %v2121_v15, 0.0  ;;  %v2742_v1 = vmax.f32 %v2134_v58, 0.0 }
 0x105   : > { %v5052_v23 = vpop.f32.mrb[12].mxu0  ;;  %v5054_v24 = vpop.f32.mrb[12].mxu1  ;;  %v5180_v56 = vsel %vm2860_vm3, %v2610_v20, -inf  ;;  %v2614_v63 = vmax.f32 %v1622_v54, 0.0  ;;  %v2743_v54 = vmax.f32 %v2137_v12, 0.0 }
 0x106   : > { %v5056_v25 = vpop.f32.mrb[13].mxu0  ;;  %v5058_v26 = vpop.f32.mrb[13].mxu1  ;;  %v5212_v17 = vsel %vm2860_vm3, %v2739_v51, -inf  ;;  %v1638_v18 = vadd.f32 %v5052_v23, %v5079_v35 }
 0x107   : > { %v5068_v29 = vpop.f32.mrb[14].mxu0  ;;  %v5070_v30 = vpop.f32.mrb[14].mxu1  ;;  %v1630_v45 = vadd.f32 %v5079_v35, %v5056_v25 }
 0x108   : > { %v5074_v33 = vpop.f32.mrb[15].mxu0  ;;  %v5076_v34 = vpop.f32.mrb[15].mxu1 }
 0x109   : > { %v1633_v25 = vadd.f32 %v5079_v35, %v5074_v33  ;;  %v2616_v33 = vmax.f32 %v1630_v45, 0.0 }
 0x10a   : > { %4392 = vmatmul.mubr.msk.bf16.gmra.mrb[120].mxu0 %vm1155_vm2, %v4676_v27  ;;  %4520 = vmatmul.mubr.msk.bf16.gmra.mrb[120].mxu1 %vm1155_vm2, %v4678_v28  ;;  %v2738_v27 = vmax.f32 %v2118_v59, 0.0  ;;  %v1614_v59 = vadd.f32 %v5079_v35, %v5032_v13  ;;  %v1617_v13 = vadd.f32 %v5079_v35, %v5044_v21 }
 0x10b   : > { %4395 = vmatprep.mubr.msk.bf16.mxu0 %vm1155_vm2, %v4679_v31  ;;  %4523 = vmatprep.mubr.msk.bf16.mxu1 %vm1155_vm2, %v4681_v32  ;;  %v2608_v31 = vmax.f32 %v1598_v61, 0.0  ;;  %v2736_v32 = vmax.f32 %v2110_v62, 0.0  ;;  %v2126_v62 = vadd.f32 %v5079_v35, %v5034_v14  ;;  %v5215_v14 = vsel %vm2860_vm3, %v2737_v55, -inf }
 0x10c   : > { %v5183_v57 = vsel %vm2860_vm3, %v2738_v27, -inf  ;;  %6570 = vst [vmem:[#allocation3_spill] sm:$0xff] %v5215_v14  ;;  %v2612_v21 = vmax.f32 %v1614_v59, 0.0  ;;  %v2613_v23 = vmax.f32 %v1617_v13, 0.0  ;;  %v2145_v13 = vadd.f32 %v5079_v35, %v5076_v34 }
 0x10d   : > { %v5087_v37 = vpop.f32.mrb[16].mxu0  ;;  %v5089_v38 = vpop.f32.mrb[16].mxu1  ;;  %v5190_v60 = vsel %vm2860_vm3, %v2608_v31, -inf  ;;  %v5193_v61 = vsel %vm2860_vm3, %v2736_v32, -inf  ;;  %v2615_v31 = vmax.f32 %v1625_v11, 0.0  ;;  %v2740_v32 = vmax.f32 %v2126_v62, 0.0 }
 0x10e   : > { %v5095_v41 = vpop.f32.mrb[17].mxu0  ;;  %v5097_v42 = vpop.f32.mrb[17].mxu1  ;;  %v5244_v62 = vsel %vm2860_vm3, %v2614_v63, -inf  ;;  %v5253_v12 = vsel %vm2860_vm3, %v2612_v21, -inf  ;;  %v5268_v34 = vsel %vm2860_vm3, %v2743_v54, -inf }
 0x10f   : > { %v5105_v47 = vpop.f32.mrb[18].mxu0  ;;  %v5107_v48 = vpop.f32.mrb[18].mxu1  ;;  %6571 = vst [vmem:[#allocation4_spill] sm:$0xff] %v5244_v62  ;;  %6572 = vst [vmem:[#allocation5_spill] sm:$0xff] %v5253_v12  ;;  %v5259_v63 = vsel %vm2860_vm3, %v2615_v31, -inf  ;;  %v5262_v62 = vsel %vm2860_vm3, %v2740_v32, -inf  ;;  %v1654_v31 = vadd.f32 %v5087_v37, %v5079_v35  ;;  %v1646_v54 = vadd.f32 %v5079_v35, %v5095_v41 }
 0x110   : > { %v5115_v52 = vpop.f32.mrb[19].mxu0  ;;  %v5117_v53 = vpop.f32.mrb[19].mxu1  ;;  %6573 = vst [vmem:[#allocation6_spill] sm:$0xff] %v5268_v34  ;;  %v2745_v12 = vmax.f32 %v2145_v13, 0.0  ;;  %v5294_v37 = vsel %vm2860_vm3, %v2616_v33, -inf  ;;  %v2158_v13 = vadd.f32 %v5079_v35, %v5097_v42 }
 0x111   : > { %6577 = vst [vmem:[#allocation10_spill] sm:$0xff] %v5294_v37  ;;  %v1649_v33 = vadd.f32 %v5079_v35, %v5115_v52  ;;  %v2622_v52 = vmax.f32 %v1654_v31, 0.0 }
 0x112   : > { %4396 = vmatmul.mubr.msk.bf16.gmra.mrb[124].mxu0 %vm1155_vm2, %v4680_v43  ;;  %4524 = vmatmul.mubr.msk.bf16.gmra.mrb[124].mxu1 %vm1155_vm2, %v4682_v44  ;;  %v5168_v43 = vsel %vm2860_vm3, %v2735_v4, -inf  ;;  %v5171_v44 = vsel %vm2860_vm3, %v2733_v7, -inf  ;;  %v2129_v4 = vadd.f32 %v5079_v35, %v5046_v22  ;;  %v5209_v7 = vsel %vm2860_vm3, %v2609_v50, -inf }
 0x113   : > { %6569 = vst [vmem:[#allocation2_spill] sm:$0xff] %v5209_v7  ;;  %v2150_v22 = vadd.f32 %v5054_v24, %v5079_v35  ;;  %v2142_v50 = vadd.f32 %v5079_v35, %v5058_v26  ;;  %v1641_v24 = vadd.f32 %v5068_v29, %v5079_v35  ;;  %v2153_v26 = vadd.f32 %v5070_v30, %v5079_v35 }
 0x114   : > { %v2741_v59 = vmax.f32 %v2129_v4, 0.0  ;;  %v5256_v29 = vsel %vm2860_vm3, %v2742_v1, -inf  ;;  %v2618_v4 = vmax.f32 %v1638_v18, 0.0  ;;  %v5265_v30 = vsel %vm2860_vm3, %v2613_v23, -inf }
 0x115   : > { %v5140_v16 = vpop.f32.mrb[20].mxu0  ;;  %v5142_v2 = vpop.f32.mrb[20].mxu1  ;;  %v2746_v14 = vmax.f32 %v2150_v22, 0.0  ;;  %v2744_v7 = vmax.f32 %v2142_v50, 0.0  ;;  %v2619_v1 = vmax.f32 %v1641_v24, 0.0  ;;  %v2617_v18 = vmax.f32 %v1633_v25, 0.0 }
 0x116   : > { %v5150_v28 = vpop.f32.mrb[21].mxu0  ;;  %v5152_v9 = vpop.f32.mrb[21].mxu1  ;;  %v5271_v21 = vsel %vm2860_vm3, %v2741_v59, -inf  ;;  %v2747_v22 = vmax.f32 %v2153_v26, 0.0  ;;  %v5280_v50 = vsel %vm2860_vm3, %v2618_v4, -inf  ;;  %v2166_v59 = vadd.f32 %v5089_v38, %v5079_v35 }
 0x117   : > { %v5160_v36 = vpop.f32.mrb[22].mxu0  ;;  %v5162_v39 = vpop.f32.mrb[22].mxu1  ;;  %6574 = vst [vmem:[#allocation7_spill] sm:$0xff] %v5271_v21  ;;  %6575 = vst [vmem:[#allocation8_spill] sm:$0xff] %v5280_v50  ;;  %v5283_v23 = vsel %vm2860_vm3, %v2746_v14, -inf  ;;  %v5297_v26 = vsel %vm2860_vm3, %v2744_v7, -inf  ;;  %v1657_v14 = vadd.f32 %v5105_v47, %v5079_v35  ;;  %v2169_v7 = vadd.f32 %v5107_v48, %v5079_v35 }
 0x118   : > { %v5173_v46 = vpop.f32.mrb[23].mxu0  ;;  %v5175_v49 = vpop.f32.mrb[23].mxu1  ;;  %6576 = vst [vmem:[#allocation9_spill] sm:$0xff] %v5283_v23  ;;  %6578 = vst [vmem:[#allocation11_spill] sm:$0xff] %v5297_v26  ;;  %v5308_v38 = vsel %vm2860_vm3, %v2619_v1, -inf  ;;  %v2161_v26 = vadd.f32 %v5079_v35, %v5117_v53  ;;  %v5321_v42 = vsel %vm2860_vm3, %v2617_v18, -inf  ;;  %v1670_v48 = vadd.f32 %v5140_v16, %v5079_v35 }
 0x119   : > { %6579 = vst [vmem:[#allocation12_spill] sm:$0xff] %v5308_v38  ;;  %v5324_v37 = vsel %vm2860_vm3, %v2747_v22, -inf  ;;  %v5327_v1 = vsel %vm2860_vm3, %v2745_v12, -inf  ;;  %v2620_v38 = vmax.f32 %v1646_v54, 0.0  ;;  %v2750_v50 = vmax.f32 %v2166_v59, 0.0 }
 0x11a   : > { %6580 = vst [vmem:[#allocation13_spill] sm:$0xff] %v5324_v37  ;;  %6581 = vst [vmem:[#allocation14_spill] sm:$0xff] %v5327_v1  ;;  %v2182_v53 = vadd.f32 %v5142_v2, %v5079_v35  ;;  %v2623_v21 = vmax.f32 %v1657_v14, 0.0  ;;  %v2748_v34 = vmax.f32 %v2158_v13, 0.0  ;;  %v1662_v18 = vadd.f32 %v5079_v35, %v5150_v28 }
 0x11b   : > { %v2174_v22 = vadd.f32 %v5079_v35, %v5152_v9  ;;  %v2621_v37 = vmax.f32 %v1649_v33, 0.0  ;;  %v2751_v12 = vmax.f32 %v2169_v7, 0.0  ;;  %v2749_v1 = vmax.f32 %v2161_v26, 0.0 }
 0x11c   : > { %v1673_v31 = vadd.f32 %v5160_v36, %v5079_v35  ;;  %v5340_v54 = vsel %vm2860_vm3, %v2622_v52, -inf  ;;  %v1665_v16 = vadd.f32 %v5079_v35, %v5173_v46  ;;  %v2185_v2 = vadd.f32 %v5162_v39, %v5079_v35 }
 0x11d   : > { %v5217_v8 = vpop.f32.mrb[24].mxu0  ;;  %v5219_v15 = vpop.f32.mrb[24].mxu1  ;;  %6582 = vst [vmem:[#allocation15_spill] sm:$0xff] %v5340_v54  ;;  %v2177_v28 = vadd.f32 %v5079_v35, %v5175_v49  ;;  %v5353_v26 = vsel %vm2860_vm3, %v2620_v38, -inf  ;;  %v5356_v36 = vsel %vm2860_vm3, %v2750_v50, -inf  ;;  %v2626_v14 = vmax.f32 %v1670_v48, 0.0 }
 0x11e   : > { %v5225_v20 = vpop.f32.mrb[25].mxu0  ;;  %v5227_v27 = vpop.f32.mrb[25].mxu1  ;;  %6583 = vst [vmem:[#allocation16_spill] sm:$0xff] %v5356_v36  ;;  %v2754_v13 = vmax.f32 %v2182_v53, 0.0  ;;  %v5363_v39 = vsel %vm2860_vm3, %v2623_v21, -inf  ;;  %v5366_v49 = vsel %vm2860_vm3, %v2748_v34, -inf  ;;  %v1686_v36 = vadd.f32 %v5217_v8, %v5079_v35 }
 0x11f   : > { %v5233_v51 = vpop.f32.mrb[26].mxu0  ;;  %v5235_v55 = vpop.f32.mrb[26].mxu1  ;;  %6584 = vst [vmem:[#allocation17_spill] sm:$0xff] %v5363_v39  ;;  %6585 = vst [vmem:[#allocation18_spill] sm:$0xff] %v5366_v49  ;;  %v2624_v7 = vmax.f32 %v1662_v18, 0.0  ;;  %v2752_v52 = vmax.f32 %v2174_v22, 0.0 }
 0x120   : > { %v5239_v58 = vpop.f32.mrb[27].mxu0  ;;  %v5241_v11 = vpop.f32.mrb[27].mxu1  ;;  %v5373_v50 = vsel %vm2860_vm3, %v2621_v37, -inf  ;;  %v5376_v48 = vsel %vm2860_vm3, %v2751_v12, -inf  ;;  %v5379_v53 = vsel %vm2860_vm3, %v2749_v1, -inf  ;;  %v2627_v21 = vmax.f32 %v1673_v31, 0.0 }
 0x121   : > { %6586 = vst [vmem:[#allocation19_spill] sm:$0xff] %v5379_v53  ;;  %v2625_v18 = vmax.f32 %v1665_v16, 0.0  ;;  %v2755_v22 = vmax.f32 %v2185_v2, 0.0  ;;  %v2753_v49 = vmax.f32 %v2177_v28, 0.0  ;;  %v5388_v37 = vsel %vm2860_vm3, %v2626_v14, -inf }
 0x122   : > { %6587 = vst [vmem:[#allocation20_spill] sm:$0xff] %v5388_v37  ;;  %v5391_v12 = vsel %vm2860_vm3, %v2754_v13, -inf  ;;  %v1678_v1 = vadd.f32 %v5079_v35, %v5225_v20  ;;  %v2198_v31 = vadd.f32 %v5219_v15, %v5079_v35  ;;  %v5398_v53 = vsel %vm2860_vm3, %v2624_v7, -inf }
 0x123   : > { %6588 = vst [vmem:[#allocation21_spill] sm:$0xff] %v5391_v12  ;;  %6589 = vst [vmem:[#allocation22_spill] sm:$0xff] %v5398_v53  ;;  %v5401_v16 = vsel %vm2860_vm3, %v2752_v52, -inf  ;;  %v1689_v8 = vadd.f32 %v5233_v51, %v5079_v35  ;;  %v2190_v2 = vadd.f32 %v5079_v35, %v5227_v27  ;;  %v5408_v28 = vsel %vm2860_vm3, %v2627_v21, -inf }
 0x124   : > { %6590 = vst [vmem:[#allocation23_spill] sm:$0xff] %v5401_v16  ;;  %6591 = vst [vmem:[#allocation24_spill] sm:$0xff] %v5408_v28  ;;  %v1681_v20 = vadd.f32 %v5079_v35, %v5239_v58  ;;  %v2201_v15 = vadd.f32 %v5235_v55, %v5079_v35  ;;  %v2193_v14 = vadd.f32 %v5079_v35, %v5241_v11  ;;  %v5417_v13 = vsel %vm2860_vm3, %v2625_v18, -inf }
 0x125   : > { %v5275_v32 = vpop.f32.mrb[28].mxu0  ;;  %v5277_v45 = vpop.f32.mrb[28].mxu1  ;;  %6592 = vst [vmem:[#allocation25_spill] sm:$0xff] %v5417_v13  ;;  %v5420_v51 = vsel %vm2860_vm3, %v2755_v22, -inf  ;;  %v5423_v27 = vsel %vm2860_vm3, %v2753_v49, -inf  ;;  %v2630_v7 = vmax.f32 %v1686_v36, 0.0 }
 0x126   : > { %v5289_v24 = vpop.f32.mrb[29].mxu0  ;;  %v5291_v25 = vpop.f32.mrb[29].mxu1  ;;  %6593 = vst [vmem:[#allocation26_spill] sm:$0xff] %v5420_v51  ;;  %6594 = vst [vmem:[#allocation27_spill] sm:$0xff] %v5423_v27  ;;  %v2628_v58 = vmax.f32 %v1678_v1, 0.0  ;;  %v2758_v16 = vmax.f32 %v2198_v31, 0.0  ;;  %v1702_v55 = vadd.f32 %v5275_v32, %v5079_v35  ;;  %v2214_v11 = vadd.f32 %v5277_v45, %v5079_v35 }
 0x127   : > { %v5303_v41 = vpop.f32.mrb[30].mxu0  ;;  %v5305_v4 = vpop.f32.mrb[30].mxu1  ;;  %v2631_v51 = vmax.f32 %v1689_v8, 0.0  ;;  %v2756_v49 = vmax.f32 %v2190_v2, 0.0  ;;  %v1694_v36 = vadd.f32 %v5079_v35, %v5289_v24  ;;  %v2206_v27 = vadd.f32 %v5079_v35, %v5291_v25 }
 0x128   : > { %v5316_v47 = vpop.f32.mrb[31].mxu0  ;;  %v5318_v23 = vpop.f32.mrb[31].mxu1  ;;  %v2629_v32 = vmax.f32 %v1681_v20, 0.0  ;;  %v2759_v13 = vmax.f32 %v2201_v15, 0.0  ;;  %v2757_v28 = vmax.f32 %v2193_v14, 0.0  ;;  %v1705_v45 = vadd.f32 %v5303_v41, %v5079_v35 }
 0x129   : > { %v5448_v8 = vsel %vm2860_vm3, %v2630_v7, -inf  ;;  %v1697_v24 = vadd.f32 %v5079_v35, %v5316_v47  ;;  %v2217_v25 = vadd.f32 %v5305_v4, %v5079_v35  ;;  %v2209_v2 = vadd.f32 %v5079_v35, %v5318_v23 }
 0x12a   : > { %6595 = vst [vmem:[#allocation28_spill] sm:$0xff] %v5448_v8  ;;  %v5457_v20 = vsel %vm2860_vm3, %v2628_v58, -inf  ;;  %v5460_v15 = vsel %vm2860_vm3, %v2758_v16, -inf  ;;  %v2634_v41 = vmax.f32 %v1702_v55, 0.0  ;;  %v2762_v14 = vmax.f32 %v2214_v11, 0.0 }
 0x12b   : > { %6596 = vst [vmem:[#allocation29_spill] sm:$0xff] %v5460_v15  ;;  %v5463_v7 = vsel %vm2860_vm3, %v2631_v51, -inf  ;;  %v5466_v8 = vsel %vm2860_vm3, %v2756_v49, -inf  ;;  %v2632_v47 = vmax.f32 %v1694_v36, 0.0  ;;  %v2760_v37 = vmax.f32 %v2206_v27, 0.0 }
 0x12c   : > { %v5469_v4 = vsel %vm2860_vm3, %v2629_v32, -inf  ;;  %v5472_v23 = vsel %vm2860_vm3, %v2759_v13, -inf  ;;  %v5475_v58 = vsel %vm2860_vm3, %v2757_v28, -inf  ;;  %v2635_v16 = vmax.f32 %v1705_v45, 0.0 }
 0x12d   : > { %v5348_v59 = vpop.f32.mrb[32].mxu0  ;;  %v5350_v9 = vpop.f32.mrb[32].mxu1  ;;  %6597 = vst [vmem:[#allocation30_spill] sm:$0xff] %v5472_v23  ;;  %6598 = vst [vmem:[#allocation31_spill] sm:$0xff] %v5475_v58  ;;  %v2633_v55 = vmax.f32 %v1697_v24, 0.0  ;;  %v2763_v11 = vmax.f32 %v2217_v25, 0.0 }
 0x12e   : > { %v5358_v33 = vpop.f32.mrb[33].mxu0  ;;  %v5360_v46 = vpop.f32.mrb[33].mxu1  ;;  %v2761_v15 = vmax.f32 %v2209_v2, 0.0  ;;  %v1718_v51 = vadd.f32 %v5348_v59, %v5079_v35  ;;  %v5484_v27 = vsel %vm2860_vm3, %v2634_v41, -inf  ;;  %v5487_v13 = vsel %vm2860_vm3, %v2762_v14, -inf }
 0x12f   : > { %v5368_v54 = vpop.f32.mrb[34].mxu0  ;;  %v5370_v38 = vpop.f32.mrb[34].mxu1  ;;  %6599 = vst [vmem:[#allocation32_spill] sm:$0xff] %v5484_v27  ;;  %6600 = vst [vmem:[#allocation33_spill] sm:$0xff] %v5487_v13  ;;  %v1710_v28 = vadd.f32 %v5079_v35, %v5358_v33  ;;  %v2230_v32 = vadd.f32 %v5350_v9, %v5079_v35  ;;  %v5496_v59 = vsel %vm2860_vm3, %v2632_v47, -inf  ;;  %v5499_v25 = vsel %vm2860_vm3, %v2760_v37, -inf }
 0x130   : > { %v5381_v39 = vpop.f32.mrb[35].mxu0  ;;  %v5383_v34 = vpop.f32.mrb[35].mxu1  ;;  %6601 = vst [vmem:[#allocation34_spill] sm:$0xff] %v5496_v59  ;;  %6602 = vst [vmem:[#allocation35_spill] sm:$0xff] %v5499_v25  ;;  %v1721_v2 = vadd.f32 %v5368_v54, %v5079_v35  ;;  %v2222_v41 = vadd.f32 %v5079_v35, %v5360_v46  ;;  %v5506_v13 = vsel %vm2860_vm3, %v2635_v16, -inf  ;;  %v2233_v47 = vadd.f32 %v5370_v38, %v5079_v35 }
 0x131   : > { %6603 = vst [vmem:[#allocation36_spill] sm:$0xff] %v5506_v13  ;;  %v1713_v9 = vadd.f32 %v5079_v35, %v5381_v39  ;;  %v2225_v37 = vadd.f32 %v5079_v35, %v5383_v34  ;;  %v5515_v54 = vsel %vm2860_vm3, %v2633_v55, -inf  ;;  %v5518_v46 = vsel %vm2860_vm3, %v2763_v11, -inf }
 0x132   : > { %6604 = vst [vmem:[#allocation37_spill] sm:$0xff] %v5515_v54  ;;  %6605 = vst [vmem:[#allocation38_spill] sm:$0xff] %v5518_v46  ;;  %v5521_v16 = vsel %vm2860_vm3, %v2761_v15, -inf  ;;  %v2638_v13 = vmax.f32 %v1718_v51, 0.0  ;;  %v2636_v27 = vmax.f32 %v1710_v28, 0.0  ;;  %v2766_v39 = vmax.f32 %v2230_v32, 0.0 }
 0x133   : > { %6606 = vst [vmem:[#allocation39_spill] sm:$0xff] %v5521_v16  ;;  %v2639_v58 = vmax.f32 %v1721_v2, 0.0  ;;  %v2764_v23 = vmax.f32 %v2222_v41, 0.0  ;;  %v2637_v46 = vmax.f32 %v1713_v9, 0.0  ;;  %v2767_v15 = vmax.f32 %v2233_v47, 0.0 }
 0x134   : > { %v2765_v16 = vmax.f32 %v2225_v37, 0.0  ;;  %v5534_v28 = vsel %vm2860_vm3, %v2638_v13, -inf  ;;  %v5544_v41 = vsel %vm2860_vm3, %v2766_v39, -inf }
 0x135   : > { %v5425_v52 = vpop.f32.mrb[36].mxu0  ;;  %v5427_v21 = vpop.f32.mrb[36].mxu1  ;;  %6607 = vst [vmem:[#allocation40_spill] sm:$0xff] %v5534_v28  ;;  %6609 = vst [vmem:[#allocation42_spill] sm:$0xff] %v5544_v41  ;;  %v5547_v37 = vsel %vm2860_vm3, %v2639_v58, -inf  ;;  %v5556_v39 = vsel %vm2860_vm3, %v2767_v15, -inf }
 0x136   : > { %v5433_v18 = vpop.f32.mrb[37].mxu0  ;;  %v5435_v22 = vpop.f32.mrb[37].mxu1  ;;  %v1734_v38 = vadd.f32 %v5425_v52, %v5079_v35  ;;  %v2246_v34 = vadd.f32 %v5427_v21, %v5079_v35  ;;  %6610 = vst [vmem:[#allocation43_spill] sm:$0xff] %v5547_v37 }
 0x137   : > { %v5441_v1 = vpop.f32.mrb[38].mxu0  ;;  %v5443_v31 = vpop.f32.mrb[38].mxu1  ;;  %v1726_v55 = vadd.f32 %v5079_v35, %v5433_v18  ;;  %v2238_v11 = vadd.f32 %v5079_v35, %v5435_v22  ;;  %v5541_v22 = vsel %vm2860_vm3, %v2636_v27, -inf  ;;  %v5553_v27 = vsel %vm2860_vm3, %v2637_v46, -inf }
 0x138   : > { %v1728_v12 = vpop.f32.mrb[39].mxu0  ;;  %v2240_v53 = vpop.f32.mrb[39].mxu1  ;;  %v1737_v51 = vadd.f32 %v5441_v1, %v5079_v35  ;;  %v2249_v21 = vadd.f32 %v5443_v31, %v5079_v35  ;;  %6608 = vst [vmem:[#allocation41_spill] sm:$0xff] %v5541_v22  ;;  %v2642_v9 = vmax.f32 %v1734_v38, 0.0  ;;  %v2770_v1 = vmax.f32 %v2246_v34, 0.0 }
 0x139   : > { %v1729_v52 = vadd.f32 %v5079_v35, %v1728_v12  ;;  %v2241_v32 = vadd.f32 %v5079_v35, %v2240_v53  ;;  %v5550_v12 = vsel %vm2860_vm3, %v2764_v23, -inf  ;;  %v2640_v31 = vmax.f32 %v1726_v55, 0.0 }
 0x13a   : > { %v2768_v53 = vmax.f32 %v2238_v11, 0.0  ;;  %v5559_v38 = vsel %vm2860_vm3, %v2765_v16, -inf  ;;  %v2643_v34 = vmax.f32 %v1737_v51, 0.0  ;;  %v2771_v22 = vmax.f32 %v2249_v21, 0.0 }
 0x13b   : > { %6611 = vst [vmem:[#allocation44_spill] sm:$0xff] %v5559_v38  ;;  %v2641_v37 = vmax.f32 %v1729_v52, 0.0  ;;  %v2769_v23 = vmax.f32 %v2241_v32, 0.0  ;;  %v5564_v11 = vsel %vm2860_vm3, %v2642_v9, -inf  ;;  %v5567_v46 = vsel %vm2860_vm3, %v2770_v1, -inf }
 0x13c   : > { %6612 = vst [vmem:[#allocation45_spill] sm:$0xff] %v5564_v11  ;;  %6613 = vst [vmem:[#allocation46_spill] sm:$0xff] %v5567_v46  ;;  %v5573_v51 = vsel %vm2860_vm3, %v2640_v31, -inf  ;;  %v5576_v52 = vsel %vm2860_vm3, %v2768_v53, -inf  ;;  %v5582_v32 = vsel %vm2860_vm3, %v2643_v34, -inf  ;;  %v5591_v31 = vsel %vm2860_vm3, %v2771_v22, -inf }
 0x13d   : > { %v5479_v49 = vpop.f32.mrb[40].mxu0  ;;  %v5481_v36 = vpop.f32.mrb[40].mxu1  ;;  %6614 = vst [vmem:[#allocation47_spill] sm:$0xff] %v5573_v51  ;;  %6615 = vst [vmem:[#allocation48_spill] sm:$0xff] %v5576_v52  ;;  %v5588_v1 = vsel %vm2860_vm3, %v2641_v37, -inf }
 0x13e   : > { %v1741_v45 = vpop.f32.mrb[41].mxu0  ;;  %v5493_v24 = vpop.f32.mrb[41].mxu1  ;;  %v1750_v55 = vadd.f32 %v5479_v49, %v5079_v35  ;;  %v2262_v16 = vadd.f32 %v5481_v36, %v5079_v35  ;;  %6616 = vst [vmem:[#allocation49_spill] sm:$0xff] %v5582_v32  ;;  %6617 = vst [vmem:[#allocation50_spill] sm:$0xff] %v5588_v1 }
 0x13f   : > { %v4314_v14 = vpop.f32.mrb[42].mxu0  ;;  %v4442_v33 = vpop.f32.mrb[42].mxu1  ;;  %v1742_v15 = vadd.f32 %v5079_v35, %v1741_v45  ;;  %v2254_v49 = vadd.f32 %v5079_v35, %v5493_v24  ;;  %6618 = vst [vmem:[#allocation51_spill] sm:$0xff] %v5591_v31 }
 0x140   : > { %v1744_v25 = vpop.f32.mrb[43].mxu0  ;;  %v2256_v59 = vpop.f32.mrb[43].mxu1  ;;  %v1753_v21 = vadd.f32 %v4314_v14, %v5079_v35  ;;  %v2265_v45 = vadd.f32 %v4442_v33, %v5079_v35  ;;  %v5594_v14 = vsel %vm2860_vm3, %v2769_v23, -inf  ;;  %v2646_v53 = vmax.f32 %v1750_v55, 0.0 }
 0x141   : > { %v1745_v9 = vadd.f32 %v5079_v35, %v1744_v25  ;;  %v2257_v36 = vadd.f32 %v5079_v35, %v2256_v59  ;;  %6619 = vst [vmem:[#allocation52_spill] sm:$0xff] %v5594_v14  ;;  %v2644_v34 = vmax.f32 %v1742_v15, 0.0  ;;  %v2774_v32 = vmax.f32 %v2262_v16, 0.0 }
 0x142   : > { %v2647_v51 = vmax.f32 %v1753_v21, 0.0  ;;  %v2772_v37 = vmax.f32 %v2254_v49, 0.0  ;;  %v2775_v55 = vmax.f32 %v2265_v45, 0.0 }
 0x143   : > { %v2645_v14 = vmax.f32 %v1745_v9, 0.0  ;;  %v2773_v11 = vmax.f32 %v2257_v36, 0.0  ;;  %v5611_v49 = vsel %vm2860_vm3, %v2774_v32, -inf }
 0x144   : > { %6620 = vst [vmem:[#allocation53_spill] sm:$0xff] %v5611_v49  ;;  %v5617_v36 = vsel %vm2860_vm3, %v2772_v37, -inf }
 0x145   : > { %v4317_v18 = vpop.f32.mrb[44].mxu0  ;;  %v4445_v2 = vpop.f32.mrb[44].mxu1 }
 0x146   : > { %v1757_v47 = vpop.f32.mrb[45].mxu0  ;;  %v2269_v13 = vpop.f32.mrb[45].mxu1  ;;  %v1766_v25 = vadd.f32 %v4317_v18, %v5079_v35  ;;  %v2278_v33 = vadd.f32 %v4445_v2, %v5079_v35  ;;  %v5602_v18 = vsel %vm2860_vm3, %v2646_v53, -inf }
 0x147   : > { %v4318_v28 = vpop.f32.mrb[46].mxu0  ;;  %v4446_v54 = vpop.f32.mrb[46].mxu1  ;;  %v1758_v1 = vadd.f32 %v5079_v35, %v1757_v47  ;;  %v2270_v22 = vadd.f32 %v5079_v35, %v2269_v13  ;;  %v5608_v13 = vsel %vm2860_vm3, %v2644_v34, -inf  ;;  %v5626_v34 = vsel %vm2860_vm3, %v2773_v11, -inf }
 0x148   : > { %v1760_v41 = vpop.f32.mrb[47].mxu0  ;;  %v2272_v58 = vpop.f32.mrb[47].mxu1  ;;  %v1769_v15 = vadd.f32 %v4318_v28, %v5079_v35  ;;  %v2281_v21 = vadd.f32 %v4446_v54, %v5079_v35  ;;  %v2650_v9 = vmax.f32 %v1766_v25, 0.0  ;;  %v2778_v45 = vmax.f32 %v2278_v33, 0.0  ;;  %6624 = vst [vmem:[#allocation57_spill] sm:$0xff] %v5626_v34 }
 0x149   : > { %v1761_v2 = vadd.f32 %v5079_v35, %v1760_v41  ;;  %v2273_v47 = vadd.f32 %v5079_v35, %v2272_v58  ;;  %v5614_v28 = vsel %vm2860_vm3, %v2647_v51, -inf  ;;  %v2648_v53 = vmax.f32 %v1758_v1, 0.0 }
 0x14a   : > { %6621 = vst [vmem:[#allocation54_spill] sm:$0xff] %v5614_v28  ;;  %v2776_v41 = vmax.f32 %v2270_v22, 0.0  ;;  %v5620_v54 = vsel %vm2860_vm3, %v2645_v14, -inf  ;;  %v5623_v58 = vsel %vm2860_vm3, %v2775_v55, -inf  ;;  %v2651_v32 = vmax.f32 %v1769_v15, 0.0 }
 0x14b   : > { %6622 = vst [vmem:[#allocation55_spill] sm:$0xff] %v5620_v54  ;;  %6623 = vst [vmem:[#allocation56_spill] sm:$0xff] %v5623_v58  ;;  %v2649_v25 = vmax.f32 %v1761_v2, 0.0  ;;  %v2779_v33 = vmax.f32 %v2281_v21, 0.0  ;;  %v2777_v49 = vmax.f32 %v2273_v47, 0.0  ;;  %v5630_v1 = vsel %vm2860_vm3, %v2650_v9, -inf }
 0x14c   : > { %6625 = vst [vmem:[#allocation58_spill] sm:$0xff] %v5630_v1  ;;  %v5633_v14 = vsel %vm2860_vm3, %v2778_v45, -inf  ;;  %v5638_v15 = vsel %vm2860_vm3, %v2648_v53, -inf  ;;  %v5641_v2 = vsel %vm2860_vm3, %v2776_v41, -inf  ;;  %v5646_v45 = vsel %vm2860_vm3, %v2651_v32, -inf }
 0x14d   : > { %v4321_v24 = vpop.f32.mrb[48].mxu0  ;;  %v4449_v52 = vpop.f32.mrb[48].mxu1  ;;  %6626 = vst [vmem:[#allocation59_spill] sm:$0xff] %v5633_v14  ;;  %6627 = vst [vmem:[#allocation60_spill] sm:$0xff] %v5638_v15  ;;  %v5652_v41 = vsel %vm2860_vm3, %v2649_v25, -inf }
 0x14e   : > { %v1773_v46 = vpop.f32.mrb[49].mxu0  ;;  %v2285_v59 = vpop.f32.mrb[49].mxu1  ;;  %v1782_v51 = vadd.f32 %v4321_v24, %v5079_v35  ;;  %v2294_v55 = vadd.f32 %v4449_v52, %v5079_v35  ;;  %6628 = vst [vmem:[#allocation61_spill] sm:$0xff] %v5641_v2  ;;  %6629 = vst [vmem:[#allocation62_spill] sm:$0xff] %v5646_v45 }
 0x14f   : > { %v4322_v31 = vpop.f32.mrb[50].mxu0  ;;  %v4450_v23 = vpop.f32.mrb[50].mxu1  ;;  %v1774_v22 = vadd.f32 %v5079_v35, %v1773_v46  ;;  %v2286_v21 = vadd.f32 %v5079_v35, %v2285_v59  ;;  %6630 = vst [vmem:[#allocation63_spill] sm:$0xff] %v5652_v41  ;;  %v5658_v59 = vsel %vm2860_vm3, %v2777_v49, -inf }
 0x150   : > { %v1776_v16 = vpop.f32.mrb[51].mxu0  ;;  %v2288_v38 = vpop.f32.mrb[51].mxu1  ;;  %v1785_v24 = vadd.f32 %v4322_v31, %v5079_v35  ;;  %v2297_v52 = vadd.f32 %v4450_v23, %v5079_v35  ;;  %v5655_v31 = vsel %vm2860_vm3, %v2779_v33, -inf  ;;  %v2654_v2 = vmax.f32 %v1782_v51, 0.0 }
 0x151   : > { %v1777_v46 = vadd.f32 %v5079_v35, %v1776_v16  ;;  %v2289_v14 = vadd.f32 %v5079_v35, %v2288_v38  ;;  %6631 = vst [vmem:[#allocation64_spill] sm:$0xff] %v5655_v31  ;;  %v2652_v32 = vmax.f32 %v1774_v22, 0.0  ;;  %v2782_v45 = vmax.f32 %v2294_v55, 0.0 }
 0x152   : > { %v2655_v1 = vmax.f32 %v1785_v24, 0.0  ;;  %v2780_v38 = vmax.f32 %v2286_v21, 0.0  ;;  %v2783_v54 = vmax.f32 %v2297_v52, 0.0  ;;  %v5666_v49 = vsel %vm2860_vm3, %v2654_v2, -inf }
 0x153   : > { %v2653_v41 = vmax.f32 %v1777_v46, 0.0  ;;  %v2781_v33 = vmax.f32 %v2289_v14, 0.0 }
 0x154   : > { %v5678_v2 = vsel %vm2860_vm3, %v2655_v1, -inf  ;;  %v5681_v46 = vsel %vm2860_vm3, %v2780_v38, -inf }
 0x155   : > { %v4325_v28 = vpop.f32.mrb[52].mxu0  ;;  %v4453_v37 = vpop.f32.mrb[52].mxu1  ;;  %6634 = vst [vmem:[#allocation67_spill] sm:$0xff] %v5678_v2 }
 0x156   : > { %v1789_v11 = vpop.f32.mrb[53].mxu0  ;;  %v2301_v34 = vpop.f32.mrb[53].mxu1  ;;  %v1798_v16 = vadd.f32 %v4325_v28, %v5079_v35  ;;  %v2310_v23 = vadd.f32 %v4453_v37, %v5079_v35 }
 0x157   : > { %v4326_v47 = vpop.f32.mrb[54].mxu0  ;;  %v4454_v9 = vpop.f32.mrb[54].mxu1  ;;  %v1790_v58 = vadd.f32 %v5079_v35, %v1789_v11  ;;  %v2302_v25 = vadd.f32 %v5079_v35, %v2301_v34  ;;  %v5672_v11 = vsel %vm2860_vm3, %v2652_v32, -inf  ;;  %v5675_v34 = vsel %vm2860_vm3, %v2782_v45, -inf }
 0x158   : > { %v1792_v53 = vpop.f32.mrb[55].mxu0  ;;  %v2304_v15 = vpop.f32.mrb[55].mxu1  ;;  %v1801_v31 = vadd.f32 %v4326_v47, %v5079_v35  ;;  %v2313_v28 = vadd.f32 %v4454_v9, %v5079_v35  ;;  %6632 = vst [vmem:[#allocation65_spill] sm:$0xff] %v5672_v11  ;;  %6633 = vst [vmem:[#allocation66_spill] sm:$0xff] %v5675_v34  ;;  %v2658_v14 = vmax.f32 %v1798_v16, 0.0  ;;  %v2786_v24 = vmax.f32 %v2310_v23, 0.0 }
 0x159   : > { %v1793_v51 = vadd.f32 %v5079_v35, %v1792_v53  ;;  %v2305_v37 = vadd.f32 %v5079_v35, %v2304_v15  ;;  %v2656_v9 = vmax.f32 %v1790_v58, 0.0  ;;  %v2784_v15 = vmax.f32 %v2302_v25, 0.0 }
 0x15a   : > { %v5684_v32 = vsel %vm2860_vm3, %v2653_v41, -inf  ;;  %v5687_v45 = vsel %vm2860_vm3, %v2783_v54, -inf  ;;  %v5690_v16 = vsel %vm2860_vm3, %v2781_v33, -inf  ;;  %v2659_v23 = vmax.f32 %v1801_v31, 0.0 }
 0x15b   : > { %6635 = vst [vmem:[#allocation68_spill] sm:$0xff] %v5684_v32  ;;  %6636 = vst [vmem:[#allocation69_spill] sm:$0xff] %v5687_v45  ;;  %v2657_v2 = vmax.f32 %v1793_v51, 0.0  ;;  %v2787_v11 = vmax.f32 %v2313_v28, 0.0  ;;  %v2785_v38 = vmax.f32 %v2305_v37, 0.0  ;;  %v5694_v25 = vsel %vm2860_vm3, %v2658_v14, -inf }
 0x15c   : > { %6637 = vst [vmem:[#allocation70_spill] sm:$0xff] %v5690_v16  ;;  %6638 = vst [vmem:[#allocation71_spill] sm:$0xff] %v5694_v25  ;;  %v5697_v41 = vsel %vm2860_vm3, %v2786_v24, -inf  ;;  %v5702_v33 = vsel %vm2860_vm3, %v2656_v9, -inf  ;;  %v5705_v31 = vsel %vm2860_vm3, %v2784_v15, -inf  ;;  %v5710_v37 = vsel %vm2860_vm3, %v2659_v23, -inf }
 0x15d   : > { %v4329_v22 = vpop.f32.mrb[56].mxu0  ;;  %v4457_v55 = vpop.f32.mrb[56].mxu1  ;;  %6639 = vst [vmem:[#allocation72_spill] sm:$0xff] %v5697_v41  ;;  %6640 = vst [vmem:[#allocation73_spill] sm:$0xff] %v5702_v33  ;;  %v5722_v9 = vsel %vm2860_vm3, %v2785_v38, -inf }
 0x15e   : > { %v1805_v21 = vpop.f32.mrb[57].mxu0  ;;  %v2317_v47 = vpop.f32.mrb[57].mxu1  ;;  %v1814_v58 = vadd.f32 %v4329_v22, %v5079_v35  ;;  %v2326_v45 = vadd.f32 %v4457_v55, %v5079_v35  ;;  %6641 = vst [vmem:[#allocation74_spill] sm:$0xff] %v5705_v31  ;;  %6642 = vst [vmem:[#allocation75_spill] sm:$0xff] %v5710_v37  ;;  %v5716_v55 = vsel %vm2860_vm3, %v2657_v2, -inf }
 0x15f   : > { %v4330_v52 = vpop.f32.mrb[58].mxu0  ;;  %v4458_v53 = vpop.f32.mrb[58].mxu1  ;;  %v1806_v54 = vadd.f32 %v5079_v35, %v1805_v21  ;;  %v2318_v28 = vadd.f32 %v5079_v35, %v2317_v47  ;;  %6643 = vst [vmem:[#allocation76_spill] sm:$0xff] %v5716_v55  ;;  %v5719_v21 = vsel %vm2860_vm3, %v2787_v11, -inf  ;;  %6645 = vst [vmem:[#allocation78_spill] sm:$0xff] %v5722_v9 }
 0x160   : > { %v1808_v34 = vpop.f32.mrb[59].mxu0  ;;  %v2320_v1 = vpop.f32.mrb[59].mxu1  ;;  %v1817_v51 = vadd.f32 %v4330_v52, %v5079_v35  ;;  %v2329_v14 = vadd.f32 %v4458_v53, %v5079_v35  ;;  %6644 = vst [vmem:[#allocation77_spill] sm:$0xff] %v5719_v21  ;;  %v2662_v15 = vmax.f32 %v1814_v58, 0.0  ;;  %v2790_v31 = vmax.f32 %v2326_v45, 0.0 }
 0x161   : > { %v1809_v22 = vadd.f32 %v5079_v35, %v1808_v34  ;;  %v2321_v24 = vadd.f32 %v5079_v35, %v2320_v1  ;;  %v2660_v23 = vmax.f32 %v1806_v54, 0.0  ;;  %v2788_v2 = vmax.f32 %v2318_v28, 0.0 }
 0x162   : > { %v2663_v41 = vmax.f32 %v1817_v51, 0.0  ;;  %v2791_v58 = vmax.f32 %v2329_v14, 0.0  ;;  %v5731_v51 = vsel %vm2860_vm3, %v2662_v15, -inf  ;;  %v5734_v28 = vsel %vm2860_vm3, %v2790_v31, -inf }
 0x163   : > { %v2661_v9 = vmax.f32 %v1809_v22, 0.0  ;;  %v2789_v33 = vmax.f32 %v2321_v24, 0.0  ;;  %v5740_v14 = vsel %vm2860_vm3, %v2660_v23, -inf  ;;  %v5743_v24 = vsel %vm2860_vm3, %v2788_v2, -inf }
 0x164   : > { %v5749_v15 = vsel %vm2860_vm3, %v2663_v41, -inf }
 0x165   : > { %v4333_v47 = vpop.f32.mrb[60].mxu0  ;;  %v4461_v52 = vpop.f32.mrb[60].mxu1  ;;  %v5752_v31 = vsel %vm2860_vm3, %v2661_v9, -inf }
 0x166   : > { %v1830_v34 = vadd.f32 %v4333_v47, %v5079_v35  ;;  %v1821_v37 = vpop.f32.mrb[61].mxu0  ;;  %v2342_v53 = vadd.f32 %v4461_v52, %v5079_v35  ;;  %v2333_v1 = vpop.f32.mrb[61].mxu1 }
 0x167   : > { %v1822_v55 = vadd.f32 %v5079_v35, %v1821_v37  ;;  %v4334_v11 = vpop.f32.mrb[62].mxu0  ;;  %v2334_v21 = vadd.f32 %v5079_v35, %v2333_v1  ;;  %v4462_v38 = vpop.f32.mrb[62].mxu1 }
 0x168   : > { %v1833_v54 = vadd.f32 %v4334_v11, %v5079_v35  ;;  %v1824_v45 = vpop.f32.mrb[63].mxu0  ;;  %v2336_v25 = vpop.f32.mrb[63].mxu1  ;;  %v2666_v47 = vmax.f32 %v1830_v34, 0.0  ;;  %v2794_v32 = vmax.f32 %v2342_v53, 0.0  ;;  %v2345_v52 = vadd.f32 %v4462_v38, %v5079_v35 }
 0x169   : > { %v2664_v16 = vmax.f32 %v1822_v55, 0.0  ;;  %v2792_v37 = vmax.f32 %v2334_v21, 0.0  ;;  %v5737_v22 = vadd.f32 %v5079_v35, %v1824_v45  ;;  %v5746_v34 = vadd.f32 %v5079_v35, %v2336_v25 }
 0x16a   : > { %v2667_v55 = vmax.f32 %v1833_v54, 0.0  ;;  %v5755_v21 = vsel %vm2860_vm3, %v2791_v58, -inf  ;;  %v5758_v53 = vsel %vm2860_vm3, %v2789_v33, -inf  ;;  %v5761_v23 = vsel %vm2860_vm3, %v2666_v47, -inf }
 0x16b   : > { %6646 = vst [vmem:[#allocation79_spill] sm:$0xff] %v5737_v22  ;;  %6647 = vst [vmem:[#allocation80_spill] sm:$0xff] %v5746_v34  ;;  %v5764_v1 = vsel %vm2860_vm3, %v2664_v16, -inf  ;;  %v5767_v25 = vsel %vm2860_vm3, %v2794_v32, -inf  ;;  %v2795_v41 = vmax.f32 %v2345_v52, 0.0  ;;  %v5770_v9 = vsel %vm2860_vm3, %v2792_v37, -inf }
 0x16c   : > { %6648 = vst [vmem:[#allocation81_spill] sm:$0xff] %v5761_v23  ;;  %6649 = vst [vmem:[#allocation82_spill] sm:$0xff] %v5764_v1  ;;  %v5776_v16 = vsel %vm2860_vm3, %v2667_v55, -inf }
 0x16d   : > { %6650 = vst [vmem:[#allocation83_spill] sm:$0xff] %v5767_v25  ;;  %v4337_v2 = vpop.f32.mrb[64].mxu0  ;;  %v4465_v11 = vpop.f32.mrb[64].mxu1  ;;  %6651 = vst [vmem:[#allocation84_spill] sm:$0xff] %v5770_v9  ;;  %v5786_v34 = vsel %vm2860_vm3, %v2795_v41, -inf }
 0x16e   : > { %v1846_v33 = vadd.f32 %v4337_v2, %v5079_v35  ;;  %v1837_v58 = vpop.f32.mrb[65].mxu0  ;;  %v2358_v54 = vadd.f32 %v4465_v11, %v5079_v35  ;;  %v2349_v45 = vpop.f32.mrb[65].mxu1  ;;  %6652 = vst [vmem:[#allocation85_spill] sm:$0xff] %v5776_v16  ;;  %6653 = vst [vmem:[#allocation86_spill] sm:$0xff] %v5786_v34 }
 0x16f   : > { %v1838_v47 = vadd.f32 %v5079_v35, %v1837_v58  ;;  %v4338_v52 = vpop.f32.mrb[66].mxu0  ;;  %v2350_v25 = vadd.f32 %v5079_v35, %v2349_v45  ;;  %v4466_v37 = vpop.f32.mrb[66].mxu1 }
 0x170   : > { %v2670_v9 = vmax.f32 %v1846_v33, 0.0  ;;  %v2798_v1 = vmax.f32 %v2358_v54, 0.0  ;;  %v1849_v2 = vadd.f32 %v4338_v52, %v5079_v35  ;;  %v1840_v38 = vpop.f32.mrb[67].mxu0  ;;  %v2361_v11 = vadd.f32 %v4466_v37, %v5079_v35  ;;  %v2352_v22 = vpop.f32.mrb[67].mxu1 }
 0x171   : > { %v2668_v23 = vmax.f32 %v1838_v47, 0.0  ;;  %v2796_v55 = vmax.f32 %v2350_v25, 0.0  ;;  %v1841_v32 = vadd.f32 %v5079_v35, %v1840_v38  ;;  %v2353_v58 = vadd.f32 %v5079_v35, %v2352_v22 }
 0x172   : > { %v2876_v33 = vsel %vm2860_vm3, %v2670_v9, -inf  ;;  %v2671_v54 = vmax.f32 %v1849_v2, 0.0  ;;  %v2799_v45 = vmax.f32 %v2361_v11, 0.0  ;;  %v2880_v37 = vsel %vm2860_vm3, %v2798_v1, -inf  ;;  %v5804_v11 = vld [vmem:[%s5066_s26] ss:$0 sm:$0xff] }
 0x173   : > { %v2877_v52 = vmax.f32 %v5132_v0, %v2876_v33  ;;  %v2862_v16 = vsel %vm2860_vm3, %v2668_v23, -inf  ;;  %v2669_v47 = vmax.f32 %v1841_v32, 0.0  ;;  %v2866_v35 = vsel %vm2860_vm3, %v2796_v55, -inf }
 0x174   : > { %v2863_v25 = vmax.f32 %v5145_v19, %v2862_v16  ;;  %v2883_v38 = vsel %vm2860_vm3, %v2671_v54, -inf  ;;  %v2797_v22 = vmax.f32 %v2353_v58, 0.0  ;;  %v2887_v23 = vsel %vm2860_vm3, %v2799_v45, -inf }
 0x175   : > { %v2879_v41 = vmax.f32 %v2877_v52, %v5148_v5  ;;  %v2884_v9 = vmax.f32 %v5155_v6, %v2883_v38  ;;  %v2869_v0 = vsel %vm2860_vm3, %v2669_v47, -inf  ;;  %v4341_v2 = vpop.f32.mrb[68].mxu0  ;;  %v4469_v1 = vpop.f32.mrb[68].mxu1 }
 0x176   : > { %v2865_v32 = vmax.f32 %v2863_v25, %v5158_v10  ;;  %v2870_v19 = vmax.f32 %v5165_v40, %v2869_v0  ;;  %v2873_v16 = vsel %vm2860_vm3, %v2797_v22, -inf  ;;  %v1862_v55 = vadd.f32 %v5804_v11, %v4341_v2  ;;  %v1853_v58 = vpop.f32.mrb[69].mxu0  ;;  %v2365_v5 = vpop.f32.mrb[69].mxu1 }
 0x177   : > { %v2881_v33 = vmax.f32 %v2879_v41, %v2880_v37  ;;  %v2886_v6 = vmax.f32 %v2884_v9, %v5168_v43  ;;  %v1854_v54 = vadd.f32 %v5804_v11, %v1853_v58  ;;  %v2374_v45 = vadd.f32 %v5804_v11, %v4469_v1  ;;  %v4342_v52 = vpop.f32.mrb[70].mxu0  ;;  %v4470_v47 = vpop.f32.mrb[70].mxu1 }
 0x178   : > { %v2867_v10 = vmax.f32 %v2865_v32, %v2866_v35  ;;  %v2872_v40 = vmax.f32 %v2870_v19, %v5171_v44  ;;  %v2674_v25 = vmax.f32 %v1862_v55, 0.0  ;;  %v1865_v37 = vadd.f32 %v5804_v11, %v4342_v52  ;;  %v1856_v43 = vpop.f32.mrb[71].mxu0  ;;  %v2368_v38 = vpop.f32.mrb[71].mxu1 }
 0x179   : > { %v4078_v22 = vpack.c.bf16 %v2881_v33, %v2881_v33  ;;  %v2888_v41 = vmax.f32 %v2886_v6, %v2887_v23  ;;  %v2672_v9 = vmax.f32 %v1854_v54, 0.0  ;;  %v2802_v0 = vmax.f32 %v2374_v45, 0.0 }
 0x17a   : > { %v4076_v2 = vpack.c.bf16 %v2867_v10, %v2867_v10  ;;  %v2874_v1 = vmax.f32 %v2872_v40, %v2873_v16  ;;  %v2904_v58 = vsel %vm2860_vm3, %v2674_v25, -inf  ;;  %v2675_v34 = vmax.f32 %v1865_v37, 0.0 }
 0x17b   : > { %3568 = vst.msk [vmem:[%s5813_s30 + $0x8] sm:$0xf] %vm3565_vm4, %v4078_v22  ;;  %v4079_v35 = vpack.c.bf16 %v2888_v41, %v2888_v41  ;;  %v2905_v44 = vmax.f32 %v5180_v56, %v2904_v58  ;;  %v2890_v32 = vsel %vm2860_vm3, %v2672_v9, -inf  ;;  %v2908_v19 = vsel %vm2860_vm3, %v2802_v0, -inf }
 0x17c   : > { %3566 = vst.msk [vmem:[%s5813_s30] sm:$0xf] %vm3565_vm4, %v4076_v2  ;;  %v4077_v23 = vpack.c.bf16 %v2874_v1, %v2874_v1  ;;  %v2891_v55 = vmax.f32 %v5190_v60, %v2890_v32  ;;  %v2911_v16 = vsel %vm2860_vm3, %v2675_v34, -inf  ;;  %v2366_v33 = vadd.f32 %v5804_v11, %v2365_v5 }
 0x17d   : > { %3569 = vst.msk [vmem:[%s5813_s30 + $0xc] sm:$0xf] %vm3565_vm4, %v4079_v35  ;;  %v2907_v6 = vmax.f32 %v2905_v44, %v5183_v57  ;;  %v2912_v54 = vmax.f32 %v5200_v3, %v2911_v16  ;;  %v1857_v56 = vadd.f32 %v5804_v11, %v1856_v43  ;;  %v2377_v45 = vadd.f32 %v5804_v11, %v4470_v47  ;;  %v4345_v52 = vpop.f32.mrb[72].mxu0  ;;  %v4473_v10 = vpop.f32.mrb[72].mxu1 }
 0x17e   : > { %3567 = vst.msk [vmem:[%s5813_s30 + $0x4] sm:$0xf] %vm3565_vm4, %v4077_v23  ;;  %v2800_v40 = vmax.f32 %v2366_v33, 0.0  ;;  %v2893_v60 = vmax.f32 %v2891_v55, %v5193_v61  ;;  %v2369_v34 = vadd.f32 %v5804_v11, %v2368_v38  ;;  %v1878_v5 = vadd.f32 %v5804_v11, %v4345_v52  ;;  %v1869_v25 = vpop.f32.mrb[73].mxu0  ;;  %v2381_v37 = vpop.f32.mrb[73].mxu1 }
 0x17f   : > { %v2909_v57 = vmax.f32 %v2907_v6, %v2908_v19  ;;  %v2673_v22 = vmax.f32 %v1857_v56, 0.0  ;;  %v2803_v3 = vmax.f32 %v2377_v45, 0.0  ;;  %v2914_v43 = vmax.f32 %v2912_v54, %v5212_v17  ;;  %v4346_v41 = vpop.f32.mrb[74].mxu0  ;;  %v4474_v47 = vpop.f32.mrb[74].mxu1  ;;  %v6654_v19 = vld [vmem:[#allocation2_spill] sm:$0xff]  ;;  %v6655_v6 = vld [vmem:[#allocation4_spill] sm:$0xff] }
 0x180   : > { %v2894_v9 = vsel %vm2860_vm3, %v2800_v40, -inf  ;;  %v2801_v0 = vmax.f32 %v2369_v34, 0.0  ;;  %v2678_v2 = vmax.f32 %v1878_v5, 0.0  ;;  %v1870_v61 = vadd.f32 %v5804_v11, %v1869_v25  ;;  %v1872_v1 = vpop.f32.mrb[75].mxu0  ;;  %v2384_v38 = vpop.f32.mrb[75].mxu1  ;;  %v6656_v40 = vld [vmem:[#allocation3_spill] sm:$0xff] }
 0x181   : > { %v4082_v58 = vpack.c.bf16 %v2909_v57, %v2909_v57  ;;  %v2895_v35 = vmax.f32 %v2893_v60, %v2894_v9  ;;  %v2897_v44 = vsel %vm2860_vm3, %v2673_v22, -inf  ;;  %v2915_v32 = vsel %vm2860_vm3, %v2803_v3, -inf }
 0x182   : > { %v2898_v17 = vmax.f32 %v6654_v19, %v2897_v44  ;;  %v2916_v23 = vmax.f32 %v2914_v43, %v2915_v32  ;;  %v2901_v55 = vsel %vm2860_vm3, %v2801_v0, -inf  ;;  %v2932_v16 = vsel %vm2860_vm3, %v2678_v2, -inf  ;;  %v6657_v0 = vld [vmem:[#allocation5_spill] sm:$0xff] }
 0x183   : > { %3572 = vst.msk [vmem:[%s5813_s30 + $0x18] sm:$0xf] %vm3565_vm4, %v4082_v58  ;;  %v4080_v33 = vpack.c.bf16 %v2895_v35, %v2895_v35  ;;  %v2933_v54 = vmax.f32 %v6655_v6, %v2932_v16  ;;  %v2676_v56 = vmax.f32 %v1870_v61, 0.0  ;;  %v2390_v45 = vadd.f32 %v5804_v11, %v4473_v10 }
 0x184   : > { %v4083_v52 = vpack.c.bf16 %v2916_v23, %v2916_v23  ;;  %v2900_v60 = vmax.f32 %v2898_v17, %v6656_v40  ;;  %v1881_v34 = vadd.f32 %v5804_v11, %v4346_v41  ;;  %v2382_v5 = vadd.f32 %v5804_v11, %v2381_v37 }
 0x185   : > { %3570 = vst.msk [vmem:[%s5813_s30 + $0x10] sm:$0xf] %vm3565_vm4, %v4080_v33  ;;  %v2918_v25 = vsel %vm2860_vm3, %v2676_v56, -inf  ;;  %v2806_v57 = vmax.f32 %v2390_v45, 0.0  ;;  %v2935_v22 = vmax.f32 %v2933_v54, %v5256_v29  ;;  %v1873_v3 = vadd.f32 %v5804_v11, %v1872_v1  ;;  %v4349_v43 = vpop.f32.mrb[76].mxu0  ;;  %v4477_v9 = vpop.f32.mrb[76].mxu1 }
 0x186   : > { %3573 = vst.msk [vmem:[%s5813_s30 + $0x1c] sm:$0xf] %vm3565_vm4, %v4083_v52  ;;  %v2902_v10 = vmax.f32 %v2900_v60, %v2901_v55  ;;  %v2919_v2 = vmax.f32 %v6657_v0, %v2918_v25  ;;  %v2679_v61 = vmax.f32 %v1881_v34, 0.0  ;;  %v2804_v41 = vmax.f32 %v2382_v5, 0.0  ;;  %v1885_v58 = vpop.f32.mrb[77].mxu0  ;;  %v2397_v37 = vpop.f32.mrb[77].mxu1 }
 0x187   : > { %v2936_v35 = vsel %vm2860_vm3, %v2806_v57, -inf  ;;  %v2677_v44 = vmax.f32 %v1873_v3, 0.0  ;;  %v2393_v32 = vadd.f32 %v5804_v11, %v4474_v47  ;;  %v2385_v29 = vadd.f32 %v5804_v11, %v2384_v38  ;;  %v4350_v1 = vpop.f32.mrb[78].mxu0  ;;  %v4478_v19 = vpop.f32.mrb[78].mxu1  ;;  %v6658_v34 = vld [vmem:[#allocation6_spill] sm:$0xff] }
 0x188   : > { %v4081_v17 = vpack.c.bf16 %v2902_v10, %v2902_v10  ;;  %v2937_v23 = vmax.f32 %v2935_v22, %v2936_v35  ;;  %v2939_v55 = vsel %vm2860_vm3, %v2679_v61, -inf  ;;  %v2921_v16 = vmax.f32 %v2919_v2, %v5262_v62  ;;  %v1888_v33 = vpop.f32.mrb[79].mxu0  ;;  %v2400_v6 = vpop.f32.mrb[79].mxu1  ;;  %v6659_v22 = vld [vmem:[#allocation7_spill] sm:$0xff] }
 0x189   : > { %v2940_v54 = vmax.f32 %v5259_v63, %v2939_v55  ;;  %v2922_v56 = vsel %vm2860_vm3, %v2804_v41, -inf  ;;  %v2925_v45 = vsel %vm2860_vm3, %v2677_v44, -inf  ;;  %v2807_v47 = vmax.f32 %v2393_v32, 0.0 }
 0x18a   : > { %3571 = vst.msk [vmem:[%s5813_s30 + $0x14] sm:$0xf] %vm3565_vm4, %v4081_v17  ;;  %v4086_v38 = vpack.c.bf16 %v2937_v23, %v2937_v23  ;;  %v2923_v52 = vmax.f32 %v2921_v16, %v2922_v56  ;;  %v2926_v40 = vmax.f32 %v5265_v30, %v2925_v45  ;;  %v2805_v60 = vmax.f32 %v2385_v29, 0.0 }
 0x18b   : > { %v2942_v62 = vmax.f32 %v2940_v54, %v6658_v34  ;;  %v2943_v5 = vsel %vm2860_vm3, %v2807_v47, -inf  ;;  %v1894_v25 = vadd.f32 %v5804_v11, %v4349_v43  ;;  %v1886_v63 = vadd.f32 %v5804_v11, %v1885_v58  ;;  %v6660_v47 = vld [vmem:[#allocation8_spill] sm:$0xff] }
 0x18c   : > { %3576 = vst.msk [vmem:[%s5813_s30 + $0x28] sm:$0xf] %vm3565_vm4, %v4086_v38  ;;  %v4084_v57 = vpack.c.bf16 %v2923_v52, %v2923_v52  ;;  %v2928_v3 = vmax.f32 %v2926_v40, %v6659_v22  ;;  %v2929_v10 = vsel %vm2860_vm3, %v2805_v60, -inf  ;;  %v2406_v0 = vadd.f32 %v5804_v11, %v4477_v9  ;;  %v6661_v52 = vld [vmem:[#allocation10_spill] sm:$0xff]  ;;  %v6663_v22 = vld [vmem:[#allocation12_spill] sm:$0xff] }
 0x18d   : > { %v2944_v30 = vmax.f32 %v2942_v62, %v2943_v5  ;;  %v2682_v2 = vmax.f32 %v1894_v25, 0.0  ;;  %v2680_v61 = vmax.f32 %v1886_v63, 0.0  ;;  %v1897_v41 = vadd.f32 %v5804_v11, %v4350_v1  ;;  %v4353_v35 = vpop.f32.mrb[80].mxu0  ;;  %v4481_v44 = vpop.f32.mrb[80].mxu1  ;;  %v6662_v63 = vld [vmem:[#allocation9_spill] sm:$0xff] }
 0x18e   : > { %3574 = vst.msk [vmem:[%s5813_s30 + $0x20] sm:$0xf] %vm3565_vm4, %v4084_v57  ;;  %v2930_v43 = vmax.f32 %v2928_v3, %v2929_v10  ;;  %v2810_v58 = vmax.f32 %v2406_v0, 0.0  ;;  %v2398_v32 = vadd.f32 %v5804_v11, %v2397_v37  ;;  %v1889_v29 = vadd.f32 %v5804_v11, %v1888_v33  ;;  %v1901_v17 = vpop.f32.mrb[81].mxu0  ;;  %v2413_v23 = vpop.f32.mrb[81].mxu1  ;;  %v6664_v10 = vld [vmem:[#allocation11_spill] sm:$0xff] }
 0x18f   : > { %v4087_v55 = vpack.c.bf16 %v2944_v30, %v2944_v30  ;;  %v2960_v9 = vsel %vm2860_vm3, %v2682_v2, -inf  ;;  %v2946_v16 = vsel %vm2860_vm3, %v2680_v61, -inf  ;;  %v2683_v1 = vmax.f32 %v1897_v41, 0.0  ;;  %v4354_v54 = vpop.f32.mrb[82].mxu0  ;;  %v5889_v56 = vpop.f32.mrb[82].mxu1 }
 0x190   : > { %v4085_v45 = vpack.c.bf16 %v2930_v43, %v2930_v43  ;;  %v2961_v38 = vmax.f32 %v6660_v47, %v2960_v9  ;;  %v2947_v37 = vmax.f32 %v6661_v52, %v2946_v16  ;;  %v2964_v40 = vsel %vm2860_vm3, %v2810_v58, -inf  ;;  %v1904_v33 = vpop.f32.mrb[83].mxu0  ;;  %v2416_v60 = vpop.f32.mrb[83].mxu1 }
 0x191   : > { %3577 = vst.msk [vmem:[%s5813_s30 + $0x2c] sm:$0xf] %vm3565_vm4, %v4087_v55  ;;  %v2967_v34 = vsel %vm2860_vm3, %v2683_v1, -inf  ;;  %v2808_v62 = vmax.f32 %v2398_v32, 0.0  ;;  %v2681_v5 = vmax.f32 %v1889_v29, 0.0  ;;  %v2409_v25 = vadd.f32 %v5804_v11, %v4478_v19  ;;  %v6665_v29 = vld [vmem:[#allocation13_spill] sm:$0xff] }
 0x192   : > { %3575 = vst.msk [vmem:[%s5813_s30 + $0x24] sm:$0xf] %vm3565_vm4, %v4085_v45  ;;  %v2963_v57 = vmax.f32 %v2961_v38, %v6662_v63  ;;  %v2968_v3 = vmax.f32 %v6663_v22, %v2967_v34  ;;  %v2949_v0 = vmax.f32 %v2947_v37, %v6664_v10  ;;  %v2401_v30 = vadd.f32 %v5804_v11, %v2400_v6  ;;  %v6667_v10 = vld [vmem:[#allocation15_spill] sm:$0xff] }
 0x193   : > { %v2950_v2 = vsel %vm2860_vm3, %v2808_v62, -inf  ;;  %v2953_v61 = vsel %vm2860_vm3, %v2681_v5, -inf  ;;  %v2811_v41 = vmax.f32 %v2409_v25, 0.0  ;;  %v1910_v43 = vadd.f32 %v5804_v11, %v4353_v35  ;;  %v6666_v35 = vld [vmem:[#allocation14_spill] sm:$0xff] }
 0x194   : > { %v2965_v58 = vmax.f32 %v2963_v57, %v2964_v40  ;;  %v2951_v32 = vmax.f32 %v2949_v0, %v2950_v2  ;;  %v2954_v19 = vmax.f32 %v5321_v42, %v2953_v61  ;;  %v2970_v55 = vmax.f32 %v2968_v3, %v6665_v29  ;;  %v6668_v29 = vld [vmem:[#allocation16_spill] sm:$0xff] }
 0x195   : > { %v2971_v9 = vsel %vm2860_vm3, %v2811_v41, -inf  ;;  %v2809_v16 = vmax.f32 %v2401_v30, 0.0  ;;  %v2686_v1 = vmax.f32 %v1910_v43, 0.0  ;;  %v1902_v6 = vadd.f32 %v5804_v11, %v1901_v17  ;;  %v4357_v45 = vpop.f32.mrb[84].mxu0  ;;  %v4485_v47 = vpop.f32.mrb[84].mxu1 }
 0x196   : > { %v4090_v38 = vpack.c.bf16 %v2965_v58, %v2965_v58  ;;  %v4088_v52 = vpack.c.bf16 %v2951_v32, %v2951_v32  ;;  %v2972_v37 = vmax.f32 %v2970_v55, %v2971_v9  ;;  %v2956_v40 = vmax.f32 %v2954_v19, %v6666_v35  ;;  %v1917_v34 = vpop.f32.mrb[85].mxu0  ;;  %v5912_v62 = vpop.f32.mrb[85].mxu1 }
 0x197   : > { %v2957_v42 = vsel %vm2860_vm3, %v2809_v16, -inf  ;;  %v2988_v5 = vsel %vm2860_vm3, %v2686_v1, -inf  ;;  %v2684_v25 = vmax.f32 %v1902_v6, 0.0  ;;  %v2422_v63 = vadd.f32 %v5804_v11, %v4481_v44  ;;  %v4358_v17 = vpop.f32.mrb[86].mxu0  ;;  %v5917_v57 = vpop.f32.mrb[86].mxu1 }
 0x198   : > { %3580 = vst.msk [vmem:[%s5813_s30 + $0x38] sm:$0xf] %vm3565_vm4, %v4090_v38  ;;  %3578 = vst.msk [vmem:[%s5813_s30 + $0x30] sm:$0xf] %vm3565_vm4, %v4088_v52  ;;  %v4091_v22 = vpack.c.bf16 %v2972_v37, %v2972_v37  ;;  %v2958_v3 = vmax.f32 %v2956_v40, %v2957_v42  ;;  %v2989_v0 = vmax.f32 %v6667_v10, %v2988_v5  ;;  %v1920_v2 = vpop.f32.mrb[87].mxu0  ;;  %v5925_v61 = vpop.f32.mrb[87].mxu1 }
 0x199   : > { %v1913_v30 = vadd.f32 %v5804_v11, %v4354_v54  ;;  %v2974_v41 = vsel %vm2860_vm3, %v2684_v25, -inf  ;;  %v2814_v44 = vmax.f32 %v2422_v63, 0.0  ;;  %v2414_v43 = vadd.f32 %v5804_v11, %v2413_v23  ;;  %v6669_v38 = vld [vmem:[#allocation18_spill] sm:$0xff] }
 0x19a   : > { %v1905_v58 = vadd.f32 %v5804_v11, %v1904_v33  ;;  %3581 = vst.msk [vmem:[%s5813_s30 + $0x3c] sm:$0xf] %vm3565_vm4, %v4091_v22  ;;  %v4089_v32 = vpack.c.bf16 %v2958_v3, %v2958_v3  ;;  %v2975_v19 = vmax.f32 %v5353_v26, %v2974_v41  ;;  %v2991_v55 = vmax.f32 %v2989_v0, %v6668_v29  ;;  %v6670_v26 = vld [vmem:[#allocation17_spill] sm:$0xff] }
 0x19b   : > { %v2687_v9 = vmax.f32 %v1913_v30, 0.0  ;;  %v2992_v54 = vsel %vm2860_vm3, %v2814_v44, -inf  ;;  %v2812_v16 = vmax.f32 %v2414_v43, 0.0  ;;  %v2425_v6 = vadd.f32 %v5804_v11, %v5889_v56 }
 0x19c   : > { %v2685_v1 = vmax.f32 %v1905_v58, 0.0  ;;  %3579 = vst.msk [vmem:[%s5813_s30 + $0x34] sm:$0xf] %vm3565_vm4, %v4089_v32  ;;  %v2993_v23 = vmax.f32 %v2991_v55, %v2992_v54  ;;  %v2977_v52 = vmax.f32 %v2975_v19, %v6669_v38  ;;  %v2417_v37 = vadd.f32 %v5804_v11, %v2416_v60  ;;  %v6671_v19 = vld [vmem:[#allocation19_spill] sm:$0xff] }
 0x19d   : > { %v2995_v33 = vsel %vm2860_vm3, %v2687_v9, -inf  ;;  %v2978_v40 = vsel %vm2860_vm3, %v2812_v16, -inf  ;;  %v2815_v5 = vmax.f32 %v2425_v6, 0.0  ;;  %v4361_v25 = vpop.f32.mrb[88].mxu0  ;;  %v5945_v63 = vpop.f32.mrb[88].mxu1  ;;  %v1926_v44 = vadd.f32 %v5804_v11, %v4357_v45 }
 0x19e   : > { %v2996_v35 = vmax.f32 %v6670_v26, %v2995_v33  ;;  %v2981_v42 = vsel %vm2860_vm3, %v2685_v1, -inf  ;;  %v4094_v56 = vpack.c.bf16 %v2993_v23, %v2993_v23  ;;  %v2979_v22 = vmax.f32 %v2977_v52, %v2978_v40  ;;  %v1933_v0 = vpop.f32.mrb[89].mxu0  ;;  %v5948_v30 = vpop.f32.mrb[89].mxu1  ;;  %v6672_v40 = vld [vmem:[#allocation20_spill] sm:$0xff] }
 0x19f   : > { %v2982_v3 = vmax.f32 %v5373_v50, %v2981_v42  ;;  %v2813_v10 = vmax.f32 %v2417_v37, 0.0  ;;  %v2999_v41 = vsel %vm2860_vm3, %v2815_v5, -inf  ;;  %v1918_v43 = vadd.f32 %v5804_v11, %v1917_v34  ;;  %v5954_v58 = vpop.f32.mrb[90].mxu0  ;;  %v5956_v32 = vpop.f32.mrb[90].mxu1 }
 0x1a0   : > { %v2998_v60 = vmax.f32 %v2996_v35, %v5376_v48  ;;  %3584 = vst.msk [vmem:[%s5813_s30 + $0x48] sm:$0xf] %vm3565_vm4, %v4094_v56  ;;  %v4092_v50 = vpack.c.bf16 %v2979_v22, %v2979_v22  ;;  %v2438_v48 = vadd.f32 %v5804_v11, %v4485_v47  ;;  %v5963_v9 = vpop.f32.mrb[91].mxu0  ;;  %v5965_v54 = vpop.f32.mrb[91].mxu1  ;;  %v2690_v16 = vmax.f32 %v1926_v44, 0.0 }
 0x1a1   : > { %v2984_v29 = vmax.f32 %v2982_v3, %v6671_v19  ;;  %v2985_v55 = vsel %vm2860_vm3, %v2813_v10, -inf  ;;  %v2688_v34 = vmax.f32 %v1918_v43, 0.0  ;;  %v1929_v1 = vadd.f32 %v5804_v11, %v4358_v17  ;;  %v6673_v17 = vld [vmem:[#allocation22_spill] sm:$0xff]  ;;  %v6675_v43 = vld [vmem:[#allocation24_spill] sm:$0xff]  ;;  %v6676_v19 = vld [vmem:[#allocation23_spill] sm:$0xff] }
 0x1a2   : > { %v3000_v45 = vmax.f32 %v2998_v60, %v2999_v41  ;;  %3582 = vst.msk [vmem:[%s5813_s30 + $0x40] sm:$0xf] %vm3565_vm4, %v4092_v50  ;;  %v2818_v23 = vmax.f32 %v2438_v48, 0.0  ;;  %v2430_v33 = vadd.f32 %v5804_v11, %v5912_v62  ;;  %v1921_v38 = vadd.f32 %v5804_v11, %v1920_v2  ;;  %v6674_v41 = vld [vmem:[#allocation21_spill] sm:$0xff] }
 0x1a3   : > { %v2986_v6 = vmax.f32 %v2984_v29, %v2985_v55  ;;  %v3016_v52 = vsel %vm2860_vm3, %v2690_v16, -inf  ;;  %v3002_v37 = vsel %vm2860_vm3, %v2688_v34, -inf  ;;  %v2691_v26 = vmax.f32 %v1929_v1, 0.0 }
 0x1a4   : > { %v4095_v47 = vpack.c.bf16 %v3000_v45, %v3000_v45  ;;  %v3017_v42 = vmax.f32 %v6672_v40, %v3016_v52  ;;  %v3003_v5 = vmax.f32 %v6673_v17, %v3002_v37  ;;  %v3020_v56 = vsel %vm2860_vm3, %v2818_v23, -inf }
 0x1a5   : > { %v4093_v35 = vpack.c.bf16 %v2986_v6, %v2986_v6  ;;  %v3023_v62 = vsel %vm2860_vm3, %v2691_v26, -inf  ;;  %v2816_v22 = vmax.f32 %v2430_v33, 0.0  ;;  %v2689_v2 = vmax.f32 %v1921_v38, 0.0  ;;  %v5983_v10 = vpop.f32.mrb[92].mxu0  ;;  %v5985_v60 = vpop.f32.mrb[92].mxu1 }
 0x1a6   : > { %3585 = vst.msk [vmem:[%s5813_s30 + $0x4c] sm:$0xf] %vm3565_vm4, %v4095_v47  ;;  %v2441_v3 = vadd.f32 %v5804_v11, %v5917_v57  ;;  %v3019_v44 = vmax.f32 %v3017_v42, %v6674_v41  ;;  %v3024_v50 = vmax.f32 %v6675_v43, %v3023_v62  ;;  %v3005_v29 = vmax.f32 %v3003_v5, %v6676_v19  ;;  %v5994_v48 = vpop.f32.mrb[93].mxu0  ;;  %v5996_v45 = vpop.f32.mrb[93].mxu1  ;;  %v6677_v47 = vld [vmem:[#allocation25_spill] sm:$0xff]  ;;  %v6680_v19 = vld [vmem:[#allocation28_spill] sm:$0xff] }
 0x1a7   : > { %3583 = vst.msk [vmem:[%s5813_s30 + $0x44] sm:$0xf] %vm3565_vm4, %v4093_v35  ;;  %v2433_v55 = vadd.f32 %v5804_v11, %v5925_v61  ;;  %v3006_v57 = vsel %vm2860_vm3, %v2816_v22, -inf  ;;  %v3009_v16 = vsel %vm2860_vm3, %v2689_v2, -inf  ;;  %v1942_v1 = vadd.f32 %v5804_v11, %v4361_v25  ;;  %v6001_v6 = vpop.f32.mrb[94].mxu0  ;;  %v6003_v23 = vpop.f32.mrb[94].mxu1 }
 0x1a8   : > { %v2819_v34 = vmax.f32 %v2441_v3, 0.0  ;;  %v3021_v33 = vmax.f32 %v3019_v44, %v3020_v56  ;;  %v3007_v38 = vmax.f32 %v3005_v29, %v3006_v57  ;;  %v3010_v52 = vmax.f32 %v6677_v47, %v3009_v16  ;;  %v6678_v61 = vld [vmem:[#allocation26_spill] sm:$0xff]  ;;  %v6007_v26 = vpop.f32.mrb[95].mxu0  ;;  %v6009_v35 = vpop.f32.mrb[95].mxu1  ;;  %v6679_v22 = vld [vmem:[#allocation27_spill] sm:$0xff] }
 0x1a9   : > { %v3026_v37 = vmax.f32 %v3024_v50, %v6678_v61  ;;  %v2817_v42 = vmax.f32 %v2433_v55, 0.0  ;;  %v2694_v25 = vmax.f32 %v1942_v1, 0.0  ;;  %v1934_v17 = vadd.f32 %v5804_v11, %v1933_v0 }
 0x1aa   : > { %v3027_v40 = vsel %vm2860_vm3, %v2819_v34, -inf  ;;  %v4098_v5 = vpack.c.bf16 %v3021_v33, %v3021_v33  ;;  %v4096_v62 = vpack.c.bf16 %v3007_v38, %v3007_v38  ;;  %v3012_v2 = vmax.f32 %v3010_v52, %v6679_v22 }
 0x1ab   : > { %v3028_v56 = vmax.f32 %v3026_v37, %v3027_v40  ;;  %v3013_v3 = vsel %vm2860_vm3, %v2817_v42, -inf  ;;  %v3044_v41 = vsel %vm2860_vm3, %v2694_v25, -inf  ;;  %v2692_v44 = vmax.f32 %v1934_v17, 0.0 }
 0x1ac   : > { %v2454_v43 = vadd.f32 %v5804_v11, %v5945_v63  ;;  %3588 = vst.msk [vmem:[%s5813_s30 + $0x58] sm:$0xf] %vm3565_vm4, %v4098_v5  ;;  %3586 = vst.msk [vmem:[%s5813_s30 + $0x50] sm:$0xf] %vm3565_vm4, %v4096_v62  ;;  %v3014_v0 = vmax.f32 %v3012_v2, %v3013_v3  ;;  %v3045_v29 = vmax.f32 %v6680_v19, %v3044_v41 }
 0x1ad   : > { %v4099_v50 = vpack.c.bf16 %v3028_v56, %v3028_v56  ;;  %v1945_v55 = vadd.f32 %v5804_v11, %v5954_v58  ;;  %v3030_v57 = vsel %vm2860_vm3, %v2692_v44, -inf  ;;  %v2446_v34 = vadd.f32 %v5804_v11, %v5948_v30  ;;  %v6030_v1 = vpop.f32.mrb[96].mxu0  ;;  %v6032_v33 = vpop.f32.mrb[96].mxu1  ;;  %v6681_v58 = vld [vmem:[#allocation29_spill] sm:$0xff] }
 0x1ae   : > { %v2822_v16 = vmax.f32 %v2454_v43, 0.0  ;;  %v1937_v63 = vadd.f32 %v5804_v11, %v5963_v9  ;;  %v4097_v38 = vpack.c.bf16 %v3014_v0, %v3014_v0  ;;  %v3031_v47 = vmax.f32 %v5457_v20, %v3030_v57  ;;  %v6038_v37 = vpop.f32.mrb[97].mxu0  ;;  %v6040_v40 = vpop.f32.mrb[97].mxu1 }
 0x1af   : > { %3589 = vst.msk [vmem:[%s5813_s30 + $0x5c] sm:$0xf] %vm3565_vm4, %v4099_v50  ;;  %v3047_v52 = vmax.f32 %v3045_v29, %v6681_v58  ;;  %v2695_v61 = vmax.f32 %v1945_v55, 0.0  ;;  %v2820_v9 = vmax.f32 %v2446_v34, 0.0  ;;  %v2457_v25 = vadd.f32 %v5804_v11, %v5956_v32  ;;  %v6045_v17 = vpop.f32.mrb[98].mxu0  ;;  %v6047_v5 = vpop.f32.mrb[98].mxu1 }
 0x1b0   : > { %v3048_v30 = vsel %vm2860_vm3, %v2822_v16, -inf  ;;  %v2693_v42 = vmax.f32 %v1937_v63, 0.0  ;;  %3587 = vst.msk [vmem:[%s5813_s30 + $0x54] sm:$0xf] %vm3565_vm4, %v4097_v38  ;;  %v3033_v56 = vmax.f32 %v3031_v47, %v5466_v8  ;;  %v2449_v22 = vadd.f32 %v5804_v11, %v5965_v54  ;;  %v6055_v2 = vpop.f32.mrb[99].mxu0  ;;  %v6057_v3 = vpop.f32.mrb[99].mxu1 }
 0x1b1   : > { %v3049_v20 = vmax.f32 %v3047_v52, %v3048_v30  ;;  %v3051_v62 = vsel %vm2860_vm3, %v2695_v61, -inf  ;;  %v3034_v41 = vsel %vm2860_vm3, %v2820_v9, -inf  ;;  %v2823_v43 = vmax.f32 %v2457_v25, 0.0  ;;  %v6682_v29 = vld [vmem:[#allocation30_spill] sm:$0xff]  ;;  %v6683_v34 = vld [vmem:[#allocation31_spill] sm:$0xff] }
 0x1b2   : > { %v3052_v32 = vmax.f32 %v5463_v7, %v3051_v62  ;;  %v3037_v44 = vsel %vm2860_vm3, %v2693_v42, -inf  ;;  %v3035_v0 = vmax.f32 %v3033_v56, %v3034_v41  ;;  %v2821_v8 = vmax.f32 %v2449_v22, 0.0 }
 0x1b3   : > { %v4102_v50 = vpack.c.bf16 %v3049_v20, %v3049_v20  ;;  %v3038_v19 = vmax.f32 %v5469_v4, %v3037_v44  ;;  %v3055_v54 = vsel %vm2860_vm3, %v2823_v43, -inf  ;;  %v1958_v57 = vadd.f32 %v5804_v11, %v5983_v10  ;;  %v6684_v44 = vld [vmem:[#allocation32_spill] sm:$0xff] }
 0x1b4   : > { %v3054_v55 = vmax.f32 %v3052_v32, %v6682_v29  ;;  %v1950_v7 = vadd.f32 %v5804_v11, %v5994_v48  ;;  %v4100_v16 = vpack.c.bf16 %v3035_v0, %v3035_v0  ;;  %v3041_v38 = vsel %vm2860_vm3, %v2821_v8, -inf }
 0x1b5   : > { %3592 = vst.msk [vmem:[%s5813_s30 + $0x68] sm:$0xf] %vm3565_vm4, %v4102_v50  ;;  %v3040_v63 = vmax.f32 %v3038_v19, %v6683_v34  ;;  %v2470_v4 = vadd.f32 %v5804_v11, %v5985_v60  ;;  %v2698_v58 = vmax.f32 %v1958_v57, 0.0  ;;  %v1961_v61 = vadd.f32 %v5804_v11, %v6001_v6  ;;  %v6077_v10 = vpop.f32.mrb[100].mxu0  ;;  %v6079_v30 = vpop.f32.mrb[100].mxu1  ;;  %v6685_v50 = vld [vmem:[#allocation34_spill] sm:$0xff] }
 0x1b6   : > { %v3056_v47 = vmax.f32 %v3054_v55, %v3055_v54  ;;  %v2696_v52 = vmax.f32 %v1950_v7, 0.0  ;;  %3590 = vst.msk [vmem:[%s5813_s30 + $0x60] sm:$0xf] %vm3565_vm4, %v4100_v16  ;;  %v2462_v42 = vadd.f32 %v5804_v11, %v5996_v45  ;;  %v1953_v60 = vadd.f32 %v5804_v11, %v6007_v26  ;;  %v6087_v25 = vpop.f32.mrb[101].mxu0  ;;  %v6089_v20 = vpop.f32.mrb[101].mxu1  ;;  %v6686_v7 = vld [vmem:[#allocation33_spill] sm:$0xff] }
 0x1b7   : > { %v3042_v48 = vmax.f32 %v3040_v63, %v3041_v38  ;;  %v2826_v9 = vmax.f32 %v2470_v4, 0.0  ;;  %v3072_v62 = vsel %vm2860_vm3, %v2698_v58, -inf  ;;  %v2699_v22 = vmax.f32 %v1961_v61, 0.0  ;;  %v6093_v32 = vpop.f32.mrb[102].mxu0  ;;  %v6095_v41 = vpop.f32.mrb[102].mxu1  ;;  %v6687_v34 = vld [vmem:[#allocation36_spill] sm:$0xff] }
 0x1b8   : > { %v4103_v6 = vpack.c.bf16 %v3056_v47, %v3056_v47  ;;  %v3058_v56 = vsel %vm2860_vm3, %v2696_v52, -inf  ;;  %v3073_v43 = vmax.f32 %v6684_v44, %v3072_v62  ;;  %v6100_v19 = vpop.f32.mrb[103].mxu0  ;;  %v6102_v8 = vpop.f32.mrb[103].mxu1  ;;  %v2824_v55 = vmax.f32 %v2462_v42, 0.0  ;;  %v6688_v38 = vld [vmem:[#allocation35_spill] sm:$0xff]  ;;  %v6689_v42 = vld [vmem:[#allocation37_spill] sm:$0xff] }
 0x1b9   : > { %v4101_v45 = vpack.c.bf16 %v3042_v48, %v3042_v48  ;;  %v3059_v26 = vmax.f32 %v6685_v50, %v3058_v56  ;;  %v3076_v0 = vsel %vm2860_vm3, %v2826_v9, -inf  ;;  %v3079_v29 = vsel %vm2860_vm3, %v2699_v22, -inf }
 0x1ba   : > { %3593 = vst.msk [vmem:[%s5813_s30 + $0x6c] sm:$0xf] %vm3565_vm4, %v4103_v6  ;;  %v2697_v54 = vmax.f32 %v1953_v60, 0.0  ;;  %v2473_v57 = vadd.f32 %v5804_v11, %v6003_v23  ;;  %v3075_v16 = vmax.f32 %v3073_v43, %v6686_v7  ;;  %v3080_v63 = vmax.f32 %v6687_v34, %v3079_v29  ;;  %v6690_v6 = vld [vmem:[#allocation38_spill] sm:$0xff] }
 0x1bb   : > { %3591 = vst.msk [vmem:[%s5813_s30 + $0x64] sm:$0xf] %vm3565_vm4, %v4101_v45  ;;  %v3061_v4 = vmax.f32 %v3059_v26, %v6688_v38  ;;  %v2465_v47 = vadd.f32 %v5804_v11, %v6009_v35  ;;  %v3062_v58 = vsel %vm2860_vm3, %v2824_v55, -inf  ;;  %v1974_v48 = vadd.f32 %v5804_v11, %v6030_v1 }
 0x1bc   : > { %v3065_v52 = vsel %vm2860_vm3, %v2697_v54, -inf  ;;  %v2827_v61 = vmax.f32 %v2473_v57, 0.0  ;;  %v3077_v23 = vmax.f32 %v3075_v16, %v3076_v0  ;;  %v3082_v62 = vmax.f32 %v3080_v63, %v6690_v6  ;;  %v6691_v0 = vld [vmem:[#allocation39_spill] sm:$0xff]  ;;  %v6693_v6 = vld [vmem:[#allocation41_spill] sm:$0xff] }
 0x1bd   : > { %v3063_v9 = vmax.f32 %v3061_v4, %v3062_v58  ;;  %v3066_v60 = vmax.f32 %v6689_v42, %v3065_v52  ;;  %v2825_v22 = vmax.f32 %v2465_v47, 0.0  ;;  %v2702_v45 = vmax.f32 %v1974_v48, 0.0  ;;  %v6125_v44 = vpop.f32.mrb[104].mxu0  ;;  %v6127_v43 = vpop.f32.mrb[104].mxu1  ;;  %v6692_v47 = vld [vmem:[#allocation40_spill] sm:$0xff] }
 0x1be   : > { %v3083_v56 = vsel %vm2860_vm3, %v2827_v61, -inf  ;;  %v1966_v35 = vadd.f32 %v5804_v11, %v6038_v37  ;;  %v4106_v1 = vpack.c.bf16 %v3077_v23, %v3077_v23  ;;  %v6130_v55 = vpop.f32.mrb[105].mxu0  ;;  %v6132_v54 = vpop.f32.mrb[105].mxu1  ;;  %v2486_v37 = vadd.f32 %v5804_v11, %v6032_v33 }
 0x1bf   : > { %v4104_v50 = vpack.c.bf16 %v3063_v9, %v3063_v9  ;;  %v3084_v26 = vmax.f32 %v3082_v62, %v3083_v56  ;;  %v3068_v29 = vmax.f32 %v3066_v60, %v6691_v0  ;;  %v3069_v57 = vsel %vm2860_vm3, %v2825_v22, -inf  ;;  %v6138_v34 = vpop.f32.mrb[106].mxu0  ;;  %v6140_v63 = vpop.f32.mrb[106].mxu1 }
 0x1c0   : > { %v3100_v7 = vsel %vm2860_vm3, %v2702_v45, -inf  ;;  %v2700_v16 = vmax.f32 %v1966_v35, 0.0  ;;  %3596 = vst.msk [vmem:[%s5813_s30 + $0x78] sm:$0xf] %vm3565_vm4, %v4106_v1  ;;  %v1977_v52 = vadd.f32 %v5804_v11, %v6045_v17  ;;  %v6149_v61 = vpop.f32.mrb[107].mxu0  ;;  %v6151_v48 = vpop.f32.mrb[107].mxu1  ;;  %v2478_v9 = vadd.f32 %v5804_v11, %v6040_v40 }
 0x1c1   : > { %3594 = vst.msk [vmem:[%s5813_s30 + $0x70] sm:$0xf] %vm3565_vm4, %v4104_v50  ;;  %v4107_v38 = vpack.c.bf16 %v3084_v26, %v3084_v26  ;;  %v3070_v4 = vmax.f32 %v3068_v29, %v3069_v57  ;;  %v3101_v58 = vmax.f32 %v6692_v47, %v3100_v7  ;;  %v2830_v23 = vmax.f32 %v2486_v37, 0.0  ;;  %v6694_v17 = vld [vmem:[#allocation42_spill] sm:$0xff]  ;;  %v6695_v29 = vld [vmem:[#allocation43_spill] sm:$0xff] }
 0x1c2   : > { %v3086_v33 = vsel %vm2860_vm3, %v2700_v16, -inf  ;;  %v1969_v42 = vadd.f32 %v5804_v11, %v6055_v2  ;;  %v2703_v22 = vmax.f32 %v1977_v52, 0.0  ;;  %v2828_v35 = vmax.f32 %v2478_v9, 0.0 }
 0x1c3   : > { %3597 = vst.msk [vmem:[%s5813_s30 + $0x7c] sm:$0xf] %vm3565_vm4, %v4107_v38  ;;  %v4105_v60 = vpack.c.bf16 %v3070_v4, %v3070_v4  ;;  %v3087_v62 = vmax.f32 %v6693_v6, %v3086_v33  ;;  %v3103_v56 = vmax.f32 %v3101_v58, %v6694_v17  ;;  %v3104_v45 = vsel %vm2860_vm3, %v2830_v23, -inf }
 0x1c4   : > { %v2701_v1 = vmax.f32 %v1969_v42, 0.0  ;;  %v2489_v50 = vadd.f32 %v5804_v11, %v6047_v5  ;;  %v3107_v2 = vsel %vm2860_vm3, %v2703_v22, -inf  ;;  %v2481_v0 = vadd.f32 %v5804_v11, %v6057_v3 }
 0x1c5   : > { %3595 = vst.msk [vmem:[%s5813_s30 + $0x74] sm:$0xf] %vm3565_vm4, %v4105_v60  ;;  %v3105_v40 = vmax.f32 %v3103_v56, %v3104_v45  ;;  %v3089_v26 = vmax.f32 %v3087_v62, %v5550_v12  ;;  %v3108_v57 = vmax.f32 %v6695_v29, %v3107_v2  ;;  %v3090_v7 = vsel %vm2860_vm3, %v2828_v35, -inf  ;;  %v6174_v38 = vpop.f32.mrb[108].mxu0  ;;  %v6176_v5 = vpop.f32.mrb[108].mxu1  ;;  %v6696_v62 = vld [vmem:[#allocation44_spill] sm:$0xff] }
 0x1c6   : > { %v3093_v16 = vsel %vm2860_vm3, %v2701_v1, -inf  ;;  %v2831_v37 = vmax.f32 %v2489_v50, 0.0  ;;  %v2829_v12 = vmax.f32 %v2481_v0, 0.0  ;;  %v6179_v52 = vpop.f32.mrb[109].mxu0  ;;  %v6181_v3 = vpop.f32.mrb[109].mxu1  ;;  %v1990_v9 = vadd.f32 %v5804_v11, %v6077_v10 }
 0x1c7   : > { %v4110_v4 = vpack.c.bf16 %v3105_v40, %v3105_v40  ;;  %v3091_v47 = vmax.f32 %v3089_v26, %v3090_v7  ;;  %v3094_v58 = vmax.f32 %v5553_v27, %v3093_v16  ;;  %v3110_v33 = vmax.f32 %v3108_v57, %v5556_v39  ;;  %v6189_v60 = vpop.f32.mrb[110].mxu0  ;;  %v6191_v6 = vpop.f32.mrb[110].mxu1  ;;  %v6697_v16 = vld [vmem:[#allocation45_spill] sm:$0xff] }
 0x1c8   : > { %v3111_v23 = vsel %vm2860_vm3, %v2831_v37, -inf  ;;  %v1982_v42 = vadd.f32 %v5804_v11, %v6087_v25  ;;  %v3097_v39 = vsel %vm2860_vm3, %v2829_v12, -inf  ;;  %v2502_v56 = vadd.f32 %v5804_v11, %v6079_v30  ;;  %v6199_v22 = vpop.f32.mrb[111].mxu0  ;;  %v6201_v10 = vpop.f32.mrb[111].mxu1  ;;  %v6698_v37 = vld [vmem:[#allocation47_spill] sm:$0xff] }
 0x1c9   : > { %3600 = vst.msk [vmem:[%s5813_s30 + $0x88] sm:$0xf] %vm3565_vm4, %v4110_v4  ;;  %v4108_v27 = vpack.c.bf16 %v3091_v47, %v3091_v47  ;;  %v3096_v17 = vmax.f32 %v3094_v58, %v6696_v62  ;;  %v3112_v45 = vmax.f32 %v3110_v33, %v3111_v23  ;;  %v2706_v25 = vmax.f32 %v1990_v9, 0.0  ;;  %v6699_v9 = vld [vmem:[#allocation46_spill] sm:$0xff] }
 0x1ca   : > { %v2704_v35 = vmax.f32 %v1982_v42, 0.0  ;;  %v1993_v1 = vadd.f32 %v5804_v11, %v6093_v32  ;;  %v2834_v40 = vmax.f32 %v2502_v56, 0.0  ;;  %v2494_v2 = vadd.f32 %v5804_v11, %v6089_v20 }
 0x1cb   : > { %3598 = vst.msk [vmem:[%s5813_s30 + $0x80] sm:$0xf] %vm3565_vm4, %v4108_v27  ;;  %v3098_v50 = vmax.f32 %v3096_v17, %v3097_v39  ;;  %v1985_v30 = vadd.f32 %v5804_v11, %v6100_v19  ;;  %v4111_v26 = vpack.c.bf16 %v3112_v45, %v3112_v45  ;;  %v3128_v0 = vsel %vm2860_vm3, %v2706_v25, -inf  ;;  %v6700_v27 = vld [vmem:[#allocation49_spill] sm:$0xff]  ;;  %v6701_v17 = vld [vmem:[#allocation48_spill] sm:$0xff] }
 0x1cc   : > { %v3114_v29 = vsel %vm2860_vm3, %v2704_v35, -inf  ;;  %v2707_v57 = vmax.f32 %v1993_v1, 0.0  ;;  %v3129_v32 = vmax.f32 %v6697_v16, %v3128_v0  ;;  %v3132_v47 = vsel %vm2860_vm3, %v2834_v40, -inf  ;;  %v6702_v0 = vld [vmem:[#allocation50_spill] sm:$0xff] }
 0x1cd   : > { %v4109_v7 = vpack.c.bf16 %v3098_v50, %v3098_v50  ;;  %v3115_v4 = vmax.f32 %v6698_v37, %v3114_v29  ;;  %3601 = vst.msk [vmem:[%s5813_s30 + $0x8c] sm:$0xf] %vm3565_vm4, %v4111_v26  ;;  %v2832_v58 = vmax.f32 %v2494_v2, 0.0  ;;  %v2705_v19 = vmax.f32 %v1985_v30, 0.0  ;;  %v6221_v33 = vpop.f32.mrb[112].mxu0  ;;  %v6223_v23 = vpop.f32.mrb[112].mxu1 }
 0x1ce   : > { %v3135_v20 = vsel %vm2860_vm3, %v2707_v57, -inf  ;;  %v2505_v12 = vadd.f32 %v5804_v11, %v6095_v41  ;;  %v3131_v42 = vmax.f32 %v3129_v32, %v6699_v9  ;;  %v2497_v56 = vadd.f32 %v5804_v11, %v6102_v8  ;;  %v6232_v45 = vpop.f32.mrb[113].mxu0  ;;  %v6234_v25 = vpop.f32.mrb[113].mxu1  ;;  %v6703_v29 = vld [vmem:[#allocation51_spill] sm:$0xff] }
 0x1cf   : > { %3599 = vst.msk [vmem:[%s5813_s30 + $0x84] sm:$0xf] %vm3565_vm4, %v4109_v7  ;;  %v3136_v62 = vmax.f32 %v6700_v27, %v3135_v20  ;;  %v3117_v39 = vmax.f32 %v3115_v4, %v6701_v17  ;;  %v3118_v41 = vsel %vm2860_vm3, %v2832_v58, -inf  ;;  %v3121_v35 = vsel %vm2860_vm3, %v2705_v19, -inf  ;;  %v6240_v40 = vpop.f32.mrb[114].mxu0  ;;  %v6242_v2 = vpop.f32.mrb[114].mxu1 }
 0x1d0   : > { %v2835_v1 = vmax.f32 %v2505_v12, 0.0  ;;  %v2006_v50 = vadd.f32 %v5804_v11, %v6125_v44  ;;  %v3133_v30 = vmax.f32 %v3131_v42, %v3132_v47  ;;  %v3122_v8 = vmax.f32 %v6702_v0, %v3121_v35  ;;  %v6246_v7 = vpop.f32.mrb[115].mxu0  ;;  %v6248_v16 = vpop.f32.mrb[115].mxu1  ;;  %v6704_v19 = vld [vmem:[#allocation52_spill] sm:$0xff] }
 0x1d1   : > { %v3119_v26 = vmax.f32 %v3117_v39, %v3118_v41  ;;  %v3138_v57 = vmax.f32 %v3136_v62, %v6703_v29  ;;  %v2833_v37 = vmax.f32 %v2497_v56, 0.0  ;;  %v1998_v4 = vadd.f32 %v5804_v11, %v6130_v55 }
 0x1d2   : > { %v3139_v32 = vsel %vm2860_vm3, %v2835_v1, -inf  ;;  %v2710_v44 = vmax.f32 %v2006_v50, 0.0  ;;  %v4114_v20 = vpack.c.bf16 %v3133_v30, %v3133_v30  ;;  %v3124_v12 = vmax.f32 %v3122_v8, %v6704_v19  ;;  %v6267_v1 = vld [vmem:[%s5066_s26] ss:$0 sm:$0xff] }
 0x1d3   : > { %v4112_v47 = vpack.c.bf16 %v3119_v26, %v3119_v26  ;;  %v3140_v58 = vmax.f32 %v3138_v57, %v3139_v32  ;;  %v3125_v9 = vsel %vm2860_vm3, %v2833_v37, -inf  ;;  %v2708_v27 = vmax.f32 %v1998_v4, 0.0 }
 0x1d4   : > { %v3156_v42 = vsel %vm2860_vm3, %v2710_v44, -inf  ;;  %v2518_v62 = vadd.f32 %v5804_v11, %v6127_v43  ;;  %3604 = vst.msk [vmem:[%s5813_s30 + $0x98] sm:$0xf] %vm3565_vm4, %v4114_v20  ;;  %v3126_v17 = vmax.f32 %v3124_v12, %v3125_v9  ;;  %v2009_v56 = vadd.f32 %v5804_v11, %v6138_v34  ;;  %v6705_v34 = vld [vmem:[#allocation53_spill] sm:$0xff] }
 0x1d5   : > { %3602 = vst.msk [vmem:[%s5813_s30 + $0x90] sm:$0xf] %vm3565_vm4, %v4112_v47  ;;  %v4115_v55 = vpack.c.bf16 %v3140_v58, %v3140_v58  ;;  %v3157_v39 = vmax.f32 %v5602_v18, %v3156_v42  ;;  %v3142_v41 = vsel %vm2860_vm3, %v2708_v27, -inf  ;;  %v2510_v50 = vadd.f32 %v6267_v1, %v6132_v54  ;;  %v6273_v30 = vpop.f32.mrb[116].mxu0  ;;  %v6275_v26 = vpop.f32.mrb[116].mxu1 }
 0x1d6   : > { %v2838_v35 = vmax.f32 %v2518_v62, 0.0  ;;  %v2001_v43 = vadd.f32 %v6267_v1, %v6149_v61  ;;  %v4113_v18 = vpack.c.bf16 %v3126_v17, %v3126_v17  ;;  %v3143_v11 = vmax.f32 %v5608_v13, %v3142_v41  ;;  %v6281_v29 = vpop.f32.mrb[117].mxu0  ;;  %v6283_v57 = vpop.f32.mrb[117].mxu1  ;;  %v6708_v41 = vld [vmem:[#allocation56_spill] sm:$0xff] }
 0x1d7   : > { %3605 = vst.msk [vmem:[%s5813_s30 + $0x9c] sm:$0xf] %vm3565_vm4, %v4115_v55  ;;  %v3159_v0 = vmax.f32 %v3157_v39, %v6705_v34  ;;  %v2711_v8 = vmax.f32 %v2009_v56, 0.0  ;;  %v2836_v61 = vmax.f32 %v2510_v50, 0.0  ;;  %v2521_v37 = vadd.f32 %v6267_v1, %v6140_v63  ;;  %v6288_v44 = vpop.f32.mrb[118].mxu0  ;;  %v6290_v4 = vpop.f32.mrb[118].mxu1 }
 0x1d8   : > { %v3160_v54 = vsel %vm2860_vm3, %v2838_v35, -inf  ;;  %v2709_v32 = vmax.f32 %v2001_v43, 0.0  ;;  %3603 = vst.msk [vmem:[%s5813_s30 + $0x94] sm:$0xf] %vm3565_vm4, %v4113_v18  ;;  %v3145_v47 = vmax.f32 %v3143_v11, %v5617_v36  ;;  %v2513_v58 = vadd.f32 %v6267_v1, %v6151_v48  ;;  %v6298_v19 = vpop.f32.mrb[119].mxu0  ;;  %v6300_v12 = vpop.f32.mrb[119].mxu1 }
 0x1d9   : > { %v3161_v13 = vmax.f32 %v3159_v0, %v3160_v54  ;;  %v3163_v20 = vsel %vm2860_vm3, %v2711_v8, -inf  ;;  %v6706_v63 = vld [vmem:[#allocation54_spill] sm:$0xff]  ;;  %v3146_v42 = vsel %vm2860_vm3, %v2836_v61, -inf  ;;  %v2839_v62 = vmax.f32 %v2521_v37, 0.0  ;;  %v6707_v39 = vld [vmem:[#allocation55_spill] sm:$0xff]  ;;  %v6709_v11 = vld [vmem:[#allocation57_spill] sm:$0xff] }
 0x1da   : > { %v3164_v9 = vmax.f32 %v6706_v63, %v3163_v20  ;;  %v3149_v27 = vsel %vm2860_vm3, %v2709_v32, -inf  ;;  %v3147_v17 = vmax.f32 %v3145_v47, %v3146_v42  ;;  %v2837_v36 = vmax.f32 %v2513_v58, 0.0 }
 0x1db   : > { %v4118_v55 = vpack.c.bf16 %v3161_v13, %v3161_v13  ;;  %v3150_v56 = vmax.f32 %v6707_v39, %v3149_v27  ;;  %v3167_v48 = vsel %vm2860_vm3, %v2839_v62, -inf  ;;  %v2022_v50 = vadd.f32 %v6267_v1, %v6174_v38 }
 0x1dc   : > { %v3166_v35 = vmax.f32 %v3164_v9, %v6708_v41  ;;  %v2014_v43 = vadd.f32 %v6267_v1, %v6179_v52  ;;  %v4116_v18 = vpack.c.bf16 %v3147_v17, %v3147_v17  ;;  %v3153_v0 = vsel %vm2860_vm3, %v2837_v36, -inf  ;;  %v6710_v17 = vld [vmem:[#allocation58_spill] sm:$0xff] }
 0x1dd   : > { %3608 = vst.msk [vmem:[%s5813_s30 + $0xa8] sm:$0xf] %vm3565_vm4, %v4118_v55  ;;  %v3152_v34 = vmax.f32 %v3150_v56, %v6709_v11  ;;  %v2534_v8 = vadd.f32 %v6267_v1, %v6176_v5  ;;  %v2714_v61 = vmax.f32 %v2022_v50, 0.0  ;;  %v2025_v37 = vadd.f32 %v6267_v1, %v6189_v60  ;;  %v6320_v38 = vpop.f32.mrb[120].mxu0  ;;  %v6322_v13 = vpop.f32.mrb[120].mxu1  ;;  %v6711_v56 = vld [vmem:[#allocation60_spill] sm:$0xff] }
 0x1de   : > { %v3168_v54 = vmax.f32 %v3166_v35, %v3167_v48  ;;  %v2712_v32 = vmax.f32 %v2014_v43, 0.0  ;;  %3606 = vst.msk [vmem:[%s5813_s30 + $0xa0] sm:$0xf] %vm3565_vm4, %v4116_v18  ;;  %v2526_v47 = vadd.f32 %v6267_v1, %v6181_v3  ;;  %v2017_v5 = vadd.f32 %v6267_v1, %v6199_v22  ;;  %v6330_v58 = vpop.f32.mrb[121].mxu0  ;;  %v6332_v63 = vpop.f32.mrb[121].mxu1  ;;  %v6712_v11 = vld [vmem:[#allocation59_spill] sm:$0xff] }
 0x1df   : > { %v3154_v52 = vmax.f32 %v3152_v34, %v3153_v0  ;;  %v2842_v20 = vmax.f32 %v2534_v8, 0.0  ;;  %v3184_v9 = vsel %vm2860_vm3, %v2714_v61, -inf  ;;  %v2715_v27 = vmax.f32 %v2025_v37, 0.0  ;;  %v6336_v62 = vpop.f32.mrb[122].mxu0  ;;  %v6338_v55 = vpop.f32.mrb[122].mxu1  ;;  %v6713_v0 = vld [vmem:[#allocation62_spill] sm:$0xff] }
 0x1e0   : > { %v4119_v60 = vpack.c.bf16 %v3168_v54, %v3168_v54  ;;  %v3170_v42 = vsel %vm2860_vm3, %v2712_v32, -inf  ;;  %v3185_v39 = vmax.f32 %v6710_v17, %v3184_v9  ;;  %v6343_v41 = vpop.f32.mrb[123].mxu0  ;;  %v6345_v35 = vpop.f32.mrb[123].mxu1  ;;  %v2840_v50 = vmax.f32 %v2526_v47, 0.0  ;;  %v6714_v54 = vld [vmem:[#allocation61_spill] sm:$0xff] }
 0x1e1   : > { %v4117_v3 = vpack.c.bf16 %v3154_v52, %v3154_v52  ;;  %v3171_v22 = vmax.f32 %v6711_v56, %v3170_v42  ;;  %v3188_v36 = vsel %vm2860_vm3, %v2842_v20, -inf  ;;  %v3191_v48 = vsel %vm2860_vm3, %v2715_v27, -inf  ;;  %v6716_v42 = vld [vmem:[#allocation64_spill] sm:$0xff] }
 0x1e2   : > { %3609 = vst.msk [vmem:[%s5813_s30 + $0xac] sm:$0xf] %vm3565_vm4, %v4119_v60  ;;  %v2713_v43 = vmax.f32 %v2017_v5, 0.0  ;;  %v2537_v18 = vadd.f32 %v6267_v1, %v6191_v6  ;;  %v3187_v34 = vmax.f32 %v3185_v39, %v6712_v11  ;;  %v3192_v8 = vmax.f32 %v6713_v0, %v3191_v48  ;;  %v6715_v60 = vld [vmem:[#allocation63_spill] sm:$0xff] }
 0x1e3   : > { %3607 = vst.msk [vmem:[%s5813_s30 + $0xa4] sm:$0xf] %vm3565_vm4, %v4117_v3  ;;  %v3173_v61 = vmax.f32 %v3171_v22, %v6714_v54  ;;  %v2529_v32 = vadd.f32 %v6267_v1, %v6201_v10  ;;  %v3174_v37 = vsel %vm2860_vm3, %v2840_v50, -inf  ;;  %v2038_v47 = vadd.f32 %v6267_v1, %v6221_v33 }
 0x1e4   : > { %v3177_v52 = vsel %vm2860_vm3, %v2713_v43, -inf  ;;  %v2843_v20 = vmax.f32 %v2537_v18, 0.0  ;;  %v3189_v6 = vmax.f32 %v3187_v34, %v3188_v36  ;;  %v3194_v27 = vmax.f32 %v3192_v8, %v6716_v42 }
 0x1e5   : > { %v3175_v5 = vmax.f32 %v3173_v61, %v3174_v37  ;;  %v3178_v9 = vmax.f32 %v6715_v60, %v3177_v52  ;;  %v2841_v17 = vmax.f32 %v2529_v32, 0.0  ;;  %v2718_v39 = vmax.f32 %v2038_v47, 0.0  ;;  %v6368_v56 = vpop.f32.mrb[124].mxu0  ;;  %v6370_v22 = vpop.f32.mrb[124].mxu1  ;;  %v6717_v60 = vld [vmem:[#allocation65_spill] sm:$0xff] }
 0x1e6   : > { %v3195_v3 = vsel %vm2860_vm3, %v2843_v20, -inf  ;;  %v2030_v10 = vadd.f32 %v6267_v1, %v6232_v45  ;;  %v4122_v33 = vpack.c.bf16 %v3189_v6, %v3189_v6  ;;  %v6373_v43 = vpop.f32.mrb[125].mxu0  ;;  %v6375_v18 = vpop.f32.mrb[125].mxu1  ;;  %v2550_v45 = vadd.f32 %v6267_v1, %v6223_v23 }
 0x1e7   : > { %v4120_v36 = vpack.c.bf16 %v3175_v5, %v3175_v5  ;;  %v3196_v48 = vmax.f32 %v3194_v27, %v3195_v3  ;;  %v3180_v50 = vmax.f32 %v3178_v9, %v5658_v59  ;;  %v3181_v11 = vsel %vm2860_vm3, %v2841_v17, -inf  ;;  %v6381_v8 = vpop.f32.mrb[126].mxu0  ;;  %v6383_v54 = vpop.f32.mrb[126].mxu1 }
 0x1e8   : > { %v3212_v34 = vsel %vm2860_vm3, %v2718_v39, -inf  ;;  %v2716_v0 = vmax.f32 %v2030_v10, 0.0  ;;  %3612 = vst.msk [vmem:[%s5813_s30 + $0xb8] sm:$0xf] %vm3565_vm4, %v4122_v33  ;;  %v2041_v37 = vadd.f32 %v6267_v1, %v6240_v40  ;;  %v6392_v52 = vpop.f32.mrb[127].mxu0  ;;  %v6394_v20 = vpop.f32.mrb[127].mxu1  ;;  %v2542_v6 = vadd.f32 %v6267_v1, %v6234_v25 }
 0x1e9   : > { %3610 = vst.msk [vmem:[%s5813_s30 + $0xb0] sm:$0xf] %vm3565_vm4, %v4120_v36  ;;  %v4123_v59 = vpack.c.bf16 %v3196_v48, %v3196_v48  ;;  %v3182_v61 = vmax.f32 %v3180_v50, %v3181_v11  ;;  %v3213_v32 = vmax.f32 %v5666_v49, %v3212_v34  ;;  %v2846_v47 = vmax.f32 %v2550_v45, 0.0  ;;  %v6718_v40 = vld [vmem:[#allocation66_spill] sm:$0xff]  ;;  %v6719_v48 = vld [vmem:[#allocation67_spill] sm:$0xff] }
 0x1ea   : > { %v3198_v23 = vsel %vm2860_vm3, %v2716_v0, -inf  ;;  %v2033_v5 = vadd.f32 %v6267_v1, %v6246_v7  ;;  %v2719_v27 = vmax.f32 %v2041_v37, 0.0  ;;  %v2844_v17 = vmax.f32 %v2542_v6, 0.0  ;;  %v6721_v37 = vld [vmem:[#allocation69_spill] sm:$0xff] }
 0x1eb   : > { %3613 = vst.msk [vmem:[%s5813_s30 + $0xbc] sm:$0xf] %vm3565_vm4, %v4123_v59  ;;  %v4121_v49 = vpack.c.bf16 %v3182_v61, %v3182_v61  ;;  %v3199_v9 = vmax.f32 %v6717_v60, %v3198_v23  ;;  %v3215_v42 = vmax.f32 %v3213_v32, %v6718_v40  ;;  %v3216_v3 = vsel %vm2860_vm3, %v2846_v47, -inf  ;;  %v6720_v59 = vld [vmem:[#allocation68_spill] sm:$0xff] }
 0x1ec   : > { %v2717_v39 = vmax.f32 %v2033_v5, 0.0  ;;  %v2553_v10 = vadd.f32 %v6267_v1, %v6242_v2  ;;  %v3219_v7 = vsel %vm2860_vm3, %v2719_v27, -inf  ;;  %v2545_v36 = vadd.f32 %v6267_v1, %v6248_v16  ;;  %v6722_v5 = vld [vmem:[#allocation70_spill] sm:$0xff] }
 0x1ed   : > { %3611 = vst.msk [vmem:[%s5813_s30 + $0xb4] sm:$0xf] %vm3565_vm4, %v4121_v49  ;;  %v3217_v25 = vmax.f32 %v3215_v42, %v3216_v3  ;;  %v3201_v33 = vmax.f32 %v3199_v9, %v5681_v46  ;;  %v3220_v50 = vmax.f32 %v6719_v48, %v3219_v7  ;;  %v3202_v11 = vsel %vm2860_vm3, %v2844_v17, -inf  ;;  %v6724_v48 = vld [vmem:[#allocation73_spill] sm:$0xff] }
 0x1ee   : > { %v3205_v34 = vsel %vm2860_vm3, %v2717_v39, -inf  ;;  %v2847_v0 = vmax.f32 %v2553_v10, 0.0  ;;  %v2845_v32 = vmax.f32 %v2545_v36, 0.0  ;;  %v2054_v16 = vadd.f32 %v6267_v1, %v6273_v30  ;;  %v6723_v36 = vld [vmem:[#allocation71_spill] sm:$0xff] }
 0x1ef   : > { %v4126_v45 = vpack.c.bf16 %v3217_v25, %v3217_v25  ;;  %v3203_v2 = vmax.f32 %v3201_v33, %v3202_v11  ;;  %v3206_v61 = vmax.f32 %v6720_v59, %v3205_v34  ;;  %v3222_v23 = vmax.f32 %v3220_v50, %v6721_v37  ;;  %v6726_v59 = vld [vmem:[#allocation75_spill] sm:$0xff] }
 0x1f0   : > { %v3223_v46 = vsel %vm2860_vm3, %v2847_v0, -inf  ;;  %v2046_v47 = vadd.f32 %v6267_v1, %v6281_v29  ;;  %v3209_v60 = vsel %vm2860_vm3, %v2845_v32, -inf  ;;  %v2566_v9 = vadd.f32 %v6267_v1, %v6275_v26  ;;  %v6727_v32 = vld [vmem:[#allocation74_spill] sm:$0xff] }
 0x1f1   : > { %3616 = vst.msk [vmem:[%s5813_s30 + $0xc8] sm:$0xf] %vm3565_vm4, %v4126_v45  ;;  %v4124_v6 = vpack.c.bf16 %v3203_v2, %v3203_v2  ;;  %v3208_v49 = vmax.f32 %v3206_v61, %v6722_v5  ;;  %v3224_v40 = vmax.f32 %v3222_v23, %v3223_v46  ;;  %v2722_v42 = vmax.f32 %v2054_v16, 0.0  ;;  %v6725_v45 = vld [vmem:[#allocation72_spill] sm:$0xff] }
 0x1f2   : > { %v2720_v27 = vmax.f32 %v2046_v47, 0.0  ;;  %v2057_v30 = vadd.f32 %v6267_v1, %v6288_v44  ;;  %v2850_v3 = vmax.f32 %v2566_v9, 0.0  ;;  %v2558_v17 = vadd.f32 %v6267_v1, %v6283_v57  ;;  %v6729_v9 = vld [vmem:[#allocation77_spill] sm:$0xff] }
 0x1f3   : > { %3614 = vst.msk [vmem:[%s5813_s30 + $0xc0] sm:$0xf] %vm3565_vm4, %v4124_v6  ;;  %v3210_v29 = vmax.f32 %v3208_v49, %v3209_v60  ;;  %v2049_v39 = vadd.f32 %v6267_v1, %v6298_v19  ;;  %v4127_v10 = vpack.c.bf16 %v3224_v40, %v3224_v40  ;;  %v3240_v26 = vsel %vm2860_vm3, %v2722_v42, -inf  ;;  %v6728_v49 = vld [vmem:[#allocation76_spill] sm:$0xff] }
 0x1f4   : > { %v3226_v25 = vsel %vm2860_vm3, %v2720_v27, -inf  ;;  %v2723_v7 = vmax.f32 %v2057_v30, 0.0  ;;  %v3241_v44 = vmax.f32 %v6723_v36, %v3240_v26  ;;  %v3244_v11 = vsel %vm2860_vm3, %v2850_v3, -inf }
 0x1f5   : > { %v4125_v33 = vpack.c.bf16 %v3210_v29, %v3210_v29  ;;  %v3227_v50 = vmax.f32 %v6724_v48, %v3226_v25  ;;  %3617 = vst.msk [vmem:[%s5813_s30 + $0xcc] sm:$0xf] %vm3565_vm4, %v4127_v10  ;;  %v2848_v34 = vmax.f32 %v2558_v17, 0.0  ;;  %v2721_v0 = vmax.f32 %v2049_v39, 0.0  ;;  %v6730_v39 = vld [vmem:[#allocation78_spill] sm:$0xff] }
 0x1f6   : > { %v3247_v57 = vsel %vm2860_vm3, %v2723_v7, -inf  ;;  %v2569_v19 = vadd.f32 %v6267_v1, %v6290_v4  ;;  %v3243_v2 = vmax.f32 %v3241_v44, %v6725_v45  ;;  %v2561_v23 = vadd.f32 %v6267_v1, %v6300_v12 }
 0x1f7   : > { %3615 = vst.msk [vmem:[%s5813_s30 + $0xc4] sm:$0xf] %vm3565_vm4, %v4125_v33  ;;  %v3248_v61 = vmax.f32 %v6726_v59, %v3247_v57  ;;  %v3229_v37 = vmax.f32 %v3227_v50, %v6727_v32  ;;  %v3230_v46 = vsel %vm2860_vm3, %v2848_v34, -inf  ;;  %v3233_v16 = vsel %vm2860_vm3, %v2721_v0, -inf }
 0x1f8   : > { %v2851_v47 = vmax.f32 %v2569_v19, 0.0  ;;  %v2070_v6 = vadd.f32 %v6267_v1, %v6320_v38  ;;  %v3245_v4 = vmax.f32 %v3243_v2, %v3244_v11  ;;  %v3234_v60 = vmax.f32 %v6728_v49, %v3233_v16 }
 0x1f9   : > { %v3231_v5 = vmax.f32 %v3229_v37, %v3230_v46  ;;  %v3250_v40 = vmax.f32 %v3248_v61, %v6729_v9  ;;  %v2849_v27 = vmax.f32 %v2561_v23, 0.0  ;;  %v2062_v30 = vadd.f32 %v6267_v1, %v6330_v58 }
 0x1fa   : > { %v3251_v42 = vsel %vm2860_vm3, %v2851_v47, -inf  ;;  %v2726_v12 = vmax.f32 %v2070_v6, 0.0  ;;  %v4130_v29 = vpack.c.bf16 %v3245_v4, %v3245_v4  ;;  %v3236_v38 = vmax.f32 %v3234_v60, %v6730_v39 }
 0x1fb   : > { %v4128_v3 = vpack.c.bf16 %v3231_v5, %v3231_v5  ;;  %v3252_v17 = vmax.f32 %v3250_v40, %v3251_v42  ;;  %v3237_v10 = vsel %vm2860_vm3, %v2849_v27, -inf  ;;  %v2724_v25 = vmax.f32 %v2062_v30, 0.0 }
 0x1fc   : > { %v3268_v26 = vsel %vm2860_vm3, %v2726_v12, -inf  ;;  %v2582_v7 = vadd.f32 %v6267_v1, %v6322_v13  ;;  %3620 = vst.msk [vmem:[%s5813_s30 + $0xd8] sm:$0xf] %vm3565_vm4, %v4130_v29  ;;  %v3238_v58 = vmax.f32 %v3236_v38, %v3237_v10  ;;  %v2073_v44 = vadd.f32 %v6267_v1, %v6336_v62  ;;  %v6731_v29 = vld [vmem:[#allocation81_spill] sm:$0xff] }
 0x1fd   : > { %3618 = vst.msk [vmem:[%s5813_s30 + $0xd0] sm:$0xf] %vm3565_vm4, %v4128_v3  ;;  %v4131_v33 = vpack.c.bf16 %v3252_v17, %v3252_v17  ;;  %v3269_v36 = vmax.f32 %v5731_v51, %v3268_v26  ;;  %v3254_v48 = vsel %vm2860_vm3, %v2724_v25, -inf  ;;  %v2574_v11 = vadd.f32 %v6267_v1, %v6332_v63  ;;  %v6732_v3 = vld [vmem:[#allocation82_spill] sm:$0xff]  ;;  %v6733_v26 = vld [vmem:[#allocation83_spill] sm:$0xff] }
 0x1fe   : > { %v2854_v50 = vmax.f32 %v2582_v7, 0.0  ;;  %v2065_v13 = vadd.f32 %v6267_v1, %v6343_v41  ;;  %v4129_v57 = vpack.c.bf16 %v3238_v58, %v3238_v58  ;;  %v3255_v34 = vmax.f32 %v5740_v14, %v3254_v48  ;;  %v6734_v7 = vld [vmem:[#allocation85_spill] sm:$0xff]  ;;  %v6735_v58 = vld [vmem:[#allocation84_spill] sm:$0xff]  ;;  %v6736_v48 = vld [vmem:[#allocation79_spill] sm:$0xff] }
 0x1ff   : > { %3621 = vst.msk [vmem:[%s5813_s30 + $0xdc] sm:$0xf] %vm3565_vm4, %v4131_v33  ;;  %v3271_v0 = vmax.f32 %v3269_v36, %v5734_v28  ;;  %v2727_v51 = vmax.f32 %v2073_v44, 0.0  ;;  %v2852_v62 = vmax.f32 %v2574_v11, 0.0  ;;  %v2585_v2 = vadd.f32 %v6267_v1, %v6338_v55 }
 0x200   : > { %v3272_v19 = vsel %vm2860_vm3, %v2854_v50, -inf  ;;  %v2725_v45 = vmax.f32 %v2065_v13, 0.0  ;;  %3619 = vst.msk [vmem:[%s5813_s30 + $0xd4] sm:$0xf] %vm3565_vm4, %v4129_v57  ;;  %v3257_v59 = vmax.f32 %v3255_v34, %v5743_v24  ;;  %v2577_v14 = vadd.f32 %v6267_v1, %v6345_v35 }
 0x201   : > { %v3273_v63 = vmax.f32 %v3271_v0, %v3272_v19  ;;  %v3275_v41 = vsel %vm2860_vm3, %v2727_v51, -inf  ;;  %v3258_v61 = vsel %vm2860_vm3, %v2852_v62, -inf  ;;  %v2855_v37 = vmax.f32 %v2585_v2, 0.0  ;;  %v6738_v19 = vld [vmem:[#allocation86_spill] sm:$0xff] }
 0x202   : > { %v3276_v28 = vmax.f32 %v5749_v15, %v3275_v41  ;;  %v3261_v32 = vsel %vm2860_vm3, %v2725_v45, -inf  ;;  %v3259_v55 = vmax.f32 %v3257_v59, %v3258_v61  ;;  %v2853_v16 = vmax.f32 %v2577_v14, 0.0  ;;  %v6739_v45 = vld [vmem:[#allocation80_spill] sm:$0xff] }
 0x203   : > { %v4134_v23 = vpack.c.bf16 %v3273_v63, %v3273_v63  ;;  %v3262_v46 = vmax.f32 %v5752_v31, %v3261_v32  ;;  %v3279_v24 = vsel %vm2860_vm3, %v2855_v37, -inf  ;;  %v2086_v35 = vadd.f32 %v6267_v1, %v6368_v56 }
 0x204   : > { %v3278_v47 = vmax.f32 %v3276_v28, %v5755_v21  ;;  %v2078_v15 = vadd.f32 %v6267_v1, %v6373_v43  ;;  %v4132_v6 = vpack.c.bf16 %v3259_v55, %v3259_v55  ;;  %v3265_v5 = vsel %vm2860_vm3, %v2853_v16, -inf }
 0x205   : > { %3624 = vst.msk [vmem:[%s5813_s30 + $0xe8] sm:$0xf] %vm3565_vm4, %v4134_v23  ;;  %v3264_v4 = vmax.f32 %v3262_v46, %v5758_v53  ;;  %v2598_v31 = vadd.f32 %v6267_v1, %v6370_v22  ;;  %v2730_v21 = vmax.f32 %v2086_v35, 0.0  ;;  %v2089_v56 = vadd.f32 %v6267_v1, %v6381_v8 }
 0x206   : > { %v3280_v49 = vmax.f32 %v3278_v47, %v3279_v24  ;;  %v2728_v60 = vmax.f32 %v2078_v15, 0.0  ;;  %3622 = vst.msk [vmem:[%s5813_s30 + $0xe0] sm:$0xf] %vm3565_vm4, %v4132_v6  ;;  %v2590_v53 = vadd.f32 %v6267_v1, %v6375_v18  ;;  %v2081_v40 = vadd.f32 %v6267_v1, %v6392_v52 }
 0x207   : > { %v3266_v43 = vmax.f32 %v3264_v4, %v3265_v5  ;;  %v2858_v9 = vmax.f32 %v2598_v31, 0.0  ;;  %v3296_v22 = vsel %vm2860_vm3, %v2730_v21, -inf  ;;  %v2731_v12 = vmax.f32 %v2089_v56, 0.0 }
 0x208   : > { %v4135_v42 = vpack.c.bf16 %v3280_v49, %v3280_v49  ;;  %v3282_v27 = vsel %vm2860_vm3, %v2728_v60, -inf  ;;  %v3297_v8 = vmax.f32 %v6731_v29, %v3296_v22  ;;  %v2856_v38 = vmax.f32 %v2590_v53, 0.0 }
 0x209   : > { %v4133_v30 = vpack.c.bf16 %v3266_v43, %v3266_v43  ;;  %v3283_v17 = vmax.f32 %v6732_v3, %v3282_v27  ;;  %v3300_v39 = vsel %vm2860_vm3, %v2858_v9, -inf  ;;  %v3303_v18 = vsel %vm2860_vm3, %v2731_v12, -inf }
 0x20a   : > { %3625 = vst.msk [vmem:[%s5813_s30 + $0xec] sm:$0xf] %vm3565_vm4, %v4135_v42  ;;  %v2729_v10 = vmax.f32 %v2081_v40, 0.0  ;;  %v2601_v52 = vadd.f32 %v6267_v1, %v6383_v54  ;;  %v3299_v25 = vmax.f32 %v3297_v8, %v6733_v26  ;;  %v3304_v33 = vmax.f32 %v6734_v7, %v3303_v18 }
 0x20b   : > { %3623 = vst.msk [vmem:[%s5813_s30 + $0xe4] sm:$0xf] %vm3565_vm4, %v4133_v30  ;;  %v3285_v36 = vmax.f32 %v3283_v17, %v6735_v58  ;;  %v2593_v44 = vadd.f32 %v6267_v1, %v6394_v20  ;;  %v6737_v50 = vmax.f32 %v6736_v48, 0.0  ;;  %v3286_v13 = vsel %vm2860_vm3, %v2856_v38, -inf }
 0x20c   : > { %v3289_v54 = vsel %vm2860_vm3, %v2729_v10, -inf  ;;  %v2859_v57 = vmax.f32 %v2601_v52, 0.0  ;;  %v3301_v34 = vmax.f32 %v3299_v25, %v3300_v39  ;;  %v3306_v62 = vmax.f32 %v3304_v33, %v6738_v19 }
 0x20d   : > { %v3288_v11 = vsel %vm2860_vm3, %v6737_v50, -inf  ;;  %v3287_v0 = vmax.f32 %v3285_v36, %v3286_v13  ;;  %v6740_v1 = vmax.f32 %v6739_v45, 0.0  ;;  %v2857_v63 = vmax.f32 %v2593_v44, 0.0 }
 0x20e   : > { %v3290_v51 = vmax.f32 %v3288_v11, %v3289_v54  ;;  %v3307_v2 = vsel %vm2860_vm3, %v2859_v57, -inf  ;;  %v4138_v41 = vpack.c.bf16 %v3301_v34, %v3301_v34 }
 0x20f   : > { %v3291_v20 = vsel %vm2860_vm3, %v6740_v1, -inf  ;;  %v4136_v59 = vpack.c.bf16 %v3287_v0, %v3287_v0  ;;  %v3308_v14 = vmax.f32 %v3306_v62, %v3307_v2  ;;  %v3293_v61 = vsel %vm2860_vm3, %v2857_v63, -inf }
 0x210   : > { %v3292_v28 = vmax.f32 %v3290_v51, %v3291_v20  ;;  %3628 = vst.msk [vmem:[%s5813_s30 + $0xf8] sm:$0xf] %vm3565_vm4, %v4138_v41 }
 0x211   : > { %3626 = vst.msk [vmem:[%s5813_s30 + $0xf0] sm:$0xf] %vm3565_vm4, %v4136_v59  ;;  %v4139_v32 = vpack.c.bf16 %v3308_v14, %v3308_v14 }
 0x212   : > { %v3294_v37 = vmax.f32 %v3292_v28, %v3293_v61 }
 0x213   : > { %3629 = vst.msk [vmem:[%s5813_s30 + $0xfc] sm:$0xf] %vm3565_vm4, %v4139_v32 }
 0x214   : > { %v4137_v23 = vpack.c.bf16 %v3294_v37, %v3294_v37 }
 0x216   : > { %3627 = vst.msk [vmem:[%s5813_s30 + $0xf4] sm:$0xf] %vm3565_vm4, %v4137_v23 }
 0x217 PF: > { %s13_s14 = sadd.s32 1, %s4707_s14   ;;  %s6741_s12 = smov %s4703_s13 }
 0x218   : > { %p10_p5 = scmp.ge.s32.totalorder %s13_s14, 4   ;;  %s6742_s13 = smov %s6744_s15 }
 0x21a   :  { %12 = sbr.rel (!%p10_p5) target bundleno = 2 (0x2), region = 68 }

// kernel: multibranch_forward.10
= control target key start
LH: loop header
LB: loop body
LE: loop exit
PB: predicated region body
PF: predicated region fallthrough
CT: control target
= control target key end

     0   :  { %vm16_vm0 = vcmask 519168   ;;  %vm90_vm1 = vcmask 1041409   ;;  %vm92_vm2 = vcmask 1042434   ;;  %vm94_vm3 = vcmask 1043459   ;;  %s159_s0 = inlined_call_operand.vmem [shape: f32[8,4,64], index: 0, kind: input, shape index: {}]   ;;  %s160_s1 = inlined_call_operand.vmem [shape: f32[8,64], index: 1, kind: output, shape index: {}]  }
   0x1   :  { %v8_v0 = vld [vmem:[%s159_s0] sm:$0xf]  ;;  %v9_v1 = vld [vmem:[%s159_s0 + $0x4] sm:$0xf]  ;;  %v10_v2 = vld [vmem:[%s159_s0 + $0x8] sm:$0xf] }
   0x2   :  { %v11_v3 = vld [vmem:[%s159_s0 + $0xc] sm:$0xf]  ;;  %v12_v4 = vld [vmem:[%s159_s0 + $0x10] sm:$0xf]  ;;  %v13_v5 = vld [vmem:[%s159_s0 + $0x14] sm:$0xf] }
   0x3   :  { %v14_v6 = vld [vmem:[%s159_s0 + $0x18] sm:$0xf]  ;;  %v17_v7 = vsel %vm16_vm0, %v8_v0, 0.0  ;;  %v24_v8 = vsel %vm16_vm0, %v9_v1, 0.0  ;;  %v15_v9 = vld [vmem:[%s159_s0 + $0x1c] sm:$0xf] }
   0x4   :  { %v18_v10 = vrot.slane %v17_v7, 4  ;;  %v25_v11 = vrot.slane %v24_v8, 4  ;;  %v31_v12 = vsel %vm16_vm0, %v10_v2, 0.0  ;;  %v38_v13 = vsel %vm16_vm0, %v11_v3, 0.0 }
   0x5   :  { %v32_v14 = vrot.slane %v31_v12, 4  ;;  %v39_v15 = vrot.slane %v38_v13, 4  ;;  %v45_v16 = vsel %vm16_vm0, %v12_v4, 0.0  ;;  %v52_v17 = vsel %vm16_vm0, %v13_v5, 0.0 }
   0x6   :  { %v19_v18 = vadd.f32 %v18_v10, %v17_v7  ;;  %v26_v19 = vadd.f32 %v25_v11, %v24_v8  ;;  %v46_v20 = vrot.slane %v45_v16, 4  ;;  %v53_v21 = vrot.slane %v52_v17, 4 }
   0x7   :  { %v33_v22 = vadd.f32 %v32_v14, %v31_v12  ;;  %v40_v23 = vadd.f32 %v39_v15, %v38_v13  ;;  %v59_v24 = vsel %vm16_vm0, %v14_v6, 0.0  ;;  %v66_v25 = vsel %vm16_vm0, %v15_v9, 0.0 }
   0x8   :  { %v20_v26 = vrot.slane %v19_v18, 2  ;;  %v27_v27 = vrot.slane %v26_v19, 2  ;;  %v47_v28 = vadd.f32 %v46_v20, %v45_v16  ;;  %v54_v29 = vadd.f32 %v53_v21, %v52_v17 }
   0x9   :  { %v34_v30 = vrot.slane %v33_v22, 2  ;;  %v41_v31 = vrot.slane %v40_v23, 2  ;;  %v60_v32 = vrot.slane %v59_v24, 4  ;;  %v67_v33 = vrot.slane %v66_v25, 4 }
   0xa   :  { %v21_v34 = vadd.f32 %v20_v26, %v19_v18  ;;  %v28_v35 = vadd.f32 %v27_v27, %v26_v19  ;;  %v48_v36 = vrot.slane %v47_v28, 2  ;;  %v55_v37 = vrot.slane %v54_v29, 2 }
   0xb   :  { %v35_v38 = vadd.f32 %v34_v30, %v33_v22  ;;  %v42_v39 = vadd.f32 %v41_v31, %v40_v23  ;;  %v61_v40 = vadd.f32 %v60_v32, %v59_v24  ;;  %v68_v41 = vadd.f32 %v67_v33, %v66_v25 }
   0xc   :  { %v22_v42 = vrot.slane %v21_v34, 1  ;;  %v29_v43 = vrot.slane %v28_v35, 1  ;;  %v49_v44 = vadd.f32 %v48_v36, %v47_v28  ;;  %v56_v45 = vadd.f32 %v55_v37, %v54_v29 }
   0xd   :  { %v36_v46 = vrot.slane %v35_v38, 1  ;;  %v43_v47 = vrot.slane %v42_v39, 1  ;;  %v62_v48 = vrot.slane %v61_v40, 2  ;;  %v69_v49 = vrot.slane %v68_v41, 2 }
   0xe   :  { %v23_v50 = vadd.f32 %v22_v42, %v21_v34  ;;  %v30_v51 = vadd.f32 %v29_v43, %v28_v35  ;;  %v50_v52 = vrot.slane %v49_v44, 1  ;;  %v57_v53 = vrot.slane %v56_v45, 1 }
   0xf   :  { %v37_v54 = vadd.f32 %v36_v46, %v35_v38  ;;  %v44_v55 = vadd.f32 %v43_v47, %v42_v39  ;;  %v63_v56 = vadd.f32 %v62_v48, %v61_v40  ;;  %v70_v57 = vadd.f32 %v69_v49, %v68_v41 }
  0x10   :  { %v51_v58 = vadd.f32 %v50_v52, %v49_v44  ;;  %v58_v59 = vadd.f32 %v57_v53, %v56_v45  ;;  %v74_v60 = vmul.f32 0.25, %v23_v50  ;;  %v75_v61 = vmul.f32 0.25, %v30_v51 }
  0x11   :  { %v64_v62 = vrot.slane %v63_v56, 1  ;;  %v71_v63 = vrot.slane %v70_v57, 1  ;;  %v76_v0 = vmul.f32 0.25, %v37_v54  ;;  %v77_v1 = vmul.f32 0.25, %v44_v55 }
  0x12   :  { %v78_v2 = vmul.f32 0.25, %v51_v58  ;;  %v79_v3 = vmul.f32 0.25, %v58_v59  ;;  %v91_v4 = vsel %vm90_vm1, %v75_v61, %v74_v60  ;;  %vm96_vm4 = vcmask 1044484  }
  0x13   :  { %v65_v5 = vadd.f32 %v64_v62, %v63_v56  ;;  %v72_v6 = vadd.f32 %v71_v63, %v70_v57  ;;  %v93_v7 = vsel %vm92_vm2, %v76_v0, %v91_v4  ;;  %vm98_vm5 = vcmask 1045509  }
  0x14   :  { %v95_v8 = vsel %vm94_vm3, %v77_v1, %v93_v7  ;;  %vm100_vm6 = vcmask 1046534   ;;  %vm102_vm7 = vcmask 1047559   ;;  %vm105_vm8 = vcmask 523264  }
  0x15   :  { %v80_v9 = vmul.f32 0.25, %v65_v5  ;;  %v81_v10 = vmul.f32 0.25, %v72_v6  ;;  %v97_v11 = vsel %vm96_vm4, %v78_v2, %v95_v8 }
  0x16   :  { %v99_v12 = vsel %vm98_vm5, %v79_v3, %v97_v11 }
  0x17   :  { %v101_v13 = vsel %vm100_vm6, %v80_v9, %v99_v12 }
  0x18   :  { %v103_v14 = vsel %vm102_vm7, %v81_v10, %v101_v13 }
  0x19   :  { %106 = vst.msk [vmem:[%s160_s1] sm:$0xff] %vm105_vm8, %v103_v14 }

// kernel: multibranch_forward.9
= control target key start
LH: loop header
LB: loop body
LE: loop exit
PB: predicated region body
PF: predicated region fallthrough
CT: control target
= control target key end

     0   :  { %s784_s12 = smov 0   ;;  %s786_s13 = smov 0   ;;  %s849_s0 = inlined_call_operand.vmem [shape: bf16[3,1,16,288], index: 0, kind: input, shape index: {}]   ;;  %s850_s1 = inlined_call_operand.vmem [shape: bf16[3,288,64], index: 1, kind: input, shape index: {}]   ;;  %s851_s2 = inlined_call_operand.vmem [shape: f32[3,1,64], index: 2, kind: input, shape index: {}]   ;;  %s852_s3 = inlined_call_operand.vmem [shape: f32[3,16,64], index: 3, kind: output, shape index: {}]  }
   0x1   :  { %s788_s14 = smov 0  }
   0x2 LB: > { %s25_s15 = sadd.s32 1, %s756_s13  ;;  %p624_p0 = scmp.ge.s32.totalorder %s760_s14, 1  ;;  %s760_s14 = sphi %s788_s14, %s13_s14   ;;  %s756_s13 = sphi %s786_s13, %s854_s13   ;;  %s752_s12 = sphi %s784_s12, %s853_s12  }
   0x3   : > { %p27_p1 = scmp.ge.s32.totalorder %s25_s15, 3  ;;  %p177_p2 = scmp.lt.s32.totalorder %s760_s14, 4 }
   0x5   : > { %s856_s15 = smov (%p27_p1, %s25_s15), 0  ;;  %p178_p3 = pnand %p624_p0, %p177_p2 }
   0x6   : > { %p219_p4 = scmp.lt.s32.totalorder (!%p178_p3), %s752_s12, 2  ;;  %v762_v0 = vmov (!%p178_p3), 0.0   ;;  %vm763_vm0 = vmmov (!%p178_p3), 0   ;;  %vm418_vm1 = vcmask (!%p178_p3), 261120   ;;  %vm506_vm2 = vcmask (!%p178_p3), 523264  }
   0x7   : > { %181 = sbr.rel (%p178_p3) target bundleno = 275 (0x113), region = 32  ;;  %680 = vmatprep.subr.bf16.mxu1 (!%p178_p3), %v762_v0  ;;  %684 = vmatprep.mubr.msk.bf16.mxu1 (!%p178_p3), %vm763_vm0, %v762_v0 }
   0xe   : > { %s858_s12 = smov (!%p219_p4, %s752_s12), 2 }
   0xf   : > { %s689_s16 = smul.u32 144, %s858_s12  ;;  %s236_s26 = scalar_lea.vmem %s851_s2, %s858_s12 }
  0x10   : > { %s688_s20 = smul.u32 24, %s858_s12  ;;  %v629_v28 = vld [vmem:[%s236_s26] ss:$0 sm:$0xff]  ;;  %s654_s27 = sshll.u32 %s858_s12, 4 }
  0x11   : > { %s808_s19 = scalar_lea.vmem %s850_s1, %s689_s16  ;;  %s245_s30 = scalar_lea.vmem %s852_s3, %s654_s27 }
  0x12   : > { %v716_v1 = vld [vmem:[%s808_s19 + $0x40] sm:$0xff]   ;;  %v718_v3 = vld [vmem:[%s808_s19 + $0x48] sm:$0xff]   ;;  %v720_v5 = vld [vmem:[%s808_s19 + $0x50] sm:$0xff]   ;;  %s227_s23 = scalar_lea.vmem %s849_s0, %s688_s20 }
  0x13   : > { %v717_v2 = vld [vmem:[%s808_s19] sm:$0xff]   ;;  %655 = vmatprep.subr.bf16.mxu0 %v716_v1  ;;  %v719_v4 = vld [vmem:[%s808_s19 + $0x8] sm:$0xff]   ;;  %v721_v6 = vld [vmem:[%s808_s19 + $0x10] sm:$0xff]  }
  0x14   : > { %656 = vmatpush3.bf16.msra.mxu0 %v717_v2  ;;  %v722_v7 = vld [vmem:[%s808_s19 + $0x58] sm:$0xff]   ;;  %v724_v9 = vld [vmem:[%s808_s19 + $0x60] sm:$0xff]   ;;  %v726_v12 = vld [vmem:[%s808_s19 + $0x68] sm:$0xff]  }
  0x15   : > { %657 = vmatprep.subr.bf16.mxu0 %v718_v3  ;;  %v723_v8 = vld [vmem:[%s808_s19 + $0x18] sm:$0xff]   ;;  %v730_v10 = vld [vmem:[%s808_s19 + $0x80] sm:$0xff]   ;;  %v727_v13 = vld [vmem:[%s808_s19 + $0x28] sm:$0xff]  }
  0x16   : > { %v725_v11 = vld [vmem:[%s808_s19 + $0x20] sm:$0xff]   ;;  %681 = vmatpush3.bf16.msra.mxu1 %v730_v10  ;;  %v736_v15 = vld [vmem:[%s808_s19 + $0x88] sm:$0xff]   ;;  %v728_v16 = vld [vmem:[%s808_s19 + $0x70] sm:$0xff]  }
  0x17   : > { %682 = vmatprep.subr.bf16.mxu1 %v762_v0  ;;  %v735_v14 = vld [vmem:[%s227_s23 + $0x4] ss:$12 sps:$4 sm:$0xff]   ;;  %v737_v17 = vld [vmem:[%s227_s23 + $0x8] ss:$12 sps:$4 sm:$0xff]   ;;  %v731_v19 = vld [vmem:[%s808_s19 + $0x78] sm:$0xff]  }
  0x18   : > { %658 = vmatpush3.bf16.msra.mxu0 %v719_v4  ;;  %454 = vmatprep.mubr.bf16.mxu0 %v735_v14  ;;  %v729_v18 = vld [vmem:[%s808_s19 + $0x30] sm:$0xff]   ;;  %v732_v20 = vld [vmem:[%s808_s19 + $0x38] sm:$0xff]   ;;  %v733_v21 = vld [vmem:[%s227_s23] ss:$12 sps:$4 sm:$0xff]  }
  0x19   : > { %659 = vmatprep.subr.bf16.mxu0 %v720_v5 }
  0x1a   : > { %683 = vmatpush3.bf16.msra.mxu1 %v736_v15 }
  0x1c   : > { %660 = vmatpush3.bf16.msra.mxu0 %v721_v6 }
  0x1d   : > { %661 = vmatprep.subr.bf16.mxu0 %v722_v7  ;;  %685 = vmatmul.mubr.msk.bf16.vlgmr.msra.gmra.mrb[0].mxu1 %vm418_vm1, %v737_v17 }
  0x20   : > { %662 = vmatpush3.bf16.msra.mxu0 %v723_v8 }
  0x21   : > { %663 = vmatprep.subr.bf16.mxu0 %v724_v9 }
  0x24   : > { %664 = vmatpush3.bf16.msra.mxu0 %v725_v11 }
  0x25   : > { %665 = vmatprep.subr.bf16.mxu0 %v726_v12 }
  0x28   : > { %666 = vmatpush3.bf16.msra.mxu0 %v727_v13 }
  0x29   : > { %667 = vmatprep.subr.bf16.mxu0 %v728_v16 }
  0x2c   : > { %668 = vmatpush3.bf16.msra.mxu0 %v729_v18 }
  0x2d   : > { %669 = vmatprep.subr.bf16.mxu0 %v731_v19 }
  0x30   : > { %670 = vmatpush3.bf16.msra.mxu0 %v732_v20 }
  0x33   : > { %455 = vmatmul.mubr.bf16.vlgmr.msra.gmra.mrb[0].mxu0 %v733_v21 }
  0xf0   : > { %v497_v22 = vpop.f32.mrb[0].mxu1 }
  0xf1   : > { %v686_v23 = vpop.f32.mrb[1].mxu1 }
  0xf2   : > { %v500_v24 = vpop.f32.mrb[2].mxu1 }
  0xf3   : > { %v687_v25 = vpop.f32.mrb[3].mxu1 }
 0x106   : > { %v671_v26 = vpop.f32.mrb[0].mxu0 }
 0x107   : > { %v672_v27 = vpop.f32.mrb[1].mxu0 }
 0x108   : > { %v673_v29 = vadd.f32 %v672_v27, %v671_v26  ;;  %v674_v30 = vpop.f32.mrb[2].mxu0 }
 0x109   : > { %v675_v31 = vpop.f32.mrb[3].mxu0 }
 0x10a   : > { %v457_v32 = vadd.f32 %v673_v29, %v629_v28  ;;  %v676_v33 = vadd.f32 %v675_v31, %v674_v30 }
 0x10c   : > { %v498_v34 = vadd.f32 %v497_v22, %v457_v32  ;;  %v460_v35 = vadd.f32 %v676_v33, %v629_v28 }
 0x10e   : > { %v504_v36 = vmax.f32 %v498_v34, 0.0  ;;  %v501_v37 = vadd.f32 %v500_v24, %v460_v35 }
 0x110   : > { %507 = vst.msk [vmem:[%s245_s30] sm:$0xff] %vm506_vm2, %v504_v36  ;;  %v505_v38 = vmax.f32 %v501_v37, 0.0 }
 0x112   : > { %508 = vst.msk [vmem:[%s245_s30 + $0x8] sm:$0xff] %vm506_vm2, %v505_v38 }
 0x113 PF: > { %s13_s14 = sadd.s32 1, %s760_s14   ;;  %s853_s12 = smov %s756_s13 }
 0x114   : > { %p10_p5 = scmp.ge.s32.totalorder %s13_s14, 5   ;;  %s854_s13 = smov %s856_s15 }
 0x116   :  { %12 = sbr.rel (!%p10_p5) target bundleno = 2 (0x2), region = 68 }

// kernel: multibranch_forward.11
= control target key start
LH: loop header
LB: loop body
LE: loop exit
PB: predicated region body
PF: predicated region fallthrough
CT: control target
= control target key end

     0   :  { %v527_v3 = vmov 0.0|0.0   ;;  %vm69_vm0 = vcmask 523264   ;;  %s772_s0 = inlined_call_operand.vmem [shape: f32[2,192], index: 0, kind: input, shape index: {}]   ;;  %s773_s1 = inlined_call_operand.vmem [shape: f32[192,128], index: 1, kind: input, shape index: {}]   ;;  %s774_s2 = inlined_call_operand.vmem [shape: f32[1,128], index: 2, kind: input, shape index: {}]   ;;  %s775_s3 = inlined_call_operand.vmem [shape: f32[128,64], index: 3, kind: input, shape index: {}]   ;;  %s776_s4 = inlined_call_operand.vmem [shape: f32[1,64], index: 4, kind: input, shape index: {}]   ;;  %s777_s5 = inlined_call_operand.vmem [shape: f32[64,5], index: 5, kind: input, shape index: {}]   ;;  %s778_s6 = inlined_call_operand.vmem [shape: f32[1,5], index: 6, kind: input, shape index: {}]   ;;  %s779_s7 = inlined_call_operand.hbm [shape: f32[2,5], index: 7, kind: output, shape index: {}]  }
   0x1   :  { %v28_v0 = vld [vmem:[%s773_s1] sm:$0xff]  ;;  %v29_v1 = vld [vmem:[%s773_s1 + $0x8] sm:$0xff]  ;;  %v30_v2 = vld [vmem:[%s773_s1 + $0x10] sm:$0xff]  ;;  %427 = vmatprep.subr.bf16.mxu0 %v527_v3  ;;  %463 = vmatprep.subr.bf16.mxu1 %v527_v3 }
   0x2   :  { %v428_v4 = vpack.c.bf16 %v29_v1, %v28_v0  ;;  %v31_v5 = vld [vmem:[%s773_s1 + $0x18] sm:$0xff]  ;;  %v32_v7 = vld [vmem:[%s773_s1 + $0x20] sm:$0xff]  ;;  %v33_v8 = vld [vmem:[%s773_s1 + $0x28] sm:$0xff] }
   0x3   :  { %v431_v6 = vpack.c.bf16 %v31_v5, %v30_v2  ;;  %v434_v9 = vpack.c.bf16 %v33_v8, %v32_v7  ;;  %v34_v10 = vld [vmem:[%s773_s1 + $0x30] sm:$0xff]  ;;  %v35_v11 = vld [vmem:[%s773_s1 + $0x38] sm:$0xff]  ;;  %v602_v12 = vld.sshfl [vmem:[%s772_s0] sm:$0x33 pattern:$0x76325410] }
   0x4   :  { %429 = vmatpush1.bf16.msra.mxu0 %v428_v4  ;;  %v143_v13 = vld [vmem:[%s775_s3] sm:$0xff]  ;;  %v144_v14 = vld [vmem:[%s775_s3 + $0x8] sm:$0xff]  ;;  %v67_v15 = vcombine.high %v602_v12, %v602_v12  ;;  %v145_v17 = vld [vmem:[%s775_s3 + $0x10] sm:$0xff]  ;;  %v437_v19 = vpack.c.bf16 %v35_v11, %v34_v10 }
   0x5   :  { %430 = vmatprep.subr.bf16.mxu0 %v527_v3  ;;  %v464_v16 = vpack.c.bf16 %v144_v14, %v143_v13  ;;  %v146_v18 = vld [vmem:[%s775_s3 + $0x18] sm:$0xff]  ;;  %v36_v20 = vld [vmem:[%s773_s1 + $0x40] sm:$0xff]  ;;  %v37_v21 = vld [vmem:[%s773_s1 + $0x48] sm:$0xff] }
   0x6   :  { %343 = vmatprep.mubr.msk.f32.mxu0 %vm69_vm0, %v67_v15  ;;  %v467_v22 = vpack.c.bf16 %v146_v18, %v145_v17  ;;  %v147_v23 = vld [vmem:[%s775_s3 + $0x20] sm:$0xff]  ;;  %v148_v24 = vld [vmem:[%s775_s3 + $0x28] sm:$0xff] }
   0x7   :  { %465 = vmatpush3.bf16.msra.mxu1 %v464_v16 }
   0x8   :  { %432 = vmatpush1.bf16.msra.mxu0 %v431_v6  ;;  %466 = vmatprep.subr.bf16.mxu1 %v527_v3 }
   0x9   :  { %433 = vmatprep.subr.bf16.mxu0 %v527_v3 }
   0xc   :  { %435 = vmatpush1.bf16.msra.mxu0 %v434_v9 }
   0xd   :  { %436 = vmatprep.subr.bf16.mxu0 %v527_v3 }
   0xe   :  { %12 = vsyncpa [#allocation3], 0  ;;  %v440_v25 = vpack.c.bf16 %v37_v21, %v36_v20  ;;  %v38_v26 = vld [vmem:[%s773_s1 + $0x50] sm:$0xff]  ;;  %v39_v27 = vld [vmem:[%s773_s1 + $0x58] sm:$0xff]  ;;  %468 = vmatpush3.bf16.msra.mxu1 %v467_v22  ;;  %v470_v28 = vpack.c.bf16 %v148_v24, %v147_v23  ;;  %vm528_vm1 = vmmov 0   ;;  %v529_v63 = vmov 0.0  }
   0xf   :  { %469 = vmatprep.subr.bf16.mxu1 %v527_v3  ;;  %v149_v29 = vld [vmem:[%s775_s3 + $0x30] sm:$0xff]  ;;  %v150_v30 = vld [vmem:[%s775_s3 + $0x38] sm:$0xff]  ;;  %v443_v31 = vpack.c.bf16 %v39_v27, %v38_v26  ;;  %v40_v32 = vld [vmem:[%s773_s1 + $0x60] sm:$0xff]  ;;  %405 = vmatprep.mubr.msk.f32.mxu1 %vm528_vm1, %v529_v63  ;;  %s530_s29 = smov [#allocation2]   ;;  %vm325_vm2 = vcmask 33792  }
  0x10   :  { %438 = vmatpush1.bf16.msra.mxu0 %v437_v19  ;;  %v41_v33 = vld [vmem:[%s773_s1 + $0x68] sm:$0xff]  ;;  %v473_v34 = vpack.c.bf16 %v150_v30, %v149_v29  ;;  %v151_v35 = vld [vmem:[%s775_s3 + $0x40] sm:$0xff]  ;;  %v42_v38 = vld [vmem:[%s773_s1 + $0x70] sm:$0xff]  ;;  %s333_s30 = sshll.u32 %s530_s29, 4  ;;  %s334_s30 = int_to_ptr.vmem [resolvable:$true] %s333_s30 }
  0x11   :  { %439 = vmatprep.subr.bf16.mxu0 %v527_v3  ;;  %v152_v36 = vld [vmem:[%s775_s3 + $0x48] sm:$0xff]  ;;  %v446_v37 = vpack.c.bf16 %v41_v33, %v40_v32  ;;  %v43_v39 = vld [vmem:[%s773_s1 + $0x78] sm:$0xff]  ;;  %v153_v41 = vld [vmem:[%s775_s3 + $0x50] sm:$0xff]  ;;  %p508_p1 = scmp.lt.s32.totalorder %s334_s30, %s334_s30 }
  0x12   :  { %471 = vmatpush3.bf16.msra.mxu1 %v470_v28  ;;  %v476_v40 = vpack.c.bf16 %v152_v36, %v151_v35  ;;  %v154_v42 = vld [vmem:[%s775_s3 + $0x58] sm:$0xff]  ;;  %v449_v43 = vpack.c.bf16 %v43_v39, %v42_v38  ;;  %v44_v44 = vld [vmem:[%s773_s1 + $0x80] sm:$0xff]  ;;  %v45_v45 = vld [vmem:[%s773_s1 + $0x88] sm:$0xff] }
  0x13   :  { %472 = vmatprep.subr.bf16.mxu1 %v527_v3  ;;  %v479_v46 = vpack.c.bf16 %v154_v42, %v153_v41  ;;  %v155_v47 = vld [vmem:[%s775_s3 + $0x60] sm:$0xff]  ;;  %v156_v48 = vld [vmem:[%s775_s3 + $0x68] sm:$0xff]  ;;  %v452_v49 = vpack.c.bf16 %v45_v45, %v44_v44  ;;  %v46_v50 = vld [vmem:[%s773_s1 + $0x90] sm:$0xff] }
  0x14   :  { %441 = vmatpush1.bf16.msra.mxu0 %v440_v25  ;;  %v47_v51 = vld [vmem:[%s773_s1 + $0x98] sm:$0xff]  ;;  %v482_v52 = vpack.c.bf16 %v156_v48, %v155_v47  ;;  %v48_v54 = vld [vmem:[%s773_s1 + $0xa0] sm:$0xff]  ;;  %v49_v55 = vld [vmem:[%s773_s1 + $0xa8] sm:$0xff] }
  0x15   :  { %442 = vmatprep.subr.bf16.mxu0 %v527_v3  ;;  %v455_v53 = vpack.c.bf16 %v47_v51, %v46_v50  ;;  %v458_v56 = vpack.c.bf16 %v49_v55, %v48_v54  ;;  %v50_v57 = vld [vmem:[%s773_s1 + $0xb0] sm:$0xff]  ;;  %v51_v58 = vld [vmem:[%s773_s1 + $0xb8] sm:$0xff]  ;;  %v341_v0 = vld [vmem:[%s774_s2] ss:$0 sm:$0xff] }
  0x16   :  { %474 = vmatpush3.bf16.msra.mxu1 %v473_v34  ;;  %v461_v59 = vpack.c.bf16 %v51_v58, %v50_v57  ;;  %v157_v60 = vld [vmem:[%s775_s3 + $0x70] sm:$0xff]  ;;  %v158_v61 = vld [vmem:[%s775_s3 + $0x78] sm:$0xff]  ;;  %v237_v1 = vld [vmem:[%s777_s5] sm:$0xff] }
  0x17   :  { %475 = vmatprep.subr.bf16.mxu1 %v527_v3  ;;  %v485_v62 = vpack.c.bf16 %v158_v61, %v157_v60  ;;  %v238_v2 = vld [vmem:[%s777_s5 + $0x8] sm:$0xff]  ;;  %v239_v9 = vld [vmem:[%s777_s5 + $0x10] sm:$0xff]  ;;  %v240_v10 = vld [vmem:[%s777_s5 + $0x18] sm:$0xff] }
  0x18   :  { %444 = vmatpush1.bf16.msra.mxu0 %v443_v31  ;;  %v488_v7 = vpack.c.bf16 %v238_v2, %v237_v1  ;;  %v491_v11 = vpack.c.bf16 %v240_v10, %v239_v9  ;;  %v242_v13 = vld [vmem:[%s777_s5 + $0x28] sm:$0xff]  ;;  %v243_v15 = vld [vmem:[%s777_s5 + $0x30] sm:$0xff]  ;;  %v244_v16 = vld [vmem:[%s777_s5 + $0x38] sm:$0xff] }
  0x19   :  { %445 = vmatprep.subr.bf16.mxu0 %v527_v3  ;;  %v497_v17 = vpack.c.bf16 %v244_v16, %v243_v15  ;;  %v344_v18 = vld [vmem:[%s776_s4] ss:$0 sm:$0xff] }
  0x1a   :  { %477 = vmatpush3.bf16.msra.mxu1 %v476_v40 }
  0x1b   :  { %478 = vmatprep.subr.bf16.mxu1 %v527_v3 }
  0x1c   :  { %447 = vmatpush1.bf16.msra.mxu0 %v446_v37 }
  0x1d   :  { %448 = vmatprep.subr.bf16.mxu0 %v527_v3 }
  0x1e   :  { %480 = vmatpush3.bf16.msra.mxu1 %v479_v46 }
  0x1f   :  { %481 = vmatprep.subr.bf16.mxu1 %v527_v3 }
  0x20   :  { %450 = vmatpush1.bf16.msra.mxu0 %v449_v43 }
  0x21   :  { %451 = vmatprep.subr.bf16.mxu0 %v527_v3 }
  0x22   :  { %483 = vmatpush3.bf16.msra.mxu1 %v482_v52 }
  0x23   :  { %484 = vmatprep.subr.bf16.mxu1 %v527_v3 }
  0x24   :  { %453 = vmatpush1.bf16.msra.mxu0 %v452_v49 }
  0x25   :  { %454 = vmatprep.subr.bf16.mxu0 %v527_v3 }
  0x26   :  { %486 = vmatpush3.bf16.msra.mxu1 %v485_v62 }
  0x27   :  { %487 = vmatprep.subr.bf16.mxu1 %v527_v3 }
  0x28   :  { %456 = vmatpush1.bf16.msra.mxu0 %v455_v53 }
  0x29   :  { %457 = vmatprep.subr.bf16.mxu0 %v527_v3 }
  0x2c   :  { %459 = vmatpush1.bf16.msra.mxu0 %v458_v56 }
  0x2d   :  { %460 = vmatprep.subr.bf16.mxu0 %v527_v3 }
  0x30   :  { %462 = vmatpush1.bf16.msra.mxu0 %v461_v59 }
  0x33   :  { %137 = vmatmul.mubr.f32.vlgmr.msra.gmra.mrb[0].mxu0 %v602_v12  ;;  %v241_v12 = vld [vmem:[%s777_s5 + $0x20] sm:$0xff]  ;;  %s503_s5 = scalar_lea.vmem %s334_s30, 32 }
  0x34   :  { %v494_v14 = vpack.c.bf16 %v242_v13, %v241_v12  ;;  %p504_p0 = scmp.ne.s32.totalorder %s334_s30, %s503_s5  ;;  %p509_p2 = scmp.lt.s32.totalorder %s503_s5, %s503_s5 }
  0x36   :  { %p510_p3 = por %p509_p2, %p508_p1 }
  0x38   :  { %p511_p4 = pnand %p510_p3, %p504_p0 }
 0x106   :  { %v138_v4 = vpop.f32.mrb[0].mxu0 }
 0x107   :  { %v139_v5 = vadd.f32 %v341_v0, %v138_v4  ;;  %v140_v6 = vpop.f32.mrb[1].mxu0 }
 0x109   :  { %v142_v8 = vmax.f32 %v139_v5, 0.0 }
 0x10b   :  { %406 = vmatmul.mubr.f32.vlgmr.msra.gmra.mrb[0].mxu1 %v142_v8 }
 0x10c   :  { %489 = vmatpush3.bf16.msra.mxu1 %v488_v7  ;;  %424 = vmatprep.mubr.msk.f32.mxu1 %vm528_vm1, %v529_v63 }
 0x10d   :  { %490 = vmatprep.subr.bf16.mxu1 %v527_v3 }
 0x110   :  { %492 = vmatpush3.bf16.msra.mxu1 %v491_v11 }
 0x111   :  { %493 = vmatprep.subr.bf16.mxu1 %v527_v3 }
 0x114   :  { %495 = vmatpush3.bf16.msra.mxu1 %v494_v14 }
 0x115   :  { %496 = vmatprep.subr.bf16.mxu1 %v527_v3  ;;  %v345_v3 = vld [vmem:[%s778_s6] ss:$0 sm:$0xff] }
 0x118   :  { %498 = vmatpush3.bf16.msra.mxu1 %v497_v17 }
 0x1de   :  { %v232_v19 = vpop.f32.mrb[0].mxu1 }
 0x1df   :  { %v233_v20 = vadd.f32 %v344_v18, %v232_v19  ;;  %v407_v21 = vpop.f32.mrb[1].mxu1 }
 0x1e1   :  { %v236_v22 = vmax.f32 %v233_v20, 0.0 }
 0x1e3   :  { %425 = vmatmul.mubr.msk.f32.vlgmr.msra.gmra.mrb[2].mxu1 %vm69_vm0, %v236_v22 }
 0x2b6   :  { %v321_v23 = vpop.f32.mrb[2].mxu1 }
 0x2b7   :  { %v322_v24 = vadd.f32 %v345_v3, %v321_v23  ;;  %v426_v25 = vpop.f32.mrb[3].mxu1 }
 0x2b9   :  { %326 = vst.msk [vmem:[#allocation2] sm:$0x3] %vm325_vm2, %v322_v24 }
 0x2ba   :  { %514 = shalt.err (!%p511_p4)
}
 0x2bb   :  { %s515_s9 = scalar_lea.hbm %s779_s7, 32 }
 0x2bc   :  { %p516_p5 = scmp.ne.s32.totalorder %s779_s7, %s515_s9  ;;  %p519_p6 = scmp.lt.u32.totalorder %s515_s9, %s779_s7 }
 0x2be   :  { %p521_p7 = pnand %p519_p6, %p516_p5 }
 0x2c0   :  { %524 = shalt.err (!%p521_p7)
}
 0x2c1   :  { %336 = dma.vmem_to_hbm [thread:$0]  %s334_s30, 32, %s779_s7, [#allocation3]  }
 0x2c2   :  { %525 = dma.done.wait [#allocation3], 32  }
 0x2c3   :  { %526 = vsyncadd [#allocation3], 4294967264 }
 0x2c4   :  { %340 = vsyncpa [#allocation3], 1 }

</bundles_post_ra>
